<compile_context>
chip_gen: v5e
topology: v5e:2x2
jax: 0.10.0
libtpu: 0.0.40
codegen_flags: <defaults>
</compile_context>

<pallas_src>
import math
from functools import partial

import numpy as np
import jax
import jax.numpy as jnp
from jax import lax
from jax.experimental import pallas as pl
from jax.experimental.pallas import tpu as pltpu


_UNROLL_T = 16   # fully unroll the time loop up to this many steps


# ----------------------------------------------------------------------------
# Fused Pallas kernel: embedded seq -> bi-LSTM x num_layers -> MLP head
# ----------------------------------------------------------------------------
def _make_fused_kernel(T, Bp2, Bc, H, num_layers, compute_dtype):
    """Build the fused forward kernel for one batch chunk (one grid step).

    Ref layout (positional):
      inputs : x (T*Bp2, E) cdt, mask (T*Bp2, Hm) f32,
               per layer l: w_in (IN_l, 8H) cdt, bias (1, 8H) f32,
                            whh (2H, 8H) block-diag  [H < 128]
                                 or (2H, 4H) stacked [H >= 128], cdt
               head: w1 (4H,128), b1, w2 (128,64), b2, w3 (64,32), b3,
                     w4 (32,target), b4   (weights cdt, biases f32)
      outputs: logits (Bp2, target) f32
      scratch: xw (T*Bp2, 8H) f32, sq (T*Bp2, 2H) cdt,
               h (Bp2, 2H) f32, c (Bp2, 2H) f32
    """
    H2, H3, H4 = 2 * H, 3 * H, 4 * H
    cdt = compute_dtype

    def kernel(*refs):
        x_ref, mask_ref = refs[0], refs[1]
        lw = refs[2:2 + 3 * num_layers]
        (w1_ref, b1_ref, w2_ref, b2_ref,
         w3_ref, b3_ref, w4_ref, b4_ref) = refs[2 + 3 * num_layers:10 + 3 * num_layers]
        out_ref = refs[10 + 3 * num_layers]
        xw_ref, sq_ref, h_ref, c_ref = refs[11 + 3 * num_layers:]

        def _cell(g4, c_old):
            # gate order (i, f, o, g): contiguous sigmoid / tanh lane slices
            sg = jax.nn.sigmoid(g4[:, :H3])
            gg = jnp.tanh(g4[:, H3:])
            c_new = sg[:, H:H2] * c_old + sg[:, :H] * gg
            h_new = sg[:, H2:H3] * jnp.tanh(c_new)
            return h_new, c_new

        for l in range(num_layers):
            # ---- invariant loads hoisted out of the time loop ----------------
            w_in = lw[3 * l][...]        # (IN_l, 8H)  [fwd i,f,o,g | bwd i,f,o,g]
            bias = lw[3 * l + 1][...]    # (1, 8H) f32 (b_ih + b_hh folded)
            whh = lw[3 * l + 2][...]     # recurrent weights (layout depends on H)
            split_rec = (whh.shape[1] == H4)   # static: two dots for H >= 128

            if l == 0:
                x_in = x_ref[...]        # (T*Bp2, E) cdt
            else:
                x_in = sq_ref[...]       # (T*Bp2, 2H) cdt (previous layer output)

            # ---- hoisted input projection for the whole sequence (bf16 MXU) --
            xw_ref[...] = (jnp.dot(x_in, w_in, preferred_element_type=jnp.float32)
                           + bias)                                     # f32 gates

            h_ref[...] = jnp.zeros(h_ref.shape, jnp.float32)
            c_ref[...] = jnp.zeros(c_ref.shape, jnp.float32)
            write_seq = (l + 1 < num_layers)   # last layer: only hidden[-1] used

            def step(rf, rb):
                gx_f = xw_ref[pl.ds(rf, Bp2), :]     # (Bp2, 8H) f32 @ time s
                gx_b = xw_ref[pl.ds(rb, Bp2), :]     # (Bp2, 8H) f32 @ time T-1-s
                h_prev = h_ref[...]                  # (Bp2, 2H) f32 [fwd | bwd]
                c_prev = c_ref[...]
                hp_f, hp_b = h_prev[:, :H], h_prev[:, H:]
                cp_f, cp_b = c_prev[:, :H], c_prev[:, H:]

                if split_rec:
                    # two (Bp2,H)x(H,4H) dots: no 50%-zero block-diag work
                    gh_f = jnp.dot(hp_f.astype(cdt), whh[:H],
                                   preferred_element_type=jnp.float32)
                    gh_b = jnp.dot(hp_b.astype(cdt), whh[H:],
                                   preferred_element_type=jnp.float32)
                    g_f = gx_f[:, :H4] + gh_f
                    g_b = gx_b[:, H4:] + gh_b
                else:
                    gh = jnp.dot(h_prev.astype(cdt), whh,
                                 preferred_element_type=jnp.float32)   # (Bp2, 8H)
                    g_f = gx_f[:, :H4] + gh[:, :H4]
                    g_b = gx_b[:, H4:] + gh[:, H4:]

                hf, cf = _cell(g_f, cp_f)
                hb, cb = _cell(g_b, cp_b)

                # pack_padded_sequence: hold state at padded steps (cmp + vselect)
                mf = mask_ref[pl.ds(rf, Bp2), :] > 0.5     # (Bp2, Hm) bool
                mb = mask_ref[pl.ds(rb, Bp2), :] > 0.5
                if mask_ref.shape[1] != H:                 # only when H > 128
                    mf = jnp.broadcast_to(mf[:, :1], (Bp2, H))
                    mb = jnp.broadcast_to(mb[:, :1], (Bp2, H))
                hf = jnp.where(mf, hf, hp_f)
                cf = jnp.where(mf, cf, cp_f)
                hb = jnp.where(mb, hb, hp_b)
                cb = jnp.where(mb, cb, cp_b)

                # slice stores (no concat temp on the serial dependency chain)
                h_ref[:, :H] = hf
                h_ref[:, H:] = hb
                c_ref[:, :H] = cf
                c_ref[:, H:] = cb

                if write_seq:
                    sq_ref[pl.ds(rf, Bp2), :H] = hf.astype(cdt)
                    sq_ref[pl.ds(rb, Bp2), H:] = hb.astype(cdt)

            if T <= _UNROLL_T:
                for s in range(T):
                    step(s * Bp2, (T - 1 - s) * Bp2)
            else:
                def body(s, carry):
                    rf = pl.multiple_of(s * Bp2, 8)
                    rb = pl.multiple_of((T - 1 - s) * Bp2, 8)
                    step(rf, rb)
                    return carry
                lax.fori_loop(0, T, body, 0, unroll=2)

        # ---- fused classifier head (dropout = identity, eval mode) ----------
        hb_all = h_ref[...][:, H:]          # hidden[-1]: last layer, backward dir
        # row i of q = row i+Bc of hb_all -> pairs premise_i with hypothesis_i
        q = jnp.concatenate([hb_all[Bc:], hb_all[:Bc]], axis=0)
        p = hb_all
        feat = jnp.concatenate([p, q, jnp.abs(p - q), p * q], axis=-1).astype(cdt)
        z = jnp.maximum(jnp.dot(feat, w1_ref[...],
                                preferred_element_type=jnp.float32) + b1_ref[...], 0.0)
        z = jnp.maximum(jnp.dot(z.astype(cdt), w2_ref[...],
                                preferred_element_type=jnp.float32) + b2_ref[...], 0.0)
        z = jnp.maximum(jnp.dot(z.astype(cdt), w3_ref[...],
                                preferred_element_type=jnp.float32) + b3_ref[...], 0.0)
        out_ref[...] = (jnp.dot(z.astype(cdt), w4_ref[...],
                                preferred_element_type=jnp.float32) + b4_ref[...])

    return kernel


# ----------------------------------------------------------------------------
# Wrapper: embedding gather + batching glue + single pallas_call (grid = chunks)
# ----------------------------------------------------------------------------
@partial(jax.jit, static_argnames=("num_batch_chunks",))
def lstm_model_forward(packed, premise_ids, hypothesis_ids, premise_len,
                       hypothesis_len, num_batch_chunks=1):
    emb = packed['embedding']                    # f32 (V, E)
    layers = packed['layers']
    head = packed['head']
    num_layers = len(layers)
    cdt = layers[0][0].dtype                     # compute (MXU operand) dtype
    H = layers[0][2].shape[0] // 2
    target = head[6].shape[1]
    B, T = premise_ids.shape
    E = emb.shape[1]

    # ---- batch chunking: grid axis -> dual-TC on v7x, bounded VMEM per chunk
    NC = max(1, min(int(num_batch_chunks), B))
    Bc = -(-B // NC)                             # examples per chunk
    pad_b = NC * Bc - B
    B2c = 2 * Bc                                 # premise + hypothesis per chunk
    Bp2 = max(8, -(-B2c // 8) * 8)               # padded to 8 sublanes
    pad_r = Bp2 - B2c

    def pad_rows(a, n):
        if n == 0:
            return a
        return jnp.concatenate([a, jnp.zeros((n,) + a.shape[1:], a.dtype)], axis=0)

    p_ids = pad_rows(premise_ids, pad_b).reshape(NC, Bc, T)
    h_ids = pad_rows(hypothesis_ids, pad_b).reshape(NC, Bc, T)
    p_len = pad_rows(premise_len.astype(jnp.int32), pad_b).reshape(NC, Bc)
    h_len = pad_rows(hypothesis_len.astype(jnp.int32), pad_b).reshape(NC, Bc)

    ids = jnp.concatenate([p_ids, h_ids,
                           jnp.zeros((NC, pad_r, T), p_ids.dtype)], axis=1)  # (NC,Bp2,T)
    lens = jnp.concatenate([p_len, h_len,
                            jnp.zeros((NC, pad_r), jnp.int32)], axis=1)      # (NC,Bp2)

    # embedding gather + time-major flatten (glue, not the hot path); x in bf16
    x = jnp.take(emb, ids, axis=0).astype(cdt)                   # (NC, Bp2, T, E)
    x = jnp.transpose(x, (0, 2, 1, 3)).reshape(NC * T * Bp2, E)  # row = (c*T+t)*Bp2+b

    # validity mask at lane width min(H, 128) (no full-H broadcast in HBM/VMEM)
    Hm = min(H, 128)
    mask = (jnp.arange(T)[None, :, None] < lens[:, None, :]).astype(jnp.float32)
    mask = jnp.broadcast_to(mask.reshape(NC * T * Bp2, 1), (NC * T * Bp2, Hm))

    kernel = _make_fused_kernel(T, Bp2, Bc, H, num_layers, cdt)
    flat_w = [a for trip in layers for a in trip] + list(head)

    in_specs = ([pl.BlockSpec((T * Bp2, E), lambda i: (i, 0)),
                 pl.BlockSpec((T * Bp2, Hm), lambda i: (i, 0))]
                + [pl.BlockSpec(a.shape, lambda i: (0, 0)) for a in flat_w])
    out_spec = pl.BlockSpec((Bp2, target), lambda i: (i, 0))

    # ---- explicit VMEM budget (double-buffered blocks + weights + scratch) ---
    isz = jnp.dtype(cdt).itemsize
    bytes_io = 2 * (T * Bp2 * E * isz + T * Bp2 * Hm * 4 + Bp2 * target * 4)
    bytes_w = 2 * sum(int(np.prod(a.shape)) * jnp.dtype(a.dtype).itemsize
                      for a in flat_w)
    bytes_scr = (T * Bp2 * 8 * H * 4          # hoisted gate projection (f32)
                 + T * Bp2 * 2 * H * isz      # layer output sequence (cdt)
                 + 2 * Bp2 * 2 * H * 4)       # h, c state (f32)
    vmem_need = bytes_io + bytes_w + bytes_scr
    vmem_limit = int(min(max(vmem_need * 3 // 2, 32 << 20), 100 << 20))

    out = pl.pallas_call(
        kernel,
        out_shape=jax.ShapeDtypeStruct((NC * Bp2, target), jnp.float32),
        grid=(NC,),
        in_specs=in_specs,
        out_specs=out_spec,
        scratch_shapes=[
            pltpu.VMEM((T * Bp2, 8 * H), jnp.float32),   # hoisted input-proj gates
            pltpu.VMEM((T * Bp2, 2 * H), cdt),           # layer output seq [fwd|bwd]
            pltpu.VMEM((Bp2, 2 * H), jnp.float32),       # h state [fwd | bwd]
            pltpu.VMEM((Bp2, 2 * H), jnp.float32),       # c state [fwd | bwd]
        ],
        compiler_params=pltpu.CompilerParams(
            dimension_semantics=("parallel",),
            vmem_limit_bytes=vmem_limit),
    )(x, mask, *flat_w)

    out = out.reshape(NC, Bp2, target)[:, :Bc].reshape(NC * Bc, target)
    return out[:B]


# ----------------------------------------------------------------------------
# Parameter init (PyTorch layout) and packing into the kernel layout
# ----------------------------------------------------------------------------
def init_params(key, vocab_size, emb_dim, hidden, num_layers, target_size):
    keys = iter(jax.random.split(key, 64))
    params = {'num_layers': num_layers, 'target_size': target_size, 'hidden': hidden}
    params['embedding'] = 0.1 * jax.random.normal(next(keys), (vocab_size, emb_dim),
                                                  jnp.float32)

    def unif(shape, scale):
        return jax.random.uniform(next(keys), shape, jnp.float32, -scale, scale)

    k = 1.0 / math.sqrt(hidden)
    lstm = {}
    for l in range(num_layers):
        in_dim = emb_dim if l == 0 else 2 * hidden
        for d in range(2):                       # 0 = forward, 1 = backward
            lstm[(l, d)] = dict(
                w_ih=unif((4 * hidden, in_dim), k),   # PyTorch (4H, IN), gates i,f,g,o
                w_hh=unif((4 * hidden, hidden), k),
                b_ih=unif((4 * hidden,), k),
                b_hh=unif((4 * hidden,), k))
    params['lstm'] = lstm

    def xavier(out_dim, in_dim):
        lim = math.sqrt(6.0 / (in_dim + out_dim))
        return jax.random.uniform(next(keys), (out_dim, in_dim), jnp.float32, -lim, lim)

    params['fc'] = dict(
        w1=xavier(128, 4 * hidden), b1=jnp.zeros((128,), jnp.float32),
        w2=xavier(64, 128), b2=jnp.zeros((64,), jnp.float32),
        w3=xavier(32, 64), b3=jnp.zeros((32,), jnp.float32),
        w4=xavier(target_size, 32), b4=jnp.zeros((target_size,), jnp.float32))
    return params


def _reorder_ifog(w):
    """PyTorch gate blocks (i,f,g,o) along axis 0 -> kernel order (i,f,o,g)."""
    H = w.shape[0] // 4
    return jnp.concatenate([w[:2 * H], w[3 * H:], w[2 * H:3 * H]], axis=0)


def pack_params(params, dtype=jnp.bfloat16):
    """Repack PyTorch-layout weights into the fused-kernel layout.

    Matmul operands are stored in `dtype` (bf16 by default: MXU-native, half the
    VMEM/HBM footprint); biases and accumulation stay f32.
    """
    nl = params['num_layers']
    H = params['hidden']
    layers = []
    for l in range(nl):
        fw = params['lstm'][(l, 0)]
        bw = params['lstm'][(l, 1)]
        # input projection for both directions fused into one (IN, 8H) RHS
        w_in = jnp.concatenate([_reorder_ifog(fw['w_ih']).T,
                                _reorder_ifog(bw['w_ih']).T], axis=1).astype(dtype)
        bias = jnp.concatenate([_reorder_ifog(fw['b_ih'] + fw['b_hh']),
                                _reorder_ifog(bw['b_ih'] + bw['b_hh'])])[None, :]
        whh_f = _reorder_ifog(fw['w_hh']).T      # (H, 4H)
        whh_b = _reorder_ifog(bw['w_hh']).T
        if H >= 128:
            # split recurrence: two dense (H, 4H) mats stacked on rows
            whh = jnp.concatenate([whh_f, whh_b], axis=0).astype(dtype)      # (2H, 4H)
        else:
            # small H: fused block-diagonal [h_fwd | h_bwd] @ whh -> all 8H gates
            whh = jnp.zeros((2 * H, 8 * H), jnp.float32)
            whh = whh.at[:H, :4 * H].set(whh_f)
            whh = whh.at[H:, 4 * H:].set(whh_b)
            whh = whh.astype(dtype)
        layers.append((w_in, bias.astype(jnp.float32), whh))
    fc = params['fc']
    head = (fc['w1'].T.astype(dtype), fc['b1'][None, :].astype(jnp.float32),
            fc['w2'].T.astype(dtype), fc['b2'][None, :].astype(jnp.float32),
            fc['w3'].T.astype(dtype), fc['b3'][None, :].astype(jnp.float32),
            fc['w4'].T.astype(dtype), fc['b4'][None, :].astype(jnp.float32))
    return {'embedding': params['embedding'], 'layers': tuple(layers), 'head': head}


# ----------------------------------------------------------------------------
# Pure-JAX reference (PyTorch layout / gate order) for correctness check
# ----------------------------------------------------------------------------
def _ref_lstm_dir(x_tbe, lens, w_ih, w_hh, b_ih, b_hh, reverse):
    T, Bn, _ = x_tbe.shape
    H = w_hh.shape[1]
    wih_t, whh_t = w_ih.T, w_hh.T
    bias = (b_ih + b_hh)[None, :]

    def cell(carry, t):
        h, c = carry
        gates = x_tbe[t] @ wih_t + h @ whh_t + bias
        i = jax.nn.sigmoid(gates[:, :H])
        f = jax.nn.sigmoid(gates[:, H:2 * H])
        g = jnp.tanh(gates[:, 2 * H:3 * H])
        o = jax.nn.sigmoid(gates[:, 3 * H:])
        c_new = f * c + i * g
        h_new = o * jnp.tanh(c_new)
        valid = (t < lens)[:, None]
        h = jnp.where(valid, h_new, h)
        c = jnp.where(valid, c_new, c)
        return (h, c), h

    ts = jnp.arange(T)
    if reverse:
        ts = ts[::-1]
    (h, _), outs = lax.scan(cell, (jnp.zeros((Bn, H)), jnp.zeros((Bn, H))), ts)
    if reverse:
        outs = outs[::-1]
    return outs, h


def _ref_forward(params, p_ids, h_ids, p_len, h_len):
    emb = params['embedding']
    nl = params['num_layers']

    def encode(ids, lens):
        x = jnp.take(emb, ids, axis=0).transpose(1, 0, 2)
        h_last = None
        for l in range(nl):
            outs, hfin = [], []
            for d, rev in enumerate((False, True)):
                lw = params['lstm'][(l, d)]
                o, hf = _ref_lstm_dir(x, lens, lw['w_ih'], lw['w_hh'],
                                      lw['b_ih'], lw['b_hh'], rev)
                outs.append(o)
                hfin.append(hf)
            x = jnp.concatenate(outs, axis=-1)
            h_last = hfin[1]            # hidden[-1] = last layer, backward dir
        return h_last

    p = encode(p_ids, p_len.astype(jnp.int32))
    q = encode(h_ids, h_len.astype(jnp.int32))
    feat = jnp.concatenate([p, q, jnp.abs(p - q), p * q], axis=-1)
    fc = params['fc']
    z = jnp.maximum(feat @ fc['w1'].T + fc['b1'], 0.0)
    z = jnp.maximum(z @ fc['w2'].T + fc['b2'], 0.0)
    z = jnp.maximum(z @ fc['w3'].T + fc['b3'], 0.0)
    return z @ fc['w4'].T + fc['b4']


# ----------------------------------------------------------------------------
if __name__ == "__main__":
    VOCAB, EMB, HIDDEN, LAYERS, TARGET = 50, 32, 32, 2, 3
    B, T = 2, 8

    key = jax.random.PRNGKey(0)
    kparam, kp, kh = jax.random.split(key, 3)
    params = init_params(kparam, VOCAB, EMB, HIDDEN, LAYERS, TARGET)

    premise = jax.random.randint(kp, (B, T), 0, VOCAB, dtype=jnp.int32)
    hypothesis = jax.random.randint(kh, (B, T), 0, VOCAB, dtype=jnp.int32)
    premise_len = jnp.array([T, 5], dtype=jnp.int32)
    hypothesis_len = jnp.array([6, T], dtype=jnp.int32)

    ref = jax.block_until_ready(
        _ref_forward(params, premise, hypothesis, premise_len, hypothesis_len))

    # Strict structural check: f32 operands, single batch chunk.
    packed32 = pack_params(params, dtype=jnp.float32)
    out32 = jax.block_until_ready(
        lstm_model_forward(packed32, premise, hypothesis, premise_len, hypothesis_len,
                           num_batch_chunks=1))
    assert out32.shape == (B, TARGET), out32.shape
    err32 = np.max(np.abs(np.asarray(out32) - np.asarray(ref)))
    assert np.allclose(np.asarray(out32), np.asarray(ref), rtol=2e-3, atol=2e-3), err32

    # Production path: bf16 MXU operands + 2 batch chunks (dual-TC grid on v7x).
    packed16 = pack_params(params, dtype=jnp.bfloat16)
    out16 = jax.block_until_ready(
        lstm_model_forward(packed16, premise, hypothesis, premise_len, hypothesis_len,
                           num_batch_chunks=2))
    assert out16.shape == (B, TARGET), out16.shape
    err16 = np.max(np.abs(np.asarray(out16) - np.asarray(ref)))
    assert np.allclose(np.asarray(out16), np.asarray(ref), rtol=5e-2, atol=5e-2), err16

    print("KERNEL_OK")
</pallas_src>

<mosaic_0001>
module attributes {stable_mosaic.version = 11 : i64} {
  func.func @kernel(%arg0: i32, %arg1: memref<64x32xf32, #tpu.memory_space<vmem>>, %arg2: memref<64x32xf32, #tpu.memory_space<vmem>>, %arg3: memref<32x256xf32, #tpu.memory_space<vmem>>, %arg4: memref<1x256xf32, #tpu.memory_space<vmem>>, %arg5: memref<64x256xf32, #tpu.memory_space<vmem>>, %arg6: memref<64x256xf32, #tpu.memory_space<vmem>>, %arg7: memref<1x256xf32, #tpu.memory_space<vmem>>, %arg8: memref<64x256xf32, #tpu.memory_space<vmem>>, %arg9: memref<128x128xf32, #tpu.memory_space<vmem>>, %arg10: memref<1x128xf32, #tpu.memory_space<vmem>>, %arg11: memref<128x64xf32, #tpu.memory_space<vmem>>, %arg12: memref<1x64xf32, #tpu.memory_space<vmem>>, %arg13: memref<64x32xf32, #tpu.memory_space<vmem>>, %arg14: memref<1x32xf32, #tpu.memory_space<vmem>>, %arg15: memref<32x3xf32, #tpu.memory_space<vmem>>, %arg16: memref<1x3xf32, #tpu.memory_space<vmem>>, %arg17: memref<8x3xf32, #tpu.memory_space<vmem>>, %arg18: memref<64x256xf32, #tpu.memory_space<vmem>>, %arg19: memref<64x64xf32, #tpu.memory_space<vmem>>, %arg20: memref<8x64xf32, #tpu.memory_space<vmem>>, %arg21: memref<8x64xf32, #tpu.memory_space<vmem>>) attributes {dimension_semantics = [#tpu.dimension_semantics<parallel>], iteration_bounds = array<i64: 1>, scalar_prefetch = 0 : i64, scratch_operands = 4 : i64, tpu.core_type = #tpu.core_type<tc>, window_params = [{transform_indices = @transform_0, window_bounds = array<i64: 64, 32>}, {transform_indices = @transform_1, window_bounds = array<i64: 64, 32>}, {pipeline_mode = #tpu.pipeline_mode<synchronous>, transform_indices = @transform_2, window_bounds = array<i64: 32, 256>}, {pipeline_mode = #tpu.pipeline_mode<synchronous>, transform_indices = @transform_3, window_bounds = array<i64: 1, 256>}, {pipeline_mode = #tpu.pipeline_mode<synchronous>, transform_indices = @transform_4, window_bounds = array<i64: 64, 256>}, {pipeline_mode = #tpu.pipeline_mode<synchronous>, transform_indices = @transform_5, window_bounds = array<i64: 64, 256>}, {pipeline_mode = #tpu.pipeline_mode<synchronous>, transform_indices = @transform_6, window_bounds = array<i64: 1, 256>}, {pipeline_mode = #tpu.pipeline_mode<synchronous>, transform_indices = @transform_7, window_bounds = array<i64: 64, 256>}, {pipeline_mode = #tpu.pipeline_mode<synchronous>, transform_indices = @transform_8, window_bounds = array<i64: 128, 128>}, {pipeline_mode = #tpu.pipeline_mode<synchronous>, transform_indices = @transform_9, window_bounds = array<i64: 1, 128>}, {pipeline_mode = #tpu.pipeline_mode<synchronous>, transform_indices = @transform_10, window_bounds = array<i64: 128, 64>}, {pipeline_mode = #tpu.pipeline_mode<synchronous>, transform_indices = @transform_11, window_bounds = array<i64: 1, 64>}, {pipeline_mode = #tpu.pipeline_mode<synchronous>, transform_indices = @transform_12, window_bounds = array<i64: 64, 32>}, {pipeline_mode = #tpu.pipeline_mode<synchronous>, transform_indices = @transform_13, window_bounds = array<i64: 1, 32>}, {pipeline_mode = #tpu.pipeline_mode<synchronous>, transform_indices = @transform_14, window_bounds = array<i64: 32, 3>}, {pipeline_mode = #tpu.pipeline_mode<synchronous>, transform_indices = @transform_15, window_bounds = array<i64: 1, 3>}, {transform_indices = @transform_16, window_bounds = array<i64: 8, 3>}]} {
    %c0 = arith.constant 0 : index
    %c0_0 = arith.constant 0 : index
    %0 = vector.load %arg3[%c0, %c0_0] : memref<32x256xf32, #tpu.memory_space<vmem>>, vector<32x256xf32>
    %c0_1 = arith.constant 0 : index
    %c0_2 = arith.constant 0 : index
    %1 = vector.load %arg4[%c0_1, %c0_2] : memref<1x256xf32, #tpu.memory_space<vmem>>, vector<1x256xf32>
    %c0_3 = arith.constant 0 : index
    %c0_4 = arith.constant 0 : index
    %2 = vector.load %arg5[%c0_3, %c0_4] : memref<64x256xf32, #tpu.memory_space<vmem>>, vector<64x256xf32>
    %c0_5 = arith.constant 0 : index
    %c0_6 = arith.constant 0 : index
    %3 = vector.load %arg1[%c0_5, %c0_6] : memref<64x32xf32, #tpu.memory_space<vmem>>, vector<64x32xf32>
    %cst = arith.constant dense<0.000000e+00> : vector<64x256xf32>
    %4 = tpu.matmul %3, %0, %cst {dimension_numbers = #tpu.dot_dimension_numbers<[1], [0], [0], [1], [0, 0, 1, 1], [], []>} : vector<64x32xf32>, vector<32x256xf32>, vector<64x256xf32> -> vector<64x256xf32>
    %5 = vector.broadcast %1 : vector<1x256xf32> to vector<64x256xf32>
    %6 = arith.addf %4, %5 : vector<64x256xf32>
    %c0_7 = arith.constant 0 : index
    %c0_8 = arith.constant 0 : index
    %7 = vector.load %arg18[%c0_7, %c0_8] : memref<64x256xf32, #tpu.memory_space<vmem>>, vector<64x256xf32>
    tpu.vector_store %arg18[%c0_7, %c0_8], %6 {strides = array<i32>} : memref<64x256xf32, #tpu.memory_space<vmem>>, vector<64x256xf32>,
    %cst_9 = arith.constant 0.000000e+00 : f32
    %8 = vector.broadcast %cst_9 : f32 to vector<8x64xf32>
    %c0_10 = arith.constant 0 : index
    %c0_11 = arith.constant 0 : index
    %9 = vector.load %arg20[%c0_10, %c0_11] : memref<8x64xf32, #tpu.memory_space<vmem>>, vector<8x64xf32>
    tpu.vector_store %arg20[%c0_10, %c0_11], %8 {strides = array<i32>} : memref<8x64xf32, #tpu.memory_space<vmem>>, vector<8x64xf32>,
    %cst_12 = arith.constant 0.000000e+00 : f32
    %10 = vector.broadcast %cst_12 : f32 to vector<8x64xf32>
    %c0_13 = arith.constant 0 : index
    %c0_14 = arith.constant 0 : index
    %11 = vector.load %arg21[%c0_13, %c0_14] : memref<8x64xf32, #tpu.memory_space<vmem>>, vector<8x64xf32>
    tpu.vector_store %arg21[%c0_13, %c0_14], %10 {strides = array<i32>} : memref<8x64xf32, #tpu.memory_space<vmem>>, vector<8x64xf32>,
    %c0_15 = arith.constant 0 : index
    %c0_16 = arith.constant 0 : index
    %12 = vector.load %arg18[%c0_15, %c0_16] : memref<64x256xf32, #tpu.memory_space<vmem>>, vector<8x256xf32>
    %c56 = arith.constant 56 : index
    %c0_17 = arith.constant 0 : index
    %13 = vector.load %arg18[%c56, %c0_17] : memref<64x256xf32, #tpu.memory_space<vmem>>, vector<8x256xf32>
    %c0_18 = arith.constant 0 : index
    %c0_19 = arith.constant 0 : index
    %14 = vector.load %arg20[%c0_18, %c0_19] : memref<8x64xf32, #tpu.memory_space<vmem>>, vector<8x64xf32>
    %c0_20 = arith.constant 0 : index
    %c0_21 = arith.constant 0 : index
    %15 = vector.load %arg21[%c0_20, %c0_21] : memref<8x64xf32, #tpu.memory_space<vmem>>, vector<8x64xf32>
    %16 = vector.extract_strided_slice %14 {offsets = [0, 0], sizes = [8, 32], strides = [1, 1]} : vector<8x64xf32> to vector<8x32xf32>
    %17 = vector.extract_strided_slice %14 {offsets = [0, 32], sizes = [8, 32], strides = [1, 1]} : vector<8x64xf32> to vector<8x32xf32>
    %18 = vector.extract_strided_slice %15 {offsets = [0, 0], sizes = [8, 32], strides = [1, 1]} : vector<8x64xf32> to vector<8x32xf32>
    %19 = vector.extract_strided_slice %15 {offsets = [0, 32], sizes = [8, 32], strides = [1, 1]} : vector<8x64xf32> to vector<8x32xf32>
    %cst_22 = arith.constant dense<0.000000e+00> : vector<8x256xf32>
    %20 = tpu.matmul %14, %2, %cst_22 {dimension_numbers = #tpu.dot_dimension_numbers<[1], [0], [0], [1], [0, 0, 1, 1], [], []>} : vector<8x64xf32>, vector<64x256xf32>, vector<8x256xf32> -> vector<8x256xf32>
    %21 = vector.extract_strided_slice %12 {offsets = [0, 0], sizes = [8, 128], strides = [1, 1]} : vector<8x256xf32> to vector<8x128xf32>
    %22 = vector.extract_strided_slice %20 {offsets = [0, 0], sizes = [8, 128], strides = [1, 1]} : vector<8x256xf32> to vector<8x128xf32>
    %23 = arith.addf %21, %22 : vector<8x128xf32>
    %24 = vector.extract_strided_slice %13 {offsets = [0, 128], sizes = [8, 128], strides = [1, 1]} : vector<8x256xf32> to vector<8x128xf32>
    %25 = vector.extract_strided_slice %20 {offsets = [0, 128], sizes = [8, 128], strides = [1, 1]} : vector<8x256xf32> to vector<8x128xf32>
    %26 = arith.addf %24, %25 : vector<8x128xf32>
    %27 = vector.extract_strided_slice %23 {offsets = [0, 0], sizes = [8, 96], strides = [1, 1]} : vector<8x128xf32> to vector<8x96xf32>
    %28 = arith.negf %27 : vector<8x96xf32>
    %29 = math.exp %28 : vector<8x96xf32>
    %cst_23 = arith.constant 1.000000e+00 : f32
    %30 = vector.broadcast %cst_23 : f32 to vector<8x96xf32>
    %31 = arith.addf %30, %29 : vector<8x96xf32>
    %32 = arith.divf %30, %31 : vector<8x96xf32>
    %33 = vector.extract_strided_slice %23 {offsets = [0, 96], sizes = [8, 32], strides = [1, 1]} : vector<8x128xf32> to vector<8x32xf32>
    %34 = math.tanh %33 : vector<8x32xf32>
    %35 = vector.extract_strided_slice %32 {offsets = [0, 32], sizes = [8, 32], strides = [1, 1]} : vector<8x96xf32> to vector<8x32xf32>
    %36 = arith.mulf %35, %18 : vector<8x32xf32>
    %37 = vector.extract_strided_slice %32 {offsets = [0, 0], sizes = [8, 32], strides = [1, 1]} : vector<8x96xf32> to vector<8x32xf32>
    %38 = arith.mulf %37, %34 : vector<8x32xf32>
    %39 = arith.addf %36, %38 : vector<8x32xf32>
    %40 = vector.extract_strided_slice %32 {offsets = [0, 64], sizes = [8, 32], strides = [1, 1]} : vector<8x96xf32> to vector<8x32xf32>
    %41 = math.tanh %39 : vector<8x32xf32>
    %42 = arith.mulf %40, %41 : vector<8x32xf32>
    %43 = vector.extract_strided_slice %26 {offsets = [0, 0], sizes = [8, 96], strides = [1, 1]} : vector<8x128xf32> to vector<8x96xf32>
    %44 = arith.negf %43 : vector<8x96xf32>
    %45 = math.exp %44 : vector<8x96xf32>
    %cst_24 = arith.constant 1.000000e+00 : f32
    %46 = vector.broadcast %cst_24 : f32 to vector<8x96xf32>
    %47 = arith.addf %46, %45 : vector<8x96xf32>
    %48 = arith.divf %46, %47 : vector<8x96xf32>
    %49 = vector.extract_strided_slice %26 {offsets = [0, 96], sizes = [8, 32], strides = [1, 1]} : vector<8x128xf32> to vector<8x32xf32>
    %50 = math.tanh %49 : vector<8x32xf32>
    %51 = vector.extract_strided_slice %48 {offsets = [0, 32], sizes = [8, 32], strides = [1, 1]} : vector<8x96xf32> to vector<8x32xf32>
    %52 = arith.mulf %51, %19 : vector<8x32xf32>
    %53 = vector.extract_strided_slice %48 {offsets = [0, 0], sizes = [8, 32], strides = [1, 1]} : vector<8x96xf32> to vector<8x32xf32>
    %54 = arith.mulf %53, %50 : vector<8x32xf32>
    %55 = arith.addf %52, %54 : vector<8x32xf32>
    %56 = vector.extract_strided_slice %48 {offsets = [0, 64], sizes = [8, 32], strides = [1, 1]} : vector<8x96xf32> to vector<8x32xf32>
    %57 = math.tanh %55 : vector<8x32xf32>
    %58 = arith.mulf %56, %57 : vector<8x32xf32>
    %c0_25 = arith.constant 0 : index
    %c0_26 = arith.constant 0 : index
    %59 = vector.load %arg2[%c0_25, %c0_26] : memref<64x32xf32, #tpu.memory_space<vmem>>, vector<8x32xf32>
    %cst_27 = arith.constant 5.000000e-01 : f32
    %60 = vector.broadcast %cst_27 : f32 to vector<8x32xf32>
    %61 = arith.cmpf ogt, %59, %60 : vector<8x32xf32>
    %c56_28 = arith.constant 56 : index
    %c0_29 = arith.constant 0 : index
    %62 = vector.load %arg2[%c56_28, %c0_29] : memref<64x32xf32, #tpu.memory_space<vmem>>, vector<8x32xf32>
    %cst_30 = arith.constant 5.000000e-01 : f32
    %63 = vector.broadcast %cst_30 : f32 to vector<8x32xf32>
    %64 = arith.cmpf ogt, %62, %63 : vector<8x32xf32>
    %65 = arith.select %61, %42, %16 : vector<8x32xi1>, vector<8x32xf32>
    %66 = arith.select %61, %39, %18 : vector<8x32xi1>, vector<8x32xf32>
    %67 = arith.select %64, %58, %17 : vector<8x32xi1>, vector<8x32xf32>
    %68 = arith.select %64, %55, %19 : vector<8x32xi1>, vector<8x32xf32>
    %c0_31 = arith.constant 0 : index
    %c0_32 = arith.constant 0 : index
    %69 = vector.load %arg20[%c0_31, %c0_32] : memref<8x64xf32, #tpu.memory_space<vmem>>, vector<8x32xf32>
    tpu.vector_store %arg20[%c0_31, %c0_32], %65 {strides = array<i32>} : memref<8x64xf32, #tpu.memory_space<vmem>>, vector<8x32xf32>,
    %c0_33 = arith.constant 0 : index
    %c32 = arith.constant 32 : index
    %70 = vector.load %arg20[%c0_33, %c32] : memref<8x64xf32, #tpu.memory_space<vmem>>, vector<8x32xf32>
    tpu.vector_store %arg20[%c0_33, %c32], %67 {strides = array<i32>} : memref<8x64xf32, #tpu.memory_space<vmem>>, vector<8x32xf32>,
    %c0_34 = arith.constant 0 : index
    %c0_35 = arith.constant 0 : index
    %71 = vector.load %arg21[%c0_34, %c0_35] : memref<8x64xf32, #tpu.memory_space<vmem>>, vector<8x32xf32>
    tpu.vector_store %arg21[%c0_34, %c0_35], %66 {strides = array<i32>} : memref<8x64xf32, #tpu.memory_space<vmem>>, vector<8x32xf32>,
    %c0_36 = arith.constant 0 : index
    %c32_37 = arith.constant 32 : index
    %72 = vector.load %arg21[%c0_36, %c32_37] : memref<8x64xf32, #tpu.memory_space<vmem>>, vector<8x32xf32>
    tpu.vector_store %arg21[%c0_36, %c32_37], %68 {strides = array<i32>} : memref<8x64xf32, #tpu.memory_space<vmem>>, vector<8x32xf32>,
    %c0_38 = arith.constant 0 : index
    %c0_39 = arith.constant 0 : index
    %73 = vector.load %arg19[%c0_38, %c0_39] : memref<64x64xf32, #tpu.memory_space<vmem>>, vector<8x32xf32>
    tpu.vector_store %arg19[%c0_38, %c0_39], %65 {strides = array<i32>} : memref<64x64xf32, #tpu.memory_space<vmem>>, vector<8x32xf32>,
    %c56_40 = arith.constant 56 : index
    %c32_41 = arith.constant 32 : index
    %74 = vector.load %arg19[%c56_40, %c32_41] : memref<64x64xf32, #tpu.memory_space<vmem>>, vector<8x32xf32>
    tpu.vector_store %arg19[%c56_40, %c32_41], %67 {strides = array<i32>} : memref<64x64xf32, #tpu.memory_space<vmem>>, vector<8x32xf32>,
    %c8 = arith.constant 8 : index
    %c0_42 = arith.constant 0 : index
    %75 = vector.load %arg18[%c8, %c0_42] : memref<64x256xf32, #tpu.memory_space<vmem>>, vector<8x256xf32>
    %c48 = arith.constant 48 : index
    %c0_43 = arith.constant 0 : index
    %76 = vector.load %arg18[%c48, %c0_43] : memref<64x256xf32, #tpu.memory_space<vmem>>, vector<8x256xf32>
    %c0_44 = arith.constant 0 : index
    %c0_45 = arith.constant 0 : index
    %77 = vector.load %arg20[%c0_44, %c0_45] : memref<8x64xf32, #tpu.memory_space<vmem>>, vector<8x64xf32>
    %c0_46 = arith.constant 0 : index
    %c0_47 = arith.constant 0 : index
    %78 = vector.load %arg21[%c0_46, %c0_47] : memref<8x64xf32, #tpu.memory_space<vmem>>, vector<8x64xf32>
    %79 = vector.extract_strided_slice %77 {offsets = [0, 0], sizes = [8, 32], strides = [1, 1]} : vector<8x64xf32> to vector<8x32xf32>
    %80 = vector.extract_strided_slice %77 {offsets = [0, 32], sizes = [8, 32], strides = [1, 1]} : vector<8x64xf32> to vector<8x32xf32>
    %81 = vector.extract_strided_slice %78 {offsets = [0, 0], sizes = [8, 32], strides = [1, 1]} : vector<8x64xf32> to vector<8x32xf32>
    %82 = vector.extract_strided_slice %78 {offsets = [0, 32], sizes = [8, 32], strides = [1, 1]} : vector<8x64xf32> to vector<8x32xf32>
    %cst_48 = arith.constant dense<0.000000e+00> : vector<8x256xf32>
    %83 = tpu.matmul %77, %2, %cst_48 {dimension_numbers = #tpu.dot_dimension_numbers<[1], [0], [0], [1], [0, 0, 1, 1], [], []>} : vector<8x64xf32>, vector<64x256xf32>, vector<8x256xf32> -> vector<8x256xf32>
    %84 = vector.extract_strided_slice %75 {offsets = [0, 0], sizes = [8, 128], strides = [1, 1]} : vector<8x256xf32> to vector<8x128xf32>
    %85 = vector.extract_strided_slice %83 {offsets = [0, 0], sizes = [8, 128], strides = [1, 1]} : vector<8x256xf32> to vector<8x128xf32>
    %86 = arith.addf %84, %85 : vector<8x128xf32>
    %87 = vector.extract_strided_slice %76 {offsets = [0, 128], sizes = [8, 128], strides = [1, 1]} : vector<8x256xf32> to vector<8x128xf32>
    %88 = vector.extract_strided_slice %83 {offsets = [0, 128], sizes = [8, 128], strides = [1, 1]} : vector<8x256xf32> to vector<8x128xf32>
    %89 = arith.addf %87, %88 : vector<8x128xf32>
    %90 = vector.extract_strided_slice %86 {offsets = [0, 0], sizes = [8, 96], strides = [1, 1]} : vector<8x128xf32> to vector<8x96xf32>
    %91 = arith.negf %90 : vector<8x96xf32>
    %92 = math.exp %91 : vector<8x96xf32>
    %cst_49 = arith.constant 1.000000e+00 : f32
    %93 = vector.broadcast %cst_49 : f32 to vector<8x96xf32>
    %94 = arith.addf %93, %92 : vector<8x96xf32>
    %95 = arith.divf %93, %94 : vector<8x96xf32>
    %96 = vector.extract_strided_slice %86 {offsets = [0, 96], sizes = [8, 32], strides = [1, 1]} : vector<8x128xf32> to vector<8x32xf32>
    %97 = math.tanh %96 : vector<8x32xf32>
    %98 = vector.extract_strided_slice %95 {offsets = [0, 32], sizes = [8, 32], strides = [1, 1]} : vector<8x96xf32> to vector<8x32xf32>
    %99 = arith.mulf %98, %81 : vector<8x32xf32>
    %100 = vector.extract_strided_slice %95 {offsets = [0, 0], sizes = [8, 32], strides = [1, 1]} : vector<8x96xf32> to vector<8x32xf32>
    %101 = arith.mulf %100, %97 : vector<8x32xf32>
    %102 = arith.addf %99, %101 : vector<8x32xf32>
    %103 = vector.extract_strided_slice %95 {offsets = [0, 64], sizes = [8, 32], strides = [1, 1]} : vector<8x96xf32> to vector<8x32xf32>
    %104 = math.tanh %102 : vector<8x32xf32>
    %105 = arith.mulf %103, %104 : vector<8x32xf32>
    %106 = vector.extract_strided_slice %89 {offsets = [0, 0], sizes = [8, 96], strides = [1, 1]} : vector<8x128xf32> to vector<8x96xf32>
    %107 = arith.negf %106 : vector<8x96xf32>
    %108 = math.exp %107 : vector<8x96xf32>
    %cst_50 = arith.constant 1.000000e+00 : f32
    %109 = vector.broadcast %cst_50 : f32 to vector<8x96xf32>
    %110 = arith.addf %109, %108 : vector<8x96xf32>
    %111 = arith.divf %109, %110 : vector<8x96xf32>
    %112 = vector.extract_strided_slice %89 {offsets = [0, 96], sizes = [8, 32], strides = [1, 1]} : vector<8x128xf32> to vector<8x32xf32>
    %113 = math.tanh %112 : vector<8x32xf32>
    %114 = vector.extract_strided_slice %111 {offsets = [0, 32], sizes = [8, 32], strides = [1, 1]} : vector<8x96xf32> to vector<8x32xf32>
    %115 = arith.mulf %114, %82 : vector<8x32xf32>
    %116 = vector.extract_strided_slice %111 {offsets = [0, 0], sizes = [8, 32], strides = [1, 1]} : vector<8x96xf32> to vector<8x32xf32>
    %117 = arith.mulf %116, %113 : vector<8x32xf32>
    %118 = arith.addf %115, %117 : vector<8x32xf32>
    %119 = vector.extract_strided_slice %111 {offsets = [0, 64], sizes = [8, 32], strides = [1, 1]} : vector<8x96xf32> to vector<8x32xf32>
    %120 = math.tanh %118 : vector<8x32xf32>
    %121 = arith.mulf %119, %120 : vector<8x32xf32>
    %c8_51 = arith.constant 8 : index
    %c0_52 = arith.constant 0 : index
    %122 = vector.load %arg2[%c8_51, %c0_52] : memref<64x32xf32, #tpu.memory_space<vmem>>, vector<8x32xf32>
    %cst_53 = arith.constant 5.000000e-01 : f32
    %123 = vector.broadcast %cst_53 : f32 to vector<8x32xf32>
    %124 = arith.cmpf ogt, %122, %123 : vector<8x32xf32>
    %c48_54 = arith.constant 48 : index
    %c0_55 = arith.constant 0 : index
    %125 = vector.load %arg2[%c48_54, %c0_55] : memref<64x32xf32, #tpu.memory_space<vmem>>, vector<8x32xf32>
    %cst_56 = arith.constant 5.000000e-01 : f32
    %126 = vector.broadcast %cst_56 : f32 to vector<8x32xf32>
    %127 = arith.cmpf ogt, %125, %126 : vector<8x32xf32>
    %128 = arith.select %124, %105, %79 : vector<8x32xi1>, vector<8x32xf32>
    %129 = arith.select %124, %102, %81 : vector<8x32xi1>, vector<8x32xf32>
    %130 = arith.select %127, %121, %80 : vector<8x32xi1>, vector<8x32xf32>
    %131 = arith.select %127, %118, %82 : vector<8x32xi1>, vector<8x32xf32>
    %c0_57 = arith.constant 0 : index
    %c0_58 = arith.constant 0 : index
    %132 = vector.load %arg20[%c0_57, %c0_58] : memref<8x64xf32, #tpu.memory_space<vmem>>, vector<8x32xf32>
    tpu.vector_store %arg20[%c0_57, %c0_58], %128 {strides = array<i32>} : memref<8x64xf32, #tpu.memory_space<vmem>>, vector<8x32xf32>,
    %c0_59 = arith.constant 0 : index
    %c32_60 = arith.constant 32 : index
    %133 = vector.load %arg20[%c0_59, %c32_60] : memref<8x64xf32, #tpu.memory_space<vmem>>, vector<8x32xf32>
    tpu.vector_store %arg20[%c0_59, %c32_60], %130 {strides = array<i32>} : memref<8x64xf32, #tpu.memory_space<vmem>>, vector<8x32xf32>,
    %c0_61 = arith.constant 0 : index
    %c0_62 = arith.constant 0 : index
    %134 = vector.load %arg21[%c0_61, %c0_62] : memref<8x64xf32, #tpu.memory_space<vmem>>, vector<8x32xf32>
    tpu.vector_store %arg21[%c0_61, %c0_62], %129 {strides = array<i32>} : memref<8x64xf32, #tpu.memory_space<vmem>>, vector<8x32xf32>,
    %c0_63 = arith.constant 0 : index
    %c32_64 = arith.constant 32 : index
    %135 = vector.load %arg21[%c0_63, %c32_64] : memref<8x64xf32, #tpu.memory_space<vmem>>, vector<8x32xf32>
    tpu.vector_store %arg21[%c0_63, %c32_64], %131 {strides = array<i32>} : memref<8x64xf32, #tpu.memory_space<vmem>>, vector<8x32xf32>,
    %c8_65 = arith.constant 8 : index
    %c0_66 = arith.constant 0 : index
    %136 = vector.load %arg19[%c8_65, %c0_66] : memref<64x64xf32, #tpu.memory_space<vmem>>, vector<8x32xf32>
    tpu.vector_store %arg19[%c8_65, %c0_66], %128 {strides = array<i32>} : memref<64x64xf32, #tpu.memory_space<vmem>>, vector<8x32xf32>,
    %c48_67 = arith.constant 48 : index
    %c32_68 = arith.constant 32 : index
    %137 = vector.load %arg19[%c48_67, %c32_68] : memref<64x64xf32, #tpu.memory_space<vmem>>, vector<8x32xf32>
    tpu.vector_store %arg19[%c48_67, %c32_68], %130 {strides = array<i32>} : memref<64x64xf32, #tpu.memory_space<vmem>>, vector<8x32xf32>,
    %c16 = arith.constant 16 : index
    %c0_69 = arith.constant 0 : index
    %138 = vector.load %arg18[%c16, %c0_69] : memref<64x256xf32, #tpu.memory_space<vmem>>, vector<8x256xf32>
    %c40 = arith.constant 40 : index
    %c0_70 = arith.constant 0 : index
    %139 = vector.load %arg18[%c40, %c0_70] : memref<64x256xf32, #tpu.memory_space<vmem>>, vector<8x256xf32>
    %c0_71 = arith.constant 0 : index
    %c0_72 = arith.constant 0 : index
    %140 = vector.load %arg20[%c0_71, %c0_72] : memref<8x64xf32, #tpu.memory_space<vmem>>, vector<8x64xf32>
    %c0_73 = arith.constant 0 : index
    %c0_74 = arith.constant 0 : index
    %141 = vector.load %arg21[%c0_73, %c0_74] : memref<8x64xf32, #tpu.memory_space<vmem>>, vector<8x64xf32>
    %142 = vector.extract_strided_slice %140 {offsets = [0, 0], sizes = [8, 32], strides = [1, 1]} : vector<8x64xf32> to vector<8x32xf32>
    %143 = vector.extract_strided_slice %140 {offsets = [0, 32], sizes = [8, 32], strides = [1, 1]} : vector<8x64xf32> to vector<8x32xf32>
    %144 = vector.extract_strided_slice %141 {offsets = [0, 0], sizes = [8, 32], strides = [1, 1]} : vector<8x64xf32> to vector<8x32xf32>
    %145 = vector.extract_strided_slice %141 {offsets = [0, 32], sizes = [8, 32], strides = [1, 1]} : vector<8x64xf32> to vector<8x32xf32>
    %cst_75 = arith.constant dense<0.000000e+00> : vector<8x256xf32>
    %146 = tpu.matmul %140, %2, %cst_75 {dimension_numbers = #tpu.dot_dimension_numbers<[1], [0], [0], [1], [0, 0, 1, 1], [], []>} : vector<8x64xf32>, vector<64x256xf32>, vector<8x256xf32> -> vector<8x256xf32>
    %147 = vector.extract_strided_slice %138 {offsets = [0, 0], sizes = [8, 128], strides = [1, 1]} : vector<8x256xf32> to vector<8x128xf32>
    %148 = vector.extract_strided_slice %146 {offsets = [0, 0], sizes = [8, 128], strides = [1, 1]} : vector<8x256xf32> to vector<8x128xf32>
    %149 = arith.addf %147, %148 : vector<8x128xf32>
    %150 = vector.extract_strided_slice %139 {offsets = [0, 128], sizes = [8, 128], strides = [1, 1]} : vector<8x256xf32> to vector<8x128xf32>
    %151 = vector.extract_strided_slice %146 {offsets = [0, 128], sizes = [8, 128], strides = [1, 1]} : vector<8x256xf32> to vector<8x128xf32>
    %152 = arith.addf %150, %151 : vector<8x128xf32>
    %153 = vector.extract_strided_slice %149 {offsets = [0, 0], sizes = [8, 96], strides = [1, 1]} : vector<8x128xf32> to vector<8x96xf32>
    %154 = arith.negf %153 : vector<8x96xf32>
    %155 = math.exp %154 : vector<8x96xf32>
    %cst_76 = arith.constant 1.000000e+00 : f32
    %156 = vector.broadcast %cst_76 : f32 to vector<8x96xf32>
    %157 = arith.addf %156, %155 : vector<8x96xf32>
    %158 = arith.divf %156, %157 : vector<8x96xf32>
    %159 = vector.extract_strided_slice %149 {offsets = [0, 96], sizes = [8, 32], strides = [1, 1]} : vector<8x128xf32> to vector<8x32xf32>
    %160 = math.tanh %159 : vector<8x32xf32>
    %161 = vector.extract_strided_slice %158 {offsets = [0, 32], sizes = [8, 32], strides = [1, 1]} : vector<8x96xf32> to vector<8x32xf32>
    %162 = arith.mulf %161, %144 : vector<8x32xf32>
    %163 = vector.extract_strided_slice %158 {offsets = [0, 0], sizes = [8, 32], strides = [1, 1]} : vector<8x96xf32> to vector<8x32xf32>
    %164 = arith.mulf %163, %160 : vector<8x32xf32>
    %165 = arith.addf %162, %164 : vector<8x32xf32>
    %166 = vector.extract_strided_slice %158 {offsets = [0, 64], sizes = [8, 32], strides = [1, 1]} : vector<8x96xf32> to vector<8x32xf32>
    %167 = math.tanh %165 : vector<8x32xf32>
    %168 = arith.mulf %166, %167 : vector<8x32xf32>
    %169 = vector.extract_strided_slice %152 {offsets = [0, 0], sizes = [8, 96], strides = [1, 1]} : vector<8x128xf32> to vector<8x96xf32>
    %170 = arith.negf %169 : vector<8x96xf32>
    %171 = math.exp %170 : vector<8x96xf32>
    %cst_77 = arith.constant 1.000000e+00 : f32
    %172 = vector.broadcast %cst_77 : f32 to vector<8x96xf32>
    %173 = arith.addf %172, %171 : vector<8x96xf32>
    %174 = arith.divf %172, %173 : vector<8x96xf32>
    %175 = vector.extract_strided_slice %152 {offsets = [0, 96], sizes = [8, 32], strides = [1, 1]} : vector<8x128xf32> to vector<8x32xf32>
    %176 = math.tanh %175 : vector<8x32xf32>
    %177 = vector.extract_strided_slice %174 {offsets = [0, 32], sizes = [8, 32], strides = [1, 1]} : vector<8x96xf32> to vector<8x32xf32>
    %178 = arith.mulf %177, %145 : vector<8x32xf32>
    %179 = vector.extract_strided_slice %174 {offsets = [0, 0], sizes = [8, 32], strides = [1, 1]} : vector<8x96xf32> to vector<8x32xf32>
    %180 = arith.mulf %179, %176 : vector<8x32xf32>
    %181 = arith.addf %178, %180 : vector<8x32xf32>
    %182 = vector.extract_strided_slice %174 {offsets = [0, 64], sizes = [8, 32], strides = [1, 1]} : vector<8x96xf32> to vector<8x32xf32>
    %183 = math.tanh %181 : vector<8x32xf32>
    %184 = arith.mulf %182, %183 : vector<8x32xf32>
    %c16_78 = arith.constant 16 : index
    %c0_79 = arith.constant 0 : index
    %185 = vector.load %arg2[%c16_78, %c0_79] : memref<64x32xf32, #tpu.memory_space<vmem>>, vector<8x32xf32>
    %cst_80 = arith.constant 5.000000e-01 : f32
    %186 = vector.broadcast %cst_80 : f32 to vector<8x32xf32>
    %187 = arith.cmpf ogt, %185, %186 : vector<8x32xf32>
    %c40_81 = arith.constant 40 : index
    %c0_82 = arith.constant 0 : index
    %188 = vector.load %arg2[%c40_81, %c0_82] : memref<64x32xf32, #tpu.memory_space<vmem>>, vector<8x32xf32>
    %cst_83 = arith.constant 5.000000e-01 : f32
    %189 = vector.broadcast %cst_83 : f32 to vector<8x32xf32>
    %190 = arith.cmpf ogt, %188, %189 : vector<8x32xf32>
    %191 = arith.select %187, %168, %142 : vector<8x32xi1>, vector<8x32xf32>
    %192 = arith.select %187, %165, %144 : vector<8x32xi1>, vector<8x32xf32>
    %193 = arith.select %190, %184, %143 : vector<8x32xi1>, vector<8x32xf32>
    %194 = arith.select %190, %181, %145 : vector<8x32xi1>, vector<8x32xf32>
    %c0_84 = arith.constant 0 : index
    %c0_85 = arith.constant 0 : index
    %195 = vector.load %arg20[%c0_84, %c0_85] : memref<8x64xf32, #tpu.memory_space<vmem>>, vector<8x32xf32>
    tpu.vector_store %arg20[%c0_84, %c0_85], %191 {strides = array<i32>} : memref<8x64xf32, #tpu.memory_space<vmem>>, vector<8x32xf32>,
    %c0_86 = arith.constant 0 : index
    %c32_87 = arith.constant 32 : index
    %196 = vector.load %arg20[%c0_86, %c32_87] : memref<8x64xf32, #tpu.memory_space<vmem>>, vector<8x32xf32>
    tpu.vector_store %arg20[%c0_86, %c32_87], %193 {strides = array<i32>} : memref<8x64xf32, #tpu.memory_space<vmem>>, vector<8x32xf32>,
    %c0_88 = arith.constant 0 : index
    %c0_89 = arith.constant 0 : index
    %197 = vector.load %arg21[%c0_88, %c0_89] : memref<8x64xf32, #tpu.memory_space<vmem>>, vector<8x32xf32>
    tpu.vector_store %arg21[%c0_88, %c0_89], %192 {strides = array<i32>} : memref<8x64xf32, #tpu.memory_space<vmem>>, vector<8x32xf32>,
    %c0_90 = arith.constant 0 : index
    %c32_91 = arith.constant 32 : index
    %198 = vector.load %arg21[%c0_90, %c32_91] : memref<8x64xf32, #tpu.memory_space<vmem>>, vector<8x32xf32>
    tpu.vector_store %arg21[%c0_90, %c32_91], %194 {strides = array<i32>} : memref<8x64xf32, #tpu.memory_space<vmem>>, vector<8x32xf32>,
    %c16_92 = arith.constant 16 : index
    %c0_93 = arith.constant 0 : index
    %199 = vector.load %arg19[%c16_92, %c0_93] : memref<64x64xf32, #tpu.memory_space<vmem>>, vector<8x32xf32>
    tpu.vector_store %arg19[%c16_92, %c0_93], %191 {strides = array<i32>} : memref<64x64xf32, #tpu.memory_space<vmem>>, vector<8x32xf32>,
    %c40_94 = arith.constant 40 : index
    %c32_95 = arith.constant 32 : index
    %200 = vector.load %arg19[%c40_94, %c32_95] : memref<64x64xf32, #tpu.memory_space<vmem>>, vector<8x32xf32>
    tpu.vector_store %arg19[%c40_94, %c32_95], %193 {strides = array<i32>} : memref<64x64xf32, #tpu.memory_space<vmem>>, vector<8x32xf32>,
    %c24 = arith.constant 24 : index
    %c0_96 = arith.constant 0 : index
    %201 = vector.load %arg18[%c24, %c0_96] : memref<64x256xf32, #tpu.memory_space<vmem>>, vector<8x256xf32>
    %c32_97 = arith.constant 32 : index
    %c0_98 = arith.constant 0 : index
    %202 = vector.load %arg18[%c32_97, %c0_98] : memref<64x256xf32, #tpu.memory_space<vmem>>, vector<8x256xf32>
    %c0_99 = arith.constant 0 : index
    %c0_100 = arith.constant 0 : index
    %203 = vector.load %arg20[%c0_99, %c0_100] : memref<8x64xf32, #tpu.memory_space<vmem>>, vector<8x64xf32>
    %c0_101 = arith.constant 0 : index
    %c0_102 = arith.constant 0 : index
    %204 = vector.load %arg21[%c0_101, %c0_102] : memref<8x64xf32, #tpu.memory_space<vmem>>, vector<8x64xf32>
    %205 = vector.extract_strided_slice %203 {offsets = [0, 0], sizes = [8, 32], strides = [1, 1]} : vector<8x64xf32> to vector<8x32xf32>
    %206 = vector.extract_strided_slice %203 {offsets = [0, 32], sizes = [8, 32], strides = [1, 1]} : vector<8x64xf32> to vector<8x32xf32>
    %207 = vector.extract_strided_slice %204 {offsets = [0, 0], sizes = [8, 32], strides = [1, 1]} : vector<8x64xf32> to vector<8x32xf32>
    %208 = vector.extract_strided_slice %204 {offsets = [0, 32], sizes = [8, 32], strides = [1, 1]} : vector<8x64xf32> to vector<8x32xf32>
    %cst_103 = arith.constant dense<0.000000e+00> : vector<8x256xf32>
    %209 = tpu.matmul %203, %2, %cst_103 {dimension_numbers = #tpu.dot_dimension_numbers<[1], [0], [0], [1], [0, 0, 1, 1], [], []>} : vector<8x64xf32>, vector<64x256xf32>, vector<8x256xf32> -> vector<8x256xf32>
    %210 = vector.extract_strided_slice %201 {offsets = [0, 0], sizes = [8, 128], strides = [1, 1]} : vector<8x256xf32> to vector<8x128xf32>
    %211 = vector.extract_strided_slice %209 {offsets = [0, 0], sizes = [8, 128], strides = [1, 1]} : vector<8x256xf32> to vector<8x128xf32>
    %212 = arith.addf %210, %211 : vector<8x128xf32>
    %213 = vector.extract_strided_slice %202 {offsets = [0, 128], sizes = [8, 128], strides = [1, 1]} : vector<8x256xf32> to vector<8x128xf32>
    %214 = vector.extract_strided_slice %209 {offsets = [0, 128], sizes = [8, 128], strides = [1, 1]} : vector<8x256xf32> to vector<8x128xf32>
    %215 = arith.addf %213, %214 : vector<8x128xf32>
    %216 = vector.extract_strided_slice %212 {offsets = [0, 0], sizes = [8, 96], strides = [1, 1]} : vector<8x128xf32> to vector<8x96xf32>
    %217 = arith.negf %216 : vector<8x96xf32>
    %218 = math.exp %217 : vector<8x96xf32>
    %cst_104 = arith.constant 1.000000e+00 : f32
    %219 = vector.broadcast %cst_104 : f32 to vector<8x96xf32>
    %220 = arith.addf %219, %218 : vector<8x96xf32>
    %221 = arith.divf %219, %220 : vector<8x96xf32>
    %222 = vector.extract_strided_slice %212 {offsets = [0, 96], sizes = [8, 32], strides = [1, 1]} : vector<8x128xf32> to vector<8x32xf32>
    %223 = math.tanh %222 : vector<8x32xf32>
    %224 = vector.extract_strided_slice %221 {offsets = [0, 32], sizes = [8, 32], strides = [1, 1]} : vector<8x96xf32> to vector<8x32xf32>
    %225 = arith.mulf %224, %207 : vector<8x32xf32>
    %226 = vector.extract_strided_slice %221 {offsets = [0, 0], sizes = [8, 32], strides = [1, 1]} : vector<8x96xf32> to vector<8x32xf32>
    %227 = arith.mulf %226, %223 : vector<8x32xf32>
    %228 = arith.addf %225, %227 : vector<8x32xf32>
    %229 = vector.extract_strided_slice %221 {offsets = [0, 64], sizes = [8, 32], strides = [1, 1]} : vector<8x96xf32> to vector<8x32xf32>
    %230 = math.tanh %228 : vector<8x32xf32>
    %231 = arith.mulf %229, %230 : vector<8x32xf32>
    %232 = vector.extract_strided_slice %215 {offsets = [0, 0], sizes = [8, 96], strides = [1, 1]} : vector<8x128xf32> to vector<8x96xf32>
    %233 = arith.negf %232 : vector<8x96xf32>
    %234 = math.exp %233 : vector<8x96xf32>
    %cst_105 = arith.constant 1.000000e+00 : f32
    %235 = vector.broadcast %cst_105 : f32 to vector<8x96xf32>
    %236 = arith.addf %235, %234 : vector<8x96xf32>
    %237 = arith.divf %235, %236 : vector<8x96xf32>
    %238 = vector.extract_strided_slice %215 {offsets = [0, 96], sizes = [8, 32], strides = [1, 1]} : vector<8x128xf32> to vector<8x32xf32>
    %239 = math.tanh %238 : vector<8x32xf32>
    %240 = vector.extract_strided_slice %237 {offsets = [0, 32], sizes = [8, 32], strides = [1, 1]} : vector<8x96xf32> to vector<8x32xf32>
    %241 = arith.mulf %240, %208 : vector<8x32xf32>
    %242 = vector.extract_strided_slice %237 {offsets = [0, 0], sizes = [8, 32], strides = [1, 1]} : vector<8x96xf32> to vector<8x32xf32>
    %243 = arith.mulf %242, %239 : vector<8x32xf32>
    %244 = arith.addf %241, %243 : vector<8x32xf32>
    %245 = vector.extract_strided_slice %237 {offsets = [0, 64], sizes = [8, 32], strides = [1, 1]} : vector<8x96xf32> to vector<8x32xf32>
    %246 = math.tanh %244 : vector<8x32xf32>
    %247 = arith.mulf %245, %246 : vector<8x32xf32>
    %c24_106 = arith.constant 24 : index
    %c0_107 = arith.constant 0 : index
    %248 = vector.load %arg2[%c24_106, %c0_107] : memref<64x32xf32, #tpu.memory_space<vmem>>, vector<8x32xf32>
    %cst_108 = arith.constant 5.000000e-01 : f32
    %249 = vector.broadcast %cst_108 : f32 to vector<8x32xf32>
    %250 = arith.cmpf ogt, %248, %249 : vector<8x32xf32>
    %c32_109 = arith.constant 32 : index
    %c0_110 = arith.constant 0 : index
    %251 = vector.load %arg2[%c32_109, %c0_110] : memref<64x32xf32, #tpu.memory_space<vmem>>, vector<8x32xf32>
    %cst_111 = arith.constant 5.000000e-01 : f32
    %252 = vector.broadcast %cst_111 : f32 to vector<8x32xf32>
    %253 = arith.cmpf ogt, %251, %252 : vector<8x32xf32>
    %254 = arith.select %250, %231, %205 : vector<8x32xi1>, vector<8x32xf32>
    %255 = arith.select %250, %228, %207 : vector<8x32xi1>, vector<8x32xf32>
    %256 = arith.select %253, %247, %206 : vector<8x32xi1>, vector<8x32xf32>
    %257 = arith.select %253, %244, %208 : vector<8x32xi1>, vector<8x32xf32>
    %c0_112 = arith.constant 0 : index
    %c0_113 = arith.constant 0 : index
    %258 = vector.load %arg20[%c0_112, %c0_113] : memref<8x64xf32, #tpu.memory_space<vmem>>, vector<8x32xf32>
    tpu.vector_store %arg20[%c0_112, %c0_113], %254 {strides = array<i32>} : memref<8x64xf32, #tpu.memory_space<vmem>>, vector<8x32xf32>,
    %c0_114 = arith.constant 0 : index
    %c32_115 = arith.constant 32 : index
    %259 = vector.load %arg20[%c0_114, %c32_115] : memref<8x64xf32, #tpu.memory_space<vmem>>, vector<8x32xf32>
    tpu.vector_store %arg20[%c0_114, %c32_115], %256 {strides = array<i32>} : memref<8x64xf32, #tpu.memory_space<vmem>>, vector<8x32xf32>,
    %c0_116 = arith.constant 0 : index
    %c0_117 = arith.constant 0 : index
    %260 = vector.load %arg21[%c0_116, %c0_117] : memref<8x64xf32, #tpu.memory_space<vmem>>, vector<8x32xf32>
    tpu.vector_store %arg21[%c0_116, %c0_117], %255 {strides = array<i32>} : memref<8x64xf32, #tpu.memory_space<vmem>>, vector<8x32xf32>,
    %c0_118 = arith.constant 0 : index
    %c32_119 = arith.constant 32 : index
    %261 = vector.load %arg21[%c0_118, %c32_119] : memref<8x64xf32, #tpu.memory_space<vmem>>, vector<8x32xf32>
    tpu.vector_store %arg21[%c0_118, %c32_119], %257 {strides = array<i32>} : memref<8x64xf32, #tpu.memory_space<vmem>>, vector<8x32xf32>,
    %c24_120 = arith.constant 24 : index
    %c0_121 = arith.constant 0 : index
    %262 = vector.load %arg19[%c24_120, %c0_121] : memref<64x64xf32, #tpu.memory_space<vmem>>, vector<8x32xf32>
    tpu.vector_store %arg19[%c24_120, %c0_121], %254 {strides = array<i32>} : memref<64x64xf32, #tpu.memory_space<vmem>>, vector<8x32xf32>,
    %c32_122 = arith.constant 32 : index
    %c32_123 = arith.constant 32 : index
    %263 = vector.load %arg19[%c32_122, %c32_123] : memref<64x64xf32, #tpu.memory_space<vmem>>, vector<8x32xf32>
    tpu.vector_store %arg19[%c32_122, %c32_123], %256 {strides = array<i32>} : memref<64x64xf32, #tpu.memory_space<vmem>>, vector<8x32xf32>,
    %c32_124 = arith.constant 32 : index
    %c0_125 = arith.constant 0 : index
    %264 = vector.load %arg18[%c32_124, %c0_125] : memref<64x256xf32, #tpu.memory_space<vmem>>, vector<8x256xf32>
    %c24_126 = arith.constant 24 : index
    %c0_127 = arith.constant 0 : index
    %265 = vector.load %arg18[%c24_126, %c0_127] : memref<64x256xf32, #tpu.memory_space<vmem>>, vector<8x256xf32>
    %c0_128 = arith.constant 0 : index
    %c0_129 = arith.constant 0 : index
    %266 = vector.load %arg20[%c0_128, %c0_129] : memref<8x64xf32, #tpu.memory_space<vmem>>, vector<8x64xf32>
    %c0_130 = arith.constant 0 : index
    %c0_131 = arith.constant 0 : index
    %267 = vector.load %arg21[%c0_130, %c0_131] : memref<8x64xf32, #tpu.memory_space<vmem>>, vector<8x64xf32>
    %268 = vector.extract_strided_slice %266 {offsets = [0, 0], sizes = [8, 32], strides = [1, 1]} : vector<8x64xf32> to vector<8x32xf32>
    %269 = vector.extract_strided_slice %266 {offsets = [0, 32], sizes = [8, 32], strides = [1, 1]} : vector<8x64xf32> to vector<8x32xf32>
    %270 = vector.extract_strided_slice %267 {offsets = [0, 0], sizes = [8, 32], strides = [1, 1]} : vector<8x64xf32> to vector<8x32xf32>
    %271 = vector.extract_strided_slice %267 {offsets = [0, 32], sizes = [8, 32], strides = [1, 1]} : vector<8x64xf32> to vector<8x32xf32>
    %cst_132 = arith.constant dense<0.000000e+00> : vector<8x256xf32>
    %272 = tpu.matmul %266, %2, %cst_132 {dimension_numbers = #tpu.dot_dimension_numbers<[1], [0], [0], [1], [0, 0, 1, 1], [], []>} : vector<8x64xf32>, vector<64x256xf32>, vector<8x256xf32> -> vector<8x256xf32>
    %273 = vector.extract_strided_slice %264 {offsets = [0, 0], sizes = [8, 128], strides = [1, 1]} : vector<8x256xf32> to vector<8x128xf32>
    %274 = vector.extract_strided_slice %272 {offsets = [0, 0], sizes = [8, 128], strides = [1, 1]} : vector<8x256xf32> to vector<8x128xf32>
    %275 = arith.addf %273, %274 : vector<8x128xf32>
    %276 = vector.extract_strided_slice %265 {offsets = [0, 128], sizes = [8, 128], strides = [1, 1]} : vector<8x256xf32> to vector<8x128xf32>
    %277 = vector.extract_strided_slice %272 {offsets = [0, 128], sizes = [8, 128], strides = [1, 1]} : vector<8x256xf32> to vector<8x128xf32>
    %278 = arith.addf %276, %277 : vector<8x128xf32>
    %279 = vector.extract_strided_slice %275 {offsets = [0, 0], sizes = [8, 96], strides = [1, 1]} : vector<8x128xf32> to vector<8x96xf32>
    %280 = arith.negf %279 : vector<8x96xf32>
    %281 = math.exp %280 : vector<8x96xf32>
    %cst_133 = arith.constant 1.000000e+00 : f32
    %282 = vector.broadcast %cst_133 : f32 to vector<8x96xf32>
    %283 = arith.addf %282, %281 : vector<8x96xf32>
    %284 = arith.divf %282, %283 : vector<8x96xf32>
    %285 = vector.extract_strided_slice %275 {offsets = [0, 96], sizes = [8, 32], strides = [1, 1]} : vector<8x128xf32> to vector<8x32xf32>
    %286 = math.tanh %285 : vector<8x32xf32>
    %287 = vector.extract_strided_slice %284 {offsets = [0, 32], sizes = [8, 32], strides = [1, 1]} : vector<8x96xf32> to vector<8x32xf32>
    %288 = arith.mulf %287, %270 : vector<8x32xf32>
    %289 = vector.extract_strided_slice %284 {offsets = [0, 0], sizes = [8, 32], strides = [1, 1]} : vector<8x96xf32> to vector<8x32xf32>
    %290 = arith.mulf %289, %286 : vector<8x32xf32>
    %291 = arith.addf %288, %290 : vector<8x32xf32>
    %292 = vector.extract_strided_slice %284 {offsets = [0, 64], sizes = [8, 32], strides = [1, 1]} : vector<8x96xf32> to vector<8x32xf32>
    %293 = math.tanh %291 : vector<8x32xf32>
    %294 = arith.mulf %292, %293 : vector<8x32xf32>
    %295 = vector.extract_strided_slice %278 {offsets = [0, 0], sizes = [8, 96], strides = [1, 1]} : vector<8x128xf32> to vector<8x96xf32>
    %296 = arith.negf %295 : vector<8x96xf32>
    %297 = math.exp %296 : vector<8x96xf32>
    %cst_134 = arith.constant 1.000000e+00 : f32
    %298 = vector.broadcast %cst_134 : f32 to vector<8x96xf32>
    %299 = arith.addf %298, %297 : vector<8x96xf32>
    %300 = arith.divf %298, %299 : vector<8x96xf32>
    %301 = vector.extract_strided_slice %278 {offsets = [0, 96], sizes = [8, 32], strides = [1, 1]} : vector<8x128xf32> to vector<8x32xf32>
    %302 = math.tanh %301 : vector<8x32xf32>
    %303 = vector.extract_strided_slice %300 {offsets = [0, 32], sizes = [8, 32], strides = [1, 1]} : vector<8x96xf32> to vector<8x32xf32>
    %304 = arith.mulf %303, %271 : vector<8x32xf32>
    %305 = vector.extract_strided_slice %300 {offsets = [0, 0], sizes = [8, 32], strides = [1, 1]} : vector<8x96xf32> to vector<8x32xf32>
    %306 = arith.mulf %305, %302 : vector<8x32xf32>
    %307 = arith.addf %304, %306 : vector<8x32xf32>
    %308 = vector.extract_strided_slice %300 {offsets = [0, 64], sizes = [8, 32], strides = [1, 1]} : vector<8x96xf32> to vector<8x32xf32>
    %309 = math.tanh %307 : vector<8x32xf32>
    %310 = arith.mulf %308, %309 : vector<8x32xf32>
    %c32_135 = arith.constant 32 : index
    %c0_136 = arith.constant 0 : index
    %311 = vector.load %arg2[%c32_135, %c0_136] : memref<64x32xf32, #tpu.memory_space<vmem>>, vector<8x32xf32>
    %cst_137 = arith.constant 5.000000e-01 : f32
    %312 = vector.broadcast %cst_137 : f32 to vector<8x32xf32>
    %313 = arith.cmpf ogt, %311, %312 : vector<8x32xf32>
    %c24_138 = arith.constant 24 : index
    %c0_139 = arith.constant 0 : index
    %314 = vector.load %arg2[%c24_138, %c0_139] : memref<64x32xf32, #tpu.memory_space<vmem>>, vector<8x32xf32>
    %cst_140 = arith.constant 5.000000e-01 : f32
    %315 = vector.broadcast %cst_140 : f32 to vector<8x32xf32>
    %316 = arith.cmpf ogt, %314, %315 : vector<8x32xf32>
    %317 = arith.select %313, %294, %268 : vector<8x32xi1>, vector<8x32xf32>
    %318 = arith.select %313, %291, %270 : vector<8x32xi1>, vector<8x32xf32>
    %319 = arith.select %316, %310, %269 : vector<8x32xi1>, vector<8x32xf32>
    %320 = arith.select %316, %307, %271 : vector<8x32xi1>, vector<8x32xf32>
    %c0_141 = arith.constant 0 : index
    %c0_142 = arith.constant 0 : index
    %321 = vector.load %arg20[%c0_141, %c0_142] : memref<8x64xf32, #tpu.memory_space<vmem>>, vector<8x32xf32>
    tpu.vector_store %arg20[%c0_141, %c0_142], %317 {strides = array<i32>} : memref<8x64xf32, #tpu.memory_space<vmem>>, vector<8x32xf32>,
    %c0_143 = arith.constant 0 : index
    %c32_144 = arith.constant 32 : index
    %322 = vector.load %arg20[%c0_143, %c32_144] : memref<8x64xf32, #tpu.memory_space<vmem>>, vector<8x32xf32>
    tpu.vector_store %arg20[%c0_143, %c32_144], %319 {strides = array<i32>} : memref<8x64xf32, #tpu.memory_space<vmem>>, vector<8x32xf32>,
    %c0_145 = arith.constant 0 : index
    %c0_146 = arith.constant 0 : index
    %323 = vector.load %arg21[%c0_145, %c0_146] : memref<8x64xf32, #tpu.memory_space<vmem>>, vector<8x32xf32>
    tpu.vector_store %arg21[%c0_145, %c0_146], %318 {strides = array<i32>} : memref<8x64xf32, #tpu.memory_space<vmem>>, vector<8x32xf32>,
    %c0_147 = arith.constant 0 : index
    %c32_148 = arith.constant 32 : index
    %324 = vector.load %arg21[%c0_147, %c32_148] : memref<8x64xf32, #tpu.memory_space<vmem>>, vector<8x32xf32>
    tpu.vector_store %arg21[%c0_147, %c32_148], %320 {strides = array<i32>} : memref<8x64xf32, #tpu.memory_space<vmem>>, vector<8x32xf32>,
    %c32_149 = arith.constant 32 : index
    %c0_150 = arith.constant 0 : index
    %325 = vector.load %arg19[%c32_149, %c0_150] : memref<64x64xf32, #tpu.memory_space<vmem>>, vector<8x32xf32>
    tpu.vector_store %arg19[%c32_149, %c0_150], %317 {strides = array<i32>} : memref<64x64xf32, #tpu.memory_space<vmem>>, vector<8x32xf32>,
    %c24_151 = arith.constant 24 : index
    %c32_152 = arith.constant 32 : index
    %326 = vector.load %arg19[%c24_151, %c32_152] : memref<64x64xf32, #tpu.memory_space<vmem>>, vector<8x32xf32>
    tpu.vector_store %arg19[%c24_151, %c32_152], %319 {strides = array<i32>} : memref<64x64xf32, #tpu.memory_space<vmem>>, vector<8x32xf32>,
    %c40_153 = arith.constant 40 : index
    %c0_154 = arith.constant 0 : index
    %327 = vector.load %arg18[%c40_153, %c0_154] : memref<64x256xf32, #tpu.memory_space<vmem>>, vector<8x256xf32>
    %c16_155 = arith.constant 16 : index
    %c0_156 = arith.constant 0 : index
    %328 = vector.load %arg18[%c16_155, %c0_156] : memref<64x256xf32, #tpu.memory_space<vmem>>, vector<8x256xf32>
    %c0_157 = arith.constant 0 : index
    %c0_158 = arith.constant 0 : index
    %329 = vector.load %arg20[%c0_157, %c0_158] : memref<8x64xf32, #tpu.memory_space<vmem>>, vector<8x64xf32>
    %c0_159 = arith.constant 0 : index
    %c0_160 = arith.constant 0 : index
    %330 = vector.load %arg21[%c0_159, %c0_160] : memref<8x64xf32, #tpu.memory_space<vmem>>, vector<8x64xf32>
    %331 = vector.extract_strided_slice %329 {offsets = [0, 0], sizes = [8, 32], strides = [1, 1]} : vector<8x64xf32> to vector<8x32xf32>
    %332 = vector.extract_strided_slice %329 {offsets = [0, 32], sizes = [8, 32], strides = [1, 1]} : vector<8x64xf32> to vector<8x32xf32>
    %333 = vector.extract_strided_slice %330 {offsets = [0, 0], sizes = [8, 32], strides = [1, 1]} : vector<8x64xf32> to vector<8x32xf32>
    %334 = vector.extract_strided_slice %330 {offsets = [0, 32], sizes = [8, 32], strides = [1, 1]} : vector<8x64xf32> to vector<8x32xf32>
    %cst_161 = arith.constant dense<0.000000e+00> : vector<8x256xf32>
    %335 = tpu.matmul %329, %2, %cst_161 {dimension_numbers = #tpu.dot_dimension_numbers<[1], [0], [0], [1], [0, 0, 1, 1], [], []>} : vector<8x64xf32>, vector<64x256xf32>, vector<8x256xf32> -> vector<8x256xf32>
    %336 = vector.extract_strided_slice %327 {offsets = [0, 0], sizes = [8, 128], strides = [1, 1]} : vector<8x256xf32> to vector<8x128xf32>
    %337 = vector.extract_strided_slice %335 {offsets = [0, 0], sizes = [8, 128], strides = [1, 1]} : vector<8x256xf32> to vector<8x128xf32>
    %338 = arith.addf %336, %337 : vector<8x128xf32>
    %339 = vector.extract_strided_slice %328 {offsets = [0, 128], sizes = [8, 128], strides = [1, 1]} : vector<8x256xf32> to vector<8x128xf32>
    %340 = vector.extract_strided_slice %335 {offsets = [0, 128], sizes = [8, 128], strides = [1, 1]} : vector<8x256xf32> to vector<8x128xf32>
    %341 = arith.addf %339, %340 : vector<8x128xf32>
    %342 = vector.extract_strided_slice %338 {offsets = [0, 0], sizes = [8, 96], strides = [1, 1]} : vector<8x128xf32> to vector<8x96xf32>
    %343 = arith.negf %342 : vector<8x96xf32>
    %344 = math.exp %343 : vector<8x96xf32>
    %cst_162 = arith.constant 1.000000e+00 : f32
    %345 = vector.broadcast %cst_162 : f32 to vector<8x96xf32>
    %346 = arith.addf %345, %344 : vector<8x96xf32>
    %347 = arith.divf %345, %346 : vector<8x96xf32>
    %348 = vector.extract_strided_slice %338 {offsets = [0, 96], sizes = [8, 32], strides = [1, 1]} : vector<8x128xf32> to vector<8x32xf32>
    %349 = math.tanh %348 : vector<8x32xf32>
    %350 = vector.extract_strided_slice %347 {offsets = [0, 32], sizes = [8, 32], strides = [1, 1]} : vector<8x96xf32> to vector<8x32xf32>
    %351 = arith.mulf %350, %333 : vector<8x32xf32>
    %352 = vector.extract_strided_slice %347 {offsets = [0, 0], sizes = [8, 32], strides = [1, 1]} : vector<8x96xf32> to vector<8x32xf32>
    %353 = arith.mulf %352, %349 : vector<8x32xf32>
    %354 = arith.addf %351, %353 : vector<8x32xf32>
    %355 = vector.extract_strided_slice %347 {offsets = [0, 64], sizes = [8, 32], strides = [1, 1]} : vector<8x96xf32> to vector<8x32xf32>
    %356 = math.tanh %354 : vector<8x32xf32>
    %357 = arith.mulf %355, %356 : vector<8x32xf32>
    %358 = vector.extract_strided_slice %341 {offsets = [0, 0], sizes = [8, 96], strides = [1, 1]} : vector<8x128xf32> to vector<8x96xf32>
    %359 = arith.negf %358 : vector<8x96xf32>
    %360 = math.exp %359 : vector<8x96xf32>
    %cst_163 = arith.constant 1.000000e+00 : f32
    %361 = vector.broadcast %cst_163 : f32 to vector<8x96xf32>
    %362 = arith.addf %361, %360 : vector<8x96xf32>
    %363 = arith.divf %361, %362 : vector<8x96xf32>
    %364 = vector.extract_strided_slice %341 {offsets = [0, 96], sizes = [8, 32], strides = [1, 1]} : vector<8x128xf32> to vector<8x32xf32>
    %365 = math.tanh %364 : vector<8x32xf32>
    %366 = vector.extract_strided_slice %363 {offsets = [0, 32], sizes = [8, 32], strides = [1, 1]} : vector<8x96xf32> to vector<8x32xf32>
    %367 = arith.mulf %366, %334 : vector<8x32xf32>
    %368 = vector.extract_strided_slice %363 {offsets = [0, 0], sizes = [8, 32], strides = [1, 1]} : vector<8x96xf32> to vector<8x32xf32>
    %369 = arith.mulf %368, %365 : vector<8x32xf32>
    %370 = arith.addf %367, %369 : vector<8x32xf32>
    %371 = vector.extract_strided_slice %363 {offsets = [0, 64], sizes = [8, 32], strides = [1, 1]} : vector<8x96xf32> to vector<8x32xf32>
    %372 = math.tanh %370 : vector<8x32xf32>
    %373 = arith.mulf %371, %372 : vector<8x32xf32>
    %c40_164 = arith.constant 40 : index
    %c0_165 = arith.constant 0 : index
    %374 = vector.load %arg2[%c40_164, %c0_165] : memref<64x32xf32, #tpu.memory_space<vmem>>, vector<8x32xf32>
    %cst_166 = arith.constant 5.000000e-01 : f32
    %375 = vector.broadcast %cst_166 : f32 to vector<8x32xf32>
    %376 = arith.cmpf ogt, %374, %375 : vector<8x32xf32>
    %c16_167 = arith.constant 16 : index
    %c0_168 = arith.constant 0 : index
    %377 = vector.load %arg2[%c16_167, %c0_168] : memref<64x32xf32, #tpu.memory_space<vmem>>, vector<8x32xf32>
    %cst_169 = arith.constant 5.000000e-01 : f32
    %378 = vector.broadcast %cst_169 : f32 to vector<8x32xf32>
    %379 = arith.cmpf ogt, %377, %378 : vector<8x32xf32>
    %380 = arith.select %376, %357, %331 : vector<8x32xi1>, vector<8x32xf32>
    %381 = arith.select %376, %354, %333 : vector<8x32xi1>, vector<8x32xf32>
    %382 = arith.select %379, %373, %332 : vector<8x32xi1>, vector<8x32xf32>
    %383 = arith.select %379, %370, %334 : vector<8x32xi1>, vector<8x32xf32>
    %c0_170 = arith.constant 0 : index
    %c0_171 = arith.constant 0 : index
    %384 = vector.load %arg20[%c0_170, %c0_171] : memref<8x64xf32, #tpu.memory_space<vmem>>, vector<8x32xf32>
    tpu.vector_store %arg20[%c0_170, %c0_171], %380 {strides = array<i32>} : memref<8x64xf32, #tpu.memory_space<vmem>>, vector<8x32xf32>,
    %c0_172 = arith.constant 0 : index
    %c32_173 = arith.constant 32 : index
    %385 = vector.load %arg20[%c0_172, %c32_173] : memref<8x64xf32, #tpu.memory_space<vmem>>, vector<8x32xf32>
    tpu.vector_store %arg20[%c0_172, %c32_173], %382 {strides = array<i32>} : memref<8x64xf32, #tpu.memory_space<vmem>>, vector<8x32xf32>,
    %c0_174 = arith.constant 0 : index
    %c0_175 = arith.constant 0 : index
    %386 = vector.load %arg21[%c0_174, %c0_175] : memref<8x64xf32, #tpu.memory_space<vmem>>, vector<8x32xf32>
    tpu.vector_store %arg21[%c0_174, %c0_175], %381 {strides = array<i32>} : memref<8x64xf32, #tpu.memory_space<vmem>>, vector<8x32xf32>,
    %c0_176 = arith.constant 0 : index
    %c32_177 = arith.constant 32 : index
    %387 = vector.load %arg21[%c0_176, %c32_177] : memref<8x64xf32, #tpu.memory_space<vmem>>, vector<8x32xf32>
    tpu.vector_store %arg21[%c0_176, %c32_177], %383 {strides = array<i32>} : memref<8x64xf32, #tpu.memory_space<vmem>>, vector<8x32xf32>,
    %c40_178 = arith.constant 40 : index
    %c0_179 = arith.constant 0 : index
    %388 = vector.load %arg19[%c40_178, %c0_179] : memref<64x64xf32, #tpu.memory_space<vmem>>, vector<8x32xf32>
    tpu.vector_store %arg19[%c40_178, %c0_179], %380 {strides = array<i32>} : memref<64x64xf32, #tpu.memory_space<vmem>>, vector<8x32xf32>,
    %c16_180 = arith.constant 16 : index
    %c32_181 = arith.constant 32 : index
    %389 = vector.load %arg19[%c16_180, %c32_181] : memref<64x64xf32, #tpu.memory_space<vmem>>, vector<8x32xf32>
    tpu.vector_store %arg19[%c16_180, %c32_181], %382 {strides = array<i32>} : memref<64x64xf32, #tpu.memory_space<vmem>>, vector<8x32xf32>,
    %c48_182 = arith.constant 48 : index
    %c0_183 = arith.constant 0 : index
    %390 = vector.load %arg18[%c48_182, %c0_183] : memref<64x256xf32, #tpu.memory_space<vmem>>, vector<8x256xf32>
    %c8_184 = arith.constant 8 : index
    %c0_185 = arith.constant 0 : index
    %391 = vector.load %arg18[%c8_184, %c0_185] : memref<64x256xf32, #tpu.memory_space<vmem>>, vector<8x256xf32>
    %c0_186 = arith.constant 0 : index
    %c0_187 = arith.constant 0 : index
    %392 = vector.load %arg20[%c0_186, %c0_187] : memref<8x64xf32, #tpu.memory_space<vmem>>, vector<8x64xf32>
    %c0_188 = arith.constant 0 : index
    %c0_189 = arith.constant 0 : index
    %393 = vector.load %arg21[%c0_188, %c0_189] : memref<8x64xf32, #tpu.memory_space<vmem>>, vector<8x64xf32>
    %394 = vector.extract_strided_slice %392 {offsets = [0, 0], sizes = [8, 32], strides = [1, 1]} : vector<8x64xf32> to vector<8x32xf32>
    %395 = vector.extract_strided_slice %392 {offsets = [0, 32], sizes = [8, 32], strides = [1, 1]} : vector<8x64xf32> to vector<8x32xf32>
    %396 = vector.extract_strided_slice %393 {offsets = [0, 0], sizes = [8, 32], strides = [1, 1]} : vector<8x64xf32> to vector<8x32xf32>
    %397 = vector.extract_strided_slice %393 {offsets = [0, 32], sizes = [8, 32], strides = [1, 1]} : vector<8x64xf32> to vector<8x32xf32>
    %cst_190 = arith.constant dense<0.000000e+00> : vector<8x256xf32>
    %398 = tpu.matmul %392, %2, %cst_190 {dimension_numbers = #tpu.dot_dimension_numbers<[1], [0], [0], [1], [0, 0, 1, 1], [], []>} : vector<8x64xf32>, vector<64x256xf32>, vector<8x256xf32> -> vector<8x256xf32>
    %399 = vector.extract_strided_slice %390 {offsets = [0, 0], sizes = [8, 128], strides = [1, 1]} : vector<8x256xf32> to vector<8x128xf32>
    %400 = vector.extract_strided_slice %398 {offsets = [0, 0], sizes = [8, 128], strides = [1, 1]} : vector<8x256xf32> to vector<8x128xf32>
    %401 = arith.addf %399, %400 : vector<8x128xf32>
    %402 = vector.extract_strided_slice %391 {offsets = [0, 128], sizes = [8, 128], strides = [1, 1]} : vector<8x256xf32> to vector<8x128xf32>
    %403 = vector.extract_strided_slice %398 {offsets = [0, 128], sizes = [8, 128], strides = [1, 1]} : vector<8x256xf32> to vector<8x128xf32>
    %404 = arith.addf %402, %403 : vector<8x128xf32>
    %405 = vector.extract_strided_slice %401 {offsets = [0, 0], sizes = [8, 96], strides = [1, 1]} : vector<8x128xf32> to vector<8x96xf32>
    %406 = arith.negf %405 : vector<8x96xf32>
    %407 = math.exp %406 : vector<8x96xf32>
    %cst_191 = arith.constant 1.000000e+00 : f32
    %408 = vector.broadcast %cst_191 : f32 to vector<8x96xf32>
    %409 = arith.addf %408, %407 : vector<8x96xf32>
    %410 = arith.divf %408, %409 : vector<8x96xf32>
    %411 = vector.extract_strided_slice %401 {offsets = [0, 96], sizes = [8, 32], strides = [1, 1]} : vector<8x128xf32> to vector<8x32xf32>
    %412 = math.tanh %411 : vector<8x32xf32>
    %413 = vector.extract_strided_slice %410 {offsets = [0, 32], sizes = [8, 32], strides = [1, 1]} : vector<8x96xf32> to vector<8x32xf32>
    %414 = arith.mulf %413, %396 : vector<8x32xf32>
    %415 = vector.extract_strided_slice %410 {offsets = [0, 0], sizes = [8, 32], strides = [1, 1]} : vector<8x96xf32> to vector<8x32xf32>
    %416 = arith.mulf %415, %412 : vector<8x32xf32>
    %417 = arith.addf %414, %416 : vector<8x32xf32>
    %418 = vector.extract_strided_slice %410 {offsets = [0, 64], sizes = [8, 32], strides = [1, 1]} : vector<8x96xf32> to vector<8x32xf32>
    %419 = math.tanh %417 : vector<8x32xf32>
    %420 = arith.mulf %418, %419 : vector<8x32xf32>
    %421 = vector.extract_strided_slice %404 {offsets = [0, 0], sizes = [8, 96], strides = [1, 1]} : vector<8x128xf32> to vector<8x96xf32>
    %422 = arith.negf %421 : vector<8x96xf32>
    %423 = math.exp %422 : vector<8x96xf32>
    %cst_192 = arith.constant 1.000000e+00 : f32
    %424 = vector.broadcast %cst_192 : f32 to vector<8x96xf32>
    %425 = arith.addf %424, %423 : vector<8x96xf32>
    %426 = arith.divf %424, %425 : vector<8x96xf32>
    %427 = vector.extract_strided_slice %404 {offsets = [0, 96], sizes = [8, 32], strides = [1, 1]} : vector<8x128xf32> to vector<8x32xf32>
    %428 = math.tanh %427 : vector<8x32xf32>
    %429 = vector.extract_strided_slice %426 {offsets = [0, 32], sizes = [8, 32], strides = [1, 1]} : vector<8x96xf32> to vector<8x32xf32>
    %430 = arith.mulf %429, %397 : vector<8x32xf32>
    %431 = vector.extract_strided_slice %426 {offsets = [0, 0], sizes = [8, 32], strides = [1, 1]} : vector<8x96xf32> to vector<8x32xf32>
    %432 = arith.mulf %431, %428 : vector<8x32xf32>
    %433 = arith.addf %430, %432 : vector<8x32xf32>
    %434 = vector.extract_strided_slice %426 {offsets = [0, 64], sizes = [8, 32], strides = [1, 1]} : vector<8x96xf32> to vector<8x32xf32>
    %435 = math.tanh %433 : vector<8x32xf32>
    %436 = arith.mulf %434, %435 : vector<8x32xf32>
    %c48_193 = arith.constant 48 : index
    %c0_194 = arith.constant 0 : index
    %437 = vector.load %arg2[%c48_193, %c0_194] : memref<64x32xf32, #tpu.memory_space<vmem>>, vector<8x32xf32>
    %cst_195 = arith.constant 5.000000e-01 : f32
    %438 = vector.broadcast %cst_195 : f32 to vector<8x32xf32>
    %439 = arith.cmpf ogt, %437, %438 : vector<8x32xf32>
    %c8_196 = arith.constant 8 : index
    %c0_197 = arith.constant 0 : index
    %440 = vector.load %arg2[%c8_196, %c0_197] : memref<64x32xf32, #tpu.memory_space<vmem>>, vector<8x32xf32>
    %cst_198 = arith.constant 5.000000e-01 : f32
    %441 = vector.broadcast %cst_198 : f32 to vector<8x32xf32>
    %442 = arith.cmpf ogt, %440, %441 : vector<8x32xf32>
    %443 = arith.select %439, %420, %394 : vector<8x32xi1>, vector<8x32xf32>
    %444 = arith.select %439, %417, %396 : vector<8x32xi1>, vector<8x32xf32>
    %445 = arith.select %442, %436, %395 : vector<8x32xi1>, vector<8x32xf32>
    %446 = arith.select %442, %433, %397 : vector<8x32xi1>, vector<8x32xf32>
    %c0_199 = arith.constant 0 : index
    %c0_200 = arith.constant 0 : index
    %447 = vector.load %arg20[%c0_199, %c0_200] : memref<8x64xf32, #tpu.memory_space<vmem>>, vector<8x32xf32>
    tpu.vector_store %arg20[%c0_199, %c0_200], %443 {strides = array<i32>} : memref<8x64xf32, #tpu.memory_space<vmem>>, vector<8x32xf32>,
    %c0_201 = arith.constant 0 : index
    %c32_202 = arith.constant 32 : index
    %448 = vector.load %arg20[%c0_201, %c32_202] : memref<8x64xf32, #tpu.memory_space<vmem>>, vector<8x32xf32>
    tpu.vector_store %arg20[%c0_201, %c32_202], %445 {strides = array<i32>} : memref<8x64xf32, #tpu.memory_space<vmem>>, vector<8x32xf32>,
    %c0_203 = arith.constant 0 : index
    %c0_204 = arith.constant 0 : index
    %449 = vector.load %arg21[%c0_203, %c0_204] : memref<8x64xf32, #tpu.memory_space<vmem>>, vector<8x32xf32>
    tpu.vector_store %arg21[%c0_203, %c0_204], %444 {strides = array<i32>} : memref<8x64xf32, #tpu.memory_space<vmem>>, vector<8x32xf32>,
    %c0_205 = arith.constant 0 : index
    %c32_206 = arith.constant 32 : index
    %450 = vector.load %arg21[%c0_205, %c32_206] : memref<8x64xf32, #tpu.memory_space<vmem>>, vector<8x32xf32>
    tpu.vector_store %arg21[%c0_205, %c32_206], %446 {strides = array<i32>} : memref<8x64xf32, #tpu.memory_space<vmem>>, vector<8x32xf32>,
    %c48_207 = arith.constant 48 : index
    %c0_208 = arith.constant 0 : index
    %451 = vector.load %arg19[%c48_207, %c0_208] : memref<64x64xf32, #tpu.memory_space<vmem>>, vector<8x32xf32>
    tpu.vector_store %arg19[%c48_207, %c0_208], %443 {strides = array<i32>} : memref<64x64xf32, #tpu.memory_space<vmem>>, vector<8x32xf32>,
    %c8_209 = arith.constant 8 : index
    %c32_210 = arith.constant 32 : index
    %452 = vector.load %arg19[%c8_209, %c32_210] : memref<64x64xf32, #tpu.memory_space<vmem>>, vector<8x32xf32>
    tpu.vector_store %arg19[%c8_209, %c32_210], %445 {strides = array<i32>} : memref<64x64xf32, #tpu.memory_space<vmem>>, vector<8x32xf32>,
    %c56_211 = arith.constant 56 : index
    %c0_212 = arith.constant 0 : index
    %453 = vector.load %arg18[%c56_211, %c0_212] : memref<64x256xf32, #tpu.memory_space<vmem>>, vector<8x256xf32>
    %c0_213 = arith.constant 0 : index
    %c0_214 = arith.constant 0 : index
    %454 = vector.load %arg18[%c0_213, %c0_214] : memref<64x256xf32, #tpu.memory_space<vmem>>, vector<8x256xf32>
    %c0_215 = arith.constant 0 : index
    %c0_216 = arith.constant 0 : index
    %455 = vector.load %arg20[%c0_215, %c0_216] : memref<8x64xf32, #tpu.memory_space<vmem>>, vector<8x64xf32>
    %c0_217 = arith.constant 0 : index
    %c0_218 = arith.constant 0 : index
    %456 = vector.load %arg21[%c0_217, %c0_218] : memref<8x64xf32, #tpu.memory_space<vmem>>, vector<8x64xf32>
    %457 = vector.extract_strided_slice %455 {offsets = [0, 0], sizes = [8, 32], strides = [1, 1]} : vector<8x64xf32> to vector<8x32xf32>
    %458 = vector.extract_strided_slice %455 {offsets = [0, 32], sizes = [8, 32], strides = [1, 1]} : vector<8x64xf32> to vector<8x32xf32>
    %459 = vector.extract_strided_slice %456 {offsets = [0, 0], sizes = [8, 32], strides = [1, 1]} : vector<8x64xf32> to vector<8x32xf32>
    %460 = vector.extract_strided_slice %456 {offsets = [0, 32], sizes = [8, 32], strides = [1, 1]} : vector<8x64xf32> to vector<8x32xf32>
    %cst_219 = arith.constant dense<0.000000e+00> : vector<8x256xf32>
    %461 = tpu.matmul %455, %2, %cst_219 {dimension_numbers = #tpu.dot_dimension_numbers<[1], [0], [0], [1], [0, 0, 1, 1], [], []>} : vector<8x64xf32>, vector<64x256xf32>, vector<8x256xf32> -> vector<8x256xf32>
    %462 = vector.extract_strided_slice %453 {offsets = [0, 0], sizes = [8, 128], strides = [1, 1]} : vector<8x256xf32> to vector<8x128xf32>
    %463 = vector.extract_strided_slice %461 {offsets = [0, 0], sizes = [8, 128], strides = [1, 1]} : vector<8x256xf32> to vector<8x128xf32>
    %464 = arith.addf %462, %463 : vector<8x128xf32>
    %465 = vector.extract_strided_slice %454 {offsets = [0, 128], sizes = [8, 128], strides = [1, 1]} : vector<8x256xf32> to vector<8x128xf32>
    %466 = vector.extract_strided_slice %461 {offsets = [0, 128], sizes = [8, 128], strides = [1, 1]} : vector<8x256xf32> to vector<8x128xf32>
    %467 = arith.addf %465, %466 : vector<8x128xf32>
    %468 = vector.extract_strided_slice %464 {offsets = [0, 0], sizes = [8, 96], strides = [1, 1]} : vector<8x128xf32> to vector<8x96xf32>
    %469 = arith.negf %468 : vector<8x96xf32>
    %470 = math.exp %469 : vector<8x96xf32>
    %cst_220 = arith.constant 1.000000e+00 : f32
    %471 = vector.broadcast %cst_220 : f32 to vector<8x96xf32>
    %472 = arith.addf %471, %470 : vector<8x96xf32>
    %473 = arith.divf %471, %472 : vector<8x96xf32>
    %474 = vector.extract_strided_slice %464 {offsets = [0, 96], sizes = [8, 32], strides = [1, 1]} : vector<8x128xf32> to vector<8x32xf32>
    %475 = math.tanh %474 : vector<8x32xf32>
    %476 = vector.extract_strided_slice %473 {offsets = [0, 32], sizes = [8, 32], strides = [1, 1]} : vector<8x96xf32> to vector<8x32xf32>
    %477 = arith.mulf %476, %459 : vector<8x32xf32>
    %478 = vector.extract_strided_slice %473 {offsets = [0, 0], sizes = [8, 32], strides = [1, 1]} : vector<8x96xf32> to vector<8x32xf32>
    %479 = arith.mulf %478, %475 : vector<8x32xf32>
    %480 = arith.addf %477, %479 : vector<8x32xf32>
    %481 = vector.extract_strided_slice %473 {offsets = [0, 64], sizes = [8, 32], strides = [1, 1]} : vector<8x96xf32> to vector<8x32xf32>
    %482 = math.tanh %480 : vector<8x32xf32>
    %483 = arith.mulf %481, %482 : vector<8x32xf32>
    %484 = vector.extract_strided_slice %467 {offsets = [0, 0], sizes = [8, 96], strides = [1, 1]} : vector<8x128xf32> to vector<8x96xf32>
    %485 = arith.negf %484 : vector<8x96xf32>
    %486 = math.exp %485 : vector<8x96xf32>
    %cst_221 = arith.constant 1.000000e+00 : f32
    %487 = vector.broadcast %cst_221 : f32 to vector<8x96xf32>
    %488 = arith.addf %487, %486 : vector<8x96xf32>
    %489 = arith.divf %487, %488 : vector<8x96xf32>
    %490 = vector.extract_strided_slice %467 {offsets = [0, 96], sizes = [8, 32], strides = [1, 1]} : vector<8x128xf32> to vector<8x32xf32>
    %491 = math.tanh %490 : vector<8x32xf32>
    %492 = vector.extract_strided_slice %489 {offsets = [0, 32], sizes = [8, 32], strides = [1, 1]} : vector<8x96xf32> to vector<8x32xf32>
    %493 = arith.mulf %492, %460 : vector<8x32xf32>
    %494 = vector.extract_strided_slice %489 {offsets = [0, 0], sizes = [8, 32], strides = [1, 1]} : vector<8x96xf32> to vector<8x32xf32>
    %495 = arith.mulf %494, %491 : vector<8x32xf32>
    %496 = arith.addf %493, %495 : vector<8x32xf32>
    %497 = vector.extract_strided_slice %489 {offsets = [0, 64], sizes = [8, 32], strides = [1, 1]} : vector<8x96xf32> to vector<8x32xf32>
    %498 = math.tanh %496 : vector<8x32xf32>
    %499 = arith.mulf %497, %498 : vector<8x32xf32>
    %c56_222 = arith.constant 56 : index
    %c0_223 = arith.constant 0 : index
    %500 = vector.load %arg2[%c56_222, %c0_223] : memref<64x32xf32, #tpu.memory_space<vmem>>, vector<8x32xf32>
    %cst_224 = arith.constant 5.000000e-01 : f32
    %501 = vector.broadcast %cst_224 : f32 to vector<8x32xf32>
    %502 = arith.cmpf ogt, %500, %501 : vector<8x32xf32>
    %c0_225 = arith.constant 0 : index
    %c0_226 = arith.constant 0 : index
    %503 = vector.load %arg2[%c0_225, %c0_226] : memref<64x32xf32, #tpu.memory_space<vmem>>, vector<8x32xf32>
    %cst_227 = arith.constant 5.000000e-01 : f32
    %504 = vector.broadcast %cst_227 : f32 to vector<8x32xf32>
    %505 = arith.cmpf ogt, %503, %504 : vector<8x32xf32>
    %506 = arith.select %502, %483, %457 : vector<8x32xi1>, vector<8x32xf32>
    %507 = arith.select %502, %480, %459 : vector<8x32xi1>, vector<8x32xf32>
    %508 = arith.select %505, %499, %458 : vector<8x32xi1>, vector<8x32xf32>
    %509 = arith.select %505, %496, %460 : vector<8x32xi1>, vector<8x32xf32>
    %c0_228 = arith.constant 0 : index
    %c0_229 = arith.constant 0 : index
    %510 = vector.load %arg20[%c0_228, %c0_229] : memref<8x64xf32, #tpu.memory_space<vmem>>, vector<8x32xf32>
    tpu.vector_store %arg20[%c0_228, %c0_229], %506 {strides = array<i32>} : memref<8x64xf32, #tpu.memory_space<vmem>>, vector<8x32xf32>,
    %c0_230 = arith.constant 0 : index
    %c32_231 = arith.constant 32 : index
    %511 = vector.load %arg20[%c0_230, %c32_231] : memref<8x64xf32, #tpu.memory_space<vmem>>, vector<8x32xf32>
    tpu.vector_store %arg20[%c0_230, %c32_231], %508 {strides = array<i32>} : memref<8x64xf32, #tpu.memory_space<vmem>>, vector<8x32xf32>,
    %c0_232 = arith.constant 0 : index
    %c0_233 = arith.constant 0 : index
    %512 = vector.load %arg21[%c0_232, %c0_233] : memref<8x64xf32, #tpu.memory_space<vmem>>, vector<8x32xf32>
    tpu.vector_store %arg21[%c0_232, %c0_233], %507 {strides = array<i32>} : memref<8x64xf32, #tpu.memory_space<vmem>>, vector<8x32xf32>,
    %c0_234 = arith.constant 0 : index
    %c32_235 = arith.constant 32 : index
    %513 = vector.load %arg21[%c0_234, %c32_235] : memref<8x64xf32, #tpu.memory_space<vmem>>, vector<8x32xf32>
    tpu.vector_store %arg21[%c0_234, %c32_235], %509 {strides = array<i32>} : memref<8x64xf32, #tpu.memory_space<vmem>>, vector<8x32xf32>,
    %c56_236 = arith.constant 56 : index
    %c0_237 = arith.constant 0 : index
    %514 = vector.load %arg19[%c56_236, %c0_237] : memref<64x64xf32, #tpu.memory_space<vmem>>, vector<8x32xf32>
    tpu.vector_store %arg19[%c56_236, %c0_237], %506 {strides = array<i32>} : memref<64x64xf32, #tpu.memory_space<vmem>>, vector<8x32xf32>,
    %c0_238 = arith.constant 0 : index
    %c32_239 = arith.constant 32 : index
    %515 = vector.load %arg19[%c0_238, %c32_239] : memref<64x64xf32, #tpu.memory_space<vmem>>, vector<8x32xf32>
    tpu.vector_store %arg19[%c0_238, %c32_239], %508 {strides = array<i32>} : memref<64x64xf32, #tpu.memory_space<vmem>>, vector<8x32xf32>,
    %c0_240 = arith.constant 0 : index
    %c0_241 = arith.constant 0 : index
    %516 = vector.load %arg6[%c0_240, %c0_241] : memref<64x256xf32, #tpu.memory_space<vmem>>, vector<64x256xf32>
    %c0_242 = arith.constant 0 : index
    %c0_243 = arith.constant 0 : index
    %517 = vector.load %arg7[%c0_242, %c0_243] : memref<1x256xf32, #tpu.memory_space<vmem>>, vector<1x256xf32>
    %c0_244 = arith.constant 0 : index
    %c0_245 = arith.constant 0 : index
    %518 = vector.load %arg8[%c0_244, %c0_245] : memref<64x256xf32, #tpu.memory_space<vmem>>, vector<64x256xf32>
    %c0_246 = arith.constant 0 : index
    %c0_247 = arith.constant 0 : index
    %519 = vector.load %arg19[%c0_246, %c0_247] : memref<64x64xf32, #tpu.memory_space<vmem>>, vector<64x64xf32>
    %cst_248 = arith.constant dense<0.000000e+00> : vector<64x256xf32>
    %520 = tpu.matmul %519, %516, %cst_248 {dimension_numbers = #tpu.dot_dimension_numbers<[1], [0], [0], [1], [0, 0, 1, 1], [], []>} : vector<64x64xf32>, vector<64x256xf32>, vector<64x256xf32> -> vector<64x256xf32>
    %521 = vector.broadcast %517 : vector<1x256xf32> to vector<64x256xf32>
    %522 = arith.addf %520, %521 : vector<64x256xf32>
    %c0_249 = arith.constant 0 : index
    %c0_250 = arith.constant 0 : index
    %523 = vector.load %arg18[%c0_249, %c0_250] : memref<64x256xf32, #tpu.memory_space<vmem>>, vector<64x256xf32>
    tpu.vector_store %arg18[%c0_249, %c0_250], %522 {strides = array<i32>} : memref<64x256xf32, #tpu.memory_space<vmem>>, vector<64x256xf32>,
    %cst_251 = arith.constant 0.000000e+00 : f32
    %524 = vector.broadcast %cst_251 : f32 to vector<8x64xf32>
    %c0_252 = arith.constant 0 : index
    %c0_253 = arith.constant 0 : index
    %525 = vector.load %arg20[%c0_252, %c0_253] : memref<8x64xf32, #tpu.memory_space<vmem>>, vector<8x64xf32>
    tpu.vector_store %arg20[%c0_252, %c0_253], %524 {strides = array<i32>} : memref<8x64xf32, #tpu.memory_space<vmem>>, vector<8x64xf32>,
    %cst_254 = arith.constant 0.000000e+00 : f32
    %526 = vector.broadcast %cst_254 : f32 to vector<8x64xf32>
    %c0_255 = arith.constant 0 : index
    %c0_256 = arith.constant 0 : index
    %527 = vector.load %arg21[%c0_255, %c0_256] : memref<8x64xf32, #tpu.memory_space<vmem>>, vector<8x64xf32>
    tpu.vector_store %arg21[%c0_255, %c0_256], %526 {strides = array<i32>} : memref<8x64xf32, #tpu.memory_space<vmem>>, vector<8x64xf32>,
    %c0_257 = arith.constant 0 : index
    %c0_258 = arith.constant 0 : index
    %528 = vector.load %arg18[%c0_257, %c0_258] : memref<64x256xf32, #tpu.memory_space<vmem>>, vector<8x256xf32>
    %c56_259 = arith.constant 56 : index
    %c0_260 = arith.constant 0 : index
    %529 = vector.load %arg18[%c56_259, %c0_260] : memref<64x256xf32, #tpu.memory_space<vmem>>, vector<8x256xf32>
    %c0_261 = arith.constant 0 : index
    %c0_262 = arith.constant 0 : index
    %530 = vector.load %arg20[%c0_261, %c0_262] : memref<8x64xf32, #tpu.memory_space<vmem>>, vector<8x64xf32>
    %c0_263 = arith.constant 0 : index
    %c0_264 = arith.constant 0 : index
    %531 = vector.load %arg21[%c0_263, %c0_264] : memref<8x64xf32, #tpu.memory_space<vmem>>, vector<8x64xf32>
    %532 = vector.extract_strided_slice %530 {offsets = [0, 0], sizes = [8, 32], strides = [1, 1]} : vector<8x64xf32> to vector<8x32xf32>
    %533 = vector.extract_strided_slice %530 {offsets = [0, 32], sizes = [8, 32], strides = [1, 1]} : vector<8x64xf32> to vector<8x32xf32>
    %534 = vector.extract_strided_slice %531 {offsets = [0, 0], sizes = [8, 32], strides = [1, 1]} : vector<8x64xf32> to vector<8x32xf32>
    %535 = vector.extract_strided_slice %531 {offsets = [0, 32], sizes = [8, 32], strides = [1, 1]} : vector<8x64xf32> to vector<8x32xf32>
    %cst_265 = arith.constant dense<0.000000e+00> : vector<8x256xf32>
    %536 = tpu.matmul %530, %518, %cst_265 {dimension_numbers = #tpu.dot_dimension_numbers<[1], [0], [0], [1], [0, 0, 1, 1], [], []>} : vector<8x64xf32>, vector<64x256xf32>, vector<8x256xf32> -> vector<8x256xf32>
    %537 = vector.extract_strided_slice %528 {offsets = [0, 0], sizes = [8, 128], strides = [1, 1]} : vector<8x256xf32> to vector<8x128xf32>
    %538 = vector.extract_strided_slice %536 {offsets = [0, 0], sizes = [8, 128], strides = [1, 1]} : vector<8x256xf32> to vector<8x128xf32>
    %539 = arith.addf %537, %538 : vector<8x128xf32>
    %540 = vector.extract_strided_slice %529 {offsets = [0, 128], sizes = [8, 128], strides = [1, 1]} : vector<8x256xf32> to vector<8x128xf32>
    %541 = vector.extract_strided_slice %536 {offsets = [0, 128], sizes = [8, 128], strides = [1, 1]} : vector<8x256xf32> to vector<8x128xf32>
    %542 = arith.addf %540, %541 : vector<8x128xf32>
    %543 = vector.extract_strided_slice %539 {offsets = [0, 0], sizes = [8, 96], strides = [1, 1]} : vector<8x128xf32> to vector<8x96xf32>
    %544 = arith.negf %543 : vector<8x96xf32>
    %545 = math.exp %544 : vector<8x96xf32>
    %cst_266 = arith.constant 1.000000e+00 : f32
    %546 = vector.broadcast %cst_266 : f32 to vector<8x96xf32>
    %547 = arith.addf %546, %545 : vector<8x96xf32>
    %548 = arith.divf %546, %547 : vector<8x96xf32>
    %549 = vector.extract_strided_slice %539 {offsets = [0, 96], sizes = [8, 32], strides = [1, 1]} : vector<8x128xf32> to vector<8x32xf32>
    %550 = math.tanh %549 : vector<8x32xf32>
    %551 = vector.extract_strided_slice %548 {offsets = [0, 32], sizes = [8, 32], strides = [1, 1]} : vector<8x96xf32> to vector<8x32xf32>
    %552 = arith.mulf %551, %534 : vector<8x32xf32>
    %553 = vector.extract_strided_slice %548 {offsets = [0, 0], sizes = [8, 32], strides = [1, 1]} : vector<8x96xf32> to vector<8x32xf32>
    %554 = arith.mulf %553, %550 : vector<8x32xf32>
    %555 = arith.addf %552, %554 : vector<8x32xf32>
    %556 = vector.extract_strided_slice %548 {offsets = [0, 64], sizes = [8, 32], strides = [1, 1]} : vector<8x96xf32> to vector<8x32xf32>
    %557 = math.tanh %555 : vector<8x32xf32>
    %558 = arith.mulf %556, %557 : vector<8x32xf32>
    %559 = vector.extract_strided_slice %542 {offsets = [0, 0], sizes = [8, 96], strides = [1, 1]} : vector<8x128xf32> to vector<8x96xf32>
    %560 = arith.negf %559 : vector<8x96xf32>
    %561 = math.exp %560 : vector<8x96xf32>
    %cst_267 = arith.constant 1.000000e+00 : f32
    %562 = vector.broadcast %cst_267 : f32 to vector<8x96xf32>
    %563 = arith.addf %562, %561 : vector<8x96xf32>
    %564 = arith.divf %562, %563 : vector<8x96xf32>
    %565 = vector.extract_strided_slice %542 {offsets = [0, 96], sizes = [8, 32], strides = [1, 1]} : vector<8x128xf32> to vector<8x32xf32>
    %566 = math.tanh %565 : vector<8x32xf32>
    %567 = vector.extract_strided_slice %564 {offsets = [0, 32], sizes = [8, 32], strides = [1, 1]} : vector<8x96xf32> to vector<8x32xf32>
    %568 = arith.mulf %567, %535 : vector<8x32xf32>
    %569 = vector.extract_strided_slice %564 {offsets = [0, 0], sizes = [8, 32], strides = [1, 1]} : vector<8x96xf32> to vector<8x32xf32>
    %570 = arith.mulf %569, %566 : vector<8x32xf32>
    %571 = arith.addf %568, %570 : vector<8x32xf32>
    %572 = vector.extract_strided_slice %564 {offsets = [0, 64], sizes = [8, 32], strides = [1, 1]} : vector<8x96xf32> to vector<8x32xf32>
    %573 = math.tanh %571 : vector<8x32xf32>
    %574 = arith.mulf %572, %573 : vector<8x32xf32>
    %c0_268 = arith.constant 0 : index
    %c0_269 = arith.constant 0 : index
    %575 = vector.load %arg2[%c0_268, %c0_269] : memref<64x32xf32, #tpu.memory_space<vmem>>, vector<8x32xf32>
    %cst_270 = arith.constant 5.000000e-01 : f32
    %576 = vector.broadcast %cst_270 : f32 to vector<8x32xf32>
    %577 = arith.cmpf ogt, %575, %576 : vector<8x32xf32>
    %c56_271 = arith.constant 56 : index
    %c0_272 = arith.constant 0 : index
    %578 = vector.load %arg2[%c56_271, %c0_272] : memref<64x32xf32, #tpu.memory_space<vmem>>, vector<8x32xf32>
    %cst_273 = arith.constant 5.000000e-01 : f32
    %579 = vector.broadcast %cst_273 : f32 to vector<8x32xf32>
    %580 = arith.cmpf ogt, %578, %579 : vector<8x32xf32>
    %581 = arith.select %577, %558, %532 : vector<8x32xi1>, vector<8x32xf32>
    %582 = arith.select %577, %555, %534 : vector<8x32xi1>, vector<8x32xf32>
    %583 = arith.select %580, %574, %533 : vector<8x32xi1>, vector<8x32xf32>
    %584 = arith.select %580, %571, %535 : vector<8x32xi1>, vector<8x32xf32>
    %c0_274 = arith.constant 0 : index
    %c0_275 = arith.constant 0 : index
    %585 = vector.load %arg20[%c0_274, %c0_275] : memref<8x64xf32, #tpu.memory_space<vmem>>, vector<8x32xf32>
    tpu.vector_store %arg20[%c0_274, %c0_275], %581 {strides = array<i32>} : memref<8x64xf32, #tpu.memory_space<vmem>>, vector<8x32xf32>,
    %c0_276 = arith.constant 0 : index
    %c32_277 = arith.constant 32 : index
    %586 = vector.load %arg20[%c0_276, %c32_277] : memref<8x64xf32, #tpu.memory_space<vmem>>, vector<8x32xf32>
    tpu.vector_store %arg20[%c0_276, %c32_277], %583 {strides = array<i32>} : memref<8x64xf32, #tpu.memory_space<vmem>>, vector<8x32xf32>,
    %c0_278 = arith.constant 0 : index
    %c0_279 = arith.constant 0 : index
    %587 = vector.load %arg21[%c0_278, %c0_279] : memref<8x64xf32, #tpu.memory_space<vmem>>, vector<8x32xf32>
    tpu.vector_store %arg21[%c0_278, %c0_279], %582 {strides = array<i32>} : memref<8x64xf32, #tpu.memory_space<vmem>>, vector<8x32xf32>,
    %c0_280 = arith.constant 0 : index
    %c32_281 = arith.constant 32 : index
    %588 = vector.load %arg21[%c0_280, %c32_281] : memref<8x64xf32, #tpu.memory_space<vmem>>, vector<8x32xf32>
    tpu.vector_store %arg21[%c0_280, %c32_281], %584 {strides = array<i32>} : memref<8x64xf32, #tpu.memory_space<vmem>>, vector<8x32xf32>,
    %c8_282 = arith.constant 8 : index
    %c0_283 = arith.constant 0 : index
    %589 = vector.load %arg18[%c8_282, %c0_283] : memref<64x256xf32, #tpu.memory_space<vmem>>, vector<8x256xf32>
    %c48_284 = arith.constant 48 : index
    %c0_285 = arith.constant 0 : index
    %590 = vector.load %arg18[%c48_284, %c0_285] : memref<64x256xf32, #tpu.memory_space<vmem>>, vector<8x256xf32>
    %c0_286 = arith.constant 0 : index
    %c0_287 = arith.constant 0 : index
    %591 = vector.load %arg20[%c0_286, %c0_287] : memref<8x64xf32, #tpu.memory_space<vmem>>, vector<8x64xf32>
    %c0_288 = arith.constant 0 : index
    %c0_289 = arith.constant 0 : index
    %592 = vector.load %arg21[%c0_288, %c0_289] : memref<8x64xf32, #tpu.memory_space<vmem>>, vector<8x64xf32>
    %593 = vector.extract_strided_slice %591 {offsets = [0, 0], sizes = [8, 32], strides = [1, 1]} : vector<8x64xf32> to vector<8x32xf32>
    %594 = vector.extract_strided_slice %591 {offsets = [0, 32], sizes = [8, 32], strides = [1, 1]} : vector<8x64xf32> to vector<8x32xf32>
    %595 = vector.extract_strided_slice %592 {offsets = [0, 0], sizes = [8, 32], strides = [1, 1]} : vector<8x64xf32> to vector<8x32xf32>
    %596 = vector.extract_strided_slice %592 {offsets = [0, 32], sizes = [8, 32], strides = [1, 1]} : vector<8x64xf32> to vector<8x32xf32>
    %cst_290 = arith.constant dense<0.000000e+00> : vector<8x256xf32>
    %597 = tpu.matmul %591, %518, %cst_290 {dimension_numbers = #tpu.dot_dimension_numbers<[1], [0], [0], [1], [0, 0, 1, 1], [], []>} : vector<8x64xf32>, vector<64x256xf32>, vector<8x256xf32> -> vector<8x256xf32>
    %598 = vector.extract_strided_slice %589 {offsets = [0, 0], sizes = [8, 128], strides = [1, 1]} : vector<8x256xf32> to vector<8x128xf32>
    %599 = vector.extract_strided_slice %597 {offsets = [0, 0], sizes = [8, 128], strides = [1, 1]} : vector<8x256xf32> to vector<8x128xf32>
    %600 = arith.addf %598, %599 : vector<8x128xf32>
    %601 = vector.extract_strided_slice %590 {offsets = [0, 128], sizes = [8, 128], strides = [1, 1]} : vector<8x256xf32> to vector<8x128xf32>
    %602 = vector.extract_strided_slice %597 {offsets = [0, 128], sizes = [8, 128], strides = [1, 1]} : vector<8x256xf32> to vector<8x128xf32>
    %603 = arith.addf %601, %602 : vector<8x128xf32>
    %604 = vector.extract_strided_slice %600 {offsets = [0, 0], sizes = [8, 96], strides = [1, 1]} : vector<8x128xf32> to vector<8x96xf32>
    %605 = arith.negf %604 : vector<8x96xf32>
    %606 = math.exp %605 : vector<8x96xf32>
    %cst_291 = arith.constant 1.000000e+00 : f32
    %607 = vector.broadcast %cst_291 : f32 to vector<8x96xf32>
    %608 = arith.addf %607, %606 : vector<8x96xf32>
    %609 = arith.divf %607, %608 : vector<8x96xf32>
    %610 = vector.extract_strided_slice %600 {offsets = [0, 96], sizes = [8, 32], strides = [1, 1]} : vector<8x128xf32> to vector<8x32xf32>
    %611 = math.tanh %610 : vector<8x32xf32>
    %612 = vector.extract_strided_slice %609 {offsets = [0, 32], sizes = [8, 32], strides = [1, 1]} : vector<8x96xf32> to vector<8x32xf32>
    %613 = arith.mulf %612, %595 : vector<8x32xf32>
    %614 = vector.extract_strided_slice %609 {offsets = [0, 0], sizes = [8, 32], strides = [1, 1]} : vector<8x96xf32> to vector<8x32xf32>
    %615 = arith.mulf %614, %611 : vector<8x32xf32>
    %616 = arith.addf %613, %615 : vector<8x32xf32>
    %617 = vector.extract_strided_slice %609 {offsets = [0, 64], sizes = [8, 32], strides = [1, 1]} : vector<8x96xf32> to vector<8x32xf32>
    %618 = math.tanh %616 : vector<8x32xf32>
    %619 = arith.mulf %617, %618 : vector<8x32xf32>
    %620 = vector.extract_strided_slice %603 {offsets = [0, 0], sizes = [8, 96], strides = [1, 1]} : vector<8x128xf32> to vector<8x96xf32>
    %621 = arith.negf %620 : vector<8x96xf32>
    %622 = math.exp %621 : vector<8x96xf32>
    %cst_292 = arith.constant 1.000000e+00 : f32
    %623 = vector.broadcast %cst_292 : f32 to vector<8x96xf32>
    %624 = arith.addf %623, %622 : vector<8x96xf32>
    %625 = arith.divf %623, %624 : vector<8x96xf32>
    %626 = vector.extract_strided_slice %603 {offsets = [0, 96], sizes = [8, 32], strides = [1, 1]} : vector<8x128xf32> to vector<8x32xf32>
    %627 = math.tanh %626 : vector<8x32xf32>
    %628 = vector.extract_strided_slice %625 {offsets = [0, 32], sizes = [8, 32], strides = [1, 1]} : vector<8x96xf32> to vector<8x32xf32>
    %629 = arith.mulf %628, %596 : vector<8x32xf32>
    %630 = vector.extract_strided_slice %625 {offsets = [0, 0], sizes = [8, 32], strides = [1, 1]} : vector<8x96xf32> to vector<8x32xf32>
    %631 = arith.mulf %630, %627 : vector<8x32xf32>
    %632 = arith.addf %629, %631 : vector<8x32xf32>
    %633 = vector.extract_strided_slice %625 {offsets = [0, 64], sizes = [8, 32], strides = [1, 1]} : vector<8x96xf32> to vector<8x32xf32>
    %634 = math.tanh %632 : vector<8x32xf32>
    %635 = arith.mulf %633, %634 : vector<8x32xf32>
    %c8_293 = arith.constant 8 : index
    %c0_294 = arith.constant 0 : index
    %636 = vector.load %arg2[%c8_293, %c0_294] : memref<64x32xf32, #tpu.memory_space<vmem>>, vector<8x32xf32>
    %cst_295 = arith.constant 5.000000e-01 : f32
    %637 = vector.broadcast %cst_295 : f32 to vector<8x32xf32>
    %638 = arith.cmpf ogt, %636, %637 : vector<8x32xf32>
    %c48_296 = arith.constant 48 : index
    %c0_297 = arith.constant 0 : index
    %639 = vector.load %arg2[%c48_296, %c0_297] : memref<64x32xf32, #tpu.memory_space<vmem>>, vector<8x32xf32>
    %cst_298 = arith.constant 5.000000e-01 : f32
    %640 = vector.broadcast %cst_298 : f32 to vector<8x32xf32>
    %641 = arith.cmpf ogt, %639, %640 : vector<8x32xf32>
    %642 = arith.select %638, %619, %593 : vector<8x32xi1>, vector<8x32xf32>
    %643 = arith.select %638, %616, %595 : vector<8x32xi1>, vector<8x32xf32>
    %644 = arith.select %641, %635, %594 : vector<8x32xi1>, vector<8x32xf32>
    %645 = arith.select %641, %632, %596 : vector<8x32xi1>, vector<8x32xf32>
    %c0_299 = arith.constant 0 : index
    %c0_300 = arith.constant 0 : index
    %646 = vector.load %arg20[%c0_299, %c0_300] : memref<8x64xf32, #tpu.memory_space<vmem>>, vector<8x32xf32>
    tpu.vector_store %arg20[%c0_299, %c0_300], %642 {strides = array<i32>} : memref<8x64xf32, #tpu.memory_space<vmem>>, vector<8x32xf32>,
    %c0_301 = arith.constant 0 : index
    %c32_302 = arith.constant 32 : index
    %647 = vector.load %arg20[%c0_301, %c32_302] : memref<8x64xf32, #tpu.memory_space<vmem>>, vector<8x32xf32>
    tpu.vector_store %arg20[%c0_301, %c32_302], %644 {strides = array<i32>} : memref<8x64xf32, #tpu.memory_space<vmem>>, vector<8x32xf32>,
    %c0_303 = arith.constant 0 : index
    %c0_304 = arith.constant 0 : index
    %648 = vector.load %arg21[%c0_303, %c0_304] : memref<8x64xf32, #tpu.memory_space<vmem>>, vector<8x32xf32>
    tpu.vector_store %arg21[%c0_303, %c0_304], %643 {strides = array<i32>} : memref<8x64xf32, #tpu.memory_space<vmem>>, vector<8x32xf32>,
    %c0_305 = arith.constant 0 : index
    %c32_306 = arith.constant 32 : index
    %649 = vector.load %arg21[%c0_305, %c32_306] : memref<8x64xf32, #tpu.memory_space<vmem>>, vector<8x32xf32>
    tpu.vector_store %arg21[%c0_305, %c32_306], %645 {strides = array<i32>} : memref<8x64xf32, #tpu.memory_space<vmem>>, vector<8x32xf32>,
    %c16_307 = arith.constant 16 : index
    %c0_308 = arith.constant 0 : index
    %650 = vector.load %arg18[%c16_307, %c0_308] : memref<64x256xf32, #tpu.memory_space<vmem>>, vector<8x256xf32>
    %c40_309 = arith.constant 40 : index
    %c0_310 = arith.constant 0 : index
    %651 = vector.load %arg18[%c40_309, %c0_310] : memref<64x256xf32, #tpu.memory_space<vmem>>, vector<8x256xf32>
    %c0_311 = arith.constant 0 : index
    %c0_312 = arith.constant 0 : index
    %652 = vector.load %arg20[%c0_311, %c0_312] : memref<8x64xf32, #tpu.memory_space<vmem>>, vector<8x64xf32>
    %c0_313 = arith.constant 0 : index
    %c0_314 = arith.constant 0 : index
    %653 = vector.load %arg21[%c0_313, %c0_314] : memref<8x64xf32, #tpu.memory_space<vmem>>, vector<8x64xf32>
    %654 = vector.extract_strided_slice %652 {offsets = [0, 0], sizes = [8, 32], strides = [1, 1]} : vector<8x64xf32> to vector<8x32xf32>
    %655 = vector.extract_strided_slice %652 {offsets = [0, 32], sizes = [8, 32], strides = [1, 1]} : vector<8x64xf32> to vector<8x32xf32>
    %656 = vector.extract_strided_slice %653 {offsets = [0, 0], sizes = [8, 32], strides = [1, 1]} : vector<8x64xf32> to vector<8x32xf32>
    %657 = vector.extract_strided_slice %653 {offsets = [0, 32], sizes = [8, 32], strides = [1, 1]} : vector<8x64xf32> to vector<8x32xf32>
    %cst_315 = arith.constant dense<0.000000e+00> : vector<8x256xf32>
    %658 = tpu.matmul %652, %518, %cst_315 {dimension_numbers = #tpu.dot_dimension_numbers<[1], [0], [0], [1], [0, 0, 1, 1], [], []>} : vector<8x64xf32>, vector<64x256xf32>, vector<8x256xf32> -> vector<8x256xf32>
    %659 = vector.extract_strided_slice %650 {offsets = [0, 0], sizes = [8, 128], strides = [1, 1]} : vector<8x256xf32> to vector<8x128xf32>
    %660 = vector.extract_strided_slice %658 {offsets = [0, 0], sizes = [8, 128], strides = [1, 1]} : vector<8x256xf32> to vector<8x128xf32>
    %661 = arith.addf %659, %660 : vector<8x128xf32>
    %662 = vector.extract_strided_slice %651 {offsets = [0, 128], sizes = [8, 128], strides = [1, 1]} : vector<8x256xf32> to vector<8x128xf32>
    %663 = vector.extract_strided_slice %658 {offsets = [0, 128], sizes = [8, 128], strides = [1, 1]} : vector<8x256xf32> to vector<8x128xf32>
    %664 = arith.addf %662, %663 : vector<8x128xf32>
    %665 = vector.extract_strided_slice %661 {offsets = [0, 0], sizes = [8, 96], strides = [1, 1]} : vector<8x128xf32> to vector<8x96xf32>
    %666 = arith.negf %665 : vector<8x96xf32>
    %667 = math.exp %666 : vector<8x96xf32>
    %cst_316 = arith.constant 1.000000e+00 : f32
    %668 = vector.broadcast %cst_316 : f32 to vector<8x96xf32>
    %669 = arith.addf %668, %667 : vector<8x96xf32>
    %670 = arith.divf %668, %669 : vector<8x96xf32>
    %671 = vector.extract_strided_slice %661 {offsets = [0, 96], sizes = [8, 32], strides = [1, 1]} : vector<8x128xf32> to vector<8x32xf32>
    %672 = math.tanh %671 : vector<8x32xf32>
    %673 = vector.extract_strided_slice %670 {offsets = [0, 32], sizes = [8, 32], strides = [1, 1]} : vector<8x96xf32> to vector<8x32xf32>
    %674 = arith.mulf %673, %656 : vector<8x32xf32>
    %675 = vector.extract_strided_slice %670 {offsets = [0, 0], sizes = [8, 32], strides = [1, 1]} : vector<8x96xf32> to vector<8x32xf32>
    %676 = arith.mulf %675, %672 : vector<8x32xf32>
    %677 = arith.addf %674, %676 : vector<8x32xf32>
    %678 = vector.extract_strided_slice %670 {offsets = [0, 64], sizes = [8, 32], strides = [1, 1]} : vector<8x96xf32> to vector<8x32xf32>
    %679 = math.tanh %677 : vector<8x32xf32>
    %680 = arith.mulf %678, %679 : vector<8x32xf32>
    %681 = vector.extract_strided_slice %664 {offsets = [0, 0], sizes = [8, 96], strides = [1, 1]} : vector<8x128xf32> to vector<8x96xf32>
    %682 = arith.negf %681 : vector<8x96xf32>
    %683 = math.exp %682 : vector<8x96xf32>
    %cst_317 = arith.constant 1.000000e+00 : f32
    %684 = vector.broadcast %cst_317 : f32 to vector<8x96xf32>
    %685 = arith.addf %684, %683 : vector<8x96xf32>
    %686 = arith.divf %684, %685 : vector<8x96xf32>
    %687 = vector.extract_strided_slice %664 {offsets = [0, 96], sizes = [8, 32], strides = [1, 1]} : vector<8x128xf32> to vector<8x32xf32>
    %688 = math.tanh %687 : vector<8x32xf32>
    %689 = vector.extract_strided_slice %686 {offsets = [0, 32], sizes = [8, 32], strides = [1, 1]} : vector<8x96xf32> to vector<8x32xf32>
    %690 = arith.mulf %689, %657 : vector<8x32xf32>
    %691 = vector.extract_strided_slice %686 {offsets = [0, 0], sizes = [8, 32], strides = [1, 1]} : vector<8x96xf32> to vector<8x32xf32>
    %692 = arith.mulf %691, %688 : vector<8x32xf32>
    %693 = arith.addf %690, %692 : vector<8x32xf32>
    %694 = vector.extract_strided_slice %686 {offsets = [0, 64], sizes = [8, 32], strides = [1, 1]} : vector<8x96xf32> to vector<8x32xf32>
    %695 = math.tanh %693 : vector<8x32xf32>
    %696 = arith.mulf %694, %695 : vector<8x32xf32>
    %c16_318 = arith.constant 16 : index
    %c0_319 = arith.constant 0 : index
    %697 = vector.load %arg2[%c16_318, %c0_319] : memref<64x32xf32, #tpu.memory_space<vmem>>, vector<8x32xf32>
    %cst_320 = arith.constant 5.000000e-01 : f32
    %698 = vector.broadcast %cst_320 : f32 to vector<8x32xf32>
    %699 = arith.cmpf ogt, %697, %698 : vector<8x32xf32>
    %c40_321 = arith.constant 40 : index
    %c0_322 = arith.constant 0 : index
    %700 = vector.load %arg2[%c40_321, %c0_322] : memref<64x32xf32, #tpu.memory_space<vmem>>, vector<8x32xf32>
    %cst_323 = arith.constant 5.000000e-01 : f32
    %701 = vector.broadcast %cst_323 : f32 to vector<8x32xf32>
    %702 = arith.cmpf ogt, %700, %701 : vector<8x32xf32>
    %703 = arith.select %699, %680, %654 : vector<8x32xi1>, vector<8x32xf32>
    %704 = arith.select %699, %677, %656 : vector<8x32xi1>, vector<8x32xf32>
    %705 = arith.select %702, %696, %655 : vector<8x32xi1>, vector<8x32xf32>
    %706 = arith.select %702, %693, %657 : vector<8x32xi1>, vector<8x32xf32>
    %c0_324 = arith.constant 0 : index
    %c0_325 = arith.constant 0 : index
    %707 = vector.load %arg20[%c0_324, %c0_325] : memref<8x64xf32, #tpu.memory_space<vmem>>, vector<8x32xf32>
    tpu.vector_store %arg20[%c0_324, %c0_325], %703 {strides = array<i32>} : memref<8x64xf32, #tpu.memory_space<vmem>>, vector<8x32xf32>,
    %c0_326 = arith.constant 0 : index
    %c32_327 = arith.constant 32 : index
    %708 = vector.load %arg20[%c0_326, %c32_327] : memref<8x64xf32, #tpu.memory_space<vmem>>, vector<8x32xf32>
    tpu.vector_store %arg20[%c0_326, %c32_327], %705 {strides = array<i32>} : memref<8x64xf32, #tpu.memory_space<vmem>>, vector<8x32xf32>,
    %c0_328 = arith.constant 0 : index
    %c0_329 = arith.constant 0 : index
    %709 = vector.load %arg21[%c0_328, %c0_329] : memref<8x64xf32, #tpu.memory_space<vmem>>, vector<8x32xf32>
    tpu.vector_store %arg21[%c0_328, %c0_329], %704 {strides = array<i32>} : memref<8x64xf32, #tpu.memory_space<vmem>>, vector<8x32xf32>,
    %c0_330 = arith.constant 0 : index
    %c32_331 = arith.constant 32 : index
    %710 = vector.load %arg21[%c0_330, %c32_331] : memref<8x64xf32, #tpu.memory_space<vmem>>, vector<8x32xf32>
    tpu.vector_store %arg21[%c0_330, %c32_331], %706 {strides = array<i32>} : memref<8x64xf32, #tpu.memory_space<vmem>>, vector<8x32xf32>,
    %c24_332 = arith.constant 24 : index
    %c0_333 = arith.constant 0 : index
    %711 = vector.load %arg18[%c24_332, %c0_333] : memref<64x256xf32, #tpu.memory_space<vmem>>, vector<8x256xf32>
    %c32_334 = arith.constant 32 : index
    %c0_335 = arith.constant 0 : index
    %712 = vector.load %arg18[%c32_334, %c0_335] : memref<64x256xf32, #tpu.memory_space<vmem>>, vector<8x256xf32>
    %c0_336 = arith.constant 0 : index
    %c0_337 = arith.constant 0 : index
    %713 = vector.load %arg20[%c0_336, %c0_337] : memref<8x64xf32, #tpu.memory_space<vmem>>, vector<8x64xf32>
    %c0_338 = arith.constant 0 : index
    %c0_339 = arith.constant 0 : index
    %714 = vector.load %arg21[%c0_338, %c0_339] : memref<8x64xf32, #tpu.memory_space<vmem>>, vector<8x64xf32>
    %715 = vector.extract_strided_slice %713 {offsets = [0, 0], sizes = [8, 32], strides = [1, 1]} : vector<8x64xf32> to vector<8x32xf32>
    %716 = vector.extract_strided_slice %713 {offsets = [0, 32], sizes = [8, 32], strides = [1, 1]} : vector<8x64xf32> to vector<8x32xf32>
    %717 = vector.extract_strided_slice %714 {offsets = [0, 0], sizes = [8, 32], strides = [1, 1]} : vector<8x64xf32> to vector<8x32xf32>
    %718 = vector.extract_strided_slice %714 {offsets = [0, 32], sizes = [8, 32], strides = [1, 1]} : vector<8x64xf32> to vector<8x32xf32>
    %cst_340 = arith.constant dense<0.000000e+00> : vector<8x256xf32>
    %719 = tpu.matmul %713, %518, %cst_340 {dimension_numbers = #tpu.dot_dimension_numbers<[1], [0], [0], [1], [0, 0, 1, 1], [], []>} : vector<8x64xf32>, vector<64x256xf32>, vector<8x256xf32> -> vector<8x256xf32>
    %720 = vector.extract_strided_slice %711 {offsets = [0, 0], sizes = [8, 128], strides = [1, 1]} : vector<8x256xf32> to vector<8x128xf32>
    %721 = vector.extract_strided_slice %719 {offsets = [0, 0], sizes = [8, 128], strides = [1, 1]} : vector<8x256xf32> to vector<8x128xf32>
    %722 = arith.addf %720, %721 : vector<8x128xf32>
    %723 = vector.extract_strided_slice %712 {offsets = [0, 128], sizes = [8, 128], strides = [1, 1]} : vector<8x256xf32> to vector<8x128xf32>
    %724 = vector.extract_strided_slice %719 {offsets = [0, 128], sizes = [8, 128], strides = [1, 1]} : vector<8x256xf32> to vector<8x128xf32>
    %725 = arith.addf %723, %724 : vector<8x128xf32>
    %726 = vector.extract_strided_slice %722 {offsets = [0, 0], sizes = [8, 96], strides = [1, 1]} : vector<8x128xf32> to vector<8x96xf32>
    %727 = arith.negf %726 : vector<8x96xf32>
    %728 = math.exp %727 : vector<8x96xf32>
    %cst_341 = arith.constant 1.000000e+00 : f32
    %729 = vector.broadcast %cst_341 : f32 to vector<8x96xf32>
    %730 = arith.addf %729, %728 : vector<8x96xf32>
    %731 = arith.divf %729, %730 : vector<8x96xf32>
    %732 = vector.extract_strided_slice %722 {offsets = [0, 96], sizes = [8, 32], strides = [1, 1]} : vector<8x128xf32> to vector<8x32xf32>
    %733 = math.tanh %732 : vector<8x32xf32>
    %734 = vector.extract_strided_slice %731 {offsets = [0, 32], sizes = [8, 32], strides = [1, 1]} : vector<8x96xf32> to vector<8x32xf32>
    %735 = arith.mulf %734, %717 : vector<8x32xf32>
    %736 = vector.extract_strided_slice %731 {offsets = [0, 0], sizes = [8, 32], strides = [1, 1]} : vector<8x96xf32> to vector<8x32xf32>
    %737 = arith.mulf %736, %733 : vector<8x32xf32>
    %738 = arith.addf %735, %737 : vector<8x32xf32>
    %739 = vector.extract_strided_slice %731 {offsets = [0, 64], sizes = [8, 32], strides = [1, 1]} : vector<8x96xf32> to vector<8x32xf32>
    %740 = math.tanh %738 : vector<8x32xf32>
    %741 = arith.mulf %739, %740 : vector<8x32xf32>
    %742 = vector.extract_strided_slice %725 {offsets = [0, 0], sizes = [8, 96], strides = [1, 1]} : vector<8x128xf32> to vector<8x96xf32>
    %743 = arith.negf %742 : vector<8x96xf32>
    %744 = math.exp %743 : vector<8x96xf32>
    %cst_342 = arith.constant 1.000000e+00 : f32
    %745 = vector.broadcast %cst_342 : f32 to vector<8x96xf32>
    %746 = arith.addf %745, %744 : vector<8x96xf32>
    %747 = arith.divf %745, %746 : vector<8x96xf32>
    %748 = vector.extract_strided_slice %725 {offsets = [0, 96], sizes = [8, 32], strides = [1, 1]} : vector<8x128xf32> to vector<8x32xf32>
    %749 = math.tanh %748 : vector<8x32xf32>
    %750 = vector.extract_strided_slice %747 {offsets = [0, 32], sizes = [8, 32], strides = [1, 1]} : vector<8x96xf32> to vector<8x32xf32>
    %751 = arith.mulf %750, %718 : vector<8x32xf32>
    %752 = vector.extract_strided_slice %747 {offsets = [0, 0], sizes = [8, 32], strides = [1, 1]} : vector<8x96xf32> to vector<8x32xf32>
    %753 = arith.mulf %752, %749 : vector<8x32xf32>
    %754 = arith.addf %751, %753 : vector<8x32xf32>
    %755 = vector.extract_strided_slice %747 {offsets = [0, 64], sizes = [8, 32], strides = [1, 1]} : vector<8x96xf32> to vector<8x32xf32>
    %756 = math.tanh %754 : vector<8x32xf32>
    %757 = arith.mulf %755, %756 : vector<8x32xf32>
    %c24_343 = arith.constant 24 : index
    %c0_344 = arith.constant 0 : index
    %758 = vector.load %arg2[%c24_343, %c0_344] : memref<64x32xf32, #tpu.memory_space<vmem>>, vector<8x32xf32>
    %cst_345 = arith.constant 5.000000e-01 : f32
    %759 = vector.broadcast %cst_345 : f32 to vector<8x32xf32>
    %760 = arith.cmpf ogt, %758, %759 : vector<8x32xf32>
    %c32_346 = arith.constant 32 : index
    %c0_347 = arith.constant 0 : index
    %761 = vector.load %arg2[%c32_346, %c0_347] : memref<64x32xf32, #tpu.memory_space<vmem>>, vector<8x32xf32>
    %cst_348 = arith.constant 5.000000e-01 : f32
    %762 = vector.broadcast %cst_348 : f32 to vector<8x32xf32>
    %763 = arith.cmpf ogt, %761, %762 : vector<8x32xf32>
    %764 = arith.select %760, %741, %715 : vector<8x32xi1>, vector<8x32xf32>
    %765 = arith.select %760, %738, %717 : vector<8x32xi1>, vector<8x32xf32>
    %766 = arith.select %763, %757, %716 : vector<8x32xi1>, vector<8x32xf32>
    %767 = arith.select %763, %754, %718 : vector<8x32xi1>, vector<8x32xf32>
    %c0_349 = arith.constant 0 : index
    %c0_350 = arith.constant 0 : index
    %768 = vector.load %arg20[%c0_349, %c0_350] : memref<8x64xf32, #tpu.memory_space<vmem>>, vector<8x32xf32>
    tpu.vector_store %arg20[%c0_349, %c0_350], %764 {strides = array<i32>} : memref<8x64xf32, #tpu.memory_space<vmem>>, vector<8x32xf32>,
    %c0_351 = arith.constant 0 : index
    %c32_352 = arith.constant 32 : index
    %769 = vector.load %arg20[%c0_351, %c32_352] : memref<8x64xf32, #tpu.memory_space<vmem>>, vector<8x32xf32>
    tpu.vector_store %arg20[%c0_351, %c32_352], %766 {strides = array<i32>} : memref<8x64xf32, #tpu.memory_space<vmem>>, vector<8x32xf32>,
    %c0_353 = arith.constant 0 : index
    %c0_354 = arith.constant 0 : index
    %770 = vector.load %arg21[%c0_353, %c0_354] : memref<8x64xf32, #tpu.memory_space<vmem>>, vector<8x32xf32>
    tpu.vector_store %arg21[%c0_353, %c0_354], %765 {strides = array<i32>} : memref<8x64xf32, #tpu.memory_space<vmem>>, vector<8x32xf32>,
    %c0_355 = arith.constant 0 : index
    %c32_356 = arith.constant 32 : index
    %771 = vector.load %arg21[%c0_355, %c32_356] : memref<8x64xf32, #tpu.memory_space<vmem>>, vector<8x32xf32>
    tpu.vector_store %arg21[%c0_355, %c32_356], %767 {strides = array<i32>} : memref<8x64xf32, #tpu.memory_space<vmem>>, vector<8x32xf32>,
    %c32_357 = arith.constant 32 : index
    %c0_358 = arith.constant 0 : index
    %772 = vector.load %arg18[%c32_357, %c0_358] : memref<64x256xf32, #tpu.memory_space<vmem>>, vector<8x256xf32>
    %c24_359 = arith.constant 24 : index
    %c0_360 = arith.constant 0 : index
    %773 = vector.load %arg18[%c24_359, %c0_360] : memref<64x256xf32, #tpu.memory_space<vmem>>, vector<8x256xf32>
    %c0_361 = arith.constant 0 : index
    %c0_362 = arith.constant 0 : index
    %774 = vector.load %arg20[%c0_361, %c0_362] : memref<8x64xf32, #tpu.memory_space<vmem>>, vector<8x64xf32>
    %c0_363 = arith.constant 0 : index
    %c0_364 = arith.constant 0 : index
    %775 = vector.load %arg21[%c0_363, %c0_364] : memref<8x64xf32, #tpu.memory_space<vmem>>, vector<8x64xf32>
    %776 = vector.extract_strided_slice %774 {offsets = [0, 0], sizes = [8, 32], strides = [1, 1]} : vector<8x64xf32> to vector<8x32xf32>
    %777 = vector.extract_strided_slice %774 {offsets = [0, 32], sizes = [8, 32], strides = [1, 1]} : vector<8x64xf32> to vector<8x32xf32>
    %778 = vector.extract_strided_slice %775 {offsets = [0, 0], sizes = [8, 32], strides = [1, 1]} : vector<8x64xf32> to vector<8x32xf32>
    %779 = vector.extract_strided_slice %775 {offsets = [0, 32], sizes = [8, 32], strides = [1, 1]} : vector<8x64xf32> to vector<8x32xf32>
    %cst_365 = arith.constant dense<0.000000e+00> : vector<8x256xf32>
    %780 = tpu.matmul %774, %518, %cst_365 {dimension_numbers = #tpu.dot_dimension_numbers<[1], [0], [0], [1], [0, 0, 1, 1], [], []>} : vector<8x64xf32>, vector<64x256xf32>, vector<8x256xf32> -> vector<8x256xf32>
    %781 = vector.extract_strided_slice %772 {offsets = [0, 0], sizes = [8, 128], strides = [1, 1]} : vector<8x256xf32> to vector<8x128xf32>
    %782 = vector.extract_strided_slice %780 {offsets = [0, 0], sizes = [8, 128], strides = [1, 1]} : vector<8x256xf32> to vector<8x128xf32>
    %783 = arith.addf %781, %782 : vector<8x128xf32>
    %784 = vector.extract_strided_slice %773 {offsets = [0, 128], sizes = [8, 128], strides = [1, 1]} : vector<8x256xf32> to vector<8x128xf32>
    %785 = vector.extract_strided_slice %780 {offsets = [0, 128], sizes = [8, 128], strides = [1, 1]} : vector<8x256xf32> to vector<8x128xf32>
    %786 = arith.addf %784, %785 : vector<8x128xf32>
    %787 = vector.extract_strided_slice %783 {offsets = [0, 0], sizes = [8, 96], strides = [1, 1]} : vector<8x128xf32> to vector<8x96xf32>
    %788 = arith.negf %787 : vector<8x96xf32>
    %789 = math.exp %788 : vector<8x96xf32>
    %cst_366 = arith.constant 1.000000e+00 : f32
    %790 = vector.broadcast %cst_366 : f32 to vector<8x96xf32>
    %791 = arith.addf %790, %789 : vector<8x96xf32>
    %792 = arith.divf %790, %791 : vector<8x96xf32>
    %793 = vector.extract_strided_slice %783 {offsets = [0, 96], sizes = [8, 32], strides = [1, 1]} : vector<8x128xf32> to vector<8x32xf32>
    %794 = math.tanh %793 : vector<8x32xf32>
    %795 = vector.extract_strided_slice %792 {offsets = [0, 32], sizes = [8, 32], strides = [1, 1]} : vector<8x96xf32> to vector<8x32xf32>
    %796 = arith.mulf %795, %778 : vector<8x32xf32>
    %797 = vector.extract_strided_slice %792 {offsets = [0, 0], sizes = [8, 32], strides = [1, 1]} : vector<8x96xf32> to vector<8x32xf32>
    %798 = arith.mulf %797, %794 : vector<8x32xf32>
    %799 = arith.addf %796, %798 : vector<8x32xf32>
    %800 = vector.extract_strided_slice %792 {offsets = [0, 64], sizes = [8, 32], strides = [1, 1]} : vector<8x96xf32> to vector<8x32xf32>
    %801 = math.tanh %799 : vector<8x32xf32>
    %802 = arith.mulf %800, %801 : vector<8x32xf32>
    %803 = vector.extract_strided_slice %786 {offsets = [0, 0], sizes = [8, 96], strides = [1, 1]} : vector<8x128xf32> to vector<8x96xf32>
    %804 = arith.negf %803 : vector<8x96xf32>
    %805 = math.exp %804 : vector<8x96xf32>
    %cst_367 = arith.constant 1.000000e+00 : f32
    %806 = vector.broadcast %cst_367 : f32 to vector<8x96xf32>
    %807 = arith.addf %806, %805 : vector<8x96xf32>
    %808 = arith.divf %806, %807 : vector<8x96xf32>
    %809 = vector.extract_strided_slice %786 {offsets = [0, 96], sizes = [8, 32], strides = [1, 1]} : vector<8x128xf32> to vector<8x32xf32>
    %810 = math.tanh %809 : vector<8x32xf32>
    %811 = vector.extract_strided_slice %808 {offsets = [0, 32], sizes = [8, 32], strides = [1, 1]} : vector<8x96xf32> to vector<8x32xf32>
    %812 = arith.mulf %811, %779 : vector<8x32xf32>
    %813 = vector.extract_strided_slice %808 {offsets = [0, 0], sizes = [8, 32], strides = [1, 1]} : vector<8x96xf32> to vector<8x32xf32>
    %814 = arith.mulf %813, %810 : vector<8x32xf32>
    %815 = arith.addf %812, %814 : vector<8x32xf32>
    %816 = vector.extract_strided_slice %808 {offsets = [0, 64], sizes = [8, 32], strides = [1, 1]} : vector<8x96xf32> to vector<8x32xf32>
    %817 = math.tanh %815 : vector<8x32xf32>
    %818 = arith.mulf %816, %817 : vector<8x32xf32>
    %c32_368 = arith.constant 32 : index
    %c0_369 = arith.constant 0 : index
    %819 = vector.load %arg2[%c32_368, %c0_369] : memref<64x32xf32, #tpu.memory_space<vmem>>, vector<8x32xf32>
    %cst_370 = arith.constant 5.000000e-01 : f32
    %820 = vector.broadcast %cst_370 : f32 to vector<8x32xf32>
    %821 = arith.cmpf ogt, %819, %820 : vector<8x32xf32>
    %c24_371 = arith.constant 24 : index
    %c0_372 = arith.constant 0 : index
    %822 = vector.load %arg2[%c24_371, %c0_372] : memref<64x32xf32, #tpu.memory_space<vmem>>, vector<8x32xf32>
    %cst_373 = arith.constant 5.000000e-01 : f32
    %823 = vector.broadcast %cst_373 : f32 to vector<8x32xf32>
    %824 = arith.cmpf ogt, %822, %823 : vector<8x32xf32>
    %825 = arith.select %821, %802, %776 : vector<8x32xi1>, vector<8x32xf32>
    %826 = arith.select %821, %799, %778 : vector<8x32xi1>, vector<8x32xf32>
    %827 = arith.select %824, %818, %777 : vector<8x32xi1>, vector<8x32xf32>
    %828 = arith.select %824, %815, %779 : vector<8x32xi1>, vector<8x32xf32>
    %c0_374 = arith.constant 0 : index
    %c0_375 = arith.constant 0 : index
    %829 = vector.load %arg20[%c0_374, %c0_375] : memref<8x64xf32, #tpu.memory_space<vmem>>, vector<8x32xf32>
    tpu.vector_store %arg20[%c0_374, %c0_375], %825 {strides = array<i32>} : memref<8x64xf32, #tpu.memory_space<vmem>>, vector<8x32xf32>,
    %c0_376 = arith.constant 0 : index
    %c32_377 = arith.constant 32 : index
    %830 = vector.load %arg20[%c0_376, %c32_377] : memref<8x64xf32, #tpu.memory_space<vmem>>, vector<8x32xf32>
    tpu.vector_store %arg20[%c0_376, %c32_377], %827 {strides = array<i32>} : memref<8x64xf32, #tpu.memory_space<vmem>>, vector<8x32xf32>,
    %c0_378 = arith.constant 0 : index
    %c0_379 = arith.constant 0 : index
    %831 = vector.load %arg21[%c0_378, %c0_379] : memref<8x64xf32, #tpu.memory_space<vmem>>, vector<8x32xf32>
    tpu.vector_store %arg21[%c0_378, %c0_379], %826 {strides = array<i32>} : memref<8x64xf32, #tpu.memory_space<vmem>>, vector<8x32xf32>,
    %c0_380 = arith.constant 0 : index
    %c32_381 = arith.constant 32 : index
    %832 = vector.load %arg21[%c0_380, %c32_381] : memref<8x64xf32, #tpu.memory_space<vmem>>, vector<8x32xf32>
    tpu.vector_store %arg21[%c0_380, %c32_381], %828 {strides = array<i32>} : memref<8x64xf32, #tpu.memory_space<vmem>>, vector<8x32xf32>,
    %c40_382 = arith.constant 40 : index
    %c0_383 = arith.constant 0 : index
    %833 = vector.load %arg18[%c40_382, %c0_383] : memref<64x256xf32, #tpu.memory_space<vmem>>, vector<8x256xf32>
    %c16_384 = arith.constant 16 : index
    %c0_385 = arith.constant 0 : index
    %834 = vector.load %arg18[%c16_384, %c0_385] : memref<64x256xf32, #tpu.memory_space<vmem>>, vector<8x256xf32>
    %c0_386 = arith.constant 0 : index
    %c0_387 = arith.constant 0 : index
    %835 = vector.load %arg20[%c0_386, %c0_387] : memref<8x64xf32, #tpu.memory_space<vmem>>, vector<8x64xf32>
    %c0_388 = arith.constant 0 : index
    %c0_389 = arith.constant 0 : index
    %836 = vector.load %arg21[%c0_388, %c0_389] : memref<8x64xf32, #tpu.memory_space<vmem>>, vector<8x64xf32>
    %837 = vector.extract_strided_slice %835 {offsets = [0, 0], sizes = [8, 32], strides = [1, 1]} : vector<8x64xf32> to vector<8x32xf32>
    %838 = vector.extract_strided_slice %835 {offsets = [0, 32], sizes = [8, 32], strides = [1, 1]} : vector<8x64xf32> to vector<8x32xf32>
    %839 = vector.extract_strided_slice %836 {offsets = [0, 0], sizes = [8, 32], strides = [1, 1]} : vector<8x64xf32> to vector<8x32xf32>
    %840 = vector.extract_strided_slice %836 {offsets = [0, 32], sizes = [8, 32], strides = [1, 1]} : vector<8x64xf32> to vector<8x32xf32>
    %cst_390 = arith.constant dense<0.000000e+00> : vector<8x256xf32>
    %841 = tpu.matmul %835, %518, %cst_390 {dimension_numbers = #tpu.dot_dimension_numbers<[1], [0], [0], [1], [0, 0, 1, 1], [], []>} : vector<8x64xf32>, vector<64x256xf32>, vector<8x256xf32> -> vector<8x256xf32>
    %842 = vector.extract_strided_slice %833 {offsets = [0, 0], sizes = [8, 128], strides = [1, 1]} : vector<8x256xf32> to vector<8x128xf32>
    %843 = vector.extract_strided_slice %841 {offsets = [0, 0], sizes = [8, 128], strides = [1, 1]} : vector<8x256xf32> to vector<8x128xf32>
    %844 = arith.addf %842, %843 : vector<8x128xf32>
    %845 = vector.extract_strided_slice %834 {offsets = [0, 128], sizes = [8, 128], strides = [1, 1]} : vector<8x256xf32> to vector<8x128xf32>
    %846 = vector.extract_strided_slice %841 {offsets = [0, 128], sizes = [8, 128], strides = [1, 1]} : vector<8x256xf32> to vector<8x128xf32>
    %847 = arith.addf %845, %846 : vector<8x128xf32>
    %848 = vector.extract_strided_slice %844 {offsets = [0, 0], sizes = [8, 96], strides = [1, 1]} : vector<8x128xf32> to vector<8x96xf32>
    %849 = arith.negf %848 : vector<8x96xf32>
    %850 = math.exp %849 : vector<8x96xf32>
    %cst_391 = arith.constant 1.000000e+00 : f32
    %851 = vector.broadcast %cst_391 : f32 to vector<8x96xf32>
    %852 = arith.addf %851, %850 : vector<8x96xf32>
    %853 = arith.divf %851, %852 : vector<8x96xf32>
    %854 = vector.extract_strided_slice %844 {offsets = [0, 96], sizes = [8, 32], strides = [1, 1]} : vector<8x128xf32> to vector<8x32xf32>
    %855 = math.tanh %854 : vector<8x32xf32>
    %856 = vector.extract_strided_slice %853 {offsets = [0, 32], sizes = [8, 32], strides = [1, 1]} : vector<8x96xf32> to vector<8x32xf32>
    %857 = arith.mulf %856, %839 : vector<8x32xf32>
    %858 = vector.extract_strided_slice %853 {offsets = [0, 0], sizes = [8, 32], strides = [1, 1]} : vector<8x96xf32> to vector<8x32xf32>
    %859 = arith.mulf %858, %855 : vector<8x32xf32>
    %860 = arith.addf %857, %859 : vector<8x32xf32>
    %861 = vector.extract_strided_slice %853 {offsets = [0, 64], sizes = [8, 32], strides = [1, 1]} : vector<8x96xf32> to vector<8x32xf32>
    %862 = math.tanh %860 : vector<8x32xf32>
    %863 = arith.mulf %861, %862 : vector<8x32xf32>
    %864 = vector.extract_strided_slice %847 {offsets = [0, 0], sizes = [8, 96], strides = [1, 1]} : vector<8x128xf32> to vector<8x96xf32>
    %865 = arith.negf %864 : vector<8x96xf32>
    %866 = math.exp %865 : vector<8x96xf32>
    %cst_392 = arith.constant 1.000000e+00 : f32
    %867 = vector.broadcast %cst_392 : f32 to vector<8x96xf32>
    %868 = arith.addf %867, %866 : vector<8x96xf32>
    %869 = arith.divf %867, %868 : vector<8x96xf32>
    %870 = vector.extract_strided_slice %847 {offsets = [0, 96], sizes = [8, 32], strides = [1, 1]} : vector<8x128xf32> to vector<8x32xf32>
    %871 = math.tanh %870 : vector<8x32xf32>
    %872 = vector.extract_strided_slice %869 {offsets = [0, 32], sizes = [8, 32], strides = [1, 1]} : vector<8x96xf32> to vector<8x32xf32>
    %873 = arith.mulf %872, %840 : vector<8x32xf32>
    %874 = vector.extract_strided_slice %869 {offsets = [0, 0], sizes = [8, 32], strides = [1, 1]} : vector<8x96xf32> to vector<8x32xf32>
    %875 = arith.mulf %874, %871 : vector<8x32xf32>
    %876 = arith.addf %873, %875 : vector<8x32xf32>
    %877 = vector.extract_strided_slice %869 {offsets = [0, 64], sizes = [8, 32], strides = [1, 1]} : vector<8x96xf32> to vector<8x32xf32>
    %878 = math.tanh %876 : vector<8x32xf32>
    %879 = arith.mulf %877, %878 : vector<8x32xf32>
    %c40_393 = arith.constant 40 : index
    %c0_394 = arith.constant 0 : index
    %880 = vector.load %arg2[%c40_393, %c0_394] : memref<64x32xf32, #tpu.memory_space<vmem>>, vector<8x32xf32>
    %cst_395 = arith.constant 5.000000e-01 : f32
    %881 = vector.broadcast %cst_395 : f32 to vector<8x32xf32>
    %882 = arith.cmpf ogt, %880, %881 : vector<8x32xf32>
    %c16_396 = arith.constant 16 : index
    %c0_397 = arith.constant 0 : index
    %883 = vector.load %arg2[%c16_396, %c0_397] : memref<64x32xf32, #tpu.memory_space<vmem>>, vector<8x32xf32>
    %cst_398 = arith.constant 5.000000e-01 : f32
    %884 = vector.broadcast %cst_398 : f32 to vector<8x32xf32>
    %885 = arith.cmpf ogt, %883, %884 : vector<8x32xf32>
    %886 = arith.select %882, %863, %837 : vector<8x32xi1>, vector<8x32xf32>
    %887 = arith.select %882, %860, %839 : vector<8x32xi1>, vector<8x32xf32>
    %888 = arith.select %885, %879, %838 : vector<8x32xi1>, vector<8x32xf32>
    %889 = arith.select %885, %876, %840 : vector<8x32xi1>, vector<8x32xf32>
    %c0_399 = arith.constant 0 : index
    %c0_400 = arith.constant 0 : index
    %890 = vector.load %arg20[%c0_399, %c0_400] : memref<8x64xf32, #tpu.memory_space<vmem>>, vector<8x32xf32>
    tpu.vector_store %arg20[%c0_399, %c0_400], %886 {strides = array<i32>} : memref<8x64xf32, #tpu.memory_space<vmem>>, vector<8x32xf32>,
    %c0_401 = arith.constant 0 : index
    %c32_402 = arith.constant 32 : index
    %891 = vector.load %arg20[%c0_401, %c32_402] : memref<8x64xf32, #tpu.memory_space<vmem>>, vector<8x32xf32>
    tpu.vector_store %arg20[%c0_401, %c32_402], %888 {strides = array<i32>} : memref<8x64xf32, #tpu.memory_space<vmem>>, vector<8x32xf32>,
    %c0_403 = arith.constant 0 : index
    %c0_404 = arith.constant 0 : index
    %892 = vector.load %arg21[%c0_403, %c0_404] : memref<8x64xf32, #tpu.memory_space<vmem>>, vector<8x32xf32>
    tpu.vector_store %arg21[%c0_403, %c0_404], %887 {strides = array<i32>} : memref<8x64xf32, #tpu.memory_space<vmem>>, vector<8x32xf32>,
    %c0_405 = arith.constant 0 : index
    %c32_406 = arith.constant 32 : index
    %893 = vector.load %arg21[%c0_405, %c32_406] : memref<8x64xf32, #tpu.memory_space<vmem>>, vector<8x32xf32>
    tpu.vector_store %arg21[%c0_405, %c32_406], %889 {strides = array<i32>} : memref<8x64xf32, #tpu.memory_space<vmem>>, vector<8x32xf32>,
    %c48_407 = arith.constant 48 : index
    %c0_408 = arith.constant 0 : index
    %894 = vector.load %arg18[%c48_407, %c0_408] : memref<64x256xf32, #tpu.memory_space<vmem>>, vector<8x256xf32>
    %c8_409 = arith.constant 8 : index
    %c0_410 = arith.constant 0 : index
    %895 = vector.load %arg18[%c8_409, %c0_410] : memref<64x256xf32, #tpu.memory_space<vmem>>, vector<8x256xf32>
    %c0_411 = arith.constant 0 : index
    %c0_412 = arith.constant 0 : index
    %896 = vector.load %arg20[%c0_411, %c0_412] : memref<8x64xf32, #tpu.memory_space<vmem>>, vector<8x64xf32>
    %c0_413 = arith.constant 0 : index
    %c0_414 = arith.constant 0 : index
    %897 = vector.load %arg21[%c0_413, %c0_414] : memref<8x64xf32, #tpu.memory_space<vmem>>, vector<8x64xf32>
    %898 = vector.extract_strided_slice %896 {offsets = [0, 0], sizes = [8, 32], strides = [1, 1]} : vector<8x64xf32> to vector<8x32xf32>
    %899 = vector.extract_strided_slice %896 {offsets = [0, 32], sizes = [8, 32], strides = [1, 1]} : vector<8x64xf32> to vector<8x32xf32>
    %900 = vector.extract_strided_slice %897 {offsets = [0, 0], sizes = [8, 32], strides = [1, 1]} : vector<8x64xf32> to vector<8x32xf32>
    %901 = vector.extract_strided_slice %897 {offsets = [0, 32], sizes = [8, 32], strides = [1, 1]} : vector<8x64xf32> to vector<8x32xf32>
    %cst_415 = arith.constant dense<0.000000e+00> : vector<8x256xf32>
    %902 = tpu.matmul %896, %518, %cst_415 {dimension_numbers = #tpu.dot_dimension_numbers<[1], [0], [0], [1], [0, 0, 1, 1], [], []>} : vector<8x64xf32>, vector<64x256xf32>, vector<8x256xf32> -> vector<8x256xf32>
    %903 = vector.extract_strided_slice %894 {offsets = [0, 0], sizes = [8, 128], strides = [1, 1]} : vector<8x256xf32> to vector<8x128xf32>
    %904 = vector.extract_strided_slice %902 {offsets = [0, 0], sizes = [8, 128], strides = [1, 1]} : vector<8x256xf32> to vector<8x128xf32>
    %905 = arith.addf %903, %904 : vector<8x128xf32>
    %906 = vector.extract_strided_slice %895 {offsets = [0, 128], sizes = [8, 128], strides = [1, 1]} : vector<8x256xf32> to vector<8x128xf32>
    %907 = vector.extract_strided_slice %902 {offsets = [0, 128], sizes = [8, 128], strides = [1, 1]} : vector<8x256xf32> to vector<8x128xf32>
    %908 = arith.addf %906, %907 : vector<8x128xf32>
    %909 = vector.extract_strided_slice %905 {offsets = [0, 0], sizes = [8, 96], strides = [1, 1]} : vector<8x128xf32> to vector<8x96xf32>
    %910 = arith.negf %909 : vector<8x96xf32>
    %911 = math.exp %910 : vector<8x96xf32>
    %cst_416 = arith.constant 1.000000e+00 : f32
    %912 = vector.broadcast %cst_416 : f32 to vector<8x96xf32>
    %913 = arith.addf %912, %911 : vector<8x96xf32>
    %914 = arith.divf %912, %913 : vector<8x96xf32>
    %915 = vector.extract_strided_slice %905 {offsets = [0, 96], sizes = [8, 32], strides = [1, 1]} : vector<8x128xf32> to vector<8x32xf32>
    %916 = math.tanh %915 : vector<8x32xf32>
    %917 = vector.extract_strided_slice %914 {offsets = [0, 32], sizes = [8, 32], strides = [1, 1]} : vector<8x96xf32> to vector<8x32xf32>
    %918 = arith.mulf %917, %900 : vector<8x32xf32>
    %919 = vector.extract_strided_slice %914 {offsets = [0, 0], sizes = [8, 32], strides = [1, 1]} : vector<8x96xf32> to vector<8x32xf32>
    %920 = arith.mulf %919, %916 : vector<8x32xf32>
    %921 = arith.addf %918, %920 : vector<8x32xf32>
    %922 = vector.extract_strided_slice %914 {offsets = [0, 64], sizes = [8, 32], strides = [1, 1]} : vector<8x96xf32> to vector<8x32xf32>
    %923 = math.tanh %921 : vector<8x32xf32>
    %924 = arith.mulf %922, %923 : vector<8x32xf32>
    %925 = vector.extract_strided_slice %908 {offsets = [0, 0], sizes = [8, 96], strides = [1, 1]} : vector<8x128xf32> to vector<8x96xf32>
    %926 = arith.negf %925 : vector<8x96xf32>
    %927 = math.exp %926 : vector<8x96xf32>
    %cst_417 = arith.constant 1.000000e+00 : f32
    %928 = vector.broadcast %cst_417 : f32 to vector<8x96xf32>
    %929 = arith.addf %928, %927 : vector<8x96xf32>
    %930 = arith.divf %928, %929 : vector<8x96xf32>
    %931 = vector.extract_strided_slice %908 {offsets = [0, 96], sizes = [8, 32], strides = [1, 1]} : vector<8x128xf32> to vector<8x32xf32>
    %932 = math.tanh %931 : vector<8x32xf32>
    %933 = vector.extract_strided_slice %930 {offsets = [0, 32], sizes = [8, 32], strides = [1, 1]} : vector<8x96xf32> to vector<8x32xf32>
    %934 = arith.mulf %933, %901 : vector<8x32xf32>
    %935 = vector.extract_strided_slice %930 {offsets = [0, 0], sizes = [8, 32], strides = [1, 1]} : vector<8x96xf32> to vector<8x32xf32>
    %936 = arith.mulf %935, %932 : vector<8x32xf32>
    %937 = arith.addf %934, %936 : vector<8x32xf32>
    %938 = vector.extract_strided_slice %930 {offsets = [0, 64], sizes = [8, 32], strides = [1, 1]} : vector<8x96xf32> to vector<8x32xf32>
    %939 = math.tanh %937 : vector<8x32xf32>
    %940 = arith.mulf %938, %939 : vector<8x32xf32>
    %c48_418 = arith.constant 48 : index
    %c0_419 = arith.constant 0 : index
    %941 = vector.load %arg2[%c48_418, %c0_419] : memref<64x32xf32, #tpu.memory_space<vmem>>, vector<8x32xf32>
    %cst_420 = arith.constant 5.000000e-01 : f32
    %942 = vector.broadcast %cst_420 : f32 to vector<8x32xf32>
    %943 = arith.cmpf ogt, %941, %942 : vector<8x32xf32>
    %c8_421 = arith.constant 8 : index
    %c0_422 = arith.constant 0 : index
    %944 = vector.load %arg2[%c8_421, %c0_422] : memref<64x32xf32, #tpu.memory_space<vmem>>, vector<8x32xf32>
    %cst_423 = arith.constant 5.000000e-01 : f32
    %945 = vector.broadcast %cst_423 : f32 to vector<8x32xf32>
    %946 = arith.cmpf ogt, %944, %945 : vector<8x32xf32>
    %947 = arith.select %943, %924, %898 : vector<8x32xi1>, vector<8x32xf32>
    %948 = arith.select %943, %921, %900 : vector<8x32xi1>, vector<8x32xf32>
    %949 = arith.select %946, %940, %899 : vector<8x32xi1>, vector<8x32xf32>
    %950 = arith.select %946, %937, %901 : vector<8x32xi1>, vector<8x32xf32>
    %c0_424 = arith.constant 0 : index
    %c0_425 = arith.constant 0 : index
    %951 = vector.load %arg20[%c0_424, %c0_425] : memref<8x64xf32, #tpu.memory_space<vmem>>, vector<8x32xf32>
    tpu.vector_store %arg20[%c0_424, %c0_425], %947 {strides = array<i32>} : memref<8x64xf32, #tpu.memory_space<vmem>>, vector<8x32xf32>,
    %c0_426 = arith.constant 0 : index
    %c32_427 = arith.constant 32 : index
    %952 = vector.load %arg20[%c0_426, %c32_427] : memref<8x64xf32, #tpu.memory_space<vmem>>, vector<8x32xf32>
    tpu.vector_store %arg20[%c0_426, %c32_427], %949 {strides = array<i32>} : memref<8x64xf32, #tpu.memory_space<vmem>>, vector<8x32xf32>,
    %c0_428 = arith.constant 0 : index
    %c0_429 = arith.constant 0 : index
    %953 = vector.load %arg21[%c0_428, %c0_429] : memref<8x64xf32, #tpu.memory_space<vmem>>, vector<8x32xf32>
    tpu.vector_store %arg21[%c0_428, %c0_429], %948 {strides = array<i32>} : memref<8x64xf32, #tpu.memory_space<vmem>>, vector<8x32xf32>,
    %c0_430 = arith.constant 0 : index
    %c32_431 = arith.constant 32 : index
    %954 = vector.load %arg21[%c0_430, %c32_431] : memref<8x64xf32, #tpu.memory_space<vmem>>, vector<8x32xf32>
    tpu.vector_store %arg21[%c0_430, %c32_431], %950 {strides = array<i32>} : memref<8x64xf32, #tpu.memory_space<vmem>>, vector<8x32xf32>,
    %c56_432 = arith.constant 56 : index
    %c0_433 = arith.constant 0 : index
    %955 = vector.load %arg18[%c56_432, %c0_433] : memref<64x256xf32, #tpu.memory_space<vmem>>, vector<8x256xf32>
    %c0_434 = arith.constant 0 : index
    %c0_435 = arith.constant 0 : index
    %956 = vector.load %arg18[%c0_434, %c0_435] : memref<64x256xf32, #tpu.memory_space<vmem>>, vector<8x256xf32>
    %c0_436 = arith.constant 0 : index
    %c0_437 = arith.constant 0 : index
    %957 = vector.load %arg20[%c0_436, %c0_437] : memref<8x64xf32, #tpu.memory_space<vmem>>, vector<8x64xf32>
    %c0_438 = arith.constant 0 : index
    %c0_439 = arith.constant 0 : index
    %958 = vector.load %arg21[%c0_438, %c0_439] : memref<8x64xf32, #tpu.memory_space<vmem>>, vector<8x64xf32>
    %959 = vector.extract_strided_slice %957 {offsets = [0, 0], sizes = [8, 32], strides = [1, 1]} : vector<8x64xf32> to vector<8x32xf32>
    %960 = vector.extract_strided_slice %957 {offsets = [0, 32], sizes = [8, 32], strides = [1, 1]} : vector<8x64xf32> to vector<8x32xf32>
    %961 = vector.extract_strided_slice %958 {offsets = [0, 0], sizes = [8, 32], strides = [1, 1]} : vector<8x64xf32> to vector<8x32xf32>
    %962 = vector.extract_strided_slice %958 {offsets = [0, 32], sizes = [8, 32], strides = [1, 1]} : vector<8x64xf32> to vector<8x32xf32>
    %cst_440 = arith.constant dense<0.000000e+00> : vector<8x256xf32>
    %963 = tpu.matmul %957, %518, %cst_440 {dimension_numbers = #tpu.dot_dimension_numbers<[1], [0], [0], [1], [0, 0, 1, 1], [], []>} : vector<8x64xf32>, vector<64x256xf32>, vector<8x256xf32> -> vector<8x256xf32>
    %964 = vector.extract_strided_slice %955 {offsets = [0, 0], sizes = [8, 128], strides = [1, 1]} : vector<8x256xf32> to vector<8x128xf32>
    %965 = vector.extract_strided_slice %963 {offsets = [0, 0], sizes = [8, 128], strides = [1, 1]} : vector<8x256xf32> to vector<8x128xf32>
    %966 = arith.addf %964, %965 : vector<8x128xf32>
    %967 = vector.extract_strided_slice %956 {offsets = [0, 128], sizes = [8, 128], strides = [1, 1]} : vector<8x256xf32> to vector<8x128xf32>
    %968 = vector.extract_strided_slice %963 {offsets = [0, 128], sizes = [8, 128], strides = [1, 1]} : vector<8x256xf32> to vector<8x128xf32>
    %969 = arith.addf %967, %968 : vector<8x128xf32>
    %970 = vector.extract_strided_slice %966 {offsets = [0, 0], sizes = [8, 96], strides = [1, 1]} : vector<8x128xf32> to vector<8x96xf32>
    %971 = arith.negf %970 : vector<8x96xf32>
    %972 = math.exp %971 : vector<8x96xf32>
    %cst_441 = arith.constant 1.000000e+00 : f32
    %973 = vector.broadcast %cst_441 : f32 to vector<8x96xf32>
    %974 = arith.addf %973, %972 : vector<8x96xf32>
    %975 = arith.divf %973, %974 : vector<8x96xf32>
    %976 = vector.extract_strided_slice %966 {offsets = [0, 96], sizes = [8, 32], strides = [1, 1]} : vector<8x128xf32> to vector<8x32xf32>
    %977 = math.tanh %976 : vector<8x32xf32>
    %978 = vector.extract_strided_slice %975 {offsets = [0, 32], sizes = [8, 32], strides = [1, 1]} : vector<8x96xf32> to vector<8x32xf32>
    %979 = arith.mulf %978, %961 : vector<8x32xf32>
    %980 = vector.extract_strided_slice %975 {offsets = [0, 0], sizes = [8, 32], strides = [1, 1]} : vector<8x96xf32> to vector<8x32xf32>
    %981 = arith.mulf %980, %977 : vector<8x32xf32>
    %982 = arith.addf %979, %981 : vector<8x32xf32>
    %983 = vector.extract_strided_slice %975 {offsets = [0, 64], sizes = [8, 32], strides = [1, 1]} : vector<8x96xf32> to vector<8x32xf32>
    %984 = math.tanh %982 : vector<8x32xf32>
    %985 = arith.mulf %983, %984 : vector<8x32xf32>
    %986 = vector.extract_strided_slice %969 {offsets = [0, 0], sizes = [8, 96], strides = [1, 1]} : vector<8x128xf32> to vector<8x96xf32>
    %987 = arith.negf %986 : vector<8x96xf32>
    %988 = math.exp %987 : vector<8x96xf32>
    %cst_442 = arith.constant 1.000000e+00 : f32
    %989 = vector.broadcast %cst_442 : f32 to vector<8x96xf32>
    %990 = arith.addf %989, %988 : vector<8x96xf32>
    %991 = arith.divf %989, %990 : vector<8x96xf32>
    %992 = vector.extract_strided_slice %969 {offsets = [0, 96], sizes = [8, 32], strides = [1, 1]} : vector<8x128xf32> to vector<8x32xf32>
    %993 = math.tanh %992 : vector<8x32xf32>
    %994 = vector.extract_strided_slice %991 {offsets = [0, 32], sizes = [8, 32], strides = [1, 1]} : vector<8x96xf32> to vector<8x32xf32>
    %995 = arith.mulf %994, %962 : vector<8x32xf32>
    %996 = vector.extract_strided_slice %991 {offsets = [0, 0], sizes = [8, 32], strides = [1, 1]} : vector<8x96xf32> to vector<8x32xf32>
    %997 = arith.mulf %996, %993 : vector<8x32xf32>
    %998 = arith.addf %995, %997 : vector<8x32xf32>
    %999 = vector.extract_strided_slice %991 {offsets = [0, 64], sizes = [8, 32], strides = [1, 1]} : vector<8x96xf32> to vector<8x32xf32>
    %1000 = math.tanh %998 : vector<8x32xf32>
    %1001 = arith.mulf %999, %1000 : vector<8x32xf32>
    %c56_443 = arith.constant 56 : index
    %c0_444 = arith.constant 0 : index
    %1002 = vector.load %arg2[%c56_443, %c0_444] : memref<64x32xf32, #tpu.memory_space<vmem>>, vector<8x32xf32>
    %cst_445 = arith.constant 5.000000e-01 : f32
    %1003 = vector.broadcast %cst_445 : f32 to vector<8x32xf32>
    %1004 = arith.cmpf ogt, %1002, %1003 : vector<8x32xf32>
    %c0_446 = arith.constant 0 : index
    %c0_447 = arith.constant 0 : index
    %1005 = vector.load %arg2[%c0_446, %c0_447] : memref<64x32xf32, #tpu.memory_space<vmem>>, vector<8x32xf32>
    %cst_448 = arith.constant 5.000000e-01 : f32
    %1006 = vector.broadcast %cst_448 : f32 to vector<8x32xf32>
    %1007 = arith.cmpf ogt, %1005, %1006 : vector<8x32xf32>
    %1008 = arith.select %1004, %985, %959 : vector<8x32xi1>, vector<8x32xf32>
    %1009 = arith.select %1004, %982, %961 : vector<8x32xi1>, vector<8x32xf32>
    %1010 = arith.select %1007, %1001, %960 : vector<8x32xi1>, vector<8x32xf32>
    %1011 = arith.select %1007, %998, %962 : vector<8x32xi1>, vector<8x32xf32>
    %c0_449 = arith.constant 0 : index
    %c0_450 = arith.constant 0 : index
    %1012 = vector.load %arg20[%c0_449, %c0_450] : memref<8x64xf32, #tpu.memory_space<vmem>>, vector<8x32xf32>
    tpu.vector_store %arg20[%c0_449, %c0_450], %1008 {strides = array<i32>} : memref<8x64xf32, #tpu.memory_space<vmem>>, vector<8x32xf32>,
    %c0_451 = arith.constant 0 : index
    %c32_452 = arith.constant 32 : index
    %1013 = vector.load %arg20[%c0_451, %c32_452] : memref<8x64xf32, #tpu.memory_space<vmem>>, vector<8x32xf32>
    tpu.vector_store %arg20[%c0_451, %c32_452], %1010 {strides = array<i32>} : memref<8x64xf32, #tpu.memory_space<vmem>>, vector<8x32xf32>,
    %c0_453 = arith.constant 0 : index
    %c0_454 = arith.constant 0 : index
    %1014 = vector.load %arg21[%c0_453, %c0_454] : memref<8x64xf32, #tpu.memory_space<vmem>>, vector<8x32xf32>
    tpu.vector_store %arg21[%c0_453, %c0_454], %1009 {strides = array<i32>} : memref<8x64xf32, #tpu.memory_space<vmem>>, vector<8x32xf32>,
    %c0_455 = arith.constant 0 : index
    %c32_456 = arith.constant 32 : index
    %1015 = vector.load %arg21[%c0_455, %c32_456] : memref<8x64xf32, #tpu.memory_space<vmem>>, vector<8x32xf32>
    tpu.vector_store %arg21[%c0_455, %c32_456], %1011 {strides = array<i32>} : memref<8x64xf32, #tpu.memory_space<vmem>>, vector<8x32xf32>,
    %c0_457 = arith.constant 0 : index
    %c0_458 = arith.constant 0 : index
    %1016 = vector.load %arg20[%c0_457, %c0_458] : memref<8x64xf32, #tpu.memory_space<vmem>>, vector<8x64xf32>
    %1017 = vector.extract_strided_slice %1016 {offsets = [0, 32], sizes = [8, 32], strides = [1, 1]} : vector<8x64xf32> to vector<8x32xf32>
    %1018 = vector.extract_strided_slice %1017 {offsets = [2, 0], sizes = [6, 32], strides = [1, 1]} : vector<8x32xf32> to vector<6x32xf32>
    %1019 = vector.extract_strided_slice %1017 {offsets = [0, 0], sizes = [2, 32], strides = [1, 1]} : vector<8x32xf32> to vector<2x32xf32>
    %1020 = tpu.concatenate %1018, %1019 in 0 : vector<6x32xf32>, vector<2x32xf32> -> vector<8x32xf32>
    %1021 = arith.subf %1017, %1020 : vector<8x32xf32>
    %1022 = math.absf %1021 : vector<8x32xf32>
    %1023 = arith.mulf %1017, %1020 : vector<8x32xf32>
    %1024 = tpu.concatenate %1017, %1020, %1022, %1023 in 1 : vector<8x32xf32>, vector<8x32xf32>, vector<8x32xf32>, vector<8x32xf32> -> vector<8x128xf32>
    %c0_459 = arith.constant 0 : index
    %c0_460 = arith.constant 0 : index
    %1025 = vector.load %arg9[%c0_459, %c0_460] : memref<128x128xf32, #tpu.memory_space<vmem>>, vector<128x128xf32>
    %cst_461 = arith.constant dense<0.000000e+00> : vector<8x128xf32>
    %1026 = tpu.matmul %1024, %1025, %cst_461 {dimension_numbers = #tpu.dot_dimension_numbers<[1], [0], [0], [1], [0, 0, 1, 1], [], []>} : vector<8x128xf32>, vector<128x128xf32>, vector<8x128xf32> -> vector<8x128xf32>
    %c0_462 = arith.constant 0 : index
    %c0_463 = arith.constant 0 : index
    %1027 = vector.load %arg10[%c0_462, %c0_463] : memref<1x128xf32, #tpu.memory_space<vmem>>, vector<1x128xf32>
    %1028 = vector.broadcast %1027 : vector<1x128xf32> to vector<8x128xf32>
    %1029 = arith.addf %1026, %1028 : vector<8x128xf32>
    %cst_464 = arith.constant 0.000000e+00 : f32
    %1030 = vector.broadcast %cst_464 : f32 to vector<8x128xf32>
    %1031 = arith.maximumf %1029, %1030 : vector<8x128xf32>
    %c0_465 = arith.constant 0 : index
    %c0_466 = arith.constant 0 : index
    %1032 = vector.load %arg11[%c0_465, %c0_466] : memref<128x64xf32, #tpu.memory_space<vmem>>, vector<128x64xf32>
    %cst_467 = arith.constant dense<0.000000e+00> : vector<8x64xf32>
    %1033 = tpu.matmul %1031, %1032, %cst_467 {dimension_numbers = #tpu.dot_dimension_numbers<[1], [0], [0], [1], [0, 0, 1, 1], [], []>} : vector<8x128xf32>, vector<128x64xf32>, vector<8x64xf32> -> vector<8x64xf32>
    %c0_468 = arith.constant 0 : index
    %c0_469 = arith.constant 0 : index
    %1034 = vector.load %arg12[%c0_468, %c0_469] : memref<1x64xf32, #tpu.memory_space<vmem>>, vector<1x64xf32>
    %1035 = vector.broadcast %1034 : vector<1x64xf32> to vector<8x64xf32>
    %1036 = arith.addf %1033, %1035 : vector<8x64xf32>
    %cst_470 = arith.constant 0.000000e+00 : f32
    %1037 = vector.broadcast %cst_470 : f32 to vector<8x64xf32>
    %1038 = arith.maximumf %1036, %1037 : vector<8x64xf32>
    %c0_471 = arith.constant 0 : index
    %c0_472 = arith.constant 0 : index
    %1039 = vector.load %arg13[%c0_471, %c0_472] : memref<64x32xf32, #tpu.memory_space<vmem>>, vector<64x32xf32>
    %cst_473 = arith.constant dense<0.000000e+00> : vector<8x32xf32>
    %1040 = tpu.matmul %1038, %1039, %cst_473 {dimension_numbers = #tpu.dot_dimension_numbers<[1], [0], [0], [1], [0, 0, 1, 1], [], []>} : vector<8x64xf32>, vector<64x32xf32>, vector<8x32xf32> -> vector<8x32xf32>
    %c0_474 = arith.constant 0 : index
    %c0_475 = arith.constant 0 : index
    %1041 = vector.load %arg14[%c0_474, %c0_475] : memref<1x32xf32, #tpu.memory_space<vmem>>, vector<1x32xf32>
    %1042 = vector.broadcast %1041 : vector<1x32xf32> to vector<8x32xf32>
    %1043 = arith.addf %1040, %1042 : vector<8x32xf32>
    %cst_476 = arith.constant 0.000000e+00 : f32
    %1044 = vector.broadcast %cst_476 : f32 to vector<8x32xf32>
    %1045 = arith.maximumf %1043, %1044 : vector<8x32xf32>
    %c0_477 = arith.constant 0 : index
    %c0_478 = arith.constant 0 : index
    %1046 = vector.load %arg15[%c0_477, %c0_478] : memref<32x3xf32, #tpu.memory_space<vmem>>, vector<32x3xf32>
    %cst_479 = arith.constant dense<0.000000e+00> : vector<8x3xf32>
    %1047 = tpu.matmul %1045, %1046, %cst_479 {dimension_numbers = #tpu.dot_dimension_numbers<[1], [0], [0], [1], [0, 0, 1, 1], [], []>} : vector<8x32xf32>, vector<32x3xf32>, vector<8x3xf32> -> vector<8x3xf32>
    %c0_480 = arith.constant 0 : index
    %c0_481 = arith.constant 0 : index
    %1048 = vector.load %arg16[%c0_480, %c0_481] : memref<1x3xf32, #tpu.memory_space<vmem>>, vector<1x3xf32>
    %1049 = vector.broadcast %1048 : vector<1x3xf32> to vector<8x3xf32>
    %1050 = arith.addf %1047, %1049 : vector<8x3xf32>
    %c0_482 = arith.constant 0 : index
    %c0_483 = arith.constant 0 : index
    %1051 = vector.load %arg17[%c0_482, %c0_483] : memref<8x3xf32, #tpu.memory_space<vmem>>, vector<8x3xf32>
    tpu.vector_store %arg17[%c0_482, %c0_483], %1050 {strides = array<i32>} : memref<8x3xf32, #tpu.memory_space<vmem>>, vector<8x3xf32>,
    return
  }
  func.func @transform_0(%arg0: i32) -> (i32, i32) {
    %c0_i32 = arith.constant 0 : i32
    %c0_i32_0 = arith.constant 0 : i32
    return %arg0, %c0_i32 : i32, i32
  }
  func.func @transform_1(%arg0: i32) -> (i32, i32) {
    %c0_i32 = arith.constant 0 : i32
    %c0_i32_0 = arith.constant 0 : i32
    return %arg0, %c0_i32 : i32, i32
  }
  func.func @transform_2(%arg0: i32) -> (i32, i32) {
    %c0_i32 = arith.constant 0 : i32
    %c0_i32_0 = arith.constant 0 : i32
    %c0_i32_1 = arith.constant 0 : i32
    return %c0_i32, %c0_i32_0 : i32, i32
  }
  func.func @transform_3(%arg0: i32) -> (i32, i32) {
    %c0_i32 = arith.constant 0 : i32
    %c0_i32_0 = arith.constant 0 : i32
    %c0_i32_1 = arith.constant 0 : i32
    return %c0_i32, %c0_i32_0 : i32, i32
  }
  func.func @transform_4(%arg0: i32) -> (i32, i32) {
    %c0_i32 = arith.constant 0 : i32
    %c0_i32_0 = arith.constant 0 : i32
    %c0_i32_1 = arith.constant 0 : i32
    return %c0_i32, %c0_i32_0 : i32, i32
  }
  func.func @transform_5(%arg0: i32) -> (i32, i32) {
    %c0_i32 = arith.constant 0 : i32
    %c0_i32_0 = arith.constant 0 : i32
    %c0_i32_1 = arith.constant 0 : i32
    return %c0_i32, %c0_i32_0 : i32, i32
  }
  func.func @transform_6(%arg0: i32) -> (i32, i32) {
    %c0_i32 = arith.constant 0 : i32
    %c0_i32_0 = arith.constant 0 : i32
    %c0_i32_1 = arith.constant 0 : i32
    return %c0_i32, %c0_i32_0 : i32, i32
  }
  func.func @transform_7(%arg0: i32) -> (i32, i32) {
    %c0_i32 = arith.constant 0 : i32
    %c0_i32_0 = arith.constant 0 : i32
    %c0_i32_1 = arith.constant 0 : i32
    return %c0_i32, %c0_i32_0 : i32, i32
  }
  func.func @transform_8(%arg0: i32) -> (i32, i32) {
    %c0_i32 = arith.constant 0 : i32
    %c0_i32_0 = arith.constant 0 : i32
    %c0_i32_1 = arith.constant 0 : i32
    return %c0_i32, %c0_i32_0 : i32, i32
  }
  func.func @transform_9(%arg0: i32) -> (i32, i32) {
    %c0_i32 = arith.constant 0 : i32
    %c0_i32_0 = arith.constant 0 : i32
    %c0_i32_1 = arith.constant 0 : i32
    return %c0_i32, %c0_i32_0 : i32, i32
  }
  func.func @transform_10(%arg0: i32) -> (i32, i32) {
    %c0_i32 = arith.constant 0 : i32
    %c0_i32_0 = arith.constant 0 : i32
    %c0_i32_1 = arith.constant 0 : i32
    return %c0_i32, %c0_i32_0 : i32, i32
  }
  func.func @transform_11(%arg0: i32) -> (i32, i32) {
    %c0_i32 = arith.constant 0 : i32
    %c0_i32_0 = arith.constant 0 : i32
    %c0_i32_1 = arith.constant 0 : i32
    return %c0_i32, %c0_i32_0 : i32, i32
  }
  func.func @transform_12(%arg0: i32) -> (i32, i32) {
    %c0_i32 = arith.constant 0 : i32
    %c0_i32_0 = arith.constant 0 : i32
    %c0_i32_1 = arith.constant 0 : i32
    return %c0_i32, %c0_i32_0 : i32, i32
  }
  func.func @transform_13(%arg0: i32) -> (i32, i32) {
    %c0_i32 = arith.constant 0 : i32
    %c0_i32_0 = arith.constant 0 : i32
    %c0_i32_1 = arith.constant 0 : i32
    return %c0_i32, %c0_i32_0 : i32, i32
  }
  func.func @transform_14(%arg0: i32) -> (i32, i32) {
    %c0_i32 = arith.constant 0 : i32
    %c0_i32_0 = arith.constant 0 : i32
    %c0_i32_1 = arith.constant 0 : i32
    return %c0_i32, %c0_i32_0 : i32, i32
  }
  func.func @transform_15(%arg0: i32) -> (i32, i32) {
    %c0_i32 = arith.constant 0 : i32
    %c0_i32_0 = arith.constant 0 : i32
    %c0_i32_1 = arith.constant 0 : i32
    return %c0_i32, %c0_i32_0 : i32, i32
  }
  func.func @transform_16(%arg0: i32) -> (i32, i32) {
    %c0_i32 = arith.constant 0 : i32
    %c0_i32_0 = arith.constant 0 : i32
    return %arg0, %c0_i32 : i32, i32
  }
}

</mosaic_0001>

<bundles_post_ra>
// kernel: lstm_model_forward.1
= control target key start
LH: loop header
LB: loop body
LE: loop exit
PB: predicated region body
PF: predicated region fallthrough
CT: control target
= control target key end

     0   :  { %vm91_vm0 = vcmask 261120   ;;  %vm214_vm1 = vcmask 523264   ;;  %v3651_v14 = vmov 0.0   ;;  %s3653_s30 = smov 96   ;;  %vm379_vm12 = vcmask 523520   ;;  %s5321_s2 = inlined_call_operand.vmem [shape: f32[32,256], index: 2, kind: input, shape index: {}]   ;;  %s5322_s0 = inlined_call_operand.vmem [shape: f32[64,32], index: 0, kind: input, shape index: {}]   ;;  %s5323_s4 = inlined_call_operand.vmem [shape: f32[64,256], index: 4, kind: input, shape index: {}]   ;;  %s5324_s3 = inlined_call_operand.vmem [shape: f32[1,256], index: 3, kind: input, shape index: {}]   ;;  %s5325_s1 = inlined_call_operand.vmem [shape: f32[64,32], index: 1, kind: input, shape index: {}]   ;;  %s5326_s5 = inlined_call_operand.vmem [shape: f32[64,256], index: 5, kind: input, shape index: {}]   ;;  %s5327_s7 = inlined_call_operand.vmem [shape: f32[64,256], index: 7, kind: input, shape index: {}]   ;;  %s5328_s6 = inlined_call_operand.vmem [shape: f32[1,256], index: 6, kind: input, shape index: {}]   ;;  %s5329_s8 = inlined_call_operand.vmem [shape: f32[128,128], index: 8, kind: input, shape index: {}]   ;;  %s5330_s9 = inlined_call_operand.vmem [shape: f32[1,128], index: 9, kind: input, shape index: {}]   ;;  %s5331_s11 = inlined_call_operand.vmem [shape: f32[1,64], index: 11, kind: input, shape index: {}]   ;;  %s5332_s10 = inlined_call_operand.vmem [shape: f32[128,64], index: 10, kind: input, shape index: {}]   ;;  %s5333_s12 = inlined_call_operand.vmem [shape: f32[64,32], index: 12, kind: input, shape index: {}]   ;;  %s5334_s13 = inlined_call_operand.vmem [shape: f32[1,32], index: 13, kind: input, shape index: {}]   ;;  %s5335_s14 = inlined_call_operand.vmem [shape: f32[32,3], index: 14, kind: input, shape index: {}]   ;;  %s5336_s15 = inlined_call_operand.vmem [shape: f32[1,3], index: 15, kind: input, shape index: {}]   ;;  %s5337_s16 = inlined_call_operand.vmem [shape: f32[8,3], index: 16, kind: output, shape index: {}]  }
   0x1   :  { %5339 = sst [smem:[#allocation6_spill]] %s5321_s2  ;;  %v3755_v4 = vld [vmem:[%s5322_s0] sm:$0xff]  ;;  %v3762_v5 = vld [vmem:[%s5323_s4 + $0x78] sm:$0xff]  ;;  %v3767_v6 = vld [vmem:[%s5323_s4 + $0x68] sm:$0xff]  ;;  %215 = vst.msk [vmem:[#allocation4] sm:$0xff] %vm214_vm1, %v3651_v14  ;;  %s3654_s2 = smov 64  }
   0x2   :  { %s5340_s23 = sld [smem:[#allocation6_spill]]  ;;  %252 = vmatpush.msra.mxu3 %v3762_v5  ;;  %v3776_v7 = vld [vmem:[%s5322_s0 + $0x8] sm:$0xff]  ;;  %v3783_v8 = vld [vmem:[%s5323_s4 + $0x58] sm:$0xff]  ;;  %v3793_v10 = vld [vmem:[%s5323_s4 + $0x70] sm:$0xff]  ;;  %216 = vst.msk [vmem:[#allocation5] sm:$0xff] %vm214_vm1, %v3651_v14 }
   0x3   :  { %v3788_v9 = vld [vmem:[%s5323_s4 + $0x48] sm:$0xff]  ;;  %232 = vmatpush.msra.mxu2 %v3793_v10  ;;  %v3800_v11 = vld [vmem:[%s5323_s4 + $0x60] sm:$0xff]  ;;  %v3805_v12 = vld [vmem:[%s5323_s4 + $0x38] sm:$0xff] }
   0x4   :  { %253 = vmatpush.msra.mxu3 %v3767_v6  ;;  %v3813_v13 = vld [vmem:[%s5323_s4 + $0x28] sm:$0xff]  ;;  %v3821_v15 = vld [vmem:[%s5322_s0 + $0x10] sm:$0xff]  ;;  %v3838_v17 = vld [vmem:[%s5323_s4 + $0x18] sm:$0xff] }
   0x5   :  { %233 = vmatpush.msra.mxu2 %v3800_v11  ;;  %v3833_v16 = vld [vmem:[%s5323_s4 + $0x50] sm:$0xff]  ;;  %v3843_v18 = vld [vmem:[%s5323_s4 + $0x40] sm:$0xff]  ;;  %v3850_v19 = vld [vmem:[%s5323_s4 + $0x8] sm:$0xff] }
   0x6   :  { %254 = vmatpush.msra.mxu3 %v3783_v8  ;;  %v3855_v20 = vld [vmem:[%s5323_s4 + $0x30] sm:$0xff]  ;;  %v3867_v22 = vld [vmem:[%s5323_s4 + $0x20] sm:$0xff]  ;;  %v3873_v23 = vld [vmem:[%s5322_s0 + $0x18] sm:$0xff] }
   0x7   :  { %234 = vmatpush.msra.mxu2 %v3833_v16  ;;  %v3888_v25 = vld [vmem:[%s5323_s4 + $0x10] sm:$0xff]  ;;  %v3897_v27 = vld [vmem:[%s5323_s4] sm:$0xff]  ;;  %v83_v31 = vld [vmem:[%s5322_s0 + $0x28] sm:$0xff] }
   0x8   :  { %v60_v0 = vld [vmem:[%s5340_s23 + $0x38] sm:$0xff]  ;;  %v58_v1 = vld [vmem:[%s5340_s23 + $0x28] sm:$0xff]  ;;  %255 = vmatpush.msra.mxu3 %v3788_v9  ;;  %v3860_v21 = vld [vmem:[#allocation4] sm:$0xff] }
   0x9   :  { %169 = vmatpush.msra.mxu1 %v60_v0  ;;  %v56_v2 = vld [vmem:[%s5340_s23 + $0x18] sm:$0xff]  ;;  %v54_v3 = vld [vmem:[%s5340_s23 + $0x8] sm:$0xff]  ;;  %235 = vmatpush.msra.mxu2 %v3843_v18  ;;  %v59_v24 = vld [vmem:[%s5340_s23 + $0x30] sm:$0xff] }
   0xa   :  { %256 = vmatpush.msra.mxu3 %v3805_v12  ;;  %v57_v26 = vld [vmem:[%s5340_s23 + $0x20] sm:$0xff]  ;;  %128 = vmatpush.msra.mxu0 %v59_v24  ;;  %v55_v28 = vld [vmem:[%s5340_s23 + $0x10] sm:$0xff]  ;;  %v85_v33 = vld [vmem:[%s5322_s0 + $0x38] sm:$0xff] }
   0xb   :  { %170 = vmatpush.msra.mxu1 %v58_v1  ;;  %236 = vmatpush.msra.mxu2 %v3855_v20  ;;  %v53_v29 = vld [vmem:[%s5340_s23] sm:$0xff]  ;;  %v84_v32 = vld [vmem:[%s5322_s0 + $0x30] sm:$0xff] }
   0xc   :  { %257 = vmatpush.msra.mxu3 %v3813_v13  ;;  %129 = vmatpush.msra.mxu0 %v57_v26  ;;  %v3914_v30 = vld [vmem:[%s5322_s0 + $0x20] sm:$0xff] }
   0xd   :  { %171 = vmatpush.msra.mxu1 %v56_v2  ;;  %237 = vmatpush.msra.mxu2 %v3867_v22  ;;  %v61_v34 = vld [vmem:[%s5324_s3] sm:$0x3]  ;;  %s3652_s3 = smov 32  }
   0xe   :  { %258 = vmatpush.msra.mxu3 %v3838_v17  ;;  %130 = vmatpush.msra.mxu0 %v55_v28  ;;  %v88_v35 = vperm.slane %v61_v34, 1  ;;  %v4011_v51 = vperm.slane %v61_v34, 0 }
   0xf   :  { %172 = vmatpush.msra.mxu1 %v54_v3  ;;  %238 = vmatpush.msra.mxu2 %v3888_v25 }
  0x10   :  { %3295 = vmatmul.msk.f32.vlgmr.msra.gmra.mxu1 %vm91_vm0, %v3755_v4  ;;  %259 = vmatpush.msra.mxu3 %v3850_v19 }
  0x11   :  { %937 = vmatpush.msrb.mxu1 %v3762_v5  ;;  %3304 = vmatmul.msk.f32.vlgmr.msra.gmra.mxu3 %vm214_vm1, %v3860_v21 }
  0x12   :  { %424 = vmatpush.msrb.mxu3 %v3762_v5  ;;  %239 = vmatpush.msra.mxu2 %v3897_v27 }
  0x13   :  { %938 = vmatpush.msrb.mxu1 %v3767_v6  ;;  %3303 = vmatmul.msk.f32.vlgmr.msra.gmra.mxu2 %vm214_vm1, %v3860_v21 }
  0x14   :  { %425 = vmatpush.msrb.mxu3 %v3767_v6  ;;  %404 = vmatpush.msrb.mxu2 %v3793_v10 }
  0x15   :  { %939 = vmatpush.msrb.mxu1 %v3783_v8  ;;  %131 = vmatpush.msra.mxu0 %v53_v29 }
  0x16   :  { %426 = vmatpush.msrb.mxu3 %v3783_v8  ;;  %405 = vmatpush.msrb.mxu2 %v3800_v11 }
  0x17   :  { %940 = vmatpush.msrb.mxu1 %v3788_v9  ;;  %3287 = vmatmul.msk.f32.vlgmr.msra.gmra.mxu0 %vm91_vm0, %v3755_v4 }
  0x18   :  { %3296 = vmatmul.msk.f32.gmra.mxu1 %vm91_vm0, %v3776_v7  ;;  %427 = vmatpush.msrb.mxu3 %v3788_v9 }
  0x19   :  { %941 = vmatpush.msrb.mxu1 %v3805_v12  ;;  %406 = vmatpush.msrb.mxu2 %v3833_v16 }
  0x1a   :  { %428 = vmatpush.msrb.mxu3 %v3805_v12  ;;  %917 = vmatpush.msrb.mxu0 %v3793_v10 }
  0x1b   :  { %942 = vmatpush.msrb.mxu1 %v3813_v13  ;;  %407 = vmatpush.msrb.mxu2 %v3843_v18 }
  0x1c   :  { %429 = vmatpush.msrb.mxu3 %v3813_v13  ;;  %918 = vmatpush.msrb.mxu0 %v3800_v11 }
  0x1d   :  { %943 = vmatpush.msrb.mxu1 %v3838_v17  ;;  %408 = vmatpush.msrb.mxu2 %v3855_v20 }
  0x1e   :  { %430 = vmatpush.msrb.mxu3 %v3838_v17  ;;  %919 = vmatpush.msrb.mxu0 %v3833_v16 }
  0x1f   :  { %944 = vmatpush.msrb.mxu1 %v3850_v19  ;;  %409 = vmatpush.msrb.mxu2 %v3867_v22 }
  0x20   :  { %3297 = vmatmul.msk.f32.gmra.mxu1 %vm91_vm0, %v3821_v15  ;;  %431 = vmatpush.msrb.mxu3 %v3850_v19 }
  0x21   :  { %1279 = vmatpush.msra.mxu1 %v3762_v5  ;;  %3288 = vmatmul.msk.f32.gmra.mxu0 %vm91_vm0, %v3776_v7 }
  0x22   :  { %595 = vmatpush.msra.mxu3 %v3762_v5  ;;  %410 = vmatpush.msrb.mxu2 %v3888_v25 }
  0x23   :  { %1280 = vmatpush.msra.mxu1 %v3767_v6  ;;  %920 = vmatpush.msrb.mxu0 %v3843_v18 }
  0x24   :  { %596 = vmatpush.msra.mxu3 %v3767_v6  ;;  %411 = vmatpush.msrb.mxu2 %v3897_v27 }
  0x25   :  { %1281 = vmatpush.msra.mxu1 %v3783_v8  ;;  %921 = vmatpush.msrb.mxu0 %v3855_v20 }
  0x26   :  { %597 = vmatpush.msra.mxu3 %v3783_v8  ;;  %575 = vmatpush.msra.mxu2 %v3793_v10 }
  0x27   :  { %1282 = vmatpush.msra.mxu1 %v3788_v9  ;;  %922 = vmatpush.msrb.mxu0 %v3867_v22 }
  0x28   :  { %3298 = vmatmul.msk.f32.gmra.mxu1 %vm91_vm0, %v3873_v23  ;;  %598 = vmatpush.msra.mxu3 %v3788_v9 }
  0x29   :  { %1283 = vmatpush.msra.mxu1 %v3805_v12  ;;  %576 = vmatpush.msra.mxu2 %v3800_v11 }
  0x2a   :  { %599 = vmatpush.msra.mxu3 %v3805_v12  ;;  %3289 = vmatmul.msk.f32.gmra.mxu0 %vm91_vm0, %v3821_v15 }
  0x2b   :  { %1284 = vmatpush.msra.mxu1 %v3813_v13  ;;  %577 = vmatpush.msra.mxu2 %v3833_v16 }
  0x2c   :  { %600 = vmatpush.msra.mxu3 %v3813_v13  ;;  %923 = vmatpush.msrb.mxu0 %v3888_v25 }
  0x2d   :  { %1285 = vmatpush.msra.mxu1 %v3838_v17  ;;  %578 = vmatpush.msra.mxu2 %v3843_v18 }
  0x2e   :  { %601 = vmatpush.msra.mxu3 %v3838_v17  ;;  %924 = vmatpush.msrb.mxu0 %v3897_v27 }
  0x2f   :  { %1286 = vmatpush.msra.mxu1 %v3850_v19  ;;  %579 = vmatpush.msra.mxu2 %v3855_v20 }
  0x30   :  { %3299 = vmatmul.msk.f32.gmra.mxu1 %vm91_vm0, %v3914_v30  ;;  %602 = vmatpush.msra.mxu3 %v3850_v19 }
  0x31   :  { %1259 = vmatpush.msra.mxu0 %v3793_v10  ;;  %580 = vmatpush.msra.mxu2 %v3867_v22 }
  0x32   :  { %3290 = vmatmul.msk.f32.gmra.mxu0 %vm91_vm0, %v3873_v23 }
  0x33   :  { %1260 = vmatpush.msra.mxu0 %v3800_v11  ;;  %581 = vmatpush.msra.mxu2 %v3888_v25 }
  0x35   :  { %582 = vmatpush.msra.mxu2 %v3897_v27  ;;  %1261 = vmatpush.msra.mxu0 %v3833_v16 }
  0x37   :  { %1262 = vmatpush.msra.mxu0 %v3843_v18 }
  0x38   :  { %3300 = vmatmul.msk.f32.gmra.mxu1 %vm91_vm0, %v83_v31 }
  0x39   :  { %1263 = vmatpush.msra.mxu0 %v3855_v20 }
  0x3a   :  { %3291 = vmatmul.msk.f32.gmra.mxu0 %vm91_vm0, %v3914_v30 }
  0x3b   :  { %1264 = vmatpush.msra.mxu0 %v3867_v22 }
  0x3d   :  { %1265 = vmatpush.msra.mxu0 %v3888_v25 }
  0x3f   :  { %1266 = vmatpush.msra.mxu0 %v3897_v27 }
  0x40   :  { %3301 = vmatmul.msk.f32.gmra.mxu1 %vm91_vm0, %v84_v32 }
  0x42   :  { %3292 = vmatmul.msk.f32.gmra.mxu0 %vm91_vm0, %v83_v31 }
  0x48   :  { %3302 = vmatmul.msk.f32.gmra.mxu1 %vm91_vm0, %v85_v33 }
  0x4a   :  { %3293 = vmatmul.msk.f32.gmra.mxu0 %vm91_vm0, %v84_v32 }
  0x52   :  { %3294 = vmatmul.msk.f32.gmra.mxu0 %vm91_vm0, %v85_v33 }
  0x8d   :  { %v174_v36 = vpop.f32.mrf.mxu1 }
  0x8e   :  { %v3997_v37 = vadd.f32 %v174_v36, %v88_v35 }
  0x94   :  { %v261_v50 = vpop.f32.mrf.mxu3  ;;  %v133_v53 = vpop.f32.mrf.mxu0 }
  0x95   :  { %v177_v38 = vpop.f32.mrf.mxu1  ;;  %v134_v56 = vadd.f32 %v133_v53, %v4011_v51  ;;  %v220_v53 = vld [vmem:[#allocation5] sm:$0xff] }
  0x96   :  { %v3999_v39 = vadd.f32 %v177_v38, %v88_v35  ;;  %v241_v57 = vpop.f32.mrf.mxu2 }
  0x97   :  { %v264_v58 = vadd.f32 %v241_v57, %v134_v56 }
  0x99   :  { %v3305_v62 = vmul.f32 -1.442695, %v264_v58 }
  0x9d   :  { %v180_v40 = vpop.f32.mrf.mxu1 }
  0x9e   :  { %v4001_v41 = vadd.f32 %v180_v40, %v88_v35 }
  0xa5   :  { %v183_v42 = vpop.f32.mrf.mxu1 }
  0xa6   :  { %v4003_v43 = vadd.f32 %v183_v42, %v88_v35 }
  0xad   :  { %v186_v44 = vpop.f32.mrf.mxu1 }
  0xae   :  { %v4005_v45 = vadd.f32 %v186_v44, %v88_v35 }
  0xb5   :  { %v189_v46 = vpop.f32.mrf.mxu1 }
  0xb6   :  { %v4007_v47 = vadd.f32 %v189_v46, %v88_v35 }
  0xbd   :  { %v192_v48 = vpop.f32.mrf.mxu1 }
  0xbe   :  { %v4009_v49 = vadd.f32 %v192_v48, %v88_v35 }
  0xc5   :  { %v195_v52 = vpop.f32.mrf.mxu1 }
  0xc6   :  { %v196_v54 = vadd.f32 %v195_v52, %v88_v35 }
  0xc8   :  { %v265_v55 = vadd.f32 %v261_v50, %v196_v54 }
  0xca   :  { %3393 = vtanh.f32 %v265_v55  ;;  %v3306_v61 = vmul.f32 -1.442695, %v265_v55 }
  0xcb   :  { %3395 = vtanh.f32 %v264_v58 }
  0xcc   :  { %3397 = vpow2.f32 %v3306_v61 }
  0xcd   :  { %3399 = vpow2.f32 %v3305_v62 }
  0xd0   :  { %v3394_v59 = vpop.eup %3393 }
  0xd1   :  { %329 = vrot.lane.b32.xlu0 %v3394_v59, %s3652_s3  ;;  %v3396_v60 = vpop.eup %3395 }
  0xd2   :  { %v3398_v63 = vpop.eup %3397 }
  0xd3   :  { %v310_v0 = vadd.f32 1.0, %v3398_v63  ;;  %v3400_v1 = vpop.eup %3399 }
  0xd4   :  { %v269_v2 = vadd.f32 1.0, %v3400_v1 }
  0xd5   :  { %3401 = vrcp.f32 %v310_v0  ;;  %v322_v29 = vand.u32 2147483648, %v310_v0  ;;  %vm316_vm3 = vweird.f32 %v310_v0  ;;  %v320_v30 = vand.u32 2147483647, %v310_v0 }
  0xd6   :  { %3403 = vrcp.f32 %v269_v2  ;;  %vm275_vm5 = vweird.f32 %v269_v2  ;;  %v281_v34 = vand.u32 2147483648, %v269_v2  ;;  %v279_v36 = vand.u32 2147483647, %v269_v2 }
  0xd7   :  { %v323_v33 = vor.u32 1.1754944e-38, %v322_v29  ;;  %vm321_vm7 = vcmp.eq.f32.partialorder %v320_v30, 8.507059e+37 }
  0xd8   :  { %v282_v44 = vor.u32 1.1754944e-38, %v281_v34  ;;  %vm280_vm9 = vcmp.eq.f32.partialorder %v279_v36, 8.507059e+37 }
  0xd9   :  { %292 = vrot.lane.b32.xlu0 %v3396_v60, %s3652_s3 }
  0xdb   :  { %v3402_v3 = vpop.eup %3401 }
  0xdc   :  { %v312_v4 = vmul.f32 %v3402_v3, %v310_v0  ;;  %v3404_v7 = vpop.eup %3403  ;;  %vm317_vm2 = vweird.f32 %v3402_v3 }
  0xdd   :  { %v271_v23 = vmul.f32 %v3404_v7, %v269_v2  ;;  %vm318_vm4 = vmor %vm316_vm3, %vm317_vm2  ;;  %vm276_vm6 = vweird.f32 %v3404_v7 }
  0xde   :  { %v313_v15 = vsub.f32 1.0, %v312_v4  ;;  %vm277_vm8 = vmor %vm275_vm5, %vm276_vm6 }
  0xdf   :  { %v272_v26 = vsub.f32 1.0, %v271_v23 }
  0xe0   :  { %v314_v24 = vmul.f32 %v3402_v3, %v313_v15 }
  0xe1   :  { %v273_v31 = vmul.f32 %v3404_v7, %v272_v26 }
  0xe2   :  { %v315_v28 = vadd.f32 %v3402_v3, %v314_v24  ;;  %v346_v24 = vld [vmem:[%s5325_s1 + $0x38] sm:$0xff] }
  0xe3   :  { %v274_v35 = vadd.f32 %v3404_v7, %v273_v31  ;;  %vm347_vm11 = vcmp.gt.f32.partialorder %v346_v24, 0.5 }
  0xe4   :  { %v319_v32 = vsel %vm318_vm4, %v3402_v3, %v315_v28  ;;  %v344_v3 = vld [vmem:[%s5325_s1] sm:$0xff] }
  0xe5   :  { %v324_v40 = vsel %vm321_vm7, %v323_v33, %v319_v32  ;;  %v278_v46 = vsel %vm277_vm8, %v3404_v7, %v274_v35  ;;  %vm345_vm10 = vcmp.gt.f32.partialorder %v344_v3, 0.5 }
  0xe6   :  { %v283_v48 = vsel %vm280_vm9, %v282_v44, %v278_v46  ;;  %v327_v54 = vmul.f32 %v324_v40, %v220_v53 }
 0x143   :  { %v330_v38 = vpop.permute.xlu0 %329 }
 0x144   :  { %v332_v42 = vmul.f32 %v330_v38, %v324_v40  ;;  %v136_v38 = vpop.f32.mrf.mxu0 }
 0x146   :  { %334 = vrot.lane.b32.xlu1 %v332_v42, %s3652_s3  ;;  %v137_v42 = vadd.f32 %v136_v38, %v4011_v51 }
 0x14b   :  { %v293_v50 = vpop.permute.xlu0 %292 }
 0x14c   :  { %v295_v52 = vmul.f32 %v293_v50, %v283_v48 }
 0x14e   :  { %287 = vrot.lane.b32.xlu1 %v220_v53, %s3652_s3  ;;  %297 = vrot.lane.b32.xlu2 %v295_v52, %s3652_s3 }
 0x1a8   :  { %v298_v60 = vpop.permute.xlu2 %297 }
 0x1b8   :  { %v335_v55 = vpop.permute.xlu1 %334 }
 0x1b9   :  { %v337_v56 = vadd.f32 %v335_v55, %v327_v54 }
 0x1bb   :  { %3405 = vtanh.f32 %v337_v56 }
 0x1c0   :  { %v288_v57 = vpop.permute.xlu1 %287 }
 0x1c1   :  { %v3406_v58 = vpop.eup %3405  ;;  %v290_v59 = vmul.f32 %v288_v57, %v283_v48 }
 0x1c2   :  { %340 = vrot.lane.b32.xlu2 %v3406_v58, %s3652_s3 }
 0x1c3   :  { %v300_v61 = vadd.f32 %v298_v60, %v290_v59 }
 0x1c5   :  { %3407 = vtanh.f32 %v300_v61 }
 0x1ca   :  { %362 = vrot.lane.b32.xlu2 %v3860_v21, %s3653_s30 }
 0x1cb   :  { %v3408_v62 = vpop.eup %3407 }
 0x1cc   :  { %303 = vrot.lane.b32.xlu0 %v3408_v62, %s3652_s3 }
 0x1d2   :  { %367 = vrot.lane.b32.xlu2 %v337_v56, %s3653_s30 }
 0x1da   :  { %354 = vrot.lane.b32.xlu2 %v300_v61, %s3653_s30 }
 0x21c   :  { %v341_v63 = vpop.permute.xlu2 %340 }
 0x21d   :  { %v343_v0 = vmul.f32 %v341_v63, %v324_v40 }
 0x21f   :  { %359 = vrot.lane.b32.xlu1 %v343_v0, %s3654_s2 }
 0x224   :  { %v363_v1 = vpop.permute.xlu2 %362 }
 0x22c   :  { %v368_v2 = vpop.permute.xlu2 %367 }
 0x234   :  { %v355_v4 = vpop.permute.xlu2 %354 }
 0x235   :  { %v357_v7 = vsel %vm345_vm10, %v355_v4, %v220_v53 }
 0x236   :  { %381 = vst.msk [vmem:[#allocation5] sm:$0xff] %vm91_vm0, %v357_v7 }
 0x23e   :  { %v304_v15 = vpop.permute.xlu0 %303 }
 0x23f   :  { %v306_v23 = vmul.f32 %v304_v15, %v283_v48 }
 0x241   :  { %349 = vrot.lane.b32.xlu0 %v306_v23, %s3654_s2 }
 0x249   :  { %370 = vrot.lane.b32.xlu0 %v220_v53, %s3653_s30 }
 0x291   :  { %v360_v26 = vpop.permute.xlu1 %359 }
 0x292   :  { %v365_v28 = vsel %vm347_vm11, %v360_v26, %v363_v1 }
 0x293   :  { %376 = vrot.lane.b32.xlu1 %v365_v28, %s3652_s3 }
 0x2b3   :  { %v350_v29 = vpop.permute.xlu0 %349 }
 0x2b4   :  { %v352_v30 = vsel %vm345_vm10, %v350_v29, %v3860_v21 }
 0x2b5   :  { %387 = vst.msk [vmem:[#allocation3] sm:$0xff] %vm91_vm0, %v352_v30 }
 0x2b6   :  { %374 = vst.msk [vmem:[#allocation4] sm:$0xff] %vm91_vm0, %v352_v30 }
 0x2bb   :  { %v371_v31 = vpop.permute.xlu0 %370 }
 0x2bc   :  { %v373_v32 = vsel %vm347_vm11, %v368_v2, %v371_v31 }
 0x2bd   :  { %383 = vrot.lane.b32.xlu0 %v373_v32, %s3652_s3 }
 0x305   :  { %v377_v33 = vpop.permute.xlu1 %376 }
 0x306   :  { %380 = vst.msk [vmem:[#allocation4] sm:$0xff] %vm379_vm12, %v377_v33 }
 0x307   :  { %388 = vst.msk [vmem:[#allocation3 + $0x38] sm:$0xff] %vm379_vm12, %v377_v33 }
 0x30d   :  { %v4042_v34 = vld [vmem:[#allocation4] sm:$0xff] }
 0x30e   :  { %3307 = vmatmul.msk.f32.vlgmr.msrb.gmra.mxu2 %vm214_vm1, %v4042_v34  ;;  %3308 = vmatmul.msk.f32.vlgmr.msrb.gmra.mxu3 %vm214_vm1, %v4042_v34 }
 0x30f   :  { %746 = vmatpush.msrb.mxu2 %v3793_v10  ;;  %766 = vmatpush.msrb.mxu3 %v3762_v5 }
 0x311   :  { %747 = vmatpush.msrb.mxu2 %v3800_v11  ;;  %767 = vmatpush.msrb.mxu3 %v3767_v6 }
 0x313   :  { %748 = vmatpush.msrb.mxu2 %v3833_v16  ;;  %768 = vmatpush.msrb.mxu3 %v3783_v8 }
 0x315   :  { %749 = vmatpush.msrb.mxu2 %v3843_v18  ;;  %769 = vmatpush.msrb.mxu3 %v3788_v9 }
 0x317   :  { %750 = vmatpush.msrb.mxu2 %v3855_v20  ;;  %770 = vmatpush.msrb.mxu3 %v3805_v12 }
 0x319   :  { %751 = vmatpush.msrb.mxu2 %v3867_v22  ;;  %771 = vmatpush.msrb.mxu3 %v3813_v13 }
 0x31b   :  { %752 = vmatpush.msrb.mxu2 %v3888_v25  ;;  %772 = vmatpush.msrb.mxu3 %v3838_v17 }
 0x31d   :  { %753 = vmatpush.msrb.mxu2 %v3897_v27  ;;  %773 = vmatpush.msrb.mxu3 %v3850_v19 }
 0x32f   :  { %v384_v21 = vpop.permute.xlu0 %383 }
 0x330   :  { %386 = vst.msk [vmem:[#allocation5] sm:$0xff] %vm379_vm12, %v384_v21 }
 0x337   :  { %v4065_v35 = vld [vmem:[#allocation5] sm:$0xff] }
 0x338   :  { %459 = vrot.lane.b32.xlu0 %v4065_v35, %s3652_s3 }
 0x391   :  { %v433_v36 = vpop.f32.mrf.mxu3  ;;  %v413_v44 = vpop.f32.mrf.mxu2 }
 0x392   :  { %v437_v40 = vadd.f32 %v433_v36, %v4009_v49  ;;  %v436_v46 = vadd.f32 %v413_v44, %v137_v42 }
 0x394   :  { %3409 = vtanh.f32 %v437_v40  ;;  %v3310_v52 = vmul.f32 -1.442695, %v437_v40  ;;  %v3309_v53 = vmul.f32 -1.442695, %v436_v46 }
 0x395   :  { %3411 = vtanh.f32 %v436_v46 }
 0x396   :  { %3413 = vpow2.f32 %v3310_v52 }
 0x397   :  { %3415 = vpow2.f32 %v3309_v53 }
 0x39a   :  { %v3410_v48 = vpop.eup %3409 }
 0x39b   :  { %501 = vrot.lane.b32.xlu1 %v3410_v48, %s3652_s3  ;;  %v3412_v50 = vpop.eup %3411 }
 0x39c   :  { %v3414_v54 = vpop.eup %3413 }
 0x39d   :  { %v482_v55 = vadd.f32 1.0, %v3414_v54  ;;  %v3416_v49 = vpop.eup %3415 }
 0x39e   :  { %v441_v56 = vadd.f32 1.0, %v3416_v49 }
 0x39f   :  { %3417 = vrcp.f32 %v482_v55  ;;  %v494_v1 = vand.u32 2147483648, %v482_v55  ;;  %vm488_vm14 = vweird.f32 %v482_v55  ;;  %v492_v2 = vand.u32 2147483647, %v482_v55 }
 0x3a0   :  { %3419 = vrcp.f32 %v441_v56  ;;  %v453_v28 = vand.u32 2147483648, %v441_v56  ;;  %vm447_vm4 = vweird.f32 %v441_v56  ;;  %v451_v29 = vand.u32 2147483647, %v441_v56 }
 0x3a1   :  { %v495_v7 = vor.u32 1.1754944e-38, %v494_v1  ;;  %vm493_vm2 = vcmp.eq.f32.partialorder %v492_v2, 8.507059e+37 }
 0x3a2   :  { %v454_v31 = vor.u32 1.1754944e-38, %v453_v28  ;;  %vm452_vm6 = vcmp.eq.f32.partialorder %v451_v29, 8.507059e+37 }
 0x3a3   :  { %464 = vrot.lane.b32.xlu1 %v3412_v50, %s3652_s3 }
 0x3a5   :  { %v3418_v57 = vpop.eup %3417 }
 0x3a6   :  { %v484_v58 = vmul.f32 %v3418_v57, %v482_v55  ;;  %v3420_v60 = vpop.eup %3419  ;;  %vm489_vm13 = vweird.f32 %v3418_v57 }
 0x3a7   :  { %v443_v61 = vmul.f32 %v3420_v60, %v441_v56  ;;  %vm490_vm15 = vmor %vm488_vm14, %vm489_vm13  ;;  %vm448_vm3 = vweird.f32 %v3420_v60  ;;  %v516_v56 = vld [vmem:[%s5325_s1 + $0x8] sm:$0xff] }
 0x3a8   :  { %v485_v59 = vsub.f32 1.0, %v484_v58  ;;  %vm449_vm5 = vmor %vm447_vm4, %vm448_vm3  ;;  %vm517_vm7 = vcmp.gt.f32.partialorder %v516_v56, 0.5 }
 0x3a9   :  { %v444_v63 = vsub.f32 1.0, %v443_v61  ;;  %v518_v61 = vld [vmem:[%s5325_s1 + $0x30] sm:$0xff] }
 0x3aa   :  { %v486_v62 = vmul.f32 %v3418_v57, %v485_v59  ;;  %v460_v44 = vpop.permute.xlu0 %459  ;;  %vm519_vm8 = vcmp.gt.f32.partialorder %v518_v61, 0.5 }
 0x3ab   :  { %v445_v3 = vmul.f32 %v3420_v60, %v444_v63 }
 0x3ac   :  { %v487_v0 = vadd.f32 %v3418_v57, %v486_v62 }
 0x3ad   :  { %v446_v24 = vadd.f32 %v3420_v60, %v445_v3 }
 0x3ae   :  { %v491_v4 = vsel %vm490_vm15, %v3418_v57, %v487_v0 }
 0x3af   :  { %v496_v23 = vsel %vm493_vm2, %v495_v7, %v491_v4  ;;  %v450_v30 = vsel %vm449_vm5, %v3420_v60, %v446_v24  ;;  %v139_v7 = vpop.f32.mrf.mxu0 }
 0x3b0   :  { %v455_v32 = vsel %vm452_vm6, %v454_v31, %v450_v30  ;;  %v499_v36 = vmul.f32 %v496_v23, %v4065_v35 }
 0x3b1   :  { %v462_v46 = vmul.f32 %v460_v44, %v455_v32 }
 0x40d   :  { %v502_v15 = vpop.permute.xlu1 %501 }
 0x40e   :  { %v504_v26 = vmul.f32 %v502_v15, %v496_v23 }
 0x410   :  { %506 = vrot.lane.b32.xlu2 %v504_v26, %s3652_s3 }
 0x415   :  { %v465_v33 = vpop.permute.xlu1 %464 }
 0x416   :  { %v467_v21 = vmul.f32 %v465_v33, %v455_v32 }
 0x418   :  { %469 = vrot.lane.b32.xlu1 %v467_v21, %s3652_s3 }
 0x46a   :  { %v507_v38 = vpop.permute.xlu2 %506 }
 0x46b   :  { %v509_v40 = vadd.f32 %v507_v38, %v499_v36 }
 0x46d   :  { %3421 = vtanh.f32 %v509_v40 }
 0x473   :  { %v3422_v42 = vpop.eup %3421 }
 0x474   :  { %512 = vrot.lane.b32.xlu2 %v3422_v42, %s3652_s3 }
 0x47c   :  { %534 = vrot.lane.b32.xlu2 %v4042_v34, %s3653_s30 }
 0x484   :  { %539 = vrot.lane.b32.xlu2 %v509_v40, %s3653_s30 }
 0x48a   :  { %v470_v48 = vpop.permute.xlu1 %469 }
 0x48b   :  { %v472_v50 = vadd.f32 %v470_v48, %v462_v46 }
 0x48d   :  { %3423 = vtanh.f32 %v472_v50  ;;  %526 = vrot.lane.b32.xlu2 %v472_v50, %s3653_s30 }
 0x493   :  { %v3424_v52 = vpop.eup %3423 }
 0x494   :  { %475 = vrot.lane.b32.xlu0 %v3424_v52, %s3652_s3 }
 0x4ce   :  { %v513_v53 = vpop.permute.xlu2 %512 }
 0x4cf   :  { %v515_v54 = vmul.f32 %v513_v53, %v496_v23  ;;  %v140_v23 = vadd.f32 %v139_v7, %v4011_v51 }
 0x4d1   :  { %531 = vrot.lane.b32.xlu1 %v515_v54, %s3654_s2 }
 0x4d6   :  { %v535_v55 = vpop.permute.xlu2 %534 }
 0x4de   :  { %v540_v49 = vpop.permute.xlu2 %539 }
 0x4e7   :  { %v527_v57 = vpop.permute.xlu2 %526 }
 0x4e8   :  { %v529_v58 = vsel %vm517_vm7, %v527_v57, %v4065_v35 }
 0x4e9   :  { %552 = vst.msk [vmem:[#allocation5] sm:$0xff] %vm91_vm0, %v529_v58 }
 0x506   :  { %v476_v59 = vpop.permute.xlu0 %475 }
 0x507   :  { %v478_v60 = vmul.f32 %v476_v59, %v455_v32 }
 0x509   :  { %521 = vrot.lane.b32.xlu0 %v478_v60, %s3654_s2 }
 0x511   :  { %542 = vrot.lane.b32.xlu0 %v4065_v35, %s3653_s30 }
 0x543   :  { %v532_v62 = vpop.permute.xlu1 %531 }
 0x544   :  { %v537_v63 = vsel %vm519_vm8, %v532_v62, %v535_v55 }
 0x545   :  { %548 = vrot.lane.b32.xlu1 %v537_v63, %s3652_s3 }
 0x57b   :  { %v522_v0 = vpop.permute.xlu0 %521 }
 0x57c   :  { %v524_v1 = vsel %vm517_vm7, %v522_v0, %v4042_v34 }
 0x57d   :  { %558 = vst.msk [vmem:[#allocation3 + $0x8] sm:$0xff] %vm91_vm0, %v524_v1 }
 0x57e   :  { %546 = vst.msk [vmem:[#allocation4] sm:$0xff] %vm91_vm0, %v524_v1 }
 0x583   :  { %v543_v2 = vpop.permute.xlu0 %542 }
 0x584   :  { %v545_v3 = vsel %vm519_vm8, %v540_v49, %v543_v2 }
 0x585   :  { %554 = vrot.lane.b32.xlu0 %v545_v3, %s3652_s3 }
 0x5b7   :  { %v549_v35 = vpop.permute.xlu1 %548 }
 0x5b8   :  { %551 = vst.msk [vmem:[#allocation4] sm:$0xff] %vm379_vm12, %v549_v35 }
 0x5b9   :  { %559 = vst.msk [vmem:[#allocation3 + $0x30] sm:$0xff] %vm379_vm12, %v549_v35 }
 0x5bf   :  { %v4101_v4 = vld [vmem:[#allocation4] sm:$0xff] }
 0x5c0   :  { %3311 = vmatmul.msk.f32.vlgmr.msra.gmra.mxu2 %vm214_vm1, %v4101_v4  ;;  %3312 = vmatmul.msk.f32.vlgmr.msra.gmra.mxu3 %vm214_vm1, %v4101_v4 }
 0x5c1   :  { %1088 = vmatpush.msra.mxu2 %v3793_v10  ;;  %1108 = vmatpush.msra.mxu3 %v3762_v5 }
 0x5c3   :  { %1089 = vmatpush.msra.mxu2 %v3800_v11  ;;  %1109 = vmatpush.msra.mxu3 %v3767_v6 }
 0x5c5   :  { %1090 = vmatpush.msra.mxu2 %v3833_v16  ;;  %1110 = vmatpush.msra.mxu3 %v3783_v8 }
 0x5c7   :  { %1091 = vmatpush.msra.mxu2 %v3843_v18  ;;  %1111 = vmatpush.msra.mxu3 %v3788_v9 }
 0x5c9   :  { %1092 = vmatpush.msra.mxu2 %v3855_v20  ;;  %1112 = vmatpush.msra.mxu3 %v3805_v12 }
 0x5cb   :  { %1093 = vmatpush.msra.mxu2 %v3867_v22  ;;  %1113 = vmatpush.msra.mxu3 %v3813_v13 }
 0x5cd   :  { %1094 = vmatpush.msra.mxu2 %v3888_v25  ;;  %1114 = vmatpush.msra.mxu3 %v3838_v17 }
 0x5cf   :  { %1095 = vmatpush.msra.mxu2 %v3897_v27  ;;  %1115 = vmatpush.msra.mxu3 %v3850_v19 }
 0x5f7   :  { %v555_v5 = vpop.permute.xlu0 %554 }
 0x5f8   :  { %557 = vst.msk [vmem:[#allocation5] sm:$0xff] %vm379_vm12, %v555_v5 }
 0x5ff   :  { %v4124_v6 = vld [vmem:[#allocation5] sm:$0xff] }
 0x600   :  { %630 = vrot.lane.b32.xlu0 %v4124_v6, %s3652_s3 }
 0x643   :  { %v604_v34 = vpop.f32.mrf.mxu3  ;;  %v584_v24 = vpop.f32.mrf.mxu2 }
 0x644   :  { %v608_v15 = vadd.f32 %v604_v34, %v4007_v47  ;;  %v607_v26 = vadd.f32 %v584_v24, %v140_v23 }
 0x646   :  { %3425 = vtanh.f32 %v608_v15  ;;  %v3314_v30 = vmul.f32 -1.442695, %v608_v15  ;;  %v3313_v31 = vmul.f32 -1.442695, %v607_v26 }
 0x647   :  { %3427 = vtanh.f32 %v607_v26 }
 0x648   :  { %3429 = vpow2.f32 %v3314_v30 }
 0x649   :  { %3431 = vpow2.f32 %v3313_v31 }
 0x64c   :  { %v3426_v28 = vpop.eup %3425 }
 0x64d   :  { %672 = vrot.lane.b32.xlu1 %v3426_v28, %s3652_s3  ;;  %v3428_v29 = vpop.eup %3427 }
 0x64e   :  { %v3430_v32 = vpop.eup %3429 }
 0x64f   :  { %v653_v33 = vadd.f32 1.0, %v3430_v32  ;;  %v3432_v47 = vpop.eup %3431  ;;  %v4145_v32 = vld [vmem:[%s5325_s1 + $0x10] sm:$0xff] }
 0x650   :  { %v612_v21 = vadd.f32 1.0, %v3432_v47  ;;  %vm688_vm4 = vcmp.gt.f32.partialorder %v4145_v32, 0.5 }
 0x651   :  { %3433 = vrcp.f32 %v653_v33  ;;  %v665_v52 = vand.u32 2147483648, %v653_v33  ;;  %vm659_vm10 = vweird.f32 %v653_v33  ;;  %v663_v53 = vand.u32 2147483647, %v653_v33 }
 0x652   :  { %3435 = vrcp.f32 %v612_v21  ;;  %v624_v60 = vand.u32 2147483648, %v612_v21  ;;  %vm618_vm15 = vweird.f32 %v612_v21  ;;  %v622_v61 = vand.u32 2147483647, %v612_v21 }
 0x653   :  { %v666_v49 = vor.u32 1.1754944e-38, %v665_v52  ;;  %vm664_vm13 = vcmp.eq.f32.partialorder %v663_v53, 8.507059e+37  ;;  %v3650_v53 = vld [vmem:[%s5323_s4 + $0x68] sm:$0xff] }
 0x654   :  { %v625_v63 = vor.u32 1.1754944e-38, %v624_v60  ;;  %vm623_vm3 = vcmp.eq.f32.partialorder %v622_v61, 8.507059e+37 }
 0x655   :  { %635 = vrot.lane.b32.xlu1 %v3428_v29, %s3652_s3 }
 0x657   :  { %v3434_v36 = vpop.eup %3433 }
 0x658   :  { %v655_v38 = vmul.f32 %v3434_v36, %v653_v33  ;;  %v3436_v42 = vpop.eup %3435  ;;  %vm660_vm9 = vweird.f32 %v3434_v36 }
 0x659   :  { %v614_v44 = vmul.f32 %v3436_v42, %v612_v21  ;;  %vm661_vm11 = vmor %vm659_vm10, %vm660_vm9  ;;  %vm619_vm14 = vweird.f32 %v3436_v42 }
 0x65a   :  { %v656_v40 = vsub.f32 1.0, %v655_v38  ;;  %vm620_vm2 = vmor %vm618_vm15, %vm619_vm14  ;;  %v4158_v38 = vld [vmem:[%s5325_s1 + $0x28] sm:$0xff] }
 0x65b   :  { %v615_v48 = vsub.f32 1.0, %v614_v44  ;;  %vm690_vm5 = vcmp.gt.f32.partialorder %v4158_v38, 0.5 }
 0x65c   :  { %v657_v46 = vmul.f32 %v3434_v36, %v656_v40 }
 0x65d   :  { %v616_v54 = vmul.f32 %v3436_v42, %v615_v48 }
 0x65e   :  { %v658_v50 = vadd.f32 %v3434_v36, %v657_v46 }
 0x65f   :  { %v617_v58 = vadd.f32 %v3436_v42, %v616_v54 }
 0x660   :  { %v662_v55 = vsel %vm661_vm11, %v3434_v36, %v658_v50 }
 0x661   :  { %v667_v57 = vsel %vm664_vm13, %v666_v49, %v662_v55  ;;  %v621_v62 = vsel %vm620_vm2, %v3436_v42, %v617_v58 }
 0x662   :  { %v626_v0 = vsel %vm623_vm3, %v625_v63, %v621_v62  ;;  %v670_v3 = vmul.f32 %v667_v57, %v4124_v6 }
 0x672   :  { %v631_v7 = vpop.permute.xlu0 %630 }
 0x673   :  { %v633_v15 = vmul.f32 %v631_v7, %v626_v0 }
 0x6bf   :  { %v673_v56 = vpop.permute.xlu1 %672 }
 0x6c0   :  { %v675_v59 = vmul.f32 %v673_v56, %v667_v57 }
 0x6c2   :  { %677 = vrot.lane.b32.xlu2 %v675_v59, %s3652_s3 }
 0x6c7   :  { %v636_v1 = vpop.permute.xlu1 %635 }
 0x6c8   :  { %v638_v2 = vmul.f32 %v636_v1, %v626_v0 }
 0x6ca   :  { %640 = vrot.lane.b32.xlu1 %v638_v2, %s3652_s3 }
 0x71c   :  { %v678_v35 = vpop.permute.xlu2 %677 }
 0x71d   :  { %v680_v5 = vadd.f32 %v678_v35, %v670_v3 }
 0x71f   :  { %3437 = vtanh.f32 %v680_v5 }
 0x725   :  { %v3438_v34 = vpop.eup %3437 }
 0x726   :  { %683 = vrot.lane.b32.xlu2 %v3438_v34, %s3652_s3 }
 0x72e   :  { %705 = vrot.lane.b32.xlu2 %v4101_v4, %s3653_s30 }
 0x736   :  { %710 = vrot.lane.b32.xlu2 %v680_v5, %s3653_s30 }
 0x73c   :  { %v641_v23 = vpop.permute.xlu1 %640 }
 0x73d   :  { %v643_v24 = vadd.f32 %v641_v23, %v633_v15 }
 0x73f   :  { %3439 = vtanh.f32 %v643_v24  ;;  %697 = vrot.lane.b32.xlu2 %v643_v24, %s3653_s30 }
 0x745   :  { %v3440_v26 = vpop.eup %3439 }
 0x746   :  { %646 = vrot.lane.b32.xlu0 %v3440_v26, %s3652_s3 }
 0x780   :  { %v684_v28 = vpop.permute.xlu2 %683 }
 0x781   :  { %v686_v29 = vmul.f32 %v684_v28, %v667_v57 }
 0x783   :  { %702 = vrot.lane.b32.xlu1 %v686_v29, %s3654_s2 }
 0x788   :  { %v706_v30 = vpop.permute.xlu2 %705 }
 0x790   :  { %v711_v31 = vpop.permute.xlu2 %710 }
 0x799   :  { %v698_v33 = vpop.permute.xlu2 %697 }
 0x79a   :  { %v700_v47 = vsel %vm688_vm4, %v698_v33, %v4124_v6 }
 0x79b   :  { %723 = vst.msk [vmem:[#allocation5] sm:$0xff] %vm91_vm0, %v700_v47 }
 0x7b8   :  { %v647_v21 = vpop.permute.xlu0 %646 }
 0x7b9   :  { %v649_v36 = vmul.f32 %v647_v21, %v626_v0 }
 0x7bb   :  { %692 = vrot.lane.b32.xlu0 %v649_v36, %s3654_s2 }
 0x7c3   :  { %713 = vrot.lane.b32.xlu0 %v4124_v6, %s3653_s30 }
 0x7f5   :  { %v703_v40 = vpop.permute.xlu1 %702 }
 0x7f6   :  { %v708_v42 = vsel %vm690_vm5, %v703_v40, %v706_v30 }
 0x7f7   :  { %719 = vrot.lane.b32.xlu1 %v708_v42, %s3652_s3 }
 0x82d   :  { %v693_v44 = vpop.permute.xlu0 %692 }
 0x82e   :  { %v695_v46 = vsel %vm688_vm4, %v693_v44, %v4101_v4  ;;  %v3649_v4 = vld [vmem:[%s5323_s4 + $0x78] sm:$0xff] }
 0x82f   :  { %729 = vst.msk [vmem:[#allocation3 + $0x10] sm:$0xff] %vm91_vm0, %v695_v46 }
 0x830   :  { %717 = vst.msk [vmem:[#allocation4] sm:$0xff] %vm91_vm0, %v695_v46 }
 0x835   :  { %v714_v6 = vpop.permute.xlu0 %713 }
 0x836   :  { %v716_v48 = vsel %vm690_vm5, %v711_v31, %v714_v6 }
 0x837   :  { %725 = vrot.lane.b32.xlu0 %v716_v48, %s3652_s3 }
 0x869   :  { %v720_v50 = vpop.permute.xlu1 %719 }
 0x86a   :  { %722 = vst.msk [vmem:[#allocation4] sm:$0xff] %vm379_vm12, %v720_v50 }
 0x86b   :  { %730 = vst.msk [vmem:[#allocation3 + $0x28] sm:$0xff] %vm379_vm12, %v720_v50 }
 0x871   :  { %v4174_v52 = vld [vmem:[#allocation4] sm:$0xff] }
 0x872   :  { %3315 = vmatmul.msk.f32.vlgmr.msrb.gmra.mxu2 %vm214_vm1, %v4174_v52  ;;  %3316 = vmatmul.msk.f32.vlgmr.msrb.gmra.mxu3 %vm214_vm1, %v4174_v52 }
 0x873   :  { %1430 = vmatpush.msrb.mxu2 %v3793_v10  ;;  %1450 = vmatpush.msrb.mxu3 %v3649_v4  ;;  %v4222_v4 = vld [vmem:[%s5325_s1 + $0x18] sm:$0xff] }
 0x874   :  { %vm859_vm15 = vcmp.gt.f32.partialorder %v4222_v4, 0.5 }
 0x875   :  { %1431 = vmatpush.msrb.mxu2 %v3800_v11  ;;  %1451 = vmatpush.msrb.mxu3 %v3650_v53  ;;  %v142_v11 = vpop.f32.mrf.mxu0 }
 0x877   :  { %1432 = vmatpush.msrb.mxu2 %v3833_v16  ;;  %1452 = vmatpush.msrb.mxu3 %v3783_v8 }
 0x879   :  { %1433 = vmatpush.msrb.mxu2 %v3843_v18  ;;  %1453 = vmatpush.msrb.mxu3 %v3788_v9 }
 0x87b   :  { %1434 = vmatpush.msrb.mxu2 %v3855_v20  ;;  %1454 = vmatpush.msrb.mxu3 %v3805_v12 }
 0x87d   :  { %1435 = vmatpush.msrb.mxu2 %v3867_v22  ;;  %1455 = vmatpush.msrb.mxu3 %v3813_v13  ;;  %v143_v13 = vadd.f32 %v142_v11, %v4011_v51 }
 0x87f   :  { %1436 = vmatpush.msrb.mxu2 %v3888_v25  ;;  %1456 = vmatpush.msrb.mxu3 %v3838_v17 }
 0x881   :  { %1437 = vmatpush.msrb.mxu2 %v3897_v27  ;;  %1457 = vmatpush.msrb.mxu3 %v3850_v19 }
 0x8a9   :  { %v726_v8 = vpop.permute.xlu0 %725 }
 0x8aa   :  { %728 = vst.msk [vmem:[#allocation5] sm:$0xff] %vm379_vm12, %v726_v8 }
 0x8b1   :  { %v4201_v9 = vld [vmem:[#allocation5] sm:$0xff] }
 0x8b2   :  { %801 = vrot.lane.b32.xlu0 %v4201_v9, %s3652_s3 }
 0x8f5   :  { %v775_v10 = vpop.f32.mrf.mxu3  ;;  %v755_v16 = vpop.f32.mrf.mxu2 }
 0x8f6   :  { %v779_v12 = vadd.f32 %v775_v10, %v4005_v45  ;;  %v778_v17 = vadd.f32 %v755_v16, %v143_v13 }
 0x8f8   :  { %3441 = vtanh.f32 %v779_v12  ;;  %v3318_v20 = vmul.f32 -1.442695, %v779_v12  ;;  %v3317_v22 = vmul.f32 -1.442695, %v778_v17  ;;  %v4235_v12 = vld [vmem:[%s5325_s1 + $0x20] sm:$0xff] }
 0x8f9   :  { %3443 = vtanh.f32 %v778_v17  ;;  %vm861_vm2 = vcmp.gt.f32.partialorder %v4235_v12, 0.5 }
 0x8fa   :  { %3445 = vpow2.f32 %v3318_v20 }
 0x8fb   :  { %3447 = vpow2.f32 %v3317_v22 }
 0x8fe   :  { %v3442_v18 = vpop.eup %3441 }
 0x8ff   :  { %843 = vrot.lane.b32.xlu1 %v3442_v18, %s3652_s3  ;;  %v3444_v19 = vpop.eup %3443 }
 0x900   :  { %v3446_v25 = vpop.eup %3445 }
 0x901   :  { %v824_v27 = vadd.f32 1.0, %v3446_v25  ;;  %v3448_v45 = vpop.eup %3447 }
 0x902   :  { %v783_v54 = vadd.f32 1.0, %v3448_v45 }
 0x903   :  { %3449 = vrcp.f32 %v824_v27  ;;  %v836_v62 = vand.u32 2147483648, %v824_v27  ;;  %vm830_vm7 = vweird.f32 %v824_v27  ;;  %v834_v63 = vand.u32 2147483647, %v824_v27 }
 0x904   :  { %3451 = vrcp.f32 %v783_v54  ;;  %v795_v7 = vand.u32 2147483648, %v783_v54  ;;  %vm789_vm11 = vweird.f32 %v783_v54  ;;  %v793_v15 = vand.u32 2147483647, %v783_v54 }
 0x905   :  { %v837_v2 = vor.u32 1.1754944e-38, %v836_v62  ;;  %vm835_vm9 = vcmp.eq.f32.partialorder %v834_v63, 8.507059e+37 }
 0x906   :  { %v796_v24 = vor.u32 1.1754944e-38, %v795_v7  ;;  %vm794_vm14 = vcmp.eq.f32.partialorder %v793_v15, 8.507059e+37 }
 0x907   :  { %806 = vrot.lane.b32.xlu1 %v3444_v19, %s3652_s3 }
 0x909   :  { %v3450_v55 = vpop.eup %3449 }
 0x90a   :  { %v826_v49 = vmul.f32 %v3450_v55, %v824_v27  ;;  %v3452_v57 = vpop.eup %3451  ;;  %vm831_vm6 = vweird.f32 %v3450_v55  ;;  %v145_v27 = vpop.f32.mrf.mxu0 }
 0x90b   :  { %v785_v58 = vmul.f32 %v3452_v57, %v783_v54  ;;  %vm832_vm8 = vmor %vm830_vm7, %vm831_vm6  ;;  %vm790_vm10 = vweird.f32 %v3452_v57 }
 0x90c   :  { %v827_v56 = vsub.f32 1.0, %v826_v49  ;;  %vm791_vm13 = vmor %vm789_vm11, %vm790_vm10 }
 0x90d   :  { %v786_v60 = vsub.f32 1.0, %v785_v58 }
 0x90e   :  { %v828_v59 = vmul.f32 %v3450_v55, %v827_v56 }
 0x90f   :  { %v787_v0 = vmul.f32 %v3452_v57, %v786_v60 }
 0x910   :  { %v829_v61 = vadd.f32 %v3450_v55, %v828_v59 }
 0x911   :  { %v788_v5 = vadd.f32 %v3452_v57, %v787_v0 }
 0x912   :  { %v833_v1 = vsel %vm832_vm8, %v3450_v55, %v829_v61  ;;  %v4262_v45 = vpop.f32.mrf.mxu0 }
 0x913   :  { %v838_v35 = vsel %vm835_vm9, %v837_v2, %v833_v1  ;;  %v792_v23 = vsel %vm791_vm13, %v3452_v57, %v788_v5  ;;  %v146_v57 = vadd.f32 %v145_v27, %v4011_v51 }
 0x914   :  { %v797_v26 = vsel %vm794_vm14, %v796_v24, %v792_v23  ;;  %v841_v30 = vmul.f32 %v838_v35, %v4201_v9 }
 0x91a   :  { %v4264_v54 = vpop.f32.mrf.mxu0 }
 0x922   :  { %v4266_v55 = vpop.f32.mrf.mxu0 }
 0x924   :  { %v802_v21 = vpop.permute.xlu0 %801 }
 0x925   :  { %v804_v36 = vmul.f32 %v802_v21, %v797_v26 }
 0x971   :  { %v844_v3 = vpop.permute.xlu1 %843 }
 0x972   :  { %v846_v34 = vmul.f32 %v844_v3, %v838_v35 }
 0x974   :  { %848 = vrot.lane.b32.xlu2 %v846_v34, %s3652_s3 }
 0x979   :  { %v807_v28 = vpop.permute.xlu1 %806 }
 0x97a   :  { %v809_v29 = vmul.f32 %v807_v28, %v797_v26 }
 0x97c   :  { %811 = vrot.lane.b32.xlu1 %v809_v29, %s3652_s3 }
 0x9ce   :  { %v849_v31 = vpop.permute.xlu2 %848 }
 0x9cf   :  { %v851_v33 = vadd.f32 %v849_v31, %v841_v30 }
 0x9d1   :  { %3453 = vtanh.f32 %v851_v33 }
 0x9d7   :  { %v3454_v47 = vpop.eup %3453 }
 0x9d8   :  { %854 = vrot.lane.b32.xlu2 %v3454_v47, %s3652_s3 }
 0x9e0   :  { %876 = vrot.lane.b32.xlu2 %v4174_v52, %s3653_s30 }
 0x9e8   :  { %881 = vrot.lane.b32.xlu2 %v851_v33, %s3653_s30 }
 0x9ee   :  { %v812_v40 = vpop.permute.xlu1 %811 }
 0x9ef   :  { %v814_v42 = vadd.f32 %v812_v40, %v804_v36 }
 0x9f1   :  { %3455 = vtanh.f32 %v814_v42  ;;  %868 = vrot.lane.b32.xlu2 %v814_v42, %s3653_s30 }
 0x9f7   :  { %v3456_v44 = vpop.eup %3455 }
 0x9f8   :  { %817 = vrot.lane.b32.xlu0 %v3456_v44, %s3652_s3 }
 0xa32   :  { %v855_v46 = vpop.permute.xlu2 %854 }
 0xa33   :  { %v857_v6 = vmul.f32 %v855_v46, %v838_v35 }
 0xa35   :  { %873 = vrot.lane.b32.xlu1 %v857_v6, %s3654_s2 }
 0xa3a   :  { %v877_v48 = vpop.permute.xlu2 %876 }
 0xa42   :  { %v882_v50 = vpop.permute.xlu2 %881 }
 0xa4b   :  { %v869_v53 = vpop.permute.xlu2 %868 }
 0xa4c   :  { %v871_v8 = vsel %vm859_vm15, %v869_v53, %v4201_v9 }
 0xa4d   :  { %894 = vst.msk [vmem:[#allocation5] sm:$0xff] %vm91_vm0, %v871_v8 }
 0xa6a   :  { %v818_v10 = vpop.permute.xlu0 %817 }
 0xa6b   :  { %v820_v11 = vmul.f32 %v818_v10, %v797_v26 }
 0xa6d   :  { %863 = vrot.lane.b32.xlu0 %v820_v11, %s3654_s2 }
 0xa75   :  { %884 = vrot.lane.b32.xlu0 %v4201_v9, %s3653_s30 }
 0xaa7   :  { %v874_v13 = vpop.permute.xlu1 %873 }
 0xaa8   :  { %v879_v16 = vsel %vm861_vm2, %v874_v13, %v877_v48 }
 0xaa9   :  { %890 = vrot.lane.b32.xlu1 %v879_v16, %s3652_s3 }
 0xadf   :  { %v864_v17 = vpop.permute.xlu0 %863 }
 0xae0   :  { %v866_v18 = vsel %vm859_vm15, %v864_v17, %v4174_v52 }
 0xae1   :  { %900 = vst.msk [vmem:[#allocation3 + $0x18] sm:$0xff] %vm91_vm0, %v866_v18 }
 0xae2   :  { %888 = vst.msk [vmem:[#allocation4] sm:$0xff] %vm91_vm0, %v866_v18 }
 0xae7   :  { %v885_v9 = vpop.permute.xlu0 %884 }
 0xae8   :  { %v887_v19 = vsel %vm861_vm2, %v882_v50, %v885_v9 }
 0xae9   :  { %896 = vrot.lane.b32.xlu0 %v887_v19, %s3652_s3 }
 0xb1b   :  { %v891_v20 = vpop.permute.xlu1 %890 }
 0xb1c   :  { %893 = vst.msk [vmem:[#allocation4] sm:$0xff] %vm379_vm12, %v891_v20 }
 0xb1d   :  { %901 = vst.msk [vmem:[#allocation3 + $0x20] sm:$0xff] %vm379_vm12, %v891_v20 }
 0xb23   :  { %v4251_v22 = vld [vmem:[#allocation4] sm:$0xff] }
 0xb24   :  { %3319 = vmatmul.msk.f32.vlgmr.msrb.gmra.mxu0 %vm214_vm1, %v4251_v22  ;;  %3320 = vmatmul.msk.f32.vlgmr.msrb.gmra.mxu1 %vm214_vm1, %v4251_v22 }
 0xb5b   :  { %v897_v52 = vpop.permute.xlu0 %896 }
 0xb5c   :  { %899 = vst.msk [vmem:[#allocation5] sm:$0xff] %vm379_vm12, %v897_v52 }
 0xb63   :  { %v4258_v25 = vld [vmem:[#allocation5] sm:$0xff] }
 0xb64   :  { %972 = vrot.lane.b32.xlu0 %v4258_v25, %s3652_s3 }
 0xba1   :  { %v946_v49 = vpop.f32.mrf.mxu1  ;;  %v926_v58 = vpop.f32.mrf.mxu0 }
 0xba2   :  { %v950_v56 = vadd.f32 %v946_v49, %v4003_v43  ;;  %v949_v59 = vadd.f32 %v926_v58, %v146_v57 }
 0xba4   :  { %3457 = vtanh.f32 %v950_v56  ;;  %v3322_v62 = vmul.f32 -1.442695, %v950_v56  ;;  %v3321_v63 = vmul.f32 -1.442695, %v949_v59 }
 0xba5   :  { %3459 = vtanh.f32 %v949_v59 }
 0xba6   :  { %3461 = vpow2.f32 %v3322_v62 }
 0xba7   :  { %3463 = vpow2.f32 %v3321_v63 }
 0xbaa   :  { %v3458_v60 = vpop.eup %3457 }
 0xbab   :  { %1014 = vrot.lane.b32.xlu1 %v3458_v60, %s3652_s3  ;;  %v3460_v61 = vpop.eup %3459 }
 0xbac   :  { %v3462_v0 = vpop.eup %3461 }
 0xbad   :  { %v995_v1 = vadd.f32 1.0, %v3462_v0  ;;  %v3464_v43 = vpop.eup %3463 }
 0xbae   :  { %v954_v2 = vadd.f32 1.0, %v3464_v43 }
 0xbaf   :  { %3465 = vrcp.f32 %v995_v1  ;;  %v1007_v26 = vand.u32 2147483648, %v995_v1  ;;  %vm1001_vm6 = vweird.f32 %v995_v1  ;;  %v1005_v28 = vand.u32 2147483647, %v995_v1 }
 0xbb0   :  { %3467 = vrcp.f32 %v954_v2  ;;  %v966_v40 = vand.u32 2147483648, %v954_v2  ;;  %vm960_vm10 = vweird.f32 %v954_v2  ;;  %v964_v42 = vand.u32 2147483647, %v954_v2 }
 0xbb1   :  { %v1008_v31 = vor.u32 1.1754944e-38, %v1007_v26  ;;  %vm1006_vm8 = vcmp.eq.f32.partialorder %v1005_v28, 8.507059e+37 }
 0xbb2   :  { %v967_v46 = vor.u32 1.1754944e-38, %v966_v40  ;;  %vm965_vm13 = vcmp.eq.f32.partialorder %v964_v42, 8.507059e+37 }
 0xbb3   :  { %977 = vrot.lane.b32.xlu1 %v3460_v61, %s3652_s3 }
 0xbb5   :  { %v3466_v3 = vpop.eup %3465 }
 0xbb6   :  { %v997_v35 = vmul.f32 %v3466_v3, %v995_v1  ;;  %v3468_v34 = vpop.eup %3467  ;;  %vm1002_vm3 = vweird.f32 %v3466_v3 }
 0xbb7   :  { %v956_v7 = vmul.f32 %v3468_v34, %v954_v2  ;;  %vm1003_vm7 = vmor %vm1001_vm6, %vm1002_vm3  ;;  %vm961_vm9 = vweird.f32 %v3468_v34 }
 0xbb8   :  { %v998_v5 = vsub.f32 1.0, %v997_v35  ;;  %vm962_vm11 = vmor %vm960_vm10, %vm961_vm9 }
 0xbb9   :  { %v957_v23 = vsub.f32 1.0, %v956_v7 }
 0xbba   :  { %v999_v15 = vmul.f32 %v3466_v3, %v998_v5 }
 0xbbb   :  { %v958_v29 = vmul.f32 %v3468_v34, %v957_v23 }
 0xbbc   :  { %v1000_v24 = vadd.f32 %v3466_v3, %v999_v15 }
 0xbbd   :  { %v959_v21 = vadd.f32 %v3468_v34, %v958_v29 }
 0xbbe   :  { %v1004_v30 = vsel %vm1003_vm7, %v3466_v3, %v1000_v24  ;;  %v149_v3 = vadd.f32 %v4262_v45, %v4011_v51 }
 0xbbf   :  { %v1009_v47 = vsel %vm1006_vm8, %v1008_v31, %v1004_v30  ;;  %v963_v44 = vsel %vm962_vm11, %v3468_v34, %v959_v21 }
 0xbc0   :  { %v968_v6 = vsel %vm965_vm13, %v967_v46, %v963_v44  ;;  %v1012_v53 = vmul.f32 %v1009_v47, %v4258_v25 }
 0xbd6   :  { %v973_v13 = vpop.permute.xlu0 %972 }
 0xbd7   :  { %v975_v16 = vmul.f32 %v973_v13, %v968_v6 }
 0xc1d   :  { %v1015_v33 = vpop.permute.xlu1 %1014 }
 0xc1e   :  { %v1017_v36 = vmul.f32 %v1015_v33, %v1009_v47 }
 0xc20   :  { %1019 = vrot.lane.b32.xlu2 %v1017_v36, %s3652_s3 }
 0xc25   :  { %v978_v48 = vpop.permute.xlu1 %977 }
 0xc26   :  { %v980_v50 = vmul.f32 %v978_v48, %v968_v6 }
 0xc28   :  { %982 = vrot.lane.b32.xlu1 %v980_v50, %s3652_s3 }
 0xc7a   :  { %v1020_v8 = vpop.permute.xlu2 %1019 }
 0xc7b   :  { %v1022_v10 = vadd.f32 %v1020_v8, %v1012_v53 }
 0xc7d   :  { %3469 = vtanh.f32 %v1022_v10 }
 0xc83   :  { %v3470_v11 = vpop.eup %3469 }
 0xc84   :  { %1025 = vrot.lane.b32.xlu2 %v3470_v11, %s3652_s3 }
 0xc8c   :  { %1047 = vrot.lane.b32.xlu2 %v4251_v22, %s3653_s30 }
 0xc94   :  { %1052 = vrot.lane.b32.xlu2 %v1022_v10, %s3653_s30 }
 0xc9a   :  { %v983_v17 = vpop.permute.xlu1 %982 }
 0xc9b   :  { %v985_v18 = vadd.f32 %v983_v17, %v975_v16 }
 0xc9d   :  { %3471 = vtanh.f32 %v985_v18  ;;  %1039 = vrot.lane.b32.xlu2 %v985_v18, %s3653_s30 }
 0xca3   :  { %v3472_v9 = vpop.eup %3471 }
 0xca4   :  { %988 = vrot.lane.b32.xlu0 %v3472_v9, %s3652_s3 }
 0xcde   :  { %v1026_v19 = vpop.permute.xlu2 %1025 }
 0xcdf   :  { %v1028_v20 = vmul.f32 %v1026_v19, %v1009_v47 }
 0xce1   :  { %1044 = vrot.lane.b32.xlu1 %v1028_v20, %s3654_s2 }
 0xce6   :  { %v1048_v52 = vpop.permute.xlu2 %1047 }
 0xcee   :  { %v1053_v27 = vpop.permute.xlu2 %1052 }
 0xcf7   :  { %v1040_v49 = vpop.permute.xlu2 %1039 }
 0xcf8   :  { %v1042_v56 = vsel %vm861_vm2, %v1040_v49, %v4258_v25 }
 0xcf9   :  { %1065 = vst.msk [vmem:[#allocation5] sm:$0xff] %vm91_vm0, %v1042_v56 }
 0xd16   :  { %v989_v57 = vpop.permute.xlu0 %988 }
 0xd17   :  { %v991_v58 = vmul.f32 %v989_v57, %v968_v6 }
 0xd19   :  { %1034 = vrot.lane.b32.xlu0 %v991_v58, %s3654_s2 }
 0xd21   :  { %1055 = vrot.lane.b32.xlu0 %v4258_v25, %s3653_s30 }
 0xd53   :  { %v1045_v59 = vpop.permute.xlu1 %1044 }
 0xd54   :  { %v1050_v60 = vsel %vm859_vm15, %v1045_v59, %v1048_v52 }
 0xd55   :  { %1061 = vrot.lane.b32.xlu1 %v1050_v60, %s3652_s3 }
 0xd8b   :  { %v1035_v61 = vpop.permute.xlu0 %1034 }
 0xd8c   :  { %v1037_v62 = vsel %vm861_vm2, %v1035_v61, %v4251_v22 }
 0xd8d   :  { %1071 = vst.msk [vmem:[#allocation3 + $0x20] sm:$0xff] %vm91_vm0, %v1037_v62 }
 0xd8e   :  { %1059 = vst.msk [vmem:[#allocation4] sm:$0xff] %vm91_vm0, %v1037_v62 }
 0xd93   :  { %v1056_v63 = vpop.permute.xlu0 %1055 }
 0xd94   :  { %v1058_v0 = vsel %vm859_vm15, %v1053_v27, %v1056_v63 }
 0xd95   :  { %1067 = vrot.lane.b32.xlu0 %v1058_v0, %s3652_s3 }
 0xdc7   :  { %v1062_v25 = vpop.permute.xlu1 %1061 }
 0xdc8   :  { %1064 = vst.msk [vmem:[#allocation4] sm:$0xff] %vm379_vm12, %v1062_v25 }
 0xdc9   :  { %1072 = vst.msk [vmem:[#allocation3 + $0x18] sm:$0xff] %vm379_vm12, %v1062_v25 }
 0xdcf   :  { %v4302_v1 = vld [vmem:[#allocation4] sm:$0xff] }
 0xdd0   :  { %3323 = vmatmul.msk.f32.vlgmr.msra.gmra.mxu2 %vm214_vm1, %v4302_v1  ;;  %3324 = vmatmul.msk.f32.vlgmr.msra.gmra.mxu3 %vm214_vm1, %v4302_v1 }
 0xe07   :  { %v1068_v12 = vpop.permute.xlu0 %1067 }
 0xe08   :  { %1070 = vst.msk [vmem:[#allocation5] sm:$0xff] %vm379_vm12, %v1068_v12 }
 0xe0f   :  { %v4309_v4 = vld [vmem:[#allocation5] sm:$0xff] }
 0xe10   :  { %1143 = vrot.lane.b32.xlu0 %v4309_v4, %s3652_s3 }
 0xe53   :  { %v1117_v22 = vpop.f32.mrf.mxu3  ;;  %v1097_v2 = vpop.f32.mrf.mxu2 }
 0xe54   :  { %v1121_v43 = vadd.f32 %v1117_v22, %v4001_v41  ;;  %v1120_v35 = vadd.f32 %v1097_v2, %v149_v3 }
 0xe56   :  { %3473 = vtanh.f32 %v1121_v43  ;;  %v3326_v7 = vmul.f32 -1.442695, %v1121_v43  ;;  %v3325_v15 = vmul.f32 -1.442695, %v1120_v35 }
 0xe57   :  { %3475 = vtanh.f32 %v1120_v35 }
 0xe58   :  { %3477 = vpow2.f32 %v3326_v7 }
 0xe59   :  { %3479 = vpow2.f32 %v3325_v15 }
 0xe5c   :  { %v3474_v5 = vpop.eup %3473 }
 0xe5d   :  { %1185 = vrot.lane.b32.xlu1 %v3474_v5, %s3652_s3  ;;  %v3476_v34 = vpop.eup %3475 }
 0xe5e   :  { %v3478_v23 = vpop.eup %3477 }
 0xe5f   :  { %v1166_v24 = vadd.f32 1.0, %v3478_v23  ;;  %v3480_v41 = vpop.eup %3479  ;;  %v152_v23 = vadd.f32 %v4264_v54, %v4011_v51 }
 0xe60   :  { %v1125_v26 = vadd.f32 1.0, %v3480_v41 }
 0xe61   :  { %3481 = vrcp.f32 %v1166_v24  ;;  %v1178_v36 = vand.u32 2147483648, %v1166_v24  ;;  %vm1172_vm15 = vweird.f32 %v1166_v24  ;;  %v1176_v40 = vand.u32 2147483647, %v1166_v24 }
 0xe62   :  { %3483 = vrcp.f32 %v1125_v26  ;;  %v1137_v8 = vand.u32 2147483648, %v1125_v26  ;;  %vm1131_vm7 = vweird.f32 %v1125_v26  ;;  %v1135_v10 = vand.u32 2147483647, %v1125_v26 }
 0xe63   :  { %v1179_v46 = vor.u32 1.1754944e-38, %v1178_v36  ;;  %vm1177_vm3 = vcmp.eq.f32.partialorder %v1176_v40, 8.507059e+37 }
 0xe64   :  { %v1138_v13 = vor.u32 1.1754944e-38, %v1137_v8  ;;  %vm1136_vm9 = vcmp.eq.f32.partialorder %v1135_v10, 8.507059e+37 }
 0xe65   :  { %1148 = vrot.lane.b32.xlu1 %v3476_v34, %s3652_s3 }
 0xe67   :  { %v3482_v28 = vpop.eup %3481 }
 0xe68   :  { %v1168_v45 = vmul.f32 %v3482_v28, %v1166_v24  ;;  %v3484_v30 = vpop.eup %3483  ;;  %vm1173_vm14 = vweird.f32 %v3482_v28 }
 0xe69   :  { %v1127_v31 = vmul.f32 %v3484_v30, %v1125_v26  ;;  %vm1174_vm2 = vmor %vm1172_vm15, %vm1173_vm14  ;;  %vm1132_vm6 = vweird.f32 %v3484_v30 }
 0xe6a   :  { %v1169_v29 = vsub.f32 1.0, %v1168_v45  ;;  %vm1133_vm8 = vmor %vm1131_vm7, %vm1132_vm6 }
 0xe6b   :  { %v1128_v47 = vsub.f32 1.0, %v1127_v31 }
 0xe6c   :  { %v1170_v33 = vmul.f32 %v3482_v28, %v1169_v29 }
 0xe6d   :  { %v1129_v42 = vmul.f32 %v3484_v30, %v1128_v47 }
 0xe6e   :  { %v1171_v21 = vadd.f32 %v3482_v28, %v1170_v33 }
 0xe6f   :  { %v1130_v50 = vadd.f32 %v3484_v30, %v1129_v42 }
 0xe70   :  { %v1175_v44 = vsel %vm1174_vm2, %v3482_v28, %v1171_v21 }
 0xe71   :  { %v1180_v48 = vsel %vm1177_vm3, %v1179_v46, %v1175_v44  ;;  %v1134_v11 = vsel %vm1133_vm8, %v3484_v30, %v1130_v50 }
 0xe72   :  { %v1139_v16 = vsel %vm1136_vm9, %v1138_v13, %v1134_v11  ;;  %v1183_v9 = vmul.f32 %v1180_v48, %v4309_v4 }
 0xe82   :  { %v1144_v27 = vpop.permute.xlu0 %1143 }
 0xe83   :  { %v1146_v49 = vmul.f32 %v1144_v27, %v1139_v16 }
 0xecf   :  { %v1186_v6 = vpop.permute.xlu1 %1185 }
 0xed0   :  { %v1188_v53 = vmul.f32 %v1186_v6, %v1180_v48 }
 0xed2   :  { %1190 = vrot.lane.b32.xlu2 %v1188_v53, %s3652_s3 }
 0xed7   :  { %v1149_v17 = vpop.permute.xlu1 %1148 }
 0xed8   :  { %v1151_v18 = vmul.f32 %v1149_v17, %v1139_v16 }
 0xeda   :  { %1153 = vrot.lane.b32.xlu1 %v1151_v18, %s3652_s3 }
 0xf2c   :  { %v1191_v19 = vpop.permute.xlu2 %1190 }
 0xf2d   :  { %v1193_v20 = vadd.f32 %v1191_v19, %v1183_v9 }
 0xf2f   :  { %3485 = vtanh.f32 %v1193_v20 }
 0xf35   :  { %v3486_v52 = vpop.eup %3485 }
 0xf36   :  { %1196 = vrot.lane.b32.xlu2 %v3486_v52, %s3652_s3 }
 0xf3e   :  { %1218 = vrot.lane.b32.xlu2 %v4302_v1, %s3653_s30 }
 0xf46   :  { %1223 = vrot.lane.b32.xlu2 %v1193_v20, %s3653_s30 }
 0xf4c   :  { %v1154_v56 = vpop.permute.xlu1 %1153 }
 0xf4d   :  { %v1156_v57 = vadd.f32 %v1154_v56, %v1146_v49 }
 0xf4f   :  { %3487 = vtanh.f32 %v1156_v57  ;;  %1210 = vrot.lane.b32.xlu2 %v1156_v57, %s3653_s30 }
 0xf55   :  { %v3488_v58 = vpop.eup %3487 }
 0xf56   :  { %1159 = vrot.lane.b32.xlu0 %v3488_v58, %s3652_s3 }
 0xf90   :  { %v1197_v59 = vpop.permute.xlu2 %1196 }
 0xf91   :  { %v1199_v60 = vmul.f32 %v1197_v59, %v1180_v48 }
 0xf93   :  { %1215 = vrot.lane.b32.xlu1 %v1199_v60, %s3654_s2 }
 0xf98   :  { %v1219_v61 = vpop.permute.xlu2 %1218 }
 0xfa0   :  { %v1224_v62 = vpop.permute.xlu2 %1223 }
 0xfa9   :  { %v1211_v63 = vpop.permute.xlu2 %1210 }
 0xfaa   :  { %v1213_v0 = vsel %vm690_vm5, %v1211_v63, %v4309_v4 }
 0xfab   :  { %1236 = vst.msk [vmem:[#allocation5] sm:$0xff] %vm91_vm0, %v1213_v0 }
 0xfc8   :  { %v1160_v25 = vpop.permute.xlu0 %1159 }
 0xfc9   :  { %v1162_v12 = vmul.f32 %v1160_v25, %v1139_v16 }
 0xfcb   :  { %1205 = vrot.lane.b32.xlu0 %v1162_v12, %s3654_s2 }
 0xfd3   :  { %1226 = vrot.lane.b32.xlu0 %v4309_v4, %s3653_s30 }
0x1005   :  { %v1216_v22 = vpop.permute.xlu1 %1215 }
0x1006   :  { %v1221_v43 = vsel %vm688_vm4, %v1216_v22, %v1219_v61  ;;  %v4377_v22 = vld [vmem:[%s5325_s1 + $0x30] sm:$0xff] }
0x1007   :  { %1232 = vrot.lane.b32.xlu1 %v1221_v43, %s3652_s3  ;;  %vm1372_vm3 = vcmp.gt.f32.partialorder %v4377_v22, 0.5 }
0x103d   :  { %v1206_v2 = vpop.permute.xlu0 %1205 }
0x103e   :  { %v1208_v3 = vsel %vm690_vm5, %v1206_v2, %v4302_v1 }
0x103f   :  { %1242 = vst.msk [vmem:[#allocation3 + $0x28] sm:$0xff] %vm91_vm0, %v1208_v3 }
0x1040   :  { %1230 = vst.msk [vmem:[#allocation4] sm:$0xff] %vm91_vm0, %v1208_v3 }
0x1045   :  { %v1227_v35 = vpop.permute.xlu0 %1226 }
0x1046   :  { %v1229_v5 = vsel %vm688_vm4, %v1224_v62, %v1227_v35 }
0x1047   :  { %1238 = vrot.lane.b32.xlu0 %v1229_v5, %s3652_s3  ;;  %v4390_v5 = vld [vmem:[%s5325_s1 + $0x8] sm:$0xff] }
0x1048   :  { %vm1374_vm6 = vcmp.gt.f32.partialorder %v4390_v5, 0.5 }
0x1079   :  { %v1233_v4 = vpop.permute.xlu1 %1232 }
0x107a   :  { %1235 = vst.msk [vmem:[#allocation4] sm:$0xff] %vm379_vm12, %v1233_v4 }
0x107b   :  { %1243 = vst.msk [vmem:[#allocation3 + $0x10] sm:$0xff] %vm379_vm12, %v1233_v4 }
0x1081   :  { %v4348_v34 = vld [vmem:[#allocation4] sm:$0xff] }
0x1082   :  { %3327 = vmatmul.msk.f32.vlgmr.msra.gmra.mxu0 %vm214_vm1, %v4348_v34  ;;  %3328 = vmatmul.msk.f32.vlgmr.msra.gmra.mxu1 %vm214_vm1, %v4348_v34 }
0x10b9   :  { %v1239_v38 = vpop.permute.xlu0 %1238 }
0x10ba   :  { %1241 = vst.msk [vmem:[#allocation5] sm:$0xff] %vm379_vm12, %v1239_v38 }
0x10c1   :  { %v4355_v32 = vld [vmem:[#allocation5] sm:$0xff] }
0x10c2   :  { %1314 = vrot.lane.b32.xlu0 %v4355_v32, %s3652_s3 }
0x10ff   :  { %v1288_v1 = vpop.f32.mrf.mxu1  ;;  %v1268_v15 = vpop.f32.mrf.mxu0 }
0x1100   :  { %v1292_v7 = vadd.f32 %v1288_v1, %v3999_v39  ;;  %v1291_v24 = vadd.f32 %v1268_v15, %v152_v23 }
0x1102   :  { %3489 = vtanh.f32 %v1292_v7  ;;  %v3330_v28 = vmul.f32 -1.442695, %v1292_v7  ;;  %v3329_v45 = vmul.f32 -1.442695, %v1291_v24 }
0x1103   :  { %3491 = vtanh.f32 %v1291_v24 }
0x1104   :  { %3493 = vpow2.f32 %v3330_v28 }
0x1105   :  { %3495 = vpow2.f32 %v3329_v45 }
0x1108   :  { %v3490_v41 = vpop.eup %3489 }
0x1109   :  { %1356 = vrot.lane.b32.xlu1 %v3490_v41, %s3652_s3  ;;  %v3492_v26 = vpop.eup %3491  ;;  %v155_v41 = vadd.f32 %v4266_v55, %v4011_v51 }
0x110a   :  { %v3494_v29 = vpop.eup %3493 }
0x110b   :  { %v1337_v30 = vadd.f32 1.0, %v3494_v29  ;;  %v3496_v39 = vpop.eup %3495 }
0x110c   :  { %v1296_v31 = vadd.f32 1.0, %v3496_v39 }
0x110d   :  { %3497 = vrcp.f32 %v1337_v30  ;;  %v1349_v46 = vand.u32 2147483648, %v1337_v30  ;;  %vm1343_vm5 = vweird.f32 %v1337_v30  ;;  %v1347_v6 = vand.u32 2147483647, %v1337_v30 }
0x110e   :  { %3499 = vrcp.f32 %v1296_v31  ;;  %v1308_v16 = vand.u32 2147483648, %v1296_v31  ;;  %vm1302_vm14 = vweird.f32 %v1296_v31  ;;  %v1306_v17 = vand.u32 2147483647, %v1296_v31 }
0x110f   :  { %v1350_v53 = vor.u32 1.1754944e-38, %v1349_v46  ;;  %vm1348_vm11 = vcmp.eq.f32.partialorder %v1347_v6, 8.507059e+37 }
0x1110   :  { %v1309_v9 = vor.u32 1.1754944e-38, %v1308_v16  ;;  %vm1307_vm2 = vcmp.eq.f32.partialorder %v1306_v17, 8.507059e+37 }
0x1111   :  { %1319 = vrot.lane.b32.xlu1 %v3492_v26, %s3652_s3 }
0x1113   :  { %v3498_v33 = vpop.eup %3497 }
0x1114   :  { %v1339_v54 = vmul.f32 %v3498_v33, %v1337_v30  ;;  %v3500_v21 = vpop.eup %3499  ;;  %vm1344_vm4 = vweird.f32 %v3498_v33 }
0x1115   :  { %v1298_v36 = vmul.f32 %v3500_v21, %v1296_v31  ;;  %vm1345_vm10 = vmor %vm1343_vm5, %vm1344_vm4  ;;  %vm1303_vm13 = vweird.f32 %v3500_v21 }
0x1116   :  { %v1340_v47 = vsub.f32 1.0, %v1339_v54  ;;  %vm1304_vm15 = vmor %vm1302_vm14, %vm1303_vm13 }
0x1117   :  { %v1299_v42 = vsub.f32 1.0, %v1298_v36 }
0x1118   :  { %v1341_v40 = vmul.f32 %v3498_v33, %v1340_v47 }
0x1119   :  { %v1300_v48 = vmul.f32 %v3500_v21, %v1299_v42 }
0x111a   :  { %v1342_v44 = vadd.f32 %v3498_v33, %v1341_v40 }
0x111b   :  { %v1301_v11 = vadd.f32 %v3500_v21, %v1300_v48 }
0x111c   :  { %v1346_v50 = vsel %vm1345_vm10, %v3498_v33, %v1342_v44 }
0x111d   :  { %v1351_v10 = vsel %vm1348_vm11, %v1350_v53, %v1346_v50  ;;  %v1305_v18 = vsel %vm1304_vm15, %v3500_v21, %v1301_v11 }
0x111e   :  { %v1310_v19 = vsel %vm1307_vm2, %v1309_v9, %v1305_v18  ;;  %v1354_v27 = vmul.f32 %v1351_v10, %v4355_v32 }
0x1134   :  { %v1315_v58 = vpop.permute.xlu0 %1314 }
0x1135   :  { %v1317_v59 = vmul.f32 %v1315_v58, %v1310_v19 }
0x117b   :  { %v1357_v8 = vpop.permute.xlu1 %1356 }
0x117c   :  { %v1359_v13 = vmul.f32 %v1357_v8, %v1351_v10 }
0x117e   :  { %1361 = vrot.lane.b32.xlu2 %v1359_v13, %s3652_s3 }
0x1183   :  { %v1320_v20 = vpop.permute.xlu1 %1319 }
0x1184   :  { %v1322_v52 = vmul.f32 %v1320_v20, %v1310_v19 }
0x1186   :  { %1324 = vrot.lane.b32.xlu1 %v1322_v52, %s3652_s3 }
0x11d8   :  { %v1362_v49 = vpop.permute.xlu2 %1361 }
0x11d9   :  { %v1364_v56 = vadd.f32 %v1362_v49, %v1354_v27 }
0x11db   :  { %3501 = vtanh.f32 %v1364_v56 }
0x11e1   :  { %v3502_v57 = vpop.eup %3501 }
0x11e2   :  { %1367 = vrot.lane.b32.xlu2 %v3502_v57, %s3652_s3 }
0x11ea   :  { %1389 = vrot.lane.b32.xlu2 %v4348_v34, %s3653_s30 }
0x11f2   :  { %1394 = vrot.lane.b32.xlu2 %v1364_v56, %s3653_s30 }
0x11f8   :  { %v1325_v60 = vpop.permute.xlu1 %1324 }
0x11f9   :  { %v1327_v61 = vadd.f32 %v1325_v60, %v1317_v59 }
0x11fb   :  { %3503 = vtanh.f32 %v1327_v61  ;;  %1381 = vrot.lane.b32.xlu2 %v1327_v61, %s3653_s30 }
0x1201   :  { %v3504_v62 = vpop.eup %3503 }
0x1202   :  { %1330 = vrot.lane.b32.xlu0 %v3504_v62, %s3652_s3 }
0x123c   :  { %v1368_v63 = vpop.permute.xlu2 %1367 }
0x123d   :  { %v1370_v0 = vmul.f32 %v1368_v63, %v1351_v10 }
0x123f   :  { %1386 = vrot.lane.b32.xlu1 %v1370_v0, %s3654_s2 }
0x1244   :  { %v1390_v25 = vpop.permute.xlu2 %1389 }
0x124c   :  { %v1395_v12 = vpop.permute.xlu2 %1394 }
0x1255   :  { %v1382_v43 = vpop.permute.xlu2 %1381 }
0x1256   :  { %v1384_v2 = vsel %vm1372_vm3, %v1382_v43, %v4355_v32 }
0x1257   :  { %1407 = vst.msk [vmem:[#allocation5] sm:$0xff] %vm91_vm0, %v1384_v2  ;;  %v1600_v2 = vld [vmem:[%s5326_s5 + $0x70] sm:$0xff] }
0x1258   :  { %1664 = vmatpush.msrb.mxu0 %v1600_v2 }
0x1274   :  { %v1331_v3 = vpop.permute.xlu0 %1330 }
0x1275   :  { %v1333_v35 = vmul.f32 %v1331_v3, %v1310_v19  ;;  %v1601_v3 = vld [vmem:[%s5326_s5 + $0x78] sm:$0xff] }
0x1276   :  { %1705 = vmatpush.msrb.mxu1 %v1601_v3 }
0x1277   :  { %1376 = vrot.lane.b32.xlu0 %v1333_v35, %s3654_s2  ;;  %v1598_v35 = vld [vmem:[%s5326_s5 + $0x60] sm:$0xff] }
0x1278   :  { %1665 = vmatpush.msrb.mxu0 %v1598_v35 }
0x127f   :  { %1397 = vrot.lane.b32.xlu0 %v4355_v32, %s3653_s30 }
0x12b1   :  { %v1387_v4 = vpop.permute.xlu1 %1386 }
0x12b2   :  { %v1392_v38 = vsel %vm1374_vm6, %v1387_v4, %v1390_v25  ;;  %v1599_v4 = vld [vmem:[%s5326_s5 + $0x68] sm:$0xff] }
0x12b3   :  { %1403 = vrot.lane.b32.xlu1 %v1392_v38, %s3652_s3  ;;  %v1596_v38 = vld [vmem:[%s5326_s5 + $0x50] sm:$0xff]  ;;  %1706 = vmatpush.msrb.mxu1 %v1599_v4 }
0x12b4   :  { %1666 = vmatpush.msrb.mxu0 %v1596_v38 }
0x12e9   :  { %v1377_v1 = vpop.permute.xlu0 %1376 }
0x12ea   :  { %v1379_v7 = vsel %vm1372_vm3, %v1377_v1, %v4348_v34  ;;  %v1597_v1 = vld [vmem:[%s5326_s5 + $0x58] sm:$0xff] }
0x12eb   :  { %1413 = vst.msk [vmem:[#allocation3 + $0x30] sm:$0xff] %vm91_vm0, %v1379_v7  ;;  %1707 = vmatpush.msrb.mxu1 %v1597_v1 }
0x12ec   :  { %1401 = vst.msk [vmem:[#allocation4] sm:$0xff] %vm91_vm0, %v1379_v7  ;;  %v1594_v7 = vld [vmem:[%s5326_s5 + $0x40] sm:$0xff] }
0x12ed   :  { %1667 = vmatpush.msrb.mxu0 %v1594_v7 }
0x12f1   :  { %v1398_v32 = vpop.permute.xlu0 %1397 }
0x12f2   :  { %v1400_v15 = vsel %vm1374_vm6, %v1395_v12, %v1398_v32  ;;  %v1595_v32 = vld [vmem:[%s5326_s5 + $0x48] sm:$0xff] }
0x12f3   :  { %1409 = vrot.lane.b32.xlu0 %v1400_v15, %s3652_s3  ;;  %1708 = vmatpush.msrb.mxu1 %v1595_v32  ;;  %v4463_v15 = vld [vmem:[%s5325_s1] sm:$0xff] }
0x12f4   :  { %vm1545_vm14 = vcmp.gt.f32.partialorder %v4463_v15, 0.5 }
0x1325   :  { %v1404_v23 = vpop.permute.xlu1 %1403 }
0x1326   :  { %1406 = vst.msk [vmem:[#allocation4] sm:$0xff] %vm379_vm12, %v1404_v23 }
0x1327   :  { %1414 = vst.msk [vmem:[#allocation3 + $0x8] sm:$0xff] %vm379_vm12, %v1404_v23 }
0x132d   :  { %v4406_v24 = vld [vmem:[#allocation4] sm:$0xff] }
0x132e   :  { %3331 = vmatmul.msk.f32.vlgmr.msrb.gmra.mxu2 %vm214_vm1, %v4406_v24  ;;  %3332 = vmatmul.msk.f32.vlgmr.msrb.gmra.mxu3 %vm214_vm1, %v4406_v24 }
0x1365   :  { %v1410_v34 = vpop.permute.xlu0 %1409 }
0x1366   :  { %1412 = vst.msk [vmem:[#allocation5] sm:$0xff] %vm379_vm12, %v1410_v34 }
0x136d   :  { %v4423_v56 = vld [vmem:[#allocation5] sm:$0xff] }
0x13b1   :  { %v1439_v26 = vpop.f32.mrf.mxu2  ;;  %v1459_v28 = vpop.f32.mrf.mxu3 }
0x13b2   :  { %v1462_v45 = vadd.f32 %v1439_v26, %v155_v41  ;;  %v1463_v29 = vadd.f32 %v1459_v28, %v3997_v37 }
0x13b4   :  { %3505 = vtanh.f32 %v1462_v45  ;;  %v3333_v31 = vmul.f32 -1.442695, %v1462_v45  ;;  %v3334_v51 = vmul.f32 -1.442695, %v1463_v29  ;;  %v1592_v45 = vld [vmem:[%s5326_s5 + $0x30] sm:$0xff] }
0x13b5   :  { %3507 = vtanh.f32 %v1463_v29  ;;  %v1593_v29 = vld [vmem:[%s5326_s5 + $0x38] sm:$0xff]  ;;  %1668 = vmatpush.msrb.mxu0 %v1592_v45 }
0x13b6   :  { %3509 = vpow2.f32 %v3333_v31  ;;  %1709 = vmatpush.msrb.mxu1 %v1593_v29  ;;  %v1588_v31 = vld [vmem:[%s5326_s5 + $0x10] sm:$0xff] }
0x13ba   :  { %v3506_v30 = vpop.eup %3505 }
0x13bb   :  { %v3508_v39 = vpop.eup %3507  ;;  %1490 = vrot.lane.b32.xlu2 %v3506_v30, %s3652_s3  ;;  %v1590_v30 = vld [vmem:[%s5326_s5 + $0x20] sm:$0xff] }
0x13bc   :  { %1527 = vrot.lane.b32.xlu1 %v3508_v39, %s3652_s3  ;;  %v3510_v33 = vpop.eup %3509  ;;  %v1591_v39 = vld [vmem:[%s5326_s5 + $0x28] sm:$0xff]  ;;  %1669 = vmatpush.msrb.mxu0 %v1590_v30 }
0x13bd   :  { %v1467_v54 = vadd.f32 1.0, %v3510_v33  ;;  %v1589_v33 = vld [vmem:[%s5326_s5 + $0x18] sm:$0xff]  ;;  %1710 = vmatpush.msrb.mxu1 %v1591_v39 }
0x13be   :  { %1670 = vmatpush.msrb.mxu0 %v1588_v31 }
0x13bf   :  { %3511 = vrcp.f32 %v1467_v54  ;;  %v1479_v44 = vand.u32 2147483648, %v1467_v54  ;;  %vm1473_vm8 = vweird.f32 %v1467_v54  ;;  %v1477_v46 = vand.u32 2147483647, %v1467_v54  ;;  %1711 = vmatpush.msrb.mxu1 %v1589_v33 }
0x13c0   :  { %3513 = vpow2.f32 %v3334_v51  ;;  %v4500_v51 = vld [vmem:[%s5327_s7 + $0x70] sm:$0xff] }
0x13c1   :  { %v1480_v48 = vor.u32 1.1754944e-38, %v1479_v44  ;;  %vm1478_vm4 = vcmp.eq.f32.partialorder %v1477_v46, 8.507059e+37  ;;  %1771 = vmatpush.msra.mxu2 %v4500_v51 }
0x13c5   :  { %v3512_v47 = vpop.eup %3511 }
0x13c6   :  { %v1469_v55 = vmul.f32 %v3512_v47, %v1467_v54  ;;  %v3514_v37 = vpop.eup %3513  ;;  %vm1474_vm7 = vweird.f32 %v3512_v47  ;;  %v1586_v54 = vld [vmem:[%s5326_s5] sm:$0xff] }
0x13c7   :  { %v1508_v40 = vadd.f32 1.0, %v3514_v37  ;;  %vm1475_vm9 = vmor %vm1473_vm8, %vm1474_vm7  ;;  %1671 = vmatpush.msrb.mxu0 %v1586_v54  ;;  %v4525_v37 = vld [vmem:[%s5327_s7 + $0x40] sm:$0xff] }
0x13c8   :  { %v1470_v21 = vsub.f32 1.0, %v1469_v55  ;;  %v4505_v55 = vld [vmem:[%s5327_s7 + $0x60] sm:$0xff] }
0x13c9   :  { %3515 = vrcp.f32 %v1508_v40  ;;  %v1520_v18 = vand.u32 2147483648, %v1508_v40  ;;  %vm1514_vm10 = vweird.f32 %v1508_v40  ;;  %v1518_v9 = vand.u32 2147483647, %v1508_v40  ;;  %2447 = vmatpush.msra.mxu0 %v4500_v51  ;;  %1772 = vmatpush.msra.mxu2 %v4505_v55 }
0x13ca   :  { %v1471_v36 = vmul.f32 %v3512_v47, %v1470_v21 }
0x13cb   :  { %v1521_v20 = vor.u32 1.1754944e-38, %v1520_v18  ;;  %vm1519_vm13 = vcmp.eq.f32.partialorder %v1518_v9, 8.507059e+37  ;;  %2448 = vmatpush.msra.mxu0 %v4505_v55  ;;  %v4589_v18 = vld [vmem:[%s5327_s7 + $0x58] sm:$0xff]  ;;  %v4597_v9 = vld [vmem:[%s5327_s7 + $0x48] sm:$0xff] }
0x13cc   :  { %v1472_v42 = vadd.f32 %v3512_v47, %v1471_v36  ;;  %v4518_v36 = vld [vmem:[%s5327_s7 + $0x50] sm:$0xff] }
0x13cd   :  { %1773 = vmatpush.msra.mxu2 %v4518_v36  ;;  %2449 = vmatpush.msra.mxu0 %v4518_v36 }
0x13ce   :  { %v1476_v6 = vsel %vm1475_vm9, %v3512_v47, %v1472_v42  ;;  %v1587_v47 = vld [vmem:[%s5326_s5 + $0x8] sm:$0xff]  ;;  %v4537_v42 = vld [vmem:[%s5327_s7 + $0x20] sm:$0xff] }
0x13cf   :  { %v4418_v50 = vsel %vm1478_vm4, %v1480_v48, %v1476_v6  ;;  %v3516_v10 = vpop.eup %3515  ;;  %1712 = vmatpush.msrb.mxu1 %v1587_v47  ;;  %1774 = vmatpush.msra.mxu2 %v4525_v37 }
0x13d0   :  { %v1510_v11 = vmul.f32 %v3516_v10, %v1508_v40  ;;  %vm1515_vm5 = vweird.f32 %v3516_v10  ;;  %v4531_v40 = vld [vmem:[%s5327_s7 + $0x30] sm:$0xff]  ;;  %2450 = vmatpush.msra.mxu0 %v4525_v37 }
0x13d1   :  { %vm1516_vm11 = vmor %vm1514_vm10, %vm1515_vm5  ;;  %1775 = vmatpush.msra.mxu2 %v4531_v40 }
0x13d2   :  { %v1511_v13 = vsub.f32 1.0, %v1510_v11  ;;  %2451 = vmatpush.msra.mxu0 %v4531_v40  ;;  %v4576_v11 = vld [vmem:[%s5327_s7 + $0x68] sm:$0xff] }
0x13d3   :  { %1776 = vmatpush.msra.mxu2 %v4537_v42 }
0x13d4   :  { %v1512_v16 = vmul.f32 %v3516_v10, %v1511_v13  ;;  %2452 = vmatpush.msra.mxu0 %v4537_v42 }
0x13d6   :  { %v1513_v17 = vadd.f32 %v3516_v10, %v1512_v16  ;;  %v1620_v16 = vld [vmem:[#allocation3 + $0x8] sm:$0xff] }
0x13d8   :  { %v1517_v19 = vsel %vm1516_vm11, %v3516_v10, %v1513_v17  ;;  %v4570_v10 = vld [vmem:[%s5327_s7 + $0x78] sm:$0xff] }
0x13d9   :  { %v1522_v27 = vsel %vm1519_vm13, %v1521_v20, %v1517_v19  ;;  %1791 = vmatpush.msra.mxu3 %v4570_v10  ;;  %2467 = vmatpush.msra.mxu1 %v4570_v10  ;;  %v4606_v19 = vld [vmem:[%s5327_s7 + $0x38] sm:$0xff]  ;;  %v4615_v20 = vld [vmem:[%s5327_s7 + $0x28] sm:$0xff] }
0x13da   :  { %v1525_v57 = vmul.f32 %v1522_v27, %v4423_v56 }
0x13db   :  { %1792 = vmatpush.msra.mxu3 %v4576_v11  ;;  %2468 = vmatpush.msra.mxu1 %v4576_v11 }
0x13dd   :  { %1793 = vmatpush.msra.mxu3 %v4589_v18  ;;  %2469 = vmatpush.msra.mxu1 %v4589_v18 }
0x13df   :  { %1794 = vmatpush.msra.mxu3 %v4597_v9  ;;  %2470 = vmatpush.msra.mxu1 %v4597_v9 }
0x13e1   :  { %1795 = vmatpush.msra.mxu3 %v4606_v19  ;;  %2471 = vmatpush.msra.mxu1 %v4606_v19 }
0x13e3   :  { %1796 = vmatpush.msra.mxu3 %v4615_v20  ;;  %2472 = vmatpush.msra.mxu1 %v4615_v20 }
0x1415   :  { %v1491_v53 = vpop.permute.xlu2 %1490 }
0x1416   :  { %v1493_v8 = vmul.f32 %v1491_v53, %v4418_v50  ;;  %v4555_v53 = vld [vmem:[%s5325_s1 + $0x38] sm:$0xff] }
0x1417   :  { %vm1543_vm15 = vcmp.gt.f32.partialorder %v4555_v53, 0.5 }
0x1418   :  { %1495 = vrot.lane.b32.xlu2 %v1493_v8, %s3652_s3  ;;  %v4560_v8 = vld [vmem:[%s5327_s7] sm:$0xff] }
0x142e   :  { %v1528_v52 = vpop.permute.xlu1 %1527 }
0x142f   :  { %v1530_v49 = vmul.f32 %v1528_v52, %v1522_v27  ;;  %v1621_v52 = vld [vmem:[#allocation3 + $0x10] sm:$0xff] }
0x1431   :  { %1532 = vrot.lane.b32.xlu1 %v1530_v49, %s3652_s3  ;;  %v4633_v49 = vld [vmem:[%s5327_s7 + $0x8] sm:$0xff] }
0x1439   :  { %1485 = vrot.lane.b32.xlu1 %v4423_v56, %s3652_s3 }
0x1441   :  { %1560 = vrot.lane.b32.xlu1 %v4406_v24, %s3653_s30 }
0x1472   :  { %v1496_v63 = vpop.permute.xlu2 %1495 }
0x14a3   :  { %v1533_v58 = vpop.permute.xlu1 %1532 }
0x14a4   :  { %v1535_v59 = vadd.f32 %v1533_v58, %v1525_v57 }
0x14a6   :  { %3517 = vtanh.f32 %v1535_v59 }
0x14ab   :  { %v1486_v61 = vpop.permute.xlu1 %1485 }
0x14ac   :  { %v3518_v60 = vpop.eup %3517  ;;  %v1488_v62 = vmul.f32 %v1486_v61, %v4418_v50  ;;  %v1625_v61 = vld [vmem:[#allocation3 + $0x30] sm:$0xff] }
0x14ad   :  { %1538 = vrot.lane.b32.xlu0 %v3518_v60, %s3652_s3  ;;  %v1624_v60 = vld [vmem:[#allocation3 + $0x28] sm:$0xff] }
0x14ae   :  { %v1498_v0 = vadd.f32 %v1496_v63, %v1488_v62 }
0x14b0   :  { %3519 = vtanh.f32 %v1498_v0 }
0x14b3   :  { %v1561_v23 = vpop.permute.xlu1 %1560 }
0x14b6   :  { %v3520_v43 = vpop.eup %3519 }
0x151f   :  { %v1539_v25 = vpop.permute.xlu0 %1538 }
0x1520   :  { %v1541_v12 = vmul.f32 %v1539_v25, %v1522_v27  ;;  %v4626_v27 = vld [vmem:[%s5327_s7 + $0x18] sm:$0xff] }
0x1521   :  { %1797 = vmatpush.msra.mxu3 %v4626_v27  ;;  %2473 = vmatpush.msra.mxu1 %v4626_v27 }
0x1522   :  { %1557 = vrot.lane.b32.xlu0 %v1541_v12, %s3654_s2 }
0x1523   :  { %1798 = vmatpush.msra.mxu3 %v4633_v49  ;;  %2474 = vmatpush.msra.mxu1 %v4633_v49 }
0x1525   :  { %1960 = vmatpush.msrb.mxu3 %v4570_v10 }
0x1527   :  { %1961 = vmatpush.msrb.mxu3 %v4576_v11 }
0x1529   :  { %1962 = vmatpush.msrb.mxu3 %v4589_v18 }
0x152a   :  { %1501 = vrot.lane.b32.xlu0 %v3520_v43, %s3652_s3 }
0x152b   :  { %1963 = vmatpush.msrb.mxu3 %v4597_v9 }
0x152d   :  { %1964 = vmatpush.msrb.mxu3 %v4606_v19 }
0x152f   :  { %1965 = vmatpush.msrb.mxu3 %v4615_v20 }
0x1531   :  { %1966 = vmatpush.msrb.mxu3 %v4626_v27 }
0x1532   :  { %1568 = vrot.lane.b32.xlu0 %v4423_v56, %s3653_s30 }
0x1533   :  { %1967 = vmatpush.msrb.mxu3 %v4633_v49 }
0x1594   :  { %v1558_v34 = vpop.permute.xlu0 %1557 }
0x1595   :  { %v1563_v41 = vsel %vm1545_vm14, %v1558_v34, %v1561_v23 }
0x1596   :  { %1574 = vrot.lane.b32.xlu2 %v1563_v41, %s3652_s3 }
0x159c   :  { %v1502_v26 = vpop.permute.xlu0 %1501 }
0x159d   :  { %v1504_v28 = vmul.f32 %v1502_v26, %v4418_v50  ;;  %v4548_v50 = vld [vmem:[%s5327_s7 + $0x10] sm:$0xff] }
0x159e   :  { %1565 = vrot.lane.b32.xlu2 %v1535_v59, %s3653_s30  ;;  %1777 = vmatpush.msra.mxu2 %v4548_v50 }
0x159f   :  { %1547 = vrot.lane.b32.xlu1 %v1504_v28, %s3654_s2  ;;  %2453 = vmatpush.msra.mxu0 %v4548_v50 }
0x15a0   :  { %1778 = vmatpush.msra.mxu2 %v4560_v8 }
0x15a1   :  { %2454 = vmatpush.msra.mxu0 %v4560_v8 }
0x15a2   :  { %1940 = vmatpush.msrb.mxu2 %v4500_v51 }
0x15a4   :  { %v1569_v44 = vpop.permute.xlu0 %1568  ;;  %1941 = vmatpush.msrb.mxu2 %v4505_v55 }
0x15a6   :  { %1552 = vrot.lane.b32.xlu2 %v1498_v0, %s3653_s30  ;;  %1942 = vmatpush.msrb.mxu2 %v4518_v36  ;;  %v1602_v0 = vld [vmem:[%s5328_s6] sm:$0x3] }
0x15a7   :  { %v1629_v25 = vperm.slane %v1602_v0, 1  ;;  %v4733_v45 = vperm.slane %v1602_v0, 0 }
0x15a8   :  { %1943 = vmatpush.msrb.mxu2 %v4525_v37 }
0x15aa   :  { %1944 = vmatpush.msrb.mxu2 %v4531_v40 }
0x15ac   :  { %1945 = vmatpush.msrb.mxu2 %v4537_v42 }
0x15ae   :  { %1946 = vmatpush.msrb.mxu2 %v4548_v50 }
0x15b0   :  { %1947 = vmatpush.msrb.mxu2 %v4560_v8 }
0x15f0   :  { %v4511_v21 = vpop.permute.xlu2 %1574 }
0x15f1   :  { %1585 = vst.msk [vmem:[#allocation3] sm:$0xff] %vm379_vm12, %v4511_v21 }
0x15f8   :  { %v1566_v46 = vpop.permute.xlu2 %1565  ;;  %v1619_v6 = vld [vmem:[#allocation3] sm:$0xff] }
0x15f9   :  { %3335 = vmatmul.msk.f32.vlgmr.msrb.gmra.mxu0 %vm214_vm1, %v1619_v6  ;;  %3343 = vmatmul.msk.f32.vlgmr.msrb.gmra.mxu1 %vm214_vm1, %v1619_v6  ;;  %v1571_v48 = vsel %vm1545_vm14, %v1566_v46, %v1569_v44 }
0x15fa   :  { %1580 = vrot.lane.b32.xlu0 %v1571_v48, %s3652_s3  ;;  %2785 = vmatpush.msrb.mxu0 %v4500_v51 }
0x15fb   :  { %2805 = vmatpush.msrb.mxu1 %v4570_v10 }
0x15fc   :  { %2786 = vmatpush.msrb.mxu0 %v4505_v55 }
0x15fd   :  { %2806 = vmatpush.msrb.mxu1 %v4576_v11 }
0x15fe   :  { %2787 = vmatpush.msrb.mxu0 %v4518_v36 }
0x15ff   :  { %2807 = vmatpush.msrb.mxu1 %v4589_v18 }
0x1600   :  { %v1553_v13 = vpop.permute.xlu2 %1552  ;;  %2788 = vmatpush.msrb.mxu0 %v4525_v37 }
0x1601   :  { %v1555_v17 = vsel %vm1543_vm15, %v1553_v13, %v4423_v56  ;;  %3336 = vmatmul.msk.f32.gmra.mxu0 %vm214_vm1, %v1620_v16  ;;  %3344 = vmatmul.msk.f32.gmra.mxu1 %vm214_vm1, %v1620_v16  ;;  %v1622_v56 = vld [vmem:[#allocation3 + $0x18] sm:$0xff] }
0x1602   :  { %1578 = vst.msk [vmem:[#allocation5] sm:$0xff] %vm91_vm0, %v1555_v17  ;;  %2789 = vmatpush.msrb.mxu0 %v4531_v40  ;;  %2808 = vmatpush.msrb.mxu1 %v4597_v9 }
0x1604   :  { %2790 = vmatpush.msrb.mxu0 %v4537_v42  ;;  %2809 = vmatpush.msrb.mxu1 %v4606_v19 }
0x1606   :  { %2791 = vmatpush.msrb.mxu0 %v4548_v50  ;;  %2810 = vmatpush.msrb.mxu1 %v4615_v20 }
0x1608   :  { %2792 = vmatpush.msrb.mxu0 %v4560_v8  ;;  %2811 = vmatpush.msrb.mxu1 %v4626_v27 }
0x1609   :  { %3337 = vmatmul.msk.f32.gmra.mxu0 %vm214_vm1, %v1621_v52  ;;  %3345 = vmatmul.msk.f32.gmra.mxu1 %vm214_vm1, %v1621_v52 }
0x160a   :  { %2812 = vmatpush.msrb.mxu1 %v4633_v49 }
0x1611   :  { %v1548_v57 = vpop.permute.xlu1 %1547  ;;  %3338 = vmatmul.msk.f32.gmra.mxu0 %vm214_vm1, %v1622_v56  ;;  %3346 = vmatmul.msk.f32.gmra.mxu1 %vm214_vm1, %v1622_v56 }
0x1612   :  { %v1550_v58 = vsel %vm1543_vm15, %v1548_v57, %v4406_v24  ;;  %v1623_v24 = vld [vmem:[#allocation3 + $0x20] sm:$0xff] }
0x1613   :  { %1572 = vst.msk [vmem:[#allocation4] sm:$0xff] %vm91_vm0, %v1550_v58 }
0x1614   :  { %1577 = vst.msk [vmem:[#allocation4] sm:$0xff] %vm379_vm12, %v4511_v21 }
0x1615   :  { %1584 = vst.msk [vmem:[#allocation3 + $0x38] sm:$0xff] %vm91_vm0, %v1550_v58 }
0x1616   :  { %1754 = vst.msk [vmem:[#allocation4] sm:$0xff] %vm214_vm1, %v3651_v14 }
0x1619   :  { %3339 = vmatmul.msk.f32.gmra.mxu0 %vm214_vm1, %v1623_v24  ;;  %3347 = vmatmul.msk.f32.gmra.mxu1 %vm214_vm1, %v1623_v24 }
0x161c   :  { %v1626_v62 = vld [vmem:[#allocation3 + $0x38] sm:$0xff] }
0x161d   :  { %v4673_v59 = vld [vmem:[#allocation4] sm:$0xff] }
0x161e   :  { %3351 = vmatmul.msk.f32.vlgmr.msra.gmra.mxu2 %vm214_vm1, %v4673_v59  ;;  %3352 = vmatmul.msk.f32.vlgmr.msra.gmra.mxu3 %vm214_vm1, %v4673_v59 }
0x161f   :  { %2109 = vmatpush.msra.mxu2 %v4500_v51  ;;  %2129 = vmatpush.msra.mxu3 %v4570_v10 }
0x1621   :  { %3340 = vmatmul.msk.f32.gmra.mxu0 %vm214_vm1, %v1624_v60  ;;  %3348 = vmatmul.msk.f32.gmra.mxu1 %vm214_vm1, %v1624_v60 }
0x1622   :  { %2110 = vmatpush.msra.mxu2 %v4505_v55  ;;  %2130 = vmatpush.msra.mxu3 %v4576_v11 }
0x1624   :  { %2111 = vmatpush.msra.mxu2 %v4518_v36  ;;  %2131 = vmatpush.msra.mxu3 %v4589_v18 }
0x1626   :  { %2112 = vmatpush.msra.mxu2 %v4525_v37  ;;  %2132 = vmatpush.msra.mxu3 %v4597_v9 }
0x1628   :  { %2113 = vmatpush.msra.mxu2 %v4531_v40  ;;  %2133 = vmatpush.msra.mxu3 %v4606_v19 }
0x1629   :  { %3341 = vmatmul.msk.f32.gmra.mxu0 %vm214_vm1, %v1625_v61  ;;  %3349 = vmatmul.msk.f32.gmra.mxu1 %vm214_vm1, %v1625_v61 }
0x162a   :  { %2114 = vmatpush.msra.mxu2 %v4537_v42  ;;  %2134 = vmatpush.msra.mxu3 %v4615_v20 }
0x162c   :  { %2115 = vmatpush.msra.mxu2 %v4548_v50  ;;  %2135 = vmatpush.msra.mxu3 %v4626_v27 }
0x162e   :  { %2116 = vmatpush.msra.mxu2 %v4560_v8  ;;  %2136 = vmatpush.msra.mxu3 %v4633_v49 }
0x1631   :  { %3342 = vmatmul.msk.f32.gmra.mxu0 %vm214_vm1, %v1626_v62  ;;  %3350 = vmatmul.msk.f32.gmra.mxu1 %vm214_vm1, %v1626_v62 }
0x166c   :  { %v1581_v63 = vpop.permute.xlu0 %1580 }
0x166d   :  { %1583 = vst.msk [vmem:[#allocation5] sm:$0xff] %vm379_vm12, %v1581_v63 }
0x166e   :  { %1755 = vst.msk [vmem:[#allocation5] sm:$0xff] %vm214_vm1, %v3651_v14 }
0x1675   :  { %v4711_v12 = vld [vmem:[#allocation5] sm:$0xff] }
0x1676   :  { %v1673_v43 = vpop.f32.mrf.mxu0  ;;  %v1714_v2 = vpop.f32.mrf.mxu1  ;;  %1826 = vrot.lane.b32.xlu0 %v4711_v12, %s3652_s3 }
0x1677   :  { %v4715_v3 = vadd.f32 %v1714_v2, %v1629_v25  ;;  %v1674_v16 = vadd.f32 %v1673_v43, %v4733_v45 }
0x167e   :  { %v4717_v35 = vpop.f32.mrf.mxu0  ;;  %v1717_v4 = vpop.f32.mrf.mxu1 }
0x167f   :  { %v4719_v38 = vadd.f32 %v1717_v4, %v1629_v25 }
0x1686   :  { %v4721_v14 = vpop.f32.mrf.mxu0  ;;  %v1720_v1 = vpop.f32.mrf.mxu1 }
0x1687   :  { %v4723_v7 = vadd.f32 %v1720_v1, %v1629_v25 }
0x168e   :  { %v4725_v32 = vpop.f32.mrf.mxu0  ;;  %v1723_v23 = vpop.f32.mrf.mxu1 }
0x168f   :  { %v4727_v34 = vadd.f32 %v1723_v23, %v1629_v25 }
0x1696   :  { %v4729_v41 = vpop.f32.mrf.mxu0  ;;  %v1726_v26 = vpop.f32.mrf.mxu1 }
0x1697   :  { %v4731_v28 = vadd.f32 %v1726_v26, %v1629_v25 }
0x169e   :  { %v1688_v29 = vpop.f32.mrf.mxu0  ;;  %v1729_v30 = vpop.f32.mrf.mxu1 }
0x169f   :  { %v4736_v39 = vadd.f32 %v1688_v29, %v4733_v45  ;;  %v4738_v31 = vadd.f32 %v1729_v30, %v1629_v25 }
0x16a1   :  { %v1800_v46 = vpop.f32.mrf.mxu3  ;;  %v1780_v13 = vpop.f32.mrf.mxu2 }
0x16a2   :  { %v1803_v17 = vadd.f32 %v1780_v13, %v1674_v16 }
0x16a4   :  { %v3353_v58 = vmul.f32 -1.442695, %v1803_v17 }
0x16a6   :  { %v1691_v33 = vpop.f32.mrf.mxu0  ;;  %v1732_v54 = vpop.f32.mrf.mxu1 }
0x16a7   :  { %v4741_v47 = vadd.f32 %v1691_v33, %v4733_v45  ;;  %v4743_v21 = vadd.f32 %v1732_v54, %v1629_v25 }
0x16ae   :  { %v1735_v44 = vpop.f32.mrf.mxu1 }
0x16af   :  { %v1736_v6 = vadd.f32 %v1735_v44, %v1629_v25 }
0x16b1   :  { %v1804_v48 = vadd.f32 %v1800_v46, %v1736_v6 }
0x16b3   :  { %3521 = vtanh.f32 %v1804_v48  ;;  %v3354_v57 = vmul.f32 -1.442695, %v1804_v48 }
0x16b4   :  { %3523 = vtanh.f32 %v1803_v17 }
0x16b5   :  { %3525 = vpow2.f32 %v3354_v57 }
0x16b6   :  { %3527 = vpow2.f32 %v3353_v58 }
0x16b9   :  { %v3522_v52 = vpop.eup %3521 }
0x16ba   :  { %1868 = vrot.lane.b32.xlu1 %v3522_v52, %s3652_s3  ;;  %v3524_v56 = vpop.eup %3523 }
0x16bb   :  { %v3526_v24 = vpop.eup %3525 }
0x16bc   :  { %v1849_v60 = vadd.f32 1.0, %v3526_v24  ;;  %v3528_v61 = vpop.eup %3527 }
0x16bd   :  { %v1808_v62 = vadd.f32 1.0, %v3528_v61 }
0x16be   :  { %3529 = vrcp.f32 %v1849_v60  ;;  %v1861_v26 = vand.u32 2147483648, %v1849_v60  ;;  %vm1855_vm7 = vweird.f32 %v1849_v60  ;;  %v1859_v29 = vand.u32 2147483647, %v1849_v60 }
0x16bf   :  { %3531 = vrcp.f32 %v1808_v62  ;;  %v1820_v13 = vand.u32 2147483648, %v1808_v62  ;;  %vm1814_vm5 = vweird.f32 %v1808_v62  ;;  %v1818_v16 = vand.u32 2147483647, %v1808_v62 }
0x16c0   :  { %v1862_v54 = vor.u32 1.1754944e-38, %v1861_v26  ;;  %vm1860_vm9 = vcmp.eq.f32.partialorder %v1859_v29, 8.507059e+37 }
0x16c1   :  { %v1821_v52 = vor.u32 1.1754944e-38, %v1820_v13  ;;  %vm1819_vm11 = vcmp.eq.f32.partialorder %v1818_v16, 8.507059e+37 }
0x16c2   :  { %1831 = vrot.lane.b32.xlu1 %v3524_v56, %s3652_s3 }
0x16c4   :  { %v3530_v63 = vpop.eup %3529 }
0x16c5   :  { %v1851_v0 = vmul.f32 %v3530_v63, %v1849_v60  ;;  %v3532_v43 = vpop.eup %3531  ;;  %vm1856_vm2 = vweird.f32 %v3530_v63 }
0x16c6   :  { %v1810_v2 = vmul.f32 %v3532_v43, %v1808_v62  ;;  %vm1857_vm8 = vmor %vm1855_vm7, %vm1856_vm2  ;;  %vm1815_vm4 = vweird.f32 %v3532_v43 }
0x16c7   :  { %v1852_v25 = vsub.f32 1.0, %v1851_v0  ;;  %vm1816_vm10 = vmor %vm1814_vm5, %vm1815_vm4 }
0x16c8   :  { %v1811_v1 = vsub.f32 1.0, %v1810_v2 }
0x16c9   :  { %v1853_v4 = vmul.f32 %v3530_v63, %v1852_v25 }
0x16ca   :  { %v1812_v30 = vmul.f32 %v3532_v43, %v1811_v1 }
0x16cb   :  { %v1854_v23 = vadd.f32 %v3530_v63, %v1853_v4 }
0x16cc   :  { %v1813_v6 = vadd.f32 %v3532_v43, %v1812_v30 }
0x16cd   :  { %v1858_v33 = vsel %vm1857_vm8, %v3530_v63, %v1854_v23 }
0x16ce   :  { %v1863_v46 = vsel %vm1860_vm9, %v1862_v54, %v1858_v33  ;;  %v1817_v17 = vsel %vm1816_vm10, %v3532_v43, %v1813_v6 }
0x16cf   :  { %v1822_v56 = vsel %vm1819_vm11, %v1821_v52, %v1817_v17  ;;  %v1866_v24 = vmul.f32 %v1863_v46, %v4711_v12 }
0x16e8   :  { %v1827_v62 = vpop.permute.xlu0 %1826 }
0x16e9   :  { %v1829_v0 = vmul.f32 %v1827_v62, %v1822_v56 }
0x172c   :  { %v1869_v44 = vpop.permute.xlu1 %1868 }
0x172d   :  { %v1871_v48 = vmul.f32 %v1869_v44, %v1863_v46 }
0x172f   :  { %1873 = vrot.lane.b32.xlu2 %v1871_v48, %s3652_s3 }
0x1734   :  { %v1832_v57 = vpop.permute.xlu1 %1831 }
0x1735   :  { %v1834_v58 = vmul.f32 %v1832_v57, %v1822_v56  ;;  %v1677_v57 = vadd.f32 %v4717_v35, %v4733_v45 }
0x1737   :  { %1836 = vrot.lane.b32.xlu1 %v1834_v58, %s3652_s3 }
0x1789   :  { %v1874_v60 = vpop.permute.xlu2 %1873 }
0x178a   :  { %v1876_v61 = vadd.f32 %v1874_v60, %v1866_v24 }
0x178c   :  { %3533 = vtanh.f32 %v1876_v61 }
0x1792   :  { %v3534_v63 = vpop.eup %3533 }
0x1793   :  { %1879 = vrot.lane.b32.xlu2 %v3534_v63, %s3652_s3 }
0x179b   :  { %1901 = vrot.lane.b32.xlu2 %v4673_v59, %s3653_s30 }
0x17a3   :  { %1906 = vrot.lane.b32.xlu2 %v1876_v61, %s3653_s30 }
0x17a9   :  { %v1837_v25 = vpop.permute.xlu1 %1836 }
0x17aa   :  { %v1839_v43 = vadd.f32 %v1837_v25, %v1829_v0 }
0x17ac   :  { %3535 = vtanh.f32 %v1839_v43  ;;  %1893 = vrot.lane.b32.xlu2 %v1839_v43, %s3653_s30 }
0x17b2   :  { %v3536_v2 = vpop.eup %3535 }
0x17b3   :  { %1842 = vrot.lane.b32.xlu0 %v3536_v2, %s3652_s3 }
0x17ed   :  { %v1880_v4 = vpop.permute.xlu2 %1879 }
0x17ee   :  { %v1882_v1 = vmul.f32 %v1880_v4, %v1863_v46 }
0x17f0   :  { %1898 = vrot.lane.b32.xlu1 %v1882_v1, %s3654_s2 }
0x17f5   :  { %v1902_v23 = vpop.permute.xlu2 %1901 }
0x17fd   :  { %v1907_v26 = vpop.permute.xlu2 %1906 }
0x1806   :  { %v1894_v29 = vpop.permute.xlu2 %1893 }
0x1807   :  { %v1896_v30 = vsel %vm1545_vm14, %v1894_v29, %v4711_v12 }
0x1808   :  { %1919 = vst.msk [vmem:[#allocation5] sm:$0xff] %vm91_vm0, %v1896_v30 }
0x1825   :  { %v1843_v33 = vpop.permute.xlu0 %1842 }
0x1826   :  { %v1845_v54 = vmul.f32 %v1843_v33, %v1822_v56 }
0x1828   :  { %1888 = vrot.lane.b32.xlu0 %v1845_v54, %s3654_s2 }
0x1830   :  { %1909 = vrot.lane.b32.xlu0 %v4711_v12, %s3653_s30 }
0x1862   :  { %v1899_v44 = vpop.permute.xlu1 %1898 }
0x1863   :  { %v1904_v46 = vsel %vm1543_vm15, %v1899_v44, %v1902_v23 }
0x1864   :  { %1915 = vrot.lane.b32.xlu1 %v1904_v46, %s3652_s3 }
0x189a   :  { %v1889_v6 = vpop.permute.xlu0 %1888 }
0x189b   :  { %v1891_v48 = vsel %vm1545_vm14, %v1889_v6, %v4673_v59 }
0x189c   :  { %1913 = vst.msk [vmem:[#allocation4] sm:$0xff] %vm91_vm0, %v1891_v48 }
0x18a2   :  { %v1910_v13 = vpop.permute.xlu0 %1909 }
0x18a3   :  { %v1912_v16 = vsel %vm1543_vm15, %v1907_v26, %v1910_v13 }
0x18a4   :  { %1921 = vrot.lane.b32.xlu0 %v1912_v16, %s3652_s3 }
0x18d6   :  { %v1916_v12 = vpop.permute.xlu1 %1915 }
0x18d7   :  { %1918 = vst.msk [vmem:[#allocation4] sm:$0xff] %vm379_vm12, %v1916_v12 }
0x18de   :  { %v4776_v17 = vld [vmem:[#allocation4] sm:$0xff] }
0x18df   :  { %3355 = vmatmul.msk.f32.vlgmr.msrb.gmra.mxu2 %vm214_vm1, %v4776_v17  ;;  %3356 = vmatmul.msk.f32.vlgmr.msrb.gmra.mxu3 %vm214_vm1, %v4776_v17 }
0x18e0   :  { %2278 = vmatpush.msrb.mxu2 %v4500_v51  ;;  %2298 = vmatpush.msrb.mxu3 %v4570_v10 }
0x18e2   :  { %2279 = vmatpush.msrb.mxu2 %v4505_v55  ;;  %2299 = vmatpush.msrb.mxu3 %v4576_v11 }
0x18e4   :  { %2280 = vmatpush.msrb.mxu2 %v4518_v36  ;;  %2300 = vmatpush.msrb.mxu3 %v4589_v18 }
0x18e6   :  { %2281 = vmatpush.msrb.mxu2 %v4525_v37  ;;  %2301 = vmatpush.msrb.mxu3 %v4597_v9 }
0x18e8   :  { %2282 = vmatpush.msrb.mxu2 %v4531_v40  ;;  %2302 = vmatpush.msrb.mxu3 %v4606_v19 }
0x18ea   :  { %2283 = vmatpush.msrb.mxu2 %v4537_v42  ;;  %2303 = vmatpush.msrb.mxu3 %v4615_v20 }
0x18ec   :  { %2284 = vmatpush.msrb.mxu2 %v4548_v50  ;;  %2304 = vmatpush.msrb.mxu3 %v4626_v27 }
0x18ee   :  { %2285 = vmatpush.msrb.mxu2 %v4560_v8  ;;  %2305 = vmatpush.msrb.mxu3 %v4633_v49 }
0x1916   :  { %v1922_v15 = vpop.permute.xlu0 %1921 }
0x1917   :  { %1924 = vst.msk [vmem:[#allocation5] sm:$0xff] %vm379_vm12, %v1922_v15 }
0x191e   :  { %v4799_v53 = vld [vmem:[#allocation5] sm:$0xff] }
0x191f   :  { %1995 = vrot.lane.b32.xlu0 %v4799_v53, %s3652_s3 }
0x1962   :  { %v1969_v59 = vpop.f32.mrf.mxu3  ;;  %v1949_v56 = vpop.f32.mrf.mxu2 }
0x1963   :  { %v1973_v52 = vadd.f32 %v1969_v59, %v4743_v21  ;;  %v1972_v58 = vadd.f32 %v1949_v56, %v1677_v57 }
0x1965   :  { %3537 = vtanh.f32 %v1973_v52  ;;  %v3358_v61 = vmul.f32 -1.442695, %v1973_v52  ;;  %v3357_v63 = vmul.f32 -1.442695, %v1972_v58 }
0x1966   :  { %3539 = vtanh.f32 %v1972_v58 }
0x1967   :  { %3541 = vpow2.f32 %v3358_v61 }
0x1968   :  { %3543 = vpow2.f32 %v3357_v63 }
0x196b   :  { %v3538_v24 = vpop.eup %3537 }
0x196c   :  { %2037 = vrot.lane.b32.xlu1 %v3538_v24, %s3652_s3  ;;  %v3540_v60 = vpop.eup %3539 }
0x196d   :  { %v3542_v62 = vpop.eup %3541 }
0x196e   :  { %v2018_v0 = vadd.f32 1.0, %v3542_v62  ;;  %v3544_v21 = vpop.eup %3543 }
0x196f   :  { %v1977_v25 = vadd.f32 1.0, %v3544_v21 }
0x1970   :  { %3545 = vrcp.f32 %v2018_v0  ;;  %v2030_v30 = vand.u32 2147483648, %v2018_v0  ;;  %vm2024_vm14 = vweird.f32 %v2018_v0  ;;  %v2028_v33 = vand.u32 2147483647, %v2018_v0 }
0x1971   :  { %3547 = vrcp.f32 %v1977_v25  ;;  %v1989_v12 = vand.u32 2147483648, %v1977_v25  ;;  %vm1983_vm8 = vweird.f32 %v1977_v25  ;;  %v1987_v15 = vand.u32 2147483647, %v1977_v25 }
0x1972   :  { %v2031_v46 = vor.u32 1.1754944e-38, %v2030_v30  ;;  %vm2029_vm2 = vcmp.eq.f32.partialorder %v2028_v33, 8.507059e+37 }
0x1973   :  { %v1990_v52 = vor.u32 1.1754944e-38, %v1989_v12  ;;  %vm1988_vm4 = vcmp.eq.f32.partialorder %v1987_v15, 8.507059e+37  ;;  %v1680_v15 = vadd.f32 %v4721_v14, %v4733_v45 }
0x1974   :  { %2000 = vrot.lane.b32.xlu1 %v3540_v60, %s3652_s3 }
0x1976   :  { %v3546_v43 = vpop.eup %3545 }
0x1977   :  { %v2020_v35 = vmul.f32 %v3546_v43, %v2018_v0  ;;  %v3548_v4 = vpop.eup %3547  ;;  %vm2025_vm13 = vweird.f32 %v3546_v43 }
0x1978   :  { %v1979_v1 = vmul.f32 %v3548_v4, %v1977_v25  ;;  %vm2026_vm15 = vmor %vm2024_vm14, %vm2025_vm13  ;;  %vm1984_vm7 = vweird.f32 %v3548_v4 }
0x1979   :  { %v2021_v2 = vsub.f32 1.0, %v2020_v35  ;;  %vm1985_vm9 = vmor %vm1983_vm8, %vm1984_vm7 }
0x197a   :  { %v1980_v26 = vsub.f32 1.0, %v1979_v1 }
0x197b   :  { %v2022_v23 = vmul.f32 %v3546_v43, %v2021_v2 }
0x197c   :  { %v1981_v54 = vmul.f32 %v3548_v4, %v1980_v26 }
0x197d   :  { %v2023_v29 = vadd.f32 %v3546_v43, %v2022_v23 }
0x197e   :  { %v1982_v13 = vadd.f32 %v3548_v4, %v1981_v54 }
0x197f   :  { %v2027_v44 = vsel %vm2026_vm15, %v3546_v43, %v2023_v29 }
0x1980   :  { %v2032_v48 = vsel %vm2029_vm2, %v2031_v46, %v2027_v44  ;;  %v1986_v59 = vsel %vm1985_vm9, %v3548_v4, %v1982_v13 }
0x1981   :  { %v1991_v56 = vsel %vm1988_vm4, %v1990_v52, %v1986_v59  ;;  %v2035_v24 = vmul.f32 %v2032_v48, %v4799_v53 }
0x1991   :  { %v1996_v62 = vpop.permute.xlu0 %1995 }
0x1992   :  { %v1998_v0 = vmul.f32 %v1996_v62, %v1991_v56 }
0x19de   :  { %v2038_v6 = vpop.permute.xlu1 %2037 }
0x19df   :  { %v2040_v16 = vmul.f32 %v2038_v6, %v2032_v48 }
0x19e1   :  { %2042 = vrot.lane.b32.xlu2 %v2040_v16, %s3652_s3 }
0x19e6   :  { %v2001_v57 = vpop.permute.xlu1 %2000 }
0x19e7   :  { %v2003_v58 = vmul.f32 %v2001_v57, %v1991_v56 }
0x19e9   :  { %2005 = vrot.lane.b32.xlu1 %v2003_v58, %s3652_s3 }
0x1a3b   :  { %v2043_v60 = vpop.permute.xlu2 %2042 }
0x1a3c   :  { %v2045_v61 = vadd.f32 %v2043_v60, %v2035_v24 }
0x1a3e   :  { %3549 = vtanh.f32 %v2045_v61 }
0x1a44   :  { %v3550_v63 = vpop.eup %3549 }
0x1a45   :  { %2048 = vrot.lane.b32.xlu2 %v3550_v63, %s3652_s3 }
0x1a4d   :  { %2070 = vrot.lane.b32.xlu2 %v4776_v17, %s3653_s30 }
0x1a55   :  { %2075 = vrot.lane.b32.xlu2 %v2045_v61, %s3653_s30 }
0x1a5b   :  { %v2006_v21 = vpop.permute.xlu1 %2005 }
0x1a5c   :  { %v2008_v25 = vadd.f32 %v2006_v21, %v1998_v0 }
0x1a5e   :  { %3551 = vtanh.f32 %v2008_v25  ;;  %2062 = vrot.lane.b32.xlu2 %v2008_v25, %s3653_s30 }
0x1a64   :  { %v3552_v43 = vpop.eup %3551 }
0x1a65   :  { %2011 = vrot.lane.b32.xlu0 %v3552_v43, %s3652_s3 }
0x1a9f   :  { %v2049_v35 = vpop.permute.xlu2 %2048 }
0x1aa0   :  { %v2051_v2 = vmul.f32 %v2049_v35, %v2032_v48 }
0x1aa2   :  { %2067 = vrot.lane.b32.xlu1 %v2051_v2, %s3654_s2 }
0x1aa7   :  { %v2071_v4 = vpop.permute.xlu2 %2070 }
0x1aaf   :  { %v2076_v1 = vpop.permute.xlu2 %2075 }
0x1ab8   :  { %v2063_v23 = vpop.permute.xlu2 %2062 }
0x1ab9   :  { %v2065_v26 = vsel %vm1374_vm6, %v2063_v23, %v4799_v53 }
0x1aba   :  { %2088 = vst.msk [vmem:[#allocation5] sm:$0xff] %vm91_vm0, %v2065_v26 }
0x1ad7   :  { %v2012_v29 = vpop.permute.xlu0 %2011 }
0x1ad8   :  { %v2014_v30 = vmul.f32 %v2012_v29, %v1991_v56 }
0x1ada   :  { %2057 = vrot.lane.b32.xlu0 %v2014_v30, %s3654_s2 }
0x1ae2   :  { %2078 = vrot.lane.b32.xlu0 %v4799_v53, %s3653_s30 }
0x1b14   :  { %v2068_v33 = vpop.permute.xlu1 %2067 }
0x1b15   :  { %v2073_v54 = vsel %vm1372_vm3, %v2068_v33, %v2071_v4 }
0x1b16   :  { %2084 = vrot.lane.b32.xlu1 %v2073_v54, %s3652_s3 }
0x1b4c   :  { %v2058_v44 = vpop.permute.xlu0 %2057 }
0x1b4d   :  { %v2060_v46 = vsel %vm1374_vm6, %v2058_v44, %v4776_v17 }
0x1b4e   :  { %2082 = vst.msk [vmem:[#allocation4] sm:$0xff] %vm91_vm0, %v2060_v46 }
0x1b54   :  { %v2079_v6 = vpop.permute.xlu0 %2078 }
0x1b55   :  { %v2081_v48 = vsel %vm1372_vm3, %v2076_v1, %v2079_v6 }
0x1b56   :  { %2090 = vrot.lane.b32.xlu0 %v2081_v48, %s3652_s3 }
0x1b88   :  { %v2085_v53 = vpop.permute.xlu1 %2084 }
0x1b89   :  { %2087 = vst.msk [vmem:[#allocation4] sm:$0xff] %vm379_vm12, %v2085_v53 }
0x1b90   :  { %v4836_v13 = vld [vmem:[#allocation4] sm:$0xff] }
0x1b91   :  { %3359 = vmatmul.msk.f32.vlgmr.msra.gmra.mxu2 %vm214_vm1, %v4836_v13  ;;  %3360 = vmatmul.msk.f32.vlgmr.msra.gmra.mxu3 %vm214_vm1, %v4836_v13 }
0x1b92   :  { %2616 = vmatpush.msra.mxu2 %v4500_v51  ;;  %2636 = vmatpush.msra.mxu3 %v4570_v10 }
0x1b94   :  { %2617 = vmatpush.msra.mxu2 %v4505_v55  ;;  %2637 = vmatpush.msra.mxu3 %v4576_v11 }
0x1b96   :  { %2618 = vmatpush.msra.mxu2 %v4518_v36  ;;  %2638 = vmatpush.msra.mxu3 %v4589_v18 }
0x1b98   :  { %2619 = vmatpush.msra.mxu2 %v4525_v37  ;;  %2639 = vmatpush.msra.mxu3 %v4597_v9 }
0x1b9a   :  { %2620 = vmatpush.msra.mxu2 %v4531_v40  ;;  %2640 = vmatpush.msra.mxu3 %v4606_v19 }
0x1b9c   :  { %2621 = vmatpush.msra.mxu2 %v4537_v42  ;;  %2641 = vmatpush.msra.mxu3 %v4615_v20 }
0x1b9e   :  { %2622 = vmatpush.msra.mxu2 %v4548_v50  ;;  %2642 = vmatpush.msra.mxu3 %v4626_v27 }
0x1ba0   :  { %2623 = vmatpush.msra.mxu2 %v4560_v8  ;;  %2643 = vmatpush.msra.mxu3 %v4633_v49 }
0x1bc8   :  { %v2091_v22 = vpop.permute.xlu0 %2090 }
0x1bc9   :  { %2093 = vst.msk [vmem:[#allocation5] sm:$0xff] %vm379_vm12, %v2091_v22 }
0x1bd0   :  { %v4859_v5 = vld [vmem:[#allocation5] sm:$0xff] }
0x1bd1   :  { %2164 = vrot.lane.b32.xlu0 %v4859_v5, %s3652_s3 }
0x1c14   :  { %v2138_v17 = vpop.f32.mrf.mxu3  ;;  %v2118_v12 = vpop.f32.mrf.mxu2 }
0x1c15   :  { %v2142_v16 = vadd.f32 %v2138_v17, %v4738_v31  ;;  %v2141_v59 = vadd.f32 %v2118_v12, %v1680_v15 }
0x1c17   :  { %3553 = vtanh.f32 %v2142_v16  ;;  %v3362_v57 = vmul.f32 -1.442695, %v2142_v16  ;;  %v3361_v58 = vmul.f32 -1.442695, %v2141_v59 }
0x1c18   :  { %3555 = vtanh.f32 %v2141_v59 }
0x1c19   :  { %3557 = vpow2.f32 %v3362_v57 }
0x1c1a   :  { %3559 = vpow2.f32 %v3361_v58 }
0x1c1d   :  { %v3554_v52 = vpop.eup %3553 }
0x1c1e   :  { %2206 = vrot.lane.b32.xlu1 %v3554_v52, %s3652_s3  ;;  %v3556_v56 = vpop.eup %3555 }
0x1c1f   :  { %v3558_v24 = vpop.eup %3557 }
0x1c20   :  { %v2187_v60 = vadd.f32 1.0, %v3558_v24  ;;  %v3560_v31 = vpop.eup %3559 }
0x1c21   :  { %v2146_v61 = vadd.f32 1.0, %v3560_v31 }
0x1c22   :  { %3561 = vrcp.f32 %v2187_v60  ;;  %v2199_v2 = vand.u32 2147483648, %v2187_v60  ;;  %vm2193_vm6 = vweird.f32 %v2187_v60  ;;  %v2197_v4 = vand.u32 2147483647, %v2187_v60 }
0x1c23   :  { %3563 = vrcp.f32 %v2146_v61  ;;  %v2158_v44 = vand.u32 2147483648, %v2146_v61  ;;  %vm2152_vm13 = vweird.f32 %v2146_v61  ;;  %v2156_v46 = vand.u32 2147483647, %v2146_v61 }
0x1c24   :  { %v2200_v26 = vor.u32 1.1754944e-38, %v2199_v2  ;;  %vm2198_vm10 = vcmp.eq.f32.partialorder %v2197_v4, 8.507059e+37 }
0x1c25   :  { %v2159_v48 = vor.u32 1.1754944e-38, %v2158_v44  ;;  %vm2157_vm15 = vcmp.eq.f32.partialorder %v2156_v46, 8.507059e+37 }
0x1c26   :  { %2169 = vrot.lane.b32.xlu1 %v3556_v56, %s3652_s3 }
0x1c28   :  { %v3562_v63 = vpop.eup %3561 }
0x1c29   :  { %v2189_v14 = vmul.f32 %v3562_v63, %v2187_v60  ;;  %v3564_v0 = vpop.eup %3563  ;;  %vm2194_vm3 = vweird.f32 %v3562_v63 }
0x1c2a   :  { %v2148_v21 = vmul.f32 %v3564_v0, %v2146_v61  ;;  %vm2195_vm5 = vmor %vm2193_vm6, %vm2194_vm3  ;;  %vm2153_vm11 = vweird.f32 %v3564_v0 }
0x1c2b   :  { %v2190_v62 = vsub.f32 1.0, %v2189_v14  ;;  %vm2154_vm14 = vmor %vm2152_vm13, %vm2153_vm11  ;;  %v4881_v14 = vld [vmem:[%s5325_s1 + $0x10] sm:$0xff] }
0x1c2c   :  { %v2149_v43 = vsub.f32 1.0, %v2148_v21  ;;  %vm2222_vm2 = vcmp.gt.f32.partialorder %v4881_v14, 0.5 }
0x1c2d   :  { %v2191_v25 = vmul.f32 %v3562_v63, %v2190_v62 }
0x1c2e   :  { %v2150_v1 = vmul.f32 %v3564_v0, %v2149_v43  ;;  %v4894_v43 = vld [vmem:[%s5325_s1 + $0x28] sm:$0xff] }
0x1c2f   :  { %v2192_v35 = vadd.f32 %v3562_v63, %v2191_v25  ;;  %vm2224_vm7 = vcmp.gt.f32.partialorder %v4894_v43, 0.5 }
0x1c30   :  { %v2151_v33 = vadd.f32 %v3564_v0, %v2150_v1 }
0x1c31   :  { %v2196_v23 = vsel %vm2195_vm5, %v3562_v63, %v2192_v35 }
0x1c32   :  { %v2201_v30 = vsel %vm2198_vm10, %v2200_v26, %v2196_v23  ;;  %v2155_v6 = vsel %vm2154_vm14, %v3564_v0, %v2151_v33 }
0x1c33   :  { %v2160_v53 = vsel %vm2157_vm15, %v2159_v48, %v2155_v6  ;;  %v2204_v16 = vmul.f32 %v2201_v30, %v4859_v5 }
0x1c43   :  { %v2165_v52 = vpop.permute.xlu0 %2164 }
0x1c44   :  { %v2167_v56 = vmul.f32 %v2165_v52, %v2160_v53 }
0x1c90   :  { %v2207_v29 = vpop.permute.xlu1 %2206 }
0x1c91   :  { %v2209_v54 = vmul.f32 %v2207_v29, %v2201_v30 }
0x1c93   :  { %2211 = vrot.lane.b32.xlu2 %v2209_v54, %s3652_s3 }
0x1c98   :  { %v2170_v22 = vpop.permute.xlu1 %2169 }
0x1c99   :  { %v2172_v17 = vmul.f32 %v2170_v22, %v2160_v53 }
0x1c9b   :  { %2174 = vrot.lane.b32.xlu1 %v2172_v17, %s3652_s3 }
0x1ced   :  { %v2212_v12 = vpop.permute.xlu2 %2211 }
0x1cee   :  { %v2214_v15 = vadd.f32 %v2212_v12, %v2204_v16 }
0x1cf0   :  { %3565 = vtanh.f32 %v2214_v15 }
0x1cf6   :  { %v3566_v59 = vpop.eup %3565 }
0x1cf7   :  { %2217 = vrot.lane.b32.xlu2 %v3566_v59, %s3652_s3 }
0x1cff   :  { %2239 = vrot.lane.b32.xlu2 %v4836_v13, %s3653_s30 }
0x1d07   :  { %2244 = vrot.lane.b32.xlu2 %v2214_v15, %s3653_s30 }
0x1d0d   :  { %v2175_v57 = vpop.permute.xlu1 %2174 }
0x1d0e   :  { %v2177_v58 = vadd.f32 %v2175_v57, %v2167_v56 }
0x1d10   :  { %3567 = vtanh.f32 %v2177_v58  ;;  %2231 = vrot.lane.b32.xlu2 %v2177_v58, %s3653_s30 }
0x1d16   :  { %v3568_v24 = vpop.eup %3567 }
0x1d17   :  { %2180 = vrot.lane.b32.xlu0 %v3568_v24, %s3652_s3 }
0x1d51   :  { %v2218_v60 = vpop.permute.xlu2 %2217 }
0x1d52   :  { %v2220_v31 = vmul.f32 %v2218_v60, %v2201_v30 }
0x1d54   :  { %2236 = vrot.lane.b32.xlu1 %v2220_v31, %s3654_s2 }
0x1d59   :  { %v2240_v61 = vpop.permute.xlu2 %2239 }
0x1d61   :  { %v2245_v63 = vpop.permute.xlu2 %2244 }
0x1d6a   :  { %v2232_v62 = vpop.permute.xlu2 %2231 }
0x1d6b   :  { %v2234_v0 = vsel %vm2222_vm2, %v2232_v62, %v4859_v5 }
0x1d6c   :  { %2257 = vst.msk [vmem:[#allocation5] sm:$0xff] %vm91_vm0, %v2234_v0 }
0x1d89   :  { %v2181_v21 = vpop.permute.xlu0 %2180 }
0x1d8a   :  { %v2183_v25 = vmul.f32 %v2181_v21, %v2160_v53 }
0x1d8c   :  { %2226 = vrot.lane.b32.xlu0 %v2183_v25, %s3654_s2 }
0x1d94   :  { %2247 = vrot.lane.b32.xlu0 %v4859_v5, %s3653_s30 }
0x1dc6   :  { %v2237_v35 = vpop.permute.xlu1 %2236 }
0x1dc7   :  { %v2242_v2 = vsel %vm2224_vm7, %v2237_v35, %v2240_v61 }
0x1dc8   :  { %2253 = vrot.lane.b32.xlu1 %v2242_v2, %s3652_s3 }
0x1dfe   :  { %v2227_v4 = vpop.permute.xlu0 %2226 }
0x1dff   :  { %v2229_v1 = vsel %vm2222_vm2, %v2227_v4, %v4836_v13 }
0x1e00   :  { %2251 = vst.msk [vmem:[#allocation4] sm:$0xff] %vm91_vm0, %v2229_v1 }
0x1e06   :  { %v2248_v5 = vpop.permute.xlu0 %2247 }
0x1e07   :  { %v2250_v23 = vsel %vm2224_vm7, %v2245_v63, %v2248_v5 }
0x1e08   :  { %2259 = vrot.lane.b32.xlu0 %v2250_v23, %s3652_s3 }
0x1e3a   :  { %v2254_v26 = vpop.permute.xlu1 %2253 }
0x1e3b   :  { %2256 = vst.msk [vmem:[#allocation4] sm:$0xff] %vm379_vm12, %v2254_v26  ;;  %v4953_v26 = vld [vmem:[%s5325_s1 + $0x18] sm:$0xff] }
0x1e3c   :  { %vm2391_vm13 = vcmp.gt.f32.partialorder %v4953_v26, 0.5 }
0x1e42   :  { %v4908_v29 = vld [vmem:[#allocation4] sm:$0xff] }
0x1e43   :  { %3363 = vmatmul.msk.f32.vlgmr.msrb.gmra.mxu2 %vm214_vm1, %v4908_v29  ;;  %3364 = vmatmul.msk.f32.vlgmr.msrb.gmra.mxu3 %vm214_vm1, %v4908_v29 }
0x1e44   :  { %2954 = vmatpush.msrb.mxu2 %v4500_v51  ;;  %2974 = vmatpush.msrb.mxu3 %v4570_v10 }
0x1e46   :  { %2955 = vmatpush.msrb.mxu2 %v4505_v55  ;;  %2975 = vmatpush.msrb.mxu3 %v4576_v11 }
0x1e48   :  { %2956 = vmatpush.msrb.mxu2 %v4518_v36  ;;  %2976 = vmatpush.msrb.mxu3 %v4589_v18 }
0x1e4a   :  { %2957 = vmatpush.msrb.mxu2 %v4525_v37  ;;  %2977 = vmatpush.msrb.mxu3 %v4597_v9 }
0x1e4c   :  { %2958 = vmatpush.msrb.mxu2 %v4531_v40  ;;  %2978 = vmatpush.msrb.mxu3 %v4606_v19 }
0x1e4e   :  { %2959 = vmatpush.msrb.mxu2 %v4537_v42  ;;  %2979 = vmatpush.msrb.mxu3 %v4615_v20  ;;  %v1683_v42 = vadd.f32 %v4725_v32, %v4733_v45 }
0x1e50   :  { %2960 = vmatpush.msrb.mxu2 %v4548_v50  ;;  %2980 = vmatpush.msrb.mxu3 %v4626_v27 }
0x1e52   :  { %2961 = vmatpush.msrb.mxu2 %v4560_v8  ;;  %2981 = vmatpush.msrb.mxu3 %v4633_v49 }
0x1e7a   :  { %v2260_v51 = vpop.permute.xlu0 %2259 }
0x1e7b   :  { %2262 = vst.msk [vmem:[#allocation5] sm:$0xff] %vm379_vm12, %v2260_v51 }
0x1e82   :  { %v4931_v55 = vld [vmem:[#allocation5] sm:$0xff] }
0x1e83   :  { %2333 = vrot.lane.b32.xlu0 %v4931_v55, %s3652_s3 }
0x1ec6   :  { %v2307_v36 = vpop.f32.mrf.mxu3  ;;  %v2287_v40 = vpop.f32.mrf.mxu2 }
0x1ec7   :  { %v2311_v37 = vadd.f32 %v2307_v36, %v4731_v28  ;;  %v2310_v50 = vadd.f32 %v2287_v40, %v1683_v42  ;;  %v4966_v42 = vld [vmem:[%s5325_s1 + $0x20] sm:$0xff] }
0x1ec8   :  { %vm2393_vm14 = vcmp.gt.f32.partialorder %v4966_v42, 0.5 }
0x1ec9   :  { %3569 = vtanh.f32 %v2311_v37  ;;  %v3366_v11 = vmul.f32 -1.442695, %v2311_v37  ;;  %v3365_v18 = vmul.f32 -1.442695, %v2310_v50 }
0x1eca   :  { %3571 = vtanh.f32 %v2310_v50 }
0x1ecb   :  { %3573 = vpow2.f32 %v3366_v11 }
0x1ecc   :  { %3575 = vpow2.f32 %v3365_v18 }
0x1ecf   :  { %v3570_v8 = vpop.eup %3569 }
0x1ed0   :  { %2375 = vrot.lane.b32.xlu1 %v3570_v8, %s3652_s3  ;;  %v3572_v10 = vpop.eup %3571 }
0x1ed1   :  { %v3574_v9 = vpop.eup %3573 }
0x1ed2   :  { %v2356_v19 = vadd.f32 1.0, %v3574_v9  ;;  %v3576_v20 = vpop.eup %3575 }
0x1ed3   :  { %v2315_v27 = vadd.f32 1.0, %v3576_v20 }
0x1ed4   :  { %3577 = vrcp.f32 %v2356_v19  ;;  %v2368_v46 = vand.u32 2147483648, %v2356_v19  ;;  %vm2362_vm9 = vweird.f32 %v2356_v19  ;;  %v2366_v6 = vand.u32 2147483647, %v2356_v19 }
0x1ed5   :  { %3579 = vrcp.f32 %v2315_v27  ;;  %v2327_v59 = vand.u32 2147483648, %v2315_v27  ;;  %vm2321_vm5 = vweird.f32 %v2315_v27  ;;  %v2325_v52 = vand.u32 2147483647, %v2315_v27 }
0x1ed6   :  { %v2369_v22 = vor.u32 1.1754944e-38, %v2368_v46  ;;  %vm2367_vm3 = vcmp.eq.f32.partialorder %v2366_v6, 8.507059e+37 }
0x1ed7   :  { %v2328_v57 = vor.u32 1.1754944e-38, %v2327_v59  ;;  %vm2326_vm11 = vcmp.eq.f32.partialorder %v2325_v52, 8.507059e+37 }
0x1ed8   :  { %2338 = vrot.lane.b32.xlu1 %v3572_v10, %s3652_s3 }
0x1eda   :  { %v3578_v49 = vpop.eup %3577 }
0x1edb   :  { %v2358_v32 = vmul.f32 %v3578_v49, %v2356_v19  ;;  %v3580_v13 = vpop.eup %3579  ;;  %vm2363_vm8 = vweird.f32 %v3578_v49 }
0x1edc   :  { %v2317_v30 = vmul.f32 %v3580_v13, %v2315_v27  ;;  %vm2364_vm4 = vmor %vm2362_vm9, %vm2363_vm8  ;;  %vm2322_vm6 = vweird.f32 %v3580_v13  ;;  %v4991_v27 = vpop.f32.mrf.mxu0 }
0x1edd   :  { %v2359_v28 = vsub.f32 1.0, %v2358_v32  ;;  %vm2323_vm10 = vmor %vm2321_vm5, %vm2322_vm6 }
0x1ede   :  { %v2318_v54 = vsub.f32 1.0, %v2317_v30 }
0x1edf   :  { %v2360_v33 = vmul.f32 %v3578_v49, %v2359_v28 }
0x1ee0   :  { %v2319_v48 = vmul.f32 %v3580_v13, %v2318_v54 }
0x1ee1   :  { %v2361_v44 = vadd.f32 %v3578_v49, %v2360_v33 }
0x1ee2   :  { %v2320_v12 = vadd.f32 %v3580_v13, %v2319_v48 }
0x1ee3   :  { %v2365_v53 = vsel %vm2364_vm4, %v3578_v49, %v2361_v44 }
0x1ee4   :  { %v2370_v16 = vsel %vm2367_vm3, %v2369_v22, %v2365_v53  ;;  %v2324_v56 = vsel %vm2323_vm10, %v3580_v13, %v2320_v12  ;;  %v1686_v13 = vadd.f32 %v4729_v41, %v4733_v45 }
0x1ee5   :  { %v2329_v58 = vsel %vm2326_vm11, %v2328_v57, %v2324_v56  ;;  %v2373_v31 = vmul.f32 %v2370_v16, %v4931_v55 }
0x1ef5   :  { %v2334_v0 = vpop.permute.xlu0 %2333 }
0x1ef6   :  { %v2336_v21 = vmul.f32 %v2334_v0, %v2329_v58 }
0x1f42   :  { %v2376_v17 = vpop.permute.xlu1 %2375 }
0x1f43   :  { %v2378_v15 = vmul.f32 %v2376_v17, %v2370_v16 }
0x1f45   :  { %2380 = vrot.lane.b32.xlu2 %v2378_v15, %s3652_s3 }
0x1f4a   :  { %v2339_v24 = vpop.permute.xlu1 %2338 }
0x1f4b   :  { %v2341_v60 = vmul.f32 %v2339_v24, %v2329_v58 }
0x1f4d   :  { %2343 = vrot.lane.b32.xlu1 %v2341_v60, %s3652_s3 }
0x1f9f   :  { %v2381_v61 = vpop.permute.xlu2 %2380 }
0x1fa0   :  { %v2383_v63 = vadd.f32 %v2381_v61, %v2373_v31 }
0x1fa2   :  { %3581 = vtanh.f32 %v2383_v63 }
0x1fa8   :  { %v3582_v62 = vpop.eup %3581 }
0x1fa9   :  { %2386 = vrot.lane.b32.xlu2 %v3582_v62, %s3652_s3 }
0x1fb1   :  { %2408 = vrot.lane.b32.xlu2 %v4908_v29, %s3653_s30 }
0x1fb9   :  { %2413 = vrot.lane.b32.xlu2 %v2383_v63, %s3653_s30 }
0x1fbf   :  { %v2344_v25 = vpop.permute.xlu1 %2343 }
0x1fc0   :  { %v2346_v35 = vadd.f32 %v2344_v25, %v2336_v21 }
0x1fc2   :  { %3583 = vtanh.f32 %v2346_v35  ;;  %2400 = vrot.lane.b32.xlu2 %v2346_v35, %s3653_s30 }
0x1fc8   :  { %v3584_v2 = vpop.eup %3583 }
0x1fc9   :  { %2349 = vrot.lane.b32.xlu0 %v3584_v2, %s3652_s3 }
0x2003   :  { %v2387_v4 = vpop.permute.xlu2 %2386 }
0x2004   :  { %v2389_v1 = vmul.f32 %v2387_v4, %v2370_v16 }
0x2006   :  { %2405 = vrot.lane.b32.xlu1 %v2389_v1, %s3654_s2 }
0x200b   :  { %v2409_v5 = vpop.permute.xlu2 %2408 }
0x2013   :  { %v2414_v23 = vpop.permute.xlu2 %2413 }
0x201c   :  { %v2401_v51 = vpop.permute.xlu2 %2400 }
0x201d   :  { %v2403_v36 = vsel %vm2391_vm13, %v2401_v51, %v4931_v55 }
0x201e   :  { %2426 = vst.msk [vmem:[#allocation5] sm:$0xff] %vm91_vm0, %v2403_v36 }
0x203b   :  { %v2350_v37 = vpop.permute.xlu0 %2349 }
0x203c   :  { %v2352_v40 = vmul.f32 %v2350_v37, %v2329_v58 }
0x203e   :  { %2395 = vrot.lane.b32.xlu0 %v2352_v40, %s3654_s2 }
0x2046   :  { %2416 = vrot.lane.b32.xlu0 %v4931_v55, %s3653_s30 }
0x2078   :  { %v2406_v50 = vpop.permute.xlu1 %2405 }
0x2079   :  { %v2411_v8 = vsel %vm2393_vm14, %v2406_v50, %v2409_v5 }
0x207a   :  { %2422 = vrot.lane.b32.xlu1 %v2411_v8, %s3652_s3 }
0x20b0   :  { %v2396_v10 = vpop.permute.xlu0 %2395 }
0x20b1   :  { %v2398_v11 = vsel %vm2391_vm13, %v2396_v10, %v4908_v29 }
0x20b2   :  { %2420 = vst.msk [vmem:[#allocation4] sm:$0xff] %vm91_vm0, %v2398_v11 }
0x20b8   :  { %v2417_v55 = vpop.permute.xlu0 %2416 }
0x20b9   :  { %v2419_v18 = vsel %vm2393_vm14, %v2414_v23, %v2417_v55 }
0x20ba   :  { %2428 = vrot.lane.b32.xlu0 %v2419_v18, %s3652_s3 }
0x20ec   :  { %v2423_v9 = vpop.permute.xlu1 %2422 }
0x20ed   :  { %2425 = vst.msk [vmem:[#allocation4] sm:$0xff] %vm379_vm12, %v2423_v9 }
0x20f4   :  { %v4980_v19 = vld [vmem:[#allocation4] sm:$0xff] }
0x20f5   :  { %3367 = vmatmul.msk.f32.vlgmr.msra.gmra.mxu0 %vm214_vm1, %v4980_v19  ;;  %3368 = vmatmul.msk.f32.vlgmr.msra.gmra.mxu1 %vm214_vm1, %v4980_v19 }
0x212c   :  { %v2429_v29 = vpop.permute.xlu0 %2428 }
0x212d   :  { %2431 = vst.msk [vmem:[#allocation5] sm:$0xff] %vm379_vm12, %v2429_v29 }
0x2134   :  { %v4987_v20 = vld [vmem:[#allocation5] sm:$0xff] }
0x2135   :  { %2502 = vrot.lane.b32.xlu0 %v4987_v20, %s3652_s3 }
0x2172   :  { %v2476_v49 = vpop.f32.mrf.mxu1  ;;  %v2456_v28 = vpop.f32.mrf.mxu0 }
0x2173   :  { %v2480_v32 = vadd.f32 %v2476_v49, %v4727_v34  ;;  %v2479_v30 = vadd.f32 %v2456_v28, %v1686_v13 }
0x2175   :  { %3585 = vtanh.f32 %v2480_v32  ;;  %v3370_v44 = vmul.f32 -1.442695, %v2480_v32  ;;  %v3369_v46 = vmul.f32 -1.442695, %v2479_v30 }
0x2176   :  { %3587 = vtanh.f32 %v2479_v30 }
0x2177   :  { %3589 = vpow2.f32 %v3370_v44 }
0x2178   :  { %3591 = vpow2.f32 %v3369_v46 }
0x217b   :  { %v3586_v33 = vpop.eup %3585 }
0x217c   :  { %2544 = vrot.lane.b32.xlu1 %v3586_v33, %s3652_s3  ;;  %v3588_v54 = vpop.eup %3587 }
0x217d   :  { %v3590_v6 = vpop.eup %3589 }
0x217e   :  { %v2525_v48 = vadd.f32 1.0, %v3590_v6  ;;  %v3592_v34 = vpop.eup %3591 }
0x217f   :  { %v2484_v53 = vadd.f32 1.0, %v3592_v34 }
0x2180   :  { %3593 = vrcp.f32 %v2525_v48  ;;  %v2537_v56 = vand.u32 2147483648, %v2525_v48  ;;  %vm2531_vm8 = vweird.f32 %v2525_v48  ;;  %v2535_v57 = vand.u32 2147483647, %v2525_v48 }
0x2181   :  { %3595 = vrcp.f32 %v2484_v53  ;;  %v2496_v0 = vand.u32 2147483648, %v2484_v53  ;;  %vm2490_vm6 = vweird.f32 %v2484_v53  ;;  %v2494_v21 = vand.u32 2147483647, %v2484_v53 }
0x2182   :  { %v2538_v60 = vor.u32 1.1754944e-38, %v2537_v56  ;;  %vm2536_vm4 = vcmp.eq.f32.partialorder %v2535_v57, 8.507059e+37 }
0x2183   :  { %v2497_v35 = vor.u32 1.1754944e-38, %v2496_v0  ;;  %vm2495_vm10 = vcmp.eq.f32.partialorder %v2494_v21, 8.507059e+37 }
0x2184   :  { %2507 = vrot.lane.b32.xlu1 %v3588_v54, %s3652_s3 }
0x2186   :  { %v3594_v22 = vpop.eup %3593 }
0x2187   :  { %v2527_v41 = vmul.f32 %v3594_v22, %v2525_v48  ;;  %v3596_v16 = vpop.eup %3595  ;;  %vm2532_vm15 = vweird.f32 %v3594_v22 }
0x2188   :  { %v2486_v12 = vmul.f32 %v3596_v16, %v2484_v53  ;;  %vm2533_vm9 = vmor %vm2531_vm8, %vm2532_vm15  ;;  %vm2491_vm3 = vweird.f32 %v3596_v16 }
0x2189   :  { %v2528_v17 = vsub.f32 1.0, %v2527_v41  ;;  %vm2492_vm5 = vmor %vm2490_vm6, %vm2491_vm3 }
0x218a   :  { %v2487_v59 = vsub.f32 1.0, %v2486_v12 }
0x218b   :  { %v2529_v15 = vmul.f32 %v3594_v22, %v2528_v17 }
0x218c   :  { %v2488_v58 = vmul.f32 %v3596_v16, %v2487_v59 }
0x218d   :  { %v2530_v52 = vadd.f32 %v3594_v22, %v2529_v15 }
0x218e   :  { %v2489_v63 = vadd.f32 %v3596_v16, %v2488_v58 }
0x218f   :  { %v2534_v24 = vsel %vm2533_vm9, %v3594_v22, %v2530_v52 }
0x2190   :  { %v2539_v61 = vsel %vm2536_vm4, %v2538_v60, %v2534_v24  ;;  %v2493_v25 = vsel %vm2492_vm5, %v3596_v16, %v2489_v63 }
0x2191   :  { %v2498_v2 = vsel %vm2495_vm10, %v2497_v35, %v2493_v25  ;;  %v2542_v5 = vmul.f32 %v2539_v61, %v4987_v20 }
0x21a7   :  { %v2503_v37 = vpop.permute.xlu0 %2502 }
0x21a8   :  { %v2505_v40 = vmul.f32 %v2503_v37, %v2498_v2 }
0x21ee   :  { %v2545_v31 = vpop.permute.xlu1 %2544 }
0x21ef   :  { %v2547_v62 = vmul.f32 %v2545_v31, %v2539_v61 }
0x21f1   :  { %2549 = vrot.lane.b32.xlu2 %v2547_v62, %s3652_s3 }
0x21f6   :  { %v2508_v4 = vpop.permute.xlu1 %2507 }
0x21f7   :  { %v2510_v1 = vmul.f32 %v2508_v4, %v2498_v2 }
0x21f9   :  { %2512 = vrot.lane.b32.xlu1 %v2510_v1, %s3652_s3 }
0x224b   :  { %v2550_v23 = vpop.permute.xlu2 %2549 }
0x224c   :  { %v2552_v51 = vadd.f32 %v2550_v23, %v2542_v5 }
0x224e   :  { %3597 = vtanh.f32 %v2552_v51 }
0x2254   :  { %v3598_v36 = vpop.eup %3597 }
0x2255   :  { %2555 = vrot.lane.b32.xlu2 %v3598_v36, %s3652_s3 }
0x225d   :  { %2577 = vrot.lane.b32.xlu2 %v4980_v19, %s3653_s30 }
0x2265   :  { %2582 = vrot.lane.b32.xlu2 %v2552_v51, %s3653_s30 }
0x226b   :  { %v2513_v50 = vpop.permute.xlu1 %2512 }
0x226c   :  { %v2515_v8 = vadd.f32 %v2513_v50, %v2505_v40 }
0x226e   :  { %3599 = vtanh.f32 %v2515_v8  ;;  %2569 = vrot.lane.b32.xlu2 %v2515_v8, %s3653_s30 }
0x2274   :  { %v3600_v10 = vpop.eup %3599 }
0x2275   :  { %2518 = vrot.lane.b32.xlu0 %v3600_v10, %s3652_s3 }
0x22af   :  { %v2556_v11 = vpop.permute.xlu2 %2555 }
0x22b0   :  { %v2558_v55 = vmul.f32 %v2556_v11, %v2539_v61 }
0x22b2   :  { %2574 = vrot.lane.b32.xlu1 %v2558_v55, %s3654_s2 }
0x22b7   :  { %v2578_v18 = vpop.permute.xlu2 %2577 }
0x22bf   :  { %v2583_v9 = vpop.permute.xlu2 %2582 }
0x22c8   :  { %v2570_v29 = vpop.permute.xlu2 %2569 }
0x22c9   :  { %v2572_v49 = vsel %vm2393_vm14, %v2570_v29, %v4987_v20 }
0x22ca   :  { %2595 = vst.msk [vmem:[#allocation5] sm:$0xff] %vm91_vm0, %v2572_v49 }
0x22e7   :  { %v2519_v32 = vpop.permute.xlu0 %2518 }
0x22e8   :  { %v2521_v28 = vmul.f32 %v2519_v32, %v2498_v2 }
0x22ea   :  { %2564 = vrot.lane.b32.xlu0 %v2521_v28, %s3654_s2 }
0x22f2   :  { %2585 = vrot.lane.b32.xlu0 %v4987_v20, %s3653_s30 }
0x2324   :  { %v2575_v13 = vpop.permute.xlu1 %2574 }
0x2325   :  { %v2580_v30 = vsel %vm2391_vm13, %v2575_v13, %v2578_v18 }
0x2326   :  { %2591 = vrot.lane.b32.xlu1 %v2580_v30, %s3652_s3 }
0x235c   :  { %v2565_v33 = vpop.permute.xlu0 %2564 }
0x235d   :  { %v2567_v54 = vsel %vm2393_vm14, %v2565_v33, %v4980_v19 }
0x235e   :  { %2589 = vst.msk [vmem:[#allocation4] sm:$0xff] %vm91_vm0, %v2567_v54 }
0x2364   :  { %v2586_v44 = vpop.permute.xlu0 %2585 }
0x2365   :  { %v2588_v46 = vsel %vm2391_vm13, %v2583_v9, %v2586_v44 }
0x2366   :  { %2597 = vrot.lane.b32.xlu0 %v2588_v46, %s3652_s3 }
0x2398   :  { %v2592_v20 = vpop.permute.xlu1 %2591 }
0x2399   :  { %2594 = vst.msk [vmem:[#allocation4] sm:$0xff] %vm379_vm12, %v2592_v20 }
0x23a0   :  { %v5026_v6 = vld [vmem:[#allocation4] sm:$0xff] }
0x23a1   :  { %3371 = vmatmul.msk.f32.vlgmr.msra.gmra.mxu2 %vm214_vm1, %v5026_v6  ;;  %3372 = vmatmul.msk.f32.vlgmr.msra.gmra.mxu3 %vm214_vm1, %v5026_v6 }
0x23d8   :  { %v2598_v42 = vpop.permute.xlu0 %2597 }
0x23d9   :  { %2600 = vst.msk [vmem:[#allocation5] sm:$0xff] %vm379_vm12, %v2598_v42 }
0x23e0   :  { %v5033_v19 = vld [vmem:[#allocation5] sm:$0xff] }
0x23e1   :  { %2671 = vrot.lane.b32.xlu0 %v5033_v19, %s3652_s3 }
0x2424   :  { %v2645_v26 = vpop.f32.mrf.mxu3  ;;  %v2625_v34 = vpop.f32.mrf.mxu2 }
0x2425   :  { %v2649_v48 = vadd.f32 %v2645_v26, %v4723_v7  ;;  %v2648_v53 = vadd.f32 %v2625_v34, %v4736_v39 }
0x2427   :  { %3601 = vtanh.f32 %v2649_v48  ;;  %v3374_v17 = vmul.f32 -1.442695, %v2649_v48  ;;  %v3373_v16 = vmul.f32 -1.442695, %v2648_v53 }
0x2428   :  { %3603 = vtanh.f32 %v2648_v53 }
0x2429   :  { %3605 = vpow2.f32 %v3374_v17 }
0x242a   :  { %3607 = vpow2.f32 %v3373_v16 }
0x242d   :  { %v3602_v22 = vpop.eup %3601 }
0x242e   :  { %2713 = vrot.lane.b32.xlu1 %v3602_v22, %s3652_s3  ;;  %v3604_v41 = vpop.eup %3603 }
0x242f   :  { %v3606_v12 = vpop.eup %3605 }
0x2430   :  { %v2694_v15 = vadd.f32 1.0, %v3606_v12  ;;  %v3608_v59 = vpop.eup %3607 }
0x2431   :  { %v2653_v7 = vadd.f32 1.0, %v3608_v59 }
0x2432   :  { %3609 = vrcp.f32 %v2694_v15  ;;  %v2706_v61 = vand.u32 2147483648, %v2694_v15  ;;  %vm2700_vm13 = vweird.f32 %v2694_v15  ;;  %v2704_v63 = vand.u32 2147483647, %v2694_v15 }
0x2433   :  { %3611 = vrcp.f32 %v2653_v7  ;;  %v2665_v1 = vand.u32 2147483648, %v2653_v7  ;;  %vm2659_vm9 = vweird.f32 %v2653_v7  ;;  %v2663_v5 = vand.u32 2147483647, %v2653_v7 }
0x2434   :  { %v2707_v21 = vor.u32 1.1754944e-38, %v2706_v61  ;;  %vm2705_vm15 = vcmp.eq.f32.partialorder %v2704_v63, 8.507059e+37 }
0x2435   :  { %v2666_v51 = vor.u32 1.1754944e-38, %v2665_v1  ;;  %vm2664_vm3 = vcmp.eq.f32.partialorder %v2663_v5, 8.507059e+37 }
0x2436   :  { %2676 = vrot.lane.b32.xlu1 %v3604_v41, %s3652_s3 }
0x2438   :  { %v3610_v52 = vpop.eup %3609 }
0x2439   :  { %v2696_v56 = vmul.f32 %v3610_v52, %v2694_v15  ;;  %v3612_v57 = vpop.eup %3611  ;;  %vm2701_vm11 = vweird.f32 %v3610_v52 }
0x243a   :  { %v2655_v58 = vmul.f32 %v3612_v57, %v2653_v7  ;;  %vm2702_vm14 = vmor %vm2700_vm13, %vm2701_vm11  ;;  %vm2660_vm8 = vweird.f32 %v3612_v57 }
0x243b   :  { %v2697_v39 = vsub.f32 1.0, %v2696_v56  ;;  %vm2661_vm4 = vmor %vm2659_vm9, %vm2660_vm8 }
0x243c   :  { %v2656_v60 = vsub.f32 1.0, %v2655_v58 }
0x243d   :  { %v2698_v24 = vmul.f32 %v3610_v52, %v2697_v39 }
0x243e   :  { %v2657_v62 = vmul.f32 %v3612_v57, %v2656_v60 }
0x243f   :  { %v2699_v31 = vadd.f32 %v3610_v52, %v2698_v24 }
0x2440   :  { %v2658_v2 = vadd.f32 %v3612_v57, %v2657_v62 }
0x2441   :  { %v2703_v0 = vsel %vm2702_vm14, %v3610_v52, %v2699_v31 }
0x2442   :  { %v2708_v35 = vsel %vm2705_vm15, %v2707_v21, %v2703_v0  ;;  %v2662_v23 = vsel %vm2661_vm4, %v3612_v57, %v2658_v2 }
0x2443   :  { %v2667_v36 = vsel %vm2664_vm3, %v2666_v51, %v2662_v23  ;;  %v2711_v50 = vmul.f32 %v2708_v35, %v5033_v19 }
0x2453   :  { %v2672_v55 = vpop.permute.xlu0 %2671 }
0x2454   :  { %v2674_v18 = vmul.f32 %v2672_v55, %v2667_v36 }
0x24a0   :  { %v2714_v25 = vpop.permute.xlu1 %2713 }
0x24a1   :  { %v2716_v4 = vmul.f32 %v2714_v25, %v2708_v35 }
0x24a3   :  { %2718 = vrot.lane.b32.xlu2 %v2716_v4, %s3652_s3 }
0x24a8   :  { %v2677_v37 = vpop.permute.xlu1 %2676 }
0x24a9   :  { %v2679_v40 = vmul.f32 %v2677_v37, %v2667_v36 }
0x24ab   :  { %2681 = vrot.lane.b32.xlu1 %v2679_v40, %s3652_s3 }
0x24fd   :  { %v2719_v8 = vpop.permute.xlu2 %2718 }
0x24fe   :  { %v2721_v10 = vadd.f32 %v2719_v8, %v2711_v50 }
0x2500   :  { %3613 = vtanh.f32 %v2721_v10 }
0x2506   :  { %v3614_v11 = vpop.eup %3613 }
0x2507   :  { %2724 = vrot.lane.b32.xlu2 %v3614_v11, %s3652_s3 }
0x250f   :  { %2746 = vrot.lane.b32.xlu2 %v5026_v6, %s3653_s30 }
0x2517   :  { %2751 = vrot.lane.b32.xlu2 %v2721_v10, %s3653_s30 }
0x251d   :  { %v2682_v9 = vpop.permute.xlu1 %2681 }
0x251e   :  { %v2684_v29 = vadd.f32 %v2682_v9, %v2674_v18 }
0x2520   :  { %3615 = vtanh.f32 %v2684_v29  ;;  %2738 = vrot.lane.b32.xlu2 %v2684_v29, %s3653_s30 }
0x2526   :  { %v3616_v49 = vpop.eup %3615 }
0x2527   :  { %2687 = vrot.lane.b32.xlu0 %v3616_v49, %s3652_s3 }
0x2561   :  { %v2725_v32 = vpop.permute.xlu2 %2724 }
0x2562   :  { %v2727_v28 = vmul.f32 %v2725_v32, %v2708_v35 }
0x2564   :  { %2743 = vrot.lane.b32.xlu1 %v2727_v28, %s3654_s2 }
0x2569   :  { %v2747_v13 = vpop.permute.xlu2 %2746 }
0x2571   :  { %v2752_v30 = vpop.permute.xlu2 %2751 }
0x257a   :  { %v2739_v33 = vpop.permute.xlu2 %2738 }
0x257b   :  { %v2741_v54 = vsel %vm2224_vm7, %v2739_v33, %v5033_v19 }
0x257c   :  { %2764 = vst.msk [vmem:[#allocation5] sm:$0xff] %vm91_vm0, %v2741_v54 }
0x2599   :  { %v2688_v44 = vpop.permute.xlu0 %2687 }
0x259a   :  { %v2690_v46 = vmul.f32 %v2688_v44, %v2667_v36  ;;  %v2897_v44 = vld [vmem:[%s5325_s1 + $0x30] sm:$0xff] }
0x259b   :  { %vm2898_vm15 = vcmp.gt.f32.partialorder %v2897_v44, 0.5 }
0x259c   :  { %2733 = vrot.lane.b32.xlu0 %v2690_v46, %s3654_s2 }
0x25a4   :  { %2754 = vrot.lane.b32.xlu0 %v5033_v19, %s3653_s30 }
0x25d6   :  { %v2744_v20 = vpop.permute.xlu1 %2743 }
0x25d7   :  { %v2749_v42 = vsel %vm2222_vm2, %v2744_v20, %v2747_v13 }
0x25d8   :  { %2760 = vrot.lane.b32.xlu1 %v2749_v42, %s3652_s3 }
0x260e   :  { %v2734_v26 = vpop.permute.xlu0 %2733 }
0x260f   :  { %v2736_v48 = vsel %vm2224_vm7, %v2734_v26, %v5026_v6 }
0x2610   :  { %2758 = vst.msk [vmem:[#allocation4] sm:$0xff] %vm91_vm0, %v2736_v48  ;;  %v2899_v48 = vld [vmem:[%s5325_s1 + $0x8] sm:$0xff] }
0x2611   :  { %vm2900_vm8 = vcmp.gt.f32.partialorder %v2899_v48, 0.5 }
0x2616   :  { %v2755_v34 = vpop.permute.xlu0 %2754 }
0x2617   :  { %v2757_v53 = vsel %vm2222_vm2, %v2752_v30, %v2755_v34 }
0x2618   :  { %2766 = vrot.lane.b32.xlu0 %v2757_v53, %s3652_s3 }
0x264a   :  { %v2761_v19 = vpop.permute.xlu1 %2760 }
0x264b   :  { %2763 = vst.msk [vmem:[#allocation4] sm:$0xff] %vm379_vm12, %v2761_v19 }
0x2652   :  { %v5069_v22 = vld [vmem:[#allocation4] sm:$0xff] }
0x2653   :  { %3375 = vmatmul.msk.f32.vlgmr.msrb.gmra.mxu0 %vm214_vm1, %v5069_v22  ;;  %3376 = vmatmul.msk.f32.vlgmr.msrb.gmra.mxu1 %vm214_vm1, %v5069_v22 }
0x268a   :  { %v2767_v43 = vpop.permute.xlu0 %2766 }
0x268b   :  { %2769 = vst.msk [vmem:[#allocation5] sm:$0xff] %vm379_vm12, %v2767_v43 }
0x2692   :  { %v5076_v6 = vld [vmem:[#allocation5] sm:$0xff] }
0x2693   :  { %2840 = vrot.lane.b32.xlu0 %v5076_v6, %s3652_s3 }
0x26d0   :  { %v2814_v14 = vpop.f32.mrf.mxu1  ;;  %v2794_v17 = vpop.f32.mrf.mxu0 }
0x26d1   :  { %v2818_v41 = vadd.f32 %v2814_v14, %v4719_v38  ;;  %v2817_v16 = vadd.f32 %v2794_v17, %v4741_v47 }
0x26d3   :  { %3617 = vtanh.f32 %v2818_v41  ;;  %v3378_v59 = vmul.f32 -1.442695, %v2818_v41  ;;  %v3377_v7 = vmul.f32 -1.442695, %v2817_v16 }
0x26d4   :  { %3619 = vtanh.f32 %v2817_v16 }
0x26d5   :  { %3621 = vpow2.f32 %v3378_v59 }
0x26d6   :  { %3623 = vpow2.f32 %v3377_v7  ;;  %v1695_v7 = vadd.f32 %v4991_v27, %v4733_v45 }
0x26d9   :  { %v3618_v12 = vpop.eup %3617 }
0x26da   :  { %2882 = vrot.lane.b32.xlu1 %v3618_v12, %s3652_s3  ;;  %v3620_v15 = vpop.eup %3619 }
0x26db   :  { %v3622_v52 = vpop.eup %3621 }
0x26dc   :  { %v2863_v56 = vadd.f32 1.0, %v3622_v52  ;;  %v3624_v39 = vpop.eup %3623 }
0x26dd   :  { %v2822_v38 = vadd.f32 1.0, %v3624_v39 }
0x26de   :  { %3625 = vrcp.f32 %v2863_v56  ;;  %v2875_v62 = vand.u32 2147483648, %v2863_v56  ;;  %vm2869_vm7 = vweird.f32 %v2863_v56  ;;  %v2873_v0 = vand.u32 2147483647, %v2863_v56 }
0x26df   :  { %3627 = vrcp.f32 %v2822_v38  ;;  %v2834_v23 = vand.u32 2147483648, %v2822_v38  ;;  %vm2828_vm11 = vweird.f32 %v2822_v38  ;;  %v2832_v51 = vand.u32 2147483647, %v2822_v38 }
0x26e0   :  { %v2876_v35 = vor.u32 1.1754944e-38, %v2875_v62  ;;  %vm2874_vm5 = vcmp.eq.f32.partialorder %v2873_v0, 8.507059e+37 }
0x26e1   :  { %v2835_v37 = vor.u32 1.1754944e-38, %v2834_v23  ;;  %vm2833_vm14 = vcmp.eq.f32.partialorder %v2832_v51, 8.507059e+37 }
0x26e2   :  { %2845 = vrot.lane.b32.xlu1 %v3620_v15, %s3652_s3 }
0x26e4   :  { %v3626_v57 = vpop.eup %3625 }
0x26e5   :  { %v2865_v58 = vmul.f32 %v3626_v57, %v2863_v56  ;;  %v3628_v24 = vpop.eup %3627  ;;  %vm2870_vm2 = vweird.f32 %v3626_v57 }
0x26e6   :  { %v2824_v60 = vmul.f32 %v3628_v24, %v2822_v38  ;;  %vm2871_vm6 = vmor %vm2869_vm7, %vm2870_vm2  ;;  %vm2829_vm10 = vweird.f32 %v3628_v24 }
0x26e7   :  { %v2866_v47 = vsub.f32 1.0, %v2865_v58  ;;  %vm2830_vm13 = vmor %vm2828_vm11, %vm2829_vm10 }
0x26e8   :  { %v2825_v61 = vsub.f32 1.0, %v2824_v60 }
0x26e9   :  { %v2867_v31 = vmul.f32 %v3626_v57, %v2866_v47 }
0x26ea   :  { %v2826_v21 = vmul.f32 %v3628_v24, %v2825_v61 }
0x26eb   :  { %v2868_v63 = vadd.f32 %v3626_v57, %v2867_v31 }
0x26ec   :  { %v2827_v1 = vadd.f32 %v3628_v24, %v2826_v21 }
0x26ed   :  { %v2872_v25 = vsel %vm2871_vm6, %v3626_v57, %v2868_v63 }
0x26ee   :  { %v2877_v4 = vsel %vm2874_vm5, %v2876_v35, %v2872_v25  ;;  %v2831_v36 = vsel %vm2830_vm13, %v3628_v24, %v2827_v1 }
0x26ef   :  { %v2836_v40 = vsel %vm2833_vm14, %v2835_v37, %v2831_v36  ;;  %v2880_v10 = vmul.f32 %v2877_v4, %v5076_v6  ;;  %vm3130_vm14 = vcmask 785408  }
0x2705   :  { %v2841_v9 = vpop.permute.xlu0 %2840 }
0x2706   :  { %v2843_v29 = vmul.f32 %v2841_v9, %v2836_v40 }
0x274c   :  { %v2883_v2 = vpop.permute.xlu1 %2882 }
0x274d   :  { %v2885_v5 = vmul.f32 %v2883_v2, %v2877_v4 }
0x274f   :  { %2887 = vrot.lane.b32.xlu2 %v2885_v5, %s3652_s3 }
0x2754   :  { %v2846_v50 = vpop.permute.xlu1 %2845 }
0x2755   :  { %v2848_v8 = vmul.f32 %v2846_v50, %v2836_v40 }
0x2757   :  { %2850 = vrot.lane.b32.xlu1 %v2848_v8, %s3652_s3 }
0x27a9   :  { %v2888_v11 = vpop.permute.xlu2 %2887 }
0x27aa   :  { %v2890_v55 = vadd.f32 %v2888_v11, %v2880_v10 }
0x27ac   :  { %3629 = vtanh.f32 %v2890_v55 }
0x27b2   :  { %v3630_v18 = vpop.eup %3629 }
0x27b3   :  { %2893 = vrot.lane.b32.xlu2 %v3630_v18, %s3652_s3 }
0x27bb   :  { %2915 = vrot.lane.b32.xlu2 %v5069_v22, %s3653_s30 }
0x27c3   :  { %2920 = vrot.lane.b32.xlu2 %v2890_v55, %s3653_s30 }
0x27c9   :  { %v2851_v49 = vpop.permute.xlu1 %2850 }
0x27ca   :  { %v2853_v32 = vadd.f32 %v2851_v49, %v2843_v29 }
0x27cc   :  { %3631 = vtanh.f32 %v2853_v32  ;;  %2907 = vrot.lane.b32.xlu2 %v2853_v32, %s3653_s30 }
0x27d2   :  { %v3632_v28 = vpop.eup %3631 }
0x27d3   :  { %2856 = vrot.lane.b32.xlu0 %v3632_v28, %s3652_s3 }
0x280d   :  { %v2894_v13 = vpop.permute.xlu2 %2893 }
0x280e   :  { %v2896_v30 = vmul.f32 %v2894_v13, %v2877_v4 }
0x2810   :  { %2912 = vrot.lane.b32.xlu1 %v2896_v30, %s3654_s2 }
0x2815   :  { %v2916_v33 = vpop.permute.xlu2 %2915 }
0x281d   :  { %v2921_v54 = vpop.permute.xlu2 %2920 }
0x2826   :  { %v2908_v46 = vpop.permute.xlu2 %2907 }
0x2827   :  { %v2910_v20 = vsel %vm2898_vm15, %v2908_v46, %v5076_v6 }
0x2828   :  { %2933 = vst.msk [vmem:[#allocation5] sm:$0xff] %vm91_vm0, %v2910_v20  ;;  %v5138_v20 = vld [vmem:[%s5325_s1] sm:$0xff] }
0x2829   :  { %vm3069_vm11 = vcmp.gt.f32.partialorder %v5138_v20, 0.5 }
0x2845   :  { %v2857_v42 = vpop.permute.xlu0 %2856 }
0x2846   :  { %v2859_v26 = vmul.f32 %v2857_v42, %v2836_v40 }
0x2848   :  { %2902 = vrot.lane.b32.xlu0 %v2859_v26, %s3654_s2 }
0x2850   :  { %2923 = vrot.lane.b32.xlu0 %v5076_v6, %s3653_s30 }
0x2882   :  { %v2913_v34 = vpop.permute.xlu1 %2912 }
0x2883   :  { %v2918_v53 = vsel %vm2900_vm8, %v2913_v34, %v2916_v33  ;;  %v5147_v34 = vld [vmem:[%s5325_s1 + $0x38] sm:$0xff] }
0x2884   :  { %2929 = vrot.lane.b32.xlu1 %v2918_v53, %s3652_s3  ;;  %vm3067_vm13 = vcmp.gt.f32.partialorder %v5147_v34, 0.5  ;;  %v3214_v34 = vld [vmem:[%s5333_s12] sm:$0xff] }
0x28ba   :  { %v2903_v19 = vpop.permute.xlu0 %2902 }
0x28bb   :  { %v2905_v43 = vsel %vm2898_vm15, %v2903_v19, %v5069_v22 }
0x28bc   :  { %2927 = vst.msk [vmem:[#allocation4] sm:$0xff] %vm91_vm0, %v2905_v43 }
0x28c2   :  { %v2924_v14 = vpop.permute.xlu0 %2923 }
0x28c3   :  { %v2926_v41 = vsel %vm2900_vm8, %v2921_v54, %v2924_v14 }
0x28c4   :  { %2935 = vrot.lane.b32.xlu0 %v2926_v41, %s3652_s3 }
0x28f6   :  { %v2930_v17 = vpop.permute.xlu1 %2929 }
0x28f7   :  { %2932 = vst.msk [vmem:[#allocation4] sm:$0xff] %vm379_vm12, %v2930_v17 }
0x28fe   :  { %v5110_v6 = vld [vmem:[#allocation4] sm:$0xff] }
0x28ff   :  { %3379 = vmatmul.msk.f32.vlgmr.msrb.gmra.mxu2 %vm214_vm1, %v5110_v6  ;;  %3380 = vmatmul.msk.f32.vlgmr.msrb.gmra.mxu3 %vm214_vm1, %v5110_v6 }
0x2936   :  { %v2936_v16 = vpop.permute.xlu0 %2935 }
0x2937   :  { %2938 = vst.msk [vmem:[#allocation5] sm:$0xff] %vm379_vm12, %v2936_v16 }
0x293e   :  { %v5117_v22 = vld [vmem:[#allocation5] sm:$0xff] }
0x293f   :  { %3009 = vrot.lane.b32.xlu0 %v5117_v22, %s3652_s3 }
0x2982   :  { %v2983_v12 = vpop.f32.mrf.mxu3  ;;  %v2963_v59 = vpop.f32.mrf.mxu2 }
0x2983   :  { %v2987_v15 = vadd.f32 %v2983_v12, %v4715_v3  ;;  %v2986_v52 = vadd.f32 %v2963_v59, %v1695_v7  ;;  %v3145_v59 = vld [vmem:[%s5329_s8 + $0x68] sm:$0xff]  ;;  %v3144_v7 = vld [vmem:[%s5329_s8 + $0x60] sm:$0xff] }
0x2985   :  { %3633 = vtanh.f32 %v2987_v15  ;;  %v3382_v38 = vmul.f32 -1.442695, %v2987_v15  ;;  %v3381_v57 = vmul.f32 -1.442695, %v2986_v52  ;;  %v3146_v15 = vld [vmem:[%s5329_s8 + $0x70] sm:$0xff] }
0x2986   :  { %3635 = vtanh.f32 %v2986_v52  ;;  %v3143_v52 = vld [vmem:[%s5329_s8 + $0x58] sm:$0xff] }
0x2987   :  { %3637 = vpow2.f32 %v3382_v38  ;;  %v3140_v38 = vld [vmem:[%s5329_s8 + $0x40] sm:$0xff] }
0x2988   :  { %3639 = vpow2.f32 %v3381_v57  ;;  %v3139_v57 = vld [vmem:[%s5329_s8 + $0x38] sm:$0xff] }
0x298b   :  { %v3634_v56 = vpop.eup %3633 }
0x298c   :  { %3051 = vrot.lane.b32.xlu1 %v3634_v56, %s3652_s3  ;;  %v3636_v39 = vpop.eup %3635  ;;  %v3142_v56 = vld [vmem:[%s5329_s8 + $0x50] sm:$0xff] }
0x298d   :  { %v3638_v58 = vpop.eup %3637 }
0x298e   :  { %v3032_v47 = vadd.f32 1.0, %v3638_v58  ;;  %v3640_v3 = vpop.eup %3639  ;;  %v3138_v58 = vld [vmem:[%s5329_s8 + $0x30] sm:$0xff] }
0x298f   :  { %v2991_v24 = vadd.f32 1.0, %v3640_v3  ;;  %v3136_v3 = vld [vmem:[%s5329_s8 + $0x20] sm:$0xff] }
0x2990   :  { %3641 = vrcp.f32 %v3032_v47  ;;  %v3044_v21 = vand.u32 2147483648, %v3032_v47  ;;  %vm3038_vm4 = vweird.f32 %v3032_v47  ;;  %v3042_v25 = vand.u32 2147483647, %v3032_v47 }
0x2991   :  { %3643 = vrcp.f32 %v2991_v24  ;;  %v3003_v36 = vand.u32 2147483648, %v2991_v24  ;;  %vm2997_vm6 = vweird.f32 %v2991_v24  ;;  %v3001_v37 = vand.u32 2147483647, %v2991_v24 }
0x2992   :  { %v3045_v4 = vor.u32 1.1754944e-38, %v3044_v21  ;;  %vm3043_vm2 = vcmp.eq.f32.partialorder %v3042_v25, 8.507059e+37 }
0x2993   :  { %v3004_v50 = vor.u32 1.1754944e-38, %v3003_v36  ;;  %vm3002_vm10 = vcmp.eq.f32.partialorder %v3001_v37, 8.507059e+37  ;;  %v3184_v36 = vld [vmem:[%s5332_s10 + $0x58] sm:$0xff]  ;;  %v3183_v37 = vld [vmem:[%s5332_s10 + $0x50] sm:$0xff] }
0x2994   :  { %3014 = vrot.lane.b32.xlu1 %v3636_v39, %s3652_s3  ;;  %v3141_v39 = vld [vmem:[%s5329_s8 + $0x48] sm:$0xff] }
0x2996   :  { %v3642_v60 = vpop.eup %3641 }
0x2997   :  { %v3034_v45 = vmul.f32 %v3642_v60, %v3032_v47  ;;  %v3644_v31 = vpop.eup %3643  ;;  %vm3039_vm9 = vweird.f32 %v3642_v60  ;;  %v3137_v47 = vld [vmem:[%s5329_s8 + $0x28] sm:$0xff] }
0x2998   :  { %v2993_v61 = vmul.f32 %v3644_v31, %v2991_v24  ;;  %vm3040_vm3 = vmor %vm3038_vm4, %vm3039_vm9  ;;  %vm2998_vm7 = vweird.f32 %v3644_v31  ;;  %v3135_v24 = vld [vmem:[%s5329_s8 + $0x18] sm:$0xff] }
0x2999   :  { %v3035_v27 = vsub.f32 1.0, %v3034_v45  ;;  %vm2999_vm5 = vmor %vm2997_vm6, %vm2998_vm7  ;;  %v3133_v45 = vld [vmem:[%s5329_s8 + $0x8] sm:$0xff] }
0x299a   :  { %v2994_v62 = vsub.f32 1.0, %v2993_v61 }
0x299b   :  { %v3036_v63 = vmul.f32 %v3642_v60, %v3035_v27  ;;  %v3132_v27 = vld [vmem:[%s5329_s8] sm:$0xff] }
0x299c   :  { %v2995_v35 = vmul.f32 %v3644_v31, %v2994_v62 }
0x299d   :  { %v3037_v0 = vadd.f32 %v3642_v60, %v3036_v63 }
0x299e   :  { %v2996_v23 = vadd.f32 %v3644_v31, %v2995_v35 }
0x299f   :  { %v3041_v2 = vsel %vm3040_vm3, %v3642_v60, %v3037_v0  ;;  %v3134_v60 = vld [vmem:[%s5329_s8 + $0x10] sm:$0xff] }
0x29a0   :  { %v3046_v5 = vsel %vm3043_vm2, %v3045_v4, %v3041_v2  ;;  %v3000_v40 = vsel %vm2999_vm5, %v3644_v31, %v2996_v23  ;;  %v3187_v23 = vld [vmem:[%s5332_s10 + $0x70] sm:$0xff] }
0x29a1   :  { %v3005_v8 = vsel %vm3002_vm10, %v3004_v50, %v3000_v40  ;;  %v3049_v55 = vmul.f32 %v3046_v5, %v5117_v22  ;;  %v3182_v40 = vld [vmem:[%s5332_s10 + $0x48] sm:$0xff]  ;;  %v3181_v50 = vld [vmem:[%s5332_s10 + $0x40] sm:$0xff] }
0x29b1   :  { %v3010_v49 = vpop.permute.xlu0 %3009 }
0x29b2   :  { %v3012_v32 = vmul.f32 %v3010_v49, %v3005_v8  ;;  %v3173_v49 = vld [vmem:[%s5332_s10] sm:$0xff] }
0x29fe   :  { %v3052_v1 = vpop.permute.xlu1 %3051 }
0x29ff   :  { %v3054_v51 = vmul.f32 %v3052_v1, %v3046_v5 }
0x2a01   :  { %3056 = vrot.lane.b32.xlu2 %v3054_v51, %s3652_s3  ;;  %v3185_v51 = vld [vmem:[%s5332_s10 + $0x60] sm:$0xff] }
0x2a06   :  { %v3015_v10 = vpop.permute.xlu1 %3014 }
0x2a07   :  { %v3017_v11 = vmul.f32 %v3015_v10, %v3005_v8  ;;  %v3179_v10 = vld [vmem:[%s5332_s10 + $0x30] sm:$0xff] }
0x2a09   :  { %3019 = vrot.lane.b32.xlu1 %v3017_v11, %s3652_s3  ;;  %v3178_v11 = vld [vmem:[%s5332_s10 + $0x28] sm:$0xff] }
0x2a5b   :  { %v3057_v18 = vpop.permute.xlu2 %3056 }
0x2a5c   :  { %v3059_v9 = vadd.f32 %v3057_v18, %v3049_v55  ;;  %v3177_v55 = vld [vmem:[%s5332_s10 + $0x20] sm:$0xff]  ;;  %v3176_v18 = vld [vmem:[%s5332_s10 + $0x18] sm:$0xff] }
0x2a5e   :  { %3645 = vtanh.f32 %v3059_v9 }
0x2a64   :  { %v3646_v29 = vpop.eup %3645 }
0x2a65   :  { %3062 = vrot.lane.b32.xlu2 %v3646_v29, %s3652_s3  ;;  %v3174_v29 = vld [vmem:[%s5332_s10 + $0x8] sm:$0xff] }
0x2a6d   :  { %3084 = vrot.lane.b32.xlu2 %v5110_v6, %s3653_s30 }
0x2a7b   :  { %v3020_v28 = vpop.permute.xlu1 %3019 }
0x2a7c   :  { %v3022_v13 = vadd.f32 %v3020_v28, %v3012_v32  ;;  %v3221_v28 = vld [vmem:[%s5333_s12 + $0x38] sm:$0xff] }
0x2a7d   :  { %3237 = vmatpush.msra.mxu2 %v3221_v28 }
0x2a7e   :  { %3647 = vtanh.f32 %v3022_v13 }
0x2a84   :  { %v3648_v30 = vpop.eup %3647 }
0x2a85   :  { %3025 = vrot.lane.b32.xlu0 %v3648_v30, %s3652_s3  ;;  %v3219_v30 = vld [vmem:[%s5333_s12 + $0x28] sm:$0xff] }
0x2abf   :  { %v3063_v33 = vpop.permute.xlu2 %3062 }
0x2ac0   :  { %v3065_v54 = vmul.f32 %v3063_v33, %v3046_v5  ;;  %v3188_v5 = vld [vmem:[%s5332_s10 + $0x78] sm:$0xff]  ;;  %v3218_v33 = vld [vmem:[%s5333_s12 + $0x20] sm:$0xff] }
0x2ac1   :  { %3193 = vmatpush.msra.mxu1 %v3188_v5 }
0x2ac2   :  { %3081 = vrot.lane.b32.xlu1 %v3065_v54, %s3654_s2  ;;  %v3217_v54 = vld [vmem:[%s5333_s12 + $0x18] sm:$0xff] }
0x2ac3   :  { %3194 = vmatpush.msra.mxu1 %v3187_v23 }
0x2ac7   :  { %v3085_v42 = vpop.permute.xlu2 %3084 }
0x2af7   :  { %v3026_v44 = vpop.permute.xlu0 %3025 }
0x2af8   :  { %v3028_v46 = vmul.f32 %v3026_v44, %v3005_v8  ;;  %v3180_v8 = vld [vmem:[%s5332_s10 + $0x38] sm:$0xff]  ;;  %v3389_v44 = vld [vmem:[%s5330_s9] ss:$0 sm:$0xff] }
0x2afa   :  { %3071 = vrot.lane.b32.xlu0 %v3028_v46, %s3654_s2 }
0x2b34   :  { %v3082_v26 = vpop.permute.xlu1 %3081 }
0x2b35   :  { %v3087_v48 = vsel %vm3069_vm11, %v3082_v26, %v3085_v42  ;;  %v3216_v26 = vld [vmem:[%s5333_s12 + $0x10] sm:$0xff] }
0x2b36   :  { %3098 = vrot.lane.b32.xlu1 %v3087_v48, %s3652_s3  ;;  %v3215_v48 = vld [vmem:[%s5333_s12 + $0x8] sm:$0xff] }
0x2b6c   :  { %v3072_v53 = vpop.permute.xlu0 %3071 }
0x2b6d   :  { %v3074_v19 = vsel %vm3067_vm13, %v3072_v53, %v5110_v6  ;;  %v3147_v6 = vld [vmem:[%s5329_s8 + $0x78] sm:$0xff] }
0x2b6e   :  { %3096 = vst.msk [vmem:[#allocation4] sm:$0xff] %vm91_vm0, %v3074_v19  ;;  %3152 = vmatpush.msra.mxu0 %v3147_v6  ;;  %v3253_v53 = vld [vmem:[%s5335_s14 + $0x18] sm:$0xff]  ;;  %v3252_v19 = vld [vmem:[%s5335_s14 + $0x10] sm:$0xff]  ;;  %v3391_v6 = vld [vmem:[%s5334_s13] ss:$0 sm:$0xff] }
0x2b6f   :  { %3273 = vmatpush.msra.mxu3 %v3253_v53 }
0x2b70   :  { %3153 = vmatpush.msra.mxu0 %v3146_v15 }
0x2b71   :  { %3274 = vmatpush.msra.mxu3 %v3252_v19 }
0x2b72   :  { %3154 = vmatpush.msra.mxu0 %v3145_v59 }
0x2b74   :  { %3155 = vmatpush.msra.mxu0 %v3144_v7 }
0x2b76   :  { %3156 = vmatpush.msra.mxu0 %v3143_v52  ;;  %v3392_v52 = vld [vmem:[%s5336_s15] ss:$0 sm:$0xff] }
0x2b78   :  { %3157 = vmatpush.msra.mxu0 %v3142_v56 }
0x2b7a   :  { %3158 = vmatpush.msra.mxu0 %v3141_v39 }
0x2b7c   :  { %3159 = vmatpush.msra.mxu0 %v3140_v38 }
0x2b7e   :  { %3160 = vmatpush.msra.mxu0 %v3139_v57 }
0x2b80   :  { %3161 = vmatpush.msra.mxu0 %v3138_v58 }
0x2b82   :  { %3162 = vmatpush.msra.mxu0 %v3137_v47 }
0x2b84   :  { %3163 = vmatpush.msra.mxu0 %v3136_v3 }
0x2b86   :  { %3164 = vmatpush.msra.mxu0 %v3135_v24 }
0x2b88   :  { %3165 = vmatpush.msra.mxu0 %v3134_v60 }
0x2b8a   :  { %3166 = vmatpush.msra.mxu0 %v3133_v45 }
0x2b8c   :  { %3167 = vmatpush.msra.mxu0 %v3132_v27 }
0x2ba8   :  { %v3099_v43 = vpop.permute.xlu1 %3098 }
0x2ba9   :  { %3101 = vst.msk [vmem:[#allocation4] sm:$0xff] %vm379_vm12, %v3099_v43  ;;  %v3390_v43 = vld [vmem:[%s5331_s11] ss:$0 sm:$0xff] }
0x2bb0   :  { %v3108_v14 = vld [vmem:[#allocation4] sm:$0xff] }
0x2bb1   :  { %3117 = vrot.lane.b32.xlu2 %v3108_v14, %s3653_s30  ;;  %v3110_v41 = vrot.slane %v3108_v14, 2 }
0x2bb3   :  { %v3114_v17 = vsub.f32 %v3108_v14, %v3110_v41  ;;  %v3116_v16 = vmul.f32 %v3110_v41, %v3108_v14 }
0x2bb5   :  { %3125 = vrot.lane.b32.xlu1 %v3116_v16, %s3654_s2  ;;  %v3115_v12 = vand.u32 2147483647, %v3114_v17  ;;  %v3251_v16 = vld [vmem:[%s5335_s14 + $0x8] sm:$0xff] }
0x2bb6   :  { %3275 = vmatpush.msra.mxu3 %v3251_v16 }
0x2bb7   :  { %3121 = vrot.lane.b32.xlu0 %v3115_v12, %s3652_s3  ;;  %v3250_v12 = vld [vmem:[%s5335_s14] sm:$0xff] }
0x2bb8   :  { %3276 = vmatpush.msra.mxu3 %v3250_v12 }
0x2bb9   :  { %3089 = vrot.lane.b32.xlu2 %v3059_v9, %s3653_s30  ;;  %v3175_v9 = vld [vmem:[%s5332_s10 + $0x10] sm:$0xff] }
0x2bbd   :  { %3076 = vrot.lane.b32.xlu1 %v3022_v13, %s3653_s30  ;;  %v3220_v13 = vld [vmem:[%s5333_s12 + $0x30] sm:$0xff] }
0x2bbe   :  { %3238 = vmatpush.msra.mxu2 %v3220_v13 }
0x2bbf   :  { %3092 = vrot.lane.b32.xlu0 %v5117_v22, %s3653_s30 }
0x2bc0   :  { %3239 = vmatpush.msra.mxu2 %v3219_v30 }
0x2bc2   :  { %3240 = vmatpush.msra.mxu2 %v3218_v33 }
0x2bc4   :  { %3241 = vmatpush.msra.mxu2 %v3217_v54 }
0x2bc6   :  { %3242 = vmatpush.msra.mxu2 %v3216_v26 }
0x2bc8   :  { %3243 = vmatpush.msra.mxu2 %v3215_v48 }
0x2bca   :  { %3244 = vmatpush.msra.mxu2 %v3214_v34 }
0x2c0b   :  { %v3118_v31 = vpop.permute.xlu2 %3117 }
0x2c0c   :  { %v3128_v63 = vsel %vm91_vm0, %v3118_v31, %v3110_v41 }
0x2c13   :  { %v3090_v2 = vpop.permute.xlu2 %3089 }
0x2c27   :  { %v3126_v61 = vpop.permute.xlu1 %3125 }
0x2c29   :  { %v3122_v62 = vpop.permute.xlu0 %3121 }
0x2c2a   :  { %v3129_v0 = vsel %vm214_vm1, %v3128_v63, %v3122_v62 }
0x2c2b   :  { %v3131_v21 = vsel %vm3130_vm14, %v3129_v0, %v3126_v61 }
0x2c2c   :  { %3168 = vmatmul.f32.vlgmr.msra.gmra.mxu0 %v3131_v21 }
0x2c2f   :  { %v3077_v25 = vpop.permute.xlu1 %3076 }
0x2c30   :  { %v3079_v35 = vsel %vm3067_vm13, %v3077_v25, %v5117_v22  ;;  %v3186_v22 = vld [vmem:[%s5332_s10 + $0x68] sm:$0xff] }
0x2c31   :  { %3102 = vst.msk [vmem:[#allocation5] sm:$0xff] %vm91_vm0, %v3079_v35  ;;  %v3093_v4 = vpop.permute.xlu0 %3092  ;;  %3195 = vmatpush.msra.mxu1 %v3186_v22 }
0x2c32   :  { %v3095_v1 = vsel %vm3069_vm11, %v3090_v2, %v3093_v4 }
0x2c33   :  { %3104 = vrot.lane.b32.xlu2 %v3095_v1, %s3652_s3  ;;  %3196 = vmatpush.msra.mxu1 %v3185_v51 }
0x2c35   :  { %3197 = vmatpush.msra.mxu1 %v3184_v36 }
0x2c37   :  { %3198 = vmatpush.msra.mxu1 %v3183_v37 }
0x2c39   :  { %3199 = vmatpush.msra.mxu1 %v3182_v40 }
0x2c3b   :  { %3200 = vmatpush.msra.mxu1 %v3181_v50 }
0x2c3d   :  { %3201 = vmatpush.msra.mxu1 %v3180_v8 }
0x2c3f   :  { %3202 = vmatpush.msra.mxu1 %v3179_v10 }
0x2c41   :  { %3203 = vmatpush.msra.mxu1 %v3178_v11 }
0x2c43   :  { %3204 = vmatpush.msra.mxu1 %v3177_v55 }
0x2c45   :  { %3205 = vmatpush.msra.mxu1 %v3176_v18 }
0x2c47   :  { %3206 = vmatpush.msra.mxu1 %v3175_v9 }
0x2c49   :  { %3207 = vmatpush.msra.mxu1 %v3174_v29 }
0x2c4b   :  { %3208 = vmatpush.msra.mxu1 %v3173_v49 }
0x2c8d   :  { %v3105_v32 = vpop.permute.xlu2 %3104 }
0x2c8e   :  { %3107 = vst.msk [vmem:[#allocation5] sm:$0xff] %vm379_vm12, %v3105_v32 }
0x2ca9   :  { %v3169_v46 = vpop.f32.mrf.mxu0 }
0x2caa   :  { %v3170_v20 = vadd.f32 %v3389_v44, %v3169_v46 }
0x2cac   :  { %v3172_v42 = vmax.f32 %v3170_v20, 0.0 }
0x2cae   :  { %3209 = vmatmul.f32.vlgmr.msra.gmra.mxu1 %v3172_v42 }
0x2d2b   :  { %v3210_v14 = vpop.f32.mrf.mxu1 }
0x2d2c   :  { %v3211_v41 = vadd.f32 %v3390_v43, %v3210_v14 }
0x2d2e   :  { %v3213_v17 = vmax.f32 %v3211_v41, 0.0 }
0x2d30   :  { %3383 = vmatmul.msk.f32.vlgmr.msra.gmra.mxu2 %vm214_vm1, %v3213_v17  ;;  %vm3281_vm1 = vcmask 23552  }
0x2db3   :  { %v3246_v15 = vpop.f32.mrf.mxu2 }
0x2db4   :  { %v3247_v59 = vadd.f32 %v3391_v6, %v3246_v15 }
0x2db6   :  { %v3249_v7 = vmax.f32 %v3247_v59, 0.0 }
0x2db8   :  { %3384 = vmatmul.msk.f32.vlgmr.msra.gmra.mxu3 %vm91_vm0, %v3249_v7 }
0x2e3b   :  { %v3278_v56 = vpop.f32.mrf.mxu3 }
0x2e3c   :  { %v3279_v39 = vadd.f32 %v3392_v52, %v3278_v56 }
0x2e3e   :  { %3282 = vst.msk [vmem:[%s5337_s16] sm:$0xff] %vm3281_vm1, %v3279_v39 }

</bundles_post_ra>
